<compile_context>
chip_gen: v7x
topology: tpu7x:2x2x1
jax: 0.10.0
libtpu: 0.0.40
codegen_flags: <defaults>
</compile_context>

<pallas_src>
import math

import jax
import jax.numpy as jnp
from jax import lax
from jax.experimental import pallas as pl
from jax.experimental.pallas import tpu as pltpu


def _round_up(x, m):
    return ((x + m - 1) // m) * m


# ---------------------------------------------------------------------------
# Kernel factory
# ---------------------------------------------------------------------------
def _make_kernel(num_layers, T, chunk, Bp, Hs, G, packed_gates, mxu_dtype,
                 precision):
    """Fused stacked-LSTM + Linear; one grid step processes `chunk` timesteps."""

    dot_kwargs = {"preferred_element_type": jnp.float32}
    if precision is not None:
        dot_kwargs["precision"] = precision

    def kernel(*refs):
        x_ref = refs[0]                                   # (chunk, Bp, Dp)
        layer_refs = refs[1:1 + 2 * num_layers]           # (W, b) per layer
        w_refs = layer_refs[0::2]                          # (Din_p + Hc, G)
        b_refs = layer_refs[1::2]                          # (1, G)
        fcw_ref = refs[1 + 2 * num_layers]                 # (Hc, Op)
        fcb_ref = refs[2 + 2 * num_layers]                 # (1, Op)
        out_ref = refs[3 + 2 * num_layers]                 # (Bp, Op)
        h_scr = refs[4 + 2 * num_layers]                   # (L, Bp, Hc) f32
        c_scr = refs[5 + 2 * num_layers]                   # (L, Bp, Hc) f32

        c_idx = pl.program_id(0)
        n_chunks = pl.num_programs(0)

        @pl.when(c_idx == 0)
        def _init():
            h_scr[...] = jnp.zeros_like(h_scr)
            c_scr[...] = jnp.zeros_like(c_scr)

        # Hoisted out of the (unrolled) time loop: bias broadcasts + tanh mask.
        bias_bc = [jnp.broadcast_to(b_refs[l][...], (Bp, G))
                   for l in range(num_layers)]
        if packed_gates:
            lane = lax.broadcasted_iota(jnp.int32, (Bp, G), 1)
            tanh_mask = (lane >= 2 * Hs) & (lane < 3 * Hs)   # g-gate lanes

        def step(t, carry):
            hs, cs = carry
            inp = x_ref[t]                                   # (Bp, Dp), mxu dtype
            new_hs, new_cs = [], []
            for l in range(num_layers):                      # layers are static
                h_l, c_l = hs[l], cs[l]
                # One fused K=(Din_p+Hc)-deep MXU pass per layer-step:
                #   gates = [x_t | h_t] @ [W_ih ; W_hh] + b
                # Weight refs are read here (cheap vld), not hoisted as values.
                lhs = jnp.concatenate([inp, h_l.astype(mxu_dtype)], axis=1)
                pre = jnp.dot(lhs, w_refs[l][...], **dot_kwargs) + bias_bc[l]
                if packed_gates:
                    # All four gates in one 128-lane tile (gate k at k*Hs).
                    # One sigmoid + one tanh over a single vreg, then XLU
                    # rolls realign each gate onto the h/c lanes [0, Hs).
                    act = jnp.where(tanh_mask, jnp.tanh(pre),
                                    jax.nn.sigmoid(pre))
                    i_g = act
                    f_g = pltpu.roll(act, shift=G - 1 * Hs, axis=1)
                    g_g = pltpu.roll(act, shift=G - 2 * Hs, axis=1)
                    o_g = pltpu.roll(act, shift=G - 3 * Hs, axis=1)
                else:
                    # Hs is a multiple of 128 -> lane-aligned, free slices.
                    i_g = jax.nn.sigmoid(pre[:, 0 * Hs:1 * Hs])
                    f_g = jax.nn.sigmoid(pre[:, 1 * Hs:2 * Hs])
                    g_g = jnp.tanh(pre[:, 2 * Hs:3 * Hs])
                    o_g = jax.nn.sigmoid(pre[:, 3 * Hs:4 * Hs])
                c_new = f_g * c_l + i_g * g_g
                h_new = o_g * jnp.tanh(c_new)
                if T % chunk != 0:        # mask padded tail timesteps (static)
                    valid = (c_idx * chunk + t) < T
                    c_new = jnp.where(valid, c_new, c_l)
                    h_new = jnp.where(valid, h_new, h_l)
                new_hs.append(h_new)
                new_cs.append(c_new)
                inp = h_new.astype(mxu_dtype)
            return tuple(new_hs), tuple(new_cs)

        hs0 = tuple(h_scr[l] for l in range(num_layers))
        cs0 = tuple(c_scr[l] for l in range(num_layers))
        hs, cs = lax.fori_loop(0, chunk, step, (hs0, cs0),
                               unroll=min(chunk, 8))
        for l in range(num_layers):
            h_scr[l] = hs[l]
            c_scr[l] = cs[l]

        # Final Linear on the last hidden state of the top layer, fused here.
        @pl.when(c_idx == n_chunks - 1)
        def _finalize():
            out_ref[...] = (jnp.dot(hs[-1].astype(mxu_dtype), fcw_ref[...],
                                    **dot_kwargs) + fcb_ref[...])

    return kernel


# ---------------------------------------------------------------------------
# Parameter init (PyTorch LSTM/Linear default shapes) + packing into the
# padded, lane-aligned, gate-fused kernel layout.
# ---------------------------------------------------------------------------
def init_params(key, input_dim, hidden_dim, output_dim, layers):
    stdv = 1.0 / math.sqrt(hidden_dim)
    lstm = []
    d_in = input_dim
    for _ in range(layers):
        key, k1, k2, k3, k4 = jax.random.split(key, 5)
        w_ih = jax.random.uniform(k1, (4 * hidden_dim, d_in), jnp.float32, -stdv, stdv)
        w_hh = jax.random.uniform(k2, (4 * hidden_dim, hidden_dim), jnp.float32, -stdv, stdv)
        b_ih = jax.random.uniform(k3, (4 * hidden_dim,), jnp.float32, -stdv, stdv)
        b_hh = jax.random.uniform(k4, (4 * hidden_dim,), jnp.float32, -stdv, stdv)
        lstm.append((w_ih, w_hh, b_ih, b_hh))
        d_in = hidden_dim
    key, k5, k6 = jax.random.split(key, 3)
    fc_w = jax.random.uniform(k5, (output_dim, hidden_dim), jnp.float32, -stdv, stdv)
    fc_b = jax.random.uniform(k6, (output_dim,), jnp.float32, -stdv, stdv)
    return {"lstm": lstm, "fc_w": fc_w, "fc_b": fc_b}


def pack_params(params, input_dim, hidden_dim, output_dim, batch,
                mxu_dtype=jnp.float32):
    H, O = hidden_dim, output_dim
    Bp = _round_up(max(batch, 1), 8)          # sublane-aligned batch
    if 4 * H <= 128:                          # small-H: 4 gates share 1 tile
        Hs, G, Hc = 32, 128, 128
    else:                                     # general: gate k at k*Hp lanes
        Hs = _round_up(H, 128)
        G, Hc = 4 * Hs, Hs
    Op = _round_up(O, 128)                    # lane-aligned output
    Dp = _round_up(max(input_dim, 1), 128)    # lane-aligned input

    packed_layers = []
    d_in, d_in_p = input_dim, Dp
    for (w_ih, w_hh, b_ih, b_hh) in params["lstm"]:
        K = d_in_p + Hc                       # fused [W_ih ; W_hh]
        w = jnp.zeros((K, G), jnp.float32)
        b = jnp.zeros((1, G), jnp.float32)
        bias = b_ih + b_hh
        for k in range(4):                    # PyTorch gate order [i, f, g, o]
            w = w.at[:d_in, k * Hs:k * Hs + H].set(w_ih[k * H:(k + 1) * H, :].T)
            w = w.at[d_in_p:d_in_p + H, k * Hs:k * Hs + H].set(
                w_hh[k * H:(k + 1) * H, :].T)
            b = b.at[0, k * Hs:k * Hs + H].set(bias[k * H:(k + 1) * H])
        packed_layers.append((w.astype(mxu_dtype), b))
        d_in, d_in_p = H, Hc

    fc_w = (jnp.zeros((Hc, Op), jnp.float32)
            .at[:H, :O].set(params["fc_w"].T).astype(mxu_dtype))
    fc_b = jnp.zeros((1, Op), jnp.float32).at[0, :O].set(params["fc_b"])
    return dict(layers=packed_layers, fc_w=fc_w, fc_b=fc_b,
                Bp=Bp, Hs=Hs, Hc=Hc, G=G, Op=Op, Dp=Dp, H=H, O=O,
                mxu_dtype=mxu_dtype)


# ---------------------------------------------------------------------------
# Net.forward:  x -> stacked LSTM -> last time step -> Linear   (one kernel)
# ---------------------------------------------------------------------------
def net_forward(x_btd, packed, *, time_chunk=128):
    B, T, Din = x_btd.shape
    Bp, Dp = packed["Bp"], packed["Dp"]
    Hs, Hc, G, Op = packed["Hs"], packed["Hc"], packed["G"], packed["Op"]
    mxu_dtype = packed["mxu_dtype"]
    num_layers = len(packed["layers"])

    chunk = max(1, min(T, time_chunk))
    n_chunks = pl.cdiv(T, chunk)
    Tp = n_chunks * chunk

    # batch_first -> time-major + pad to aligned tiles; one cheap XLA op
    # outside the recurrence. x is stored in the MXU operand dtype so the
    # streamed chunks are matmul-ready (and half-sized for bf16).
    x_tbd = jnp.transpose(x_btd, (1, 0, 2)).astype(mxu_dtype)
    x_p = jnp.zeros((Tp, Bp, Dp), mxu_dtype).at[:T, :B, :Din].set(x_tbd)

    inputs = [x_p]
    in_specs = [pl.BlockSpec((chunk, Bp, Dp), lambda c: (c, 0, 0))]
    for (w, b) in packed["layers"]:
        inputs += [w, b]
        in_specs += [pl.BlockSpec(w.shape, lambda c: (0, 0)),   # resident
                     pl.BlockSpec(b.shape, lambda c: (0, 0))]
    inputs += [packed["fc_w"], packed["fc_b"]]
    in_specs += [pl.BlockSpec(packed["fc_w"].shape, lambda c: (0, 0)),
                 pl.BlockSpec(packed["fc_b"].shape, lambda c: (0, 0))]

    # f32 path: exact MXU accumulation; bf16 path: fast v6e/v7x MXU mode.
    precision = (None if jnp.dtype(mxu_dtype) == jnp.dtype(jnp.bfloat16)
                 else lax.Precision.HIGHEST)

    # VMEM budget: real footprint (double-buffered x chunk + resident weights
    # + state) with headroom, capped at 3/4 of physical VMEM
    # (~48 MiB on v7x, ~96 MiB on v5e/v6e).
    isz = jnp.dtype(mxu_dtype).itemsize
    est = 2 * chunk * Bp * Dp * isz
    est += 2 * sum(w.size * w.dtype.itemsize + b.size * 4
                   for (w, b) in packed["layers"])
    est += 2 * (packed["fc_w"].size * isz + packed["fc_b"].size * 4)
    est += Bp * Op * 4 + 2 * num_layers * Bp * Hc * 4
    try:
        vmem_cap = pltpu.get_tpu_info().vmem_capacity_bytes
    except Exception:
        vmem_cap = 64 * 1024 * 1024
    vmem_limit = int(min(max(2 * est, 32 * 1024 * 1024), vmem_cap * 3 // 4))

    kernel = _make_kernel(num_layers, T, chunk, Bp, Hs, G,
                          packed_gates=(Hs < Hc), mxu_dtype=mxu_dtype,
                          precision=precision)

    out_p = pl.pallas_call(
        kernel,
        out_shape=jax.ShapeDtypeStruct((Bp, Op), jnp.float32),
        grid_spec=pltpu.PrefetchScalarGridSpec(
            num_scalar_prefetch=0,
            grid=(n_chunks,),
            in_specs=in_specs,
            out_specs=pl.BlockSpec((Bp, Op), lambda c: (0, 0)),
            scratch_shapes=[pltpu.VMEM((num_layers, Bp, Hc), jnp.float32),
                            pltpu.VMEM((num_layers, Bp, Hc), jnp.float32)]),
        compiler_params=pltpu.CompilerParams(
            # Sequential recurrence over time -> "arbitrary".
            # (On v7x a leading "parallel" batch axis would engage the second
            #  TensorCore once Bp >= 16; not useful at Bp = 8.)
            dimension_semantics=("arbitrary",),
            vmem_limit_bytes=vmem_limit),
    )(*inputs)

    return out_p[:B, :packed["O"]]


# ---------------------------------------------------------------------------
# Pure-JAX reference (mirrors torch.nn.LSTM/Linear forward), exact f32 dots.
# ---------------------------------------------------------------------------
def _dot_hi(a, b):
    return jnp.dot(a, b, precision=lax.Precision.HIGHEST)


def reference_forward(x_btd, params):
    B, T, _ = x_btd.shape
    h_seq = x_btd.astype(jnp.float32)
    for (w_ih, w_hh, b_ih, b_hh) in params["lstm"]:
        H = w_hh.shape[1]
        h = jnp.zeros((B, H), jnp.float32)
        c = jnp.zeros((B, H), jnp.float32)
        outs = []
        for t in range(T):
            gates = _dot_hi(h_seq[:, t], w_ih.T) + _dot_hi(h, w_hh.T) + b_ih + b_hh
            i = jax.nn.sigmoid(gates[:, 0:H])
            f = jax.nn.sigmoid(gates[:, H:2 * H])
            g = jnp.tanh(gates[:, 2 * H:3 * H])
            o = jax.nn.sigmoid(gates[:, 3 * H:4 * H])
            c = f * c + i * g
            h = o * jnp.tanh(c)
            outs.append(h)
        h_seq = jnp.stack(outs, axis=1)
    return _dot_hi(h_seq[:, -1], params["fc_w"].T) + params["fc_b"]


if __name__ == "__main__":
    B, T = 2, 8
    input_dim, hidden_dim, output_dim, layers = 4, 10, 1, 2

    key = jax.random.PRNGKey(0)
    key, kx, kp = jax.random.split(key, 3)
    x = jax.random.normal(kx, (B, T, input_dim), dtype=jnp.float32)

    params = init_params(kp, input_dim, hidden_dim, output_dim, layers)
    ref = jax.block_until_ready(reference_forward(x, params))

    # 1) Exact path: f32 MXU operands (precision=HIGHEST) -> tight tolerance.
    packed_f32 = pack_params(params, input_dim, hidden_dim, output_dim, B,
                             mxu_dtype=jnp.float32)
    out_f32 = jax.block_until_ready(
        jax.jit(lambda v: net_forward(v, packed_f32))(x))
    assert out_f32.shape == (B, output_dim), out_f32.shape
    err = float(jnp.max(jnp.abs(out_f32 - ref)))
    assert err < 1e-4, f"f32 path: max abs error vs reference: {err}"

    # 2) Same f32 path with a small time chunk -> exercises the time-chunk
    #    grid, persistent h/c scratch carry and ragged-tail masking.
    out_chunked = jax.block_until_ready(
        jax.jit(lambda v: net_forward(v, packed_f32, time_chunk=3))(x))
    err_c = float(jnp.max(jnp.abs(out_chunked - ref)))
    assert err_c < 1e-4, f"chunked path: max abs error vs reference: {err_c}"

    # 3) Fast path: bf16 MXU operands (v6e/v7x), f32 state/accumulation.
    packed_bf16 = pack_params(params, input_dim, hidden_dim, output_dim, B,
                              mxu_dtype=jnp.bfloat16)
    out_bf16 = jax.block_until_ready(
        jax.jit(lambda v: net_forward(v, packed_bf16))(x))
    err_b = float(jnp.max(jnp.abs(out_bf16 - ref)))
    assert err_b < 3e-2, f"bf16 path: max abs error vs reference: {err_b}"

    print("KERNEL_OK")
</pallas_src>

<mosaic_0001>
module attributes {stable_mosaic.version = 11 : i64} {
  func.func @kernel(%arg0: i32, %arg1: memref<8x8x128xf32, #tpu.memory_space<vmem>>, %arg2: memref<256x128xf32, #tpu.memory_space<vmem>>, %arg3: memref<1x128xf32, #tpu.memory_space<vmem>>, %arg4: memref<256x128xf32, #tpu.memory_space<vmem>>, %arg5: memref<1x128xf32, #tpu.memory_space<vmem>>, %arg6: memref<128x128xf32, #tpu.memory_space<vmem>>, %arg7: memref<1x128xf32, #tpu.memory_space<vmem>>, %arg8: memref<8x128xf32, #tpu.memory_space<vmem>>, %arg9: memref<2x8x128xf32, #tpu.memory_space<vmem>>, %arg10: memref<2x8x128xf32, #tpu.memory_space<vmem>>) attributes {dimension_semantics = [#tpu.dimension_semantics<arbitrary>], iteration_bounds = array<i64: 1>, scalar_prefetch = 0 : i64, scratch_operands = 2 : i64, tpu.core_type = #tpu.core_type<tc>, window_params = [{transform_indices = @transform_0, window_bounds = array<i64: 8, 8, 128>}, {pipeline_mode = #tpu.pipeline_mode<synchronous>, transform_indices = @transform_1, window_bounds = array<i64: 256, 128>}, {pipeline_mode = #tpu.pipeline_mode<synchronous>, transform_indices = @transform_2, window_bounds = array<i64: 1, 128>}, {pipeline_mode = #tpu.pipeline_mode<synchronous>, transform_indices = @transform_3, window_bounds = array<i64: 256, 128>}, {pipeline_mode = #tpu.pipeline_mode<synchronous>, transform_indices = @transform_4, window_bounds = array<i64: 1, 128>}, {pipeline_mode = #tpu.pipeline_mode<synchronous>, transform_indices = @transform_5, window_bounds = array<i64: 128, 128>}, {pipeline_mode = #tpu.pipeline_mode<synchronous>, transform_indices = @transform_6, window_bounds = array<i64: 1, 128>}, {pipeline_mode = #tpu.pipeline_mode<synchronous>, transform_indices = @transform_7, window_bounds = array<i64: 8, 128>}]} {
    %c0_i32 = arith.constant 0 : i32
    %0 = arith.cmpi eq, %arg0, %c0_i32 : i32
    %1 = arith.extui %0 : i1 to i32
    %c0_i32_0 = arith.constant 0 : i32
    %2 = arith.cmpi ne, %1, %c0_i32_0 : i32
    scf.if %2 {
      %cst_156 = arith.constant 0.000000e+00 : f32
      %366 = vector.broadcast %cst_156 : f32 to vector<2x8x128xf32>
      %c0_157 = arith.constant 0 : index
      %c0_158 = arith.constant 0 : index
      %c0_159 = arith.constant 0 : index
      %367 = vector.load %arg9[%c0_157, %c0_158, %c0_159] : memref<2x8x128xf32, #tpu.memory_space<vmem>>, vector<2x8x128xf32>
      tpu.vector_store %arg9[%c0_157, %c0_158, %c0_159], %366 {strides = array<i32>} : memref<2x8x128xf32, #tpu.memory_space<vmem>>, vector<2x8x128xf32>,
      %cst_160 = arith.constant 0.000000e+00 : f32
      %368 = vector.broadcast %cst_160 : f32 to vector<2x8x128xf32>
      %c0_161 = arith.constant 0 : index
      %c0_162 = arith.constant 0 : index
      %c0_163 = arith.constant 0 : index
      %369 = vector.load %arg10[%c0_161, %c0_162, %c0_163] : memref<2x8x128xf32, #tpu.memory_space<vmem>>, vector<2x8x128xf32>
      tpu.vector_store %arg10[%c0_161, %c0_162, %c0_163], %368 {strides = array<i32>} : memref<2x8x128xf32, #tpu.memory_space<vmem>>, vector<2x8x128xf32>,
    } else {
    }
    %c0 = arith.constant 0 : index
    %c0_1 = arith.constant 0 : index
    %3 = vector.load %arg3[%c0, %c0_1] : memref<1x128xf32, #tpu.memory_space<vmem>>, vector<1x128xf32>
    %4 = vector.shape_cast %3 : vector<1x128xf32> to vector<1x128xf32>
    %5 = vector.broadcast %4 : vector<1x128xf32> to vector<8x128xf32>
    %c0_2 = arith.constant 0 : index
    %c0_3 = arith.constant 0 : index
    %6 = vector.load %arg5[%c0_2, %c0_3] : memref<1x128xf32, #tpu.memory_space<vmem>>, vector<1x128xf32>
    %7 = vector.shape_cast %6 : vector<1x128xf32> to vector<1x128xf32>
    %8 = vector.broadcast %7 : vector<1x128xf32> to vector<8x128xf32>
    %9 = tpu.iota {dimensions = array<i32: 1>} : vector<8x128xi32>
    %c64_i32 = arith.constant 64 : i32
    %10 = vector.broadcast %c64_i32 : i32 to vector<8x128xi32>
    %11 = arith.cmpi sge, %9, %10 : vector<8x128xi32>
    %c96_i32 = arith.constant 96 : i32
    %12 = vector.broadcast %c96_i32 : i32 to vector<8x128xi32>
    %13 = arith.cmpi slt, %9, %12 : vector<8x128xi32>
    %14 = arith.andi %11, %13 : vector<8x128xi1>
    %c0_4 = arith.constant 0 : index
    %c0_5 = arith.constant 0 : index
    %c0_6 = arith.constant 0 : index
    %15 = vector.load %arg9[%c0_4, %c0_5, %c0_6] : memref<2x8x128xf32, #tpu.memory_space<vmem>>, vector<1x8x128xf32>
    %16 = vector.shape_cast %15 : vector<1x8x128xf32> to vector<8x128xf32>
    %c1 = arith.constant 1 : index
    %c0_7 = arith.constant 0 : index
    %c0_8 = arith.constant 0 : index
    %17 = vector.load %arg9[%c1, %c0_7, %c0_8] : memref<2x8x128xf32, #tpu.memory_space<vmem>>, vector<1x8x128xf32>
    %18 = vector.shape_cast %17 : vector<1x8x128xf32> to vector<8x128xf32>
    %c0_9 = arith.constant 0 : index
    %c0_10 = arith.constant 0 : index
    %c0_11 = arith.constant 0 : index
    %19 = vector.load %arg10[%c0_9, %c0_10, %c0_11] : memref<2x8x128xf32, #tpu.memory_space<vmem>>, vector<1x8x128xf32>
    %20 = vector.shape_cast %19 : vector<1x8x128xf32> to vector<8x128xf32>
    %c1_12 = arith.constant 1 : index
    %c0_13 = arith.constant 0 : index
    %c0_14 = arith.constant 0 : index
    %21 = vector.load %arg10[%c1_12, %c0_13, %c0_14] : memref<2x8x128xf32, #tpu.memory_space<vmem>>, vector<1x8x128xf32>
    %22 = vector.shape_cast %21 : vector<1x8x128xf32> to vector<8x128xf32>
    %c0_i32_15 = arith.constant 0 : i32
    %23 = arith.index_cast %c0_i32_15 : i32 to index
    %c0_16 = arith.constant 0 : index
    %c0_17 = arith.constant 0 : index
    %24 = vector.load %arg1[%23, %c0_16, %c0_17] : memref<8x8x128xf32, #tpu.memory_space<vmem>>, vector<1x8x128xf32>
    %25 = vector.shape_cast %24 : vector<1x8x128xf32> to vector<8x128xf32>
    %26 = tpu.concatenate %25, %16 in 1 : vector<8x128xf32>, vector<8x128xf32> -> vector<8x256xf32>
    %c0_18 = arith.constant 0 : index
    %c0_19 = arith.constant 0 : index
    %27 = vector.load %arg2[%c0_18, %c0_19] : memref<256x128xf32, #tpu.memory_space<vmem>>, vector<256x128xf32>
    %cst = arith.constant dense<0.000000e+00> : vector<8x128xf32>
    %28 = tpu.matmul %26, %27, %cst {dimension_numbers = #tpu.dot_dimension_numbers<[1], [0], [0], [1], [0, 0, 1, 1], [], []>, precision = #tpu.contract_precision<fp32>} : vector<8x256xf32>, vector<256x128xf32>, vector<8x128xf32> -> vector<8x128xf32>
    %29 = arith.addf %28, %5 : vector<8x128xf32>
    %30 = math.tanh %29 : vector<8x128xf32>
    %31 = arith.negf %29 : vector<8x128xf32>
    %32 = math.exp %31 : vector<8x128xf32>
    %cst_20 = arith.constant 1.000000e+00 : f32
    %33 = vector.broadcast %cst_20 : f32 to vector<8x128xf32>
    %34 = arith.addf %33, %32 : vector<8x128xf32>
    %35 = arith.divf %33, %34 : vector<8x128xf32>
    %36 = arith.select %14, %30, %35 : vector<8x128xi1>, vector<8x128xf32>
    %c96_i32_21 = arith.constant 96 : i32
    %37 = tpu.dynamic_rotate %36 by %c96_i32_21 dim 1 : vector<8x128xf32>, i32 -> vector<8x128xf32>
    %c64_i32_22 = arith.constant 64 : i32
    %38 = tpu.dynamic_rotate %36 by %c64_i32_22 dim 1 : vector<8x128xf32>, i32 -> vector<8x128xf32>
    %c32_i32 = arith.constant 32 : i32
    %39 = tpu.dynamic_rotate %36 by %c32_i32 dim 1 : vector<8x128xf32>, i32 -> vector<8x128xf32>
    %40 = arith.mulf %37, %20 : vector<8x128xf32>
    %41 = arith.mulf %36, %38 : vector<8x128xf32>
    %42 = arith.addf %40, %41 : vector<8x128xf32>
    %43 = math.tanh %42 : vector<8x128xf32>
    %44 = arith.mulf %39, %43 : vector<8x128xf32>
    %45 = tpu.concatenate %44, %18 in 1 : vector<8x128xf32>, vector<8x128xf32> -> vector<8x256xf32>
    %c0_23 = arith.constant 0 : index
    %c0_24 = arith.constant 0 : index
    %46 = vector.load %arg4[%c0_23, %c0_24] : memref<256x128xf32, #tpu.memory_space<vmem>>, vector<256x128xf32>
    %cst_25 = arith.constant dense<0.000000e+00> : vector<8x128xf32>
    %47 = tpu.matmul %45, %46, %cst_25 {dimension_numbers = #tpu.dot_dimension_numbers<[1], [0], [0], [1], [0, 0, 1, 1], [], []>, precision = #tpu.contract_precision<fp32>} : vector<8x256xf32>, vector<256x128xf32>, vector<8x128xf32> -> vector<8x128xf32>
    %48 = arith.addf %47, %8 : vector<8x128xf32>
    %49 = math.tanh %48 : vector<8x128xf32>
    %50 = arith.negf %48 : vector<8x128xf32>
    %51 = math.exp %50 : vector<8x128xf32>
    %cst_26 = arith.constant 1.000000e+00 : f32
    %52 = vector.broadcast %cst_26 : f32 to vector<8x128xf32>
    %53 = arith.addf %52, %51 : vector<8x128xf32>
    %54 = arith.divf %52, %53 : vector<8x128xf32>
    %55 = arith.select %14, %49, %54 : vector<8x128xi1>, vector<8x128xf32>
    %c96_i32_27 = arith.constant 96 : i32
    %56 = tpu.dynamic_rotate %55 by %c96_i32_27 dim 1 : vector<8x128xf32>, i32 -> vector<8x128xf32>
    %c64_i32_28 = arith.constant 64 : i32
    %57 = tpu.dynamic_rotate %55 by %c64_i32_28 dim 1 : vector<8x128xf32>, i32 -> vector<8x128xf32>
    %c32_i32_29 = arith.constant 32 : i32
    %58 = tpu.dynamic_rotate %55 by %c32_i32_29 dim 1 : vector<8x128xf32>, i32 -> vector<8x128xf32>
    %59 = arith.mulf %56, %22 : vector<8x128xf32>
    %60 = arith.mulf %55, %57 : vector<8x128xf32>
    %61 = arith.addf %59, %60 : vector<8x128xf32>
    %62 = math.tanh %61 : vector<8x128xf32>
    %63 = arith.mulf %58, %62 : vector<8x128xf32>
    %c1_i32 = arith.constant 1 : i32
    %64 = arith.index_cast %c1_i32 : i32 to index
    %c0_30 = arith.constant 0 : index
    %c0_31 = arith.constant 0 : index
    %65 = vector.load %arg1[%64, %c0_30, %c0_31] : memref<8x8x128xf32, #tpu.memory_space<vmem>>, vector<1x8x128xf32>
    %66 = vector.shape_cast %65 : vector<1x8x128xf32> to vector<8x128xf32>
    %67 = tpu.concatenate %66, %44 in 1 : vector<8x128xf32>, vector<8x128xf32> -> vector<8x256xf32>
    %c0_32 = arith.constant 0 : index
    %c0_33 = arith.constant 0 : index
    %68 = vector.load %arg2[%c0_32, %c0_33] : memref<256x128xf32, #tpu.memory_space<vmem>>, vector<256x128xf32>
    %cst_34 = arith.constant dense<0.000000e+00> : vector<8x128xf32>
    %69 = tpu.matmul %67, %68, %cst_34 {dimension_numbers = #tpu.dot_dimension_numbers<[1], [0], [0], [1], [0, 0, 1, 1], [], []>, precision = #tpu.contract_precision<fp32>} : vector<8x256xf32>, vector<256x128xf32>, vector<8x128xf32> -> vector<8x128xf32>
    %70 = arith.addf %69, %5 : vector<8x128xf32>
    %71 = math.tanh %70 : vector<8x128xf32>
    %72 = arith.negf %70 : vector<8x128xf32>
    %73 = math.exp %72 : vector<8x128xf32>
    %cst_35 = arith.constant 1.000000e+00 : f32
    %74 = vector.broadcast %cst_35 : f32 to vector<8x128xf32>
    %75 = arith.addf %74, %73 : vector<8x128xf32>
    %76 = arith.divf %74, %75 : vector<8x128xf32>
    %77 = arith.select %14, %71, %76 : vector<8x128xi1>, vector<8x128xf32>
    %c96_i32_36 = arith.constant 96 : i32
    %78 = tpu.dynamic_rotate %77 by %c96_i32_36 dim 1 : vector<8x128xf32>, i32 -> vector<8x128xf32>
    %c64_i32_37 = arith.constant 64 : i32
    %79 = tpu.dynamic_rotate %77 by %c64_i32_37 dim 1 : vector<8x128xf32>, i32 -> vector<8x128xf32>
    %c32_i32_38 = arith.constant 32 : i32
    %80 = tpu.dynamic_rotate %77 by %c32_i32_38 dim 1 : vector<8x128xf32>, i32 -> vector<8x128xf32>
    %81 = arith.mulf %78, %42 : vector<8x128xf32>
    %82 = arith.mulf %77, %79 : vector<8x128xf32>
    %83 = arith.addf %81, %82 : vector<8x128xf32>
    %84 = math.tanh %83 : vector<8x128xf32>
    %85 = arith.mulf %80, %84 : vector<8x128xf32>
    %86 = tpu.concatenate %85, %63 in 1 : vector<8x128xf32>, vector<8x128xf32> -> vector<8x256xf32>
    %c0_39 = arith.constant 0 : index
    %c0_40 = arith.constant 0 : index
    %87 = vector.load %arg4[%c0_39, %c0_40] : memref<256x128xf32, #tpu.memory_space<vmem>>, vector<256x128xf32>
    %cst_41 = arith.constant dense<0.000000e+00> : vector<8x128xf32>
    %88 = tpu.matmul %86, %87, %cst_41 {dimension_numbers = #tpu.dot_dimension_numbers<[1], [0], [0], [1], [0, 0, 1, 1], [], []>, precision = #tpu.contract_precision<fp32>} : vector<8x256xf32>, vector<256x128xf32>, vector<8x128xf32> -> vector<8x128xf32>
    %89 = arith.addf %88, %8 : vector<8x128xf32>
    %90 = math.tanh %89 : vector<8x128xf32>
    %91 = arith.negf %89 : vector<8x128xf32>
    %92 = math.exp %91 : vector<8x128xf32>
    %cst_42 = arith.constant 1.000000e+00 : f32
    %93 = vector.broadcast %cst_42 : f32 to vector<8x128xf32>
    %94 = arith.addf %93, %92 : vector<8x128xf32>
    %95 = arith.divf %93, %94 : vector<8x128xf32>
    %96 = arith.select %14, %90, %95 : vector<8x128xi1>, vector<8x128xf32>
    %c96_i32_43 = arith.constant 96 : i32
    %97 = tpu.dynamic_rotate %96 by %c96_i32_43 dim 1 : vector<8x128xf32>, i32 -> vector<8x128xf32>
    %c64_i32_44 = arith.constant 64 : i32
    %98 = tpu.dynamic_rotate %96 by %c64_i32_44 dim 1 : vector<8x128xf32>, i32 -> vector<8x128xf32>
    %c32_i32_45 = arith.constant 32 : i32
    %99 = tpu.dynamic_rotate %96 by %c32_i32_45 dim 1 : vector<8x128xf32>, i32 -> vector<8x128xf32>
    %100 = arith.mulf %97, %61 : vector<8x128xf32>
    %101 = arith.mulf %96, %98 : vector<8x128xf32>
    %102 = arith.addf %100, %101 : vector<8x128xf32>
    %103 = math.tanh %102 : vector<8x128xf32>
    %104 = arith.mulf %99, %103 : vector<8x128xf32>
    %c2_i32 = arith.constant 2 : i32
    %105 = arith.index_cast %c2_i32 : i32 to index
    %c0_46 = arith.constant 0 : index
    %c0_47 = arith.constant 0 : index
    %106 = vector.load %arg1[%105, %c0_46, %c0_47] : memref<8x8x128xf32, #tpu.memory_space<vmem>>, vector<1x8x128xf32>
    %107 = vector.shape_cast %106 : vector<1x8x128xf32> to vector<8x128xf32>
    %108 = tpu.concatenate %107, %85 in 1 : vector<8x128xf32>, vector<8x128xf32> -> vector<8x256xf32>
    %c0_48 = arith.constant 0 : index
    %c0_49 = arith.constant 0 : index
    %109 = vector.load %arg2[%c0_48, %c0_49] : memref<256x128xf32, #tpu.memory_space<vmem>>, vector<256x128xf32>
    %cst_50 = arith.constant dense<0.000000e+00> : vector<8x128xf32>
    %110 = tpu.matmul %108, %109, %cst_50 {dimension_numbers = #tpu.dot_dimension_numbers<[1], [0], [0], [1], [0, 0, 1, 1], [], []>, precision = #tpu.contract_precision<fp32>} : vector<8x256xf32>, vector<256x128xf32>, vector<8x128xf32> -> vector<8x128xf32>
    %111 = arith.addf %110, %5 : vector<8x128xf32>
    %112 = math.tanh %111 : vector<8x128xf32>
    %113 = arith.negf %111 : vector<8x128xf32>
    %114 = math.exp %113 : vector<8x128xf32>
    %cst_51 = arith.constant 1.000000e+00 : f32
    %115 = vector.broadcast %cst_51 : f32 to vector<8x128xf32>
    %116 = arith.addf %115, %114 : vector<8x128xf32>
    %117 = arith.divf %115, %116 : vector<8x128xf32>
    %118 = arith.select %14, %112, %117 : vector<8x128xi1>, vector<8x128xf32>
    %c96_i32_52 = arith.constant 96 : i32
    %119 = tpu.dynamic_rotate %118 by %c96_i32_52 dim 1 : vector<8x128xf32>, i32 -> vector<8x128xf32>
    %c64_i32_53 = arith.constant 64 : i32
    %120 = tpu.dynamic_rotate %118 by %c64_i32_53 dim 1 : vector<8x128xf32>, i32 -> vector<8x128xf32>
    %c32_i32_54 = arith.constant 32 : i32
    %121 = tpu.dynamic_rotate %118 by %c32_i32_54 dim 1 : vector<8x128xf32>, i32 -> vector<8x128xf32>
    %122 = arith.mulf %119, %83 : vector<8x128xf32>
    %123 = arith.mulf %118, %120 : vector<8x128xf32>
    %124 = arith.addf %122, %123 : vector<8x128xf32>
    %125 = math.tanh %124 : vector<8x128xf32>
    %126 = arith.mulf %121, %125 : vector<8x128xf32>
    %127 = tpu.concatenate %126, %104 in 1 : vector<8x128xf32>, vector<8x128xf32> -> vector<8x256xf32>
    %c0_55 = arith.constant 0 : index
    %c0_56 = arith.constant 0 : index
    %128 = vector.load %arg4[%c0_55, %c0_56] : memref<256x128xf32, #tpu.memory_space<vmem>>, vector<256x128xf32>
    %cst_57 = arith.constant dense<0.000000e+00> : vector<8x128xf32>
    %129 = tpu.matmul %127, %128, %cst_57 {dimension_numbers = #tpu.dot_dimension_numbers<[1], [0], [0], [1], [0, 0, 1, 1], [], []>, precision = #tpu.contract_precision<fp32>} : vector<8x256xf32>, vector<256x128xf32>, vector<8x128xf32> -> vector<8x128xf32>
    %130 = arith.addf %129, %8 : vector<8x128xf32>
    %131 = math.tanh %130 : vector<8x128xf32>
    %132 = arith.negf %130 : vector<8x128xf32>
    %133 = math.exp %132 : vector<8x128xf32>
    %cst_58 = arith.constant 1.000000e+00 : f32
    %134 = vector.broadcast %cst_58 : f32 to vector<8x128xf32>
    %135 = arith.addf %134, %133 : vector<8x128xf32>
    %136 = arith.divf %134, %135 : vector<8x128xf32>
    %137 = arith.select %14, %131, %136 : vector<8x128xi1>, vector<8x128xf32>
    %c96_i32_59 = arith.constant 96 : i32
    %138 = tpu.dynamic_rotate %137 by %c96_i32_59 dim 1 : vector<8x128xf32>, i32 -> vector<8x128xf32>
    %c64_i32_60 = arith.constant 64 : i32
    %139 = tpu.dynamic_rotate %137 by %c64_i32_60 dim 1 : vector<8x128xf32>, i32 -> vector<8x128xf32>
    %c32_i32_61 = arith.constant 32 : i32
    %140 = tpu.dynamic_rotate %137 by %c32_i32_61 dim 1 : vector<8x128xf32>, i32 -> vector<8x128xf32>
    %141 = arith.mulf %138, %102 : vector<8x128xf32>
    %142 = arith.mulf %137, %139 : vector<8x128xf32>
    %143 = arith.addf %141, %142 : vector<8x128xf32>
    %144 = math.tanh %143 : vector<8x128xf32>
    %145 = arith.mulf %140, %144 : vector<8x128xf32>
    %c3_i32 = arith.constant 3 : i32
    %146 = arith.index_cast %c3_i32 : i32 to index
    %c0_62 = arith.constant 0 : index
    %c0_63 = arith.constant 0 : index
    %147 = vector.load %arg1[%146, %c0_62, %c0_63] : memref<8x8x128xf32, #tpu.memory_space<vmem>>, vector<1x8x128xf32>
    %148 = vector.shape_cast %147 : vector<1x8x128xf32> to vector<8x128xf32>
    %149 = tpu.concatenate %148, %126 in 1 : vector<8x128xf32>, vector<8x128xf32> -> vector<8x256xf32>
    %c0_64 = arith.constant 0 : index
    %c0_65 = arith.constant 0 : index
    %150 = vector.load %arg2[%c0_64, %c0_65] : memref<256x128xf32, #tpu.memory_space<vmem>>, vector<256x128xf32>
    %cst_66 = arith.constant dense<0.000000e+00> : vector<8x128xf32>
    %151 = tpu.matmul %149, %150, %cst_66 {dimension_numbers = #tpu.dot_dimension_numbers<[1], [0], [0], [1], [0, 0, 1, 1], [], []>, precision = #tpu.contract_precision<fp32>} : vector<8x256xf32>, vector<256x128xf32>, vector<8x128xf32> -> vector<8x128xf32>
    %152 = arith.addf %151, %5 : vector<8x128xf32>
    %153 = math.tanh %152 : vector<8x128xf32>
    %154 = arith.negf %152 : vector<8x128xf32>
    %155 = math.exp %154 : vector<8x128xf32>
    %cst_67 = arith.constant 1.000000e+00 : f32
    %156 = vector.broadcast %cst_67 : f32 to vector<8x128xf32>
    %157 = arith.addf %156, %155 : vector<8x128xf32>
    %158 = arith.divf %156, %157 : vector<8x128xf32>
    %159 = arith.select %14, %153, %158 : vector<8x128xi1>, vector<8x128xf32>
    %c96_i32_68 = arith.constant 96 : i32
    %160 = tpu.dynamic_rotate %159 by %c96_i32_68 dim 1 : vector<8x128xf32>, i32 -> vector<8x128xf32>
    %c64_i32_69 = arith.constant 64 : i32
    %161 = tpu.dynamic_rotate %159 by %c64_i32_69 dim 1 : vector<8x128xf32>, i32 -> vector<8x128xf32>
    %c32_i32_70 = arith.constant 32 : i32
    %162 = tpu.dynamic_rotate %159 by %c32_i32_70 dim 1 : vector<8x128xf32>, i32 -> vector<8x128xf32>
    %163 = arith.mulf %160, %124 : vector<8x128xf32>
    %164 = arith.mulf %159, %161 : vector<8x128xf32>
    %165 = arith.addf %163, %164 : vector<8x128xf32>
    %166 = math.tanh %165 : vector<8x128xf32>
    %167 = arith.mulf %162, %166 : vector<8x128xf32>
    %168 = tpu.concatenate %167, %145 in 1 : vector<8x128xf32>, vector<8x128xf32> -> vector<8x256xf32>
    %c0_71 = arith.constant 0 : index
    %c0_72 = arith.constant 0 : index
    %169 = vector.load %arg4[%c0_71, %c0_72] : memref<256x128xf32, #tpu.memory_space<vmem>>, vector<256x128xf32>
    %cst_73 = arith.constant dense<0.000000e+00> : vector<8x128xf32>
    %170 = tpu.matmul %168, %169, %cst_73 {dimension_numbers = #tpu.dot_dimension_numbers<[1], [0], [0], [1], [0, 0, 1, 1], [], []>, precision = #tpu.contract_precision<fp32>} : vector<8x256xf32>, vector<256x128xf32>, vector<8x128xf32> -> vector<8x128xf32>
    %171 = arith.addf %170, %8 : vector<8x128xf32>
    %172 = math.tanh %171 : vector<8x128xf32>
    %173 = arith.negf %171 : vector<8x128xf32>
    %174 = math.exp %173 : vector<8x128xf32>
    %cst_74 = arith.constant 1.000000e+00 : f32
    %175 = vector.broadcast %cst_74 : f32 to vector<8x128xf32>
    %176 = arith.addf %175, %174 : vector<8x128xf32>
    %177 = arith.divf %175, %176 : vector<8x128xf32>
    %178 = arith.select %14, %172, %177 : vector<8x128xi1>, vector<8x128xf32>
    %c96_i32_75 = arith.constant 96 : i32
    %179 = tpu.dynamic_rotate %178 by %c96_i32_75 dim 1 : vector<8x128xf32>, i32 -> vector<8x128xf32>
    %c64_i32_76 = arith.constant 64 : i32
    %180 = tpu.dynamic_rotate %178 by %c64_i32_76 dim 1 : vector<8x128xf32>, i32 -> vector<8x128xf32>
    %c32_i32_77 = arith.constant 32 : i32
    %181 = tpu.dynamic_rotate %178 by %c32_i32_77 dim 1 : vector<8x128xf32>, i32 -> vector<8x128xf32>
    %182 = arith.mulf %179, %143 : vector<8x128xf32>
    %183 = arith.mulf %178, %180 : vector<8x128xf32>
    %184 = arith.addf %182, %183 : vector<8x128xf32>
    %185 = math.tanh %184 : vector<8x128xf32>
    %186 = arith.mulf %181, %185 : vector<8x128xf32>
    %c4_i32 = arith.constant 4 : i32
    %187 = arith.index_cast %c4_i32 : i32 to index
    %c0_78 = arith.constant 0 : index
    %c0_79 = arith.constant 0 : index
    %188 = vector.load %arg1[%187, %c0_78, %c0_79] : memref<8x8x128xf32, #tpu.memory_space<vmem>>, vector<1x8x128xf32>
    %189 = vector.shape_cast %188 : vector<1x8x128xf32> to vector<8x128xf32>
    %190 = tpu.concatenate %189, %167 in 1 : vector<8x128xf32>, vector<8x128xf32> -> vector<8x256xf32>
    %c0_80 = arith.constant 0 : index
    %c0_81 = arith.constant 0 : index
    %191 = vector.load %arg2[%c0_80, %c0_81] : memref<256x128xf32, #tpu.memory_space<vmem>>, vector<256x128xf32>
    %cst_82 = arith.constant dense<0.000000e+00> : vector<8x128xf32>
    %192 = tpu.matmul %190, %191, %cst_82 {dimension_numbers = #tpu.dot_dimension_numbers<[1], [0], [0], [1], [0, 0, 1, 1], [], []>, precision = #tpu.contract_precision<fp32>} : vector<8x256xf32>, vector<256x128xf32>, vector<8x128xf32> -> vector<8x128xf32>
    %193 = arith.addf %192, %5 : vector<8x128xf32>
    %194 = math.tanh %193 : vector<8x128xf32>
    %195 = arith.negf %193 : vector<8x128xf32>
    %196 = math.exp %195 : vector<8x128xf32>
    %cst_83 = arith.constant 1.000000e+00 : f32
    %197 = vector.broadcast %cst_83 : f32 to vector<8x128xf32>
    %198 = arith.addf %197, %196 : vector<8x128xf32>
    %199 = arith.divf %197, %198 : vector<8x128xf32>
    %200 = arith.select %14, %194, %199 : vector<8x128xi1>, vector<8x128xf32>
    %c96_i32_84 = arith.constant 96 : i32
    %201 = tpu.dynamic_rotate %200 by %c96_i32_84 dim 1 : vector<8x128xf32>, i32 -> vector<8x128xf32>
    %c64_i32_85 = arith.constant 64 : i32
    %202 = tpu.dynamic_rotate %200 by %c64_i32_85 dim 1 : vector<8x128xf32>, i32 -> vector<8x128xf32>
    %c32_i32_86 = arith.constant 32 : i32
    %203 = tpu.dynamic_rotate %200 by %c32_i32_86 dim 1 : vector<8x128xf32>, i32 -> vector<8x128xf32>
    %204 = arith.mulf %201, %165 : vector<8x128xf32>
    %205 = arith.mulf %200, %202 : vector<8x128xf32>
    %206 = arith.addf %204, %205 : vector<8x128xf32>
    %207 = math.tanh %206 : vector<8x128xf32>
    %208 = arith.mulf %203, %207 : vector<8x128xf32>
    %209 = tpu.concatenate %208, %186 in 1 : vector<8x128xf32>, vector<8x128xf32> -> vector<8x256xf32>
    %c0_87 = arith.constant 0 : index
    %c0_88 = arith.constant 0 : index
    %210 = vector.load %arg4[%c0_87, %c0_88] : memref<256x128xf32, #tpu.memory_space<vmem>>, vector<256x128xf32>
    %cst_89 = arith.constant dense<0.000000e+00> : vector<8x128xf32>
    %211 = tpu.matmul %209, %210, %cst_89 {dimension_numbers = #tpu.dot_dimension_numbers<[1], [0], [0], [1], [0, 0, 1, 1], [], []>, precision = #tpu.contract_precision<fp32>} : vector<8x256xf32>, vector<256x128xf32>, vector<8x128xf32> -> vector<8x128xf32>
    %212 = arith.addf %211, %8 : vector<8x128xf32>
    %213 = math.tanh %212 : vector<8x128xf32>
    %214 = arith.negf %212 : vector<8x128xf32>
    %215 = math.exp %214 : vector<8x128xf32>
    %cst_90 = arith.constant 1.000000e+00 : f32
    %216 = vector.broadcast %cst_90 : f32 to vector<8x128xf32>
    %217 = arith.addf %216, %215 : vector<8x128xf32>
    %218 = arith.divf %216, %217 : vector<8x128xf32>
    %219 = arith.select %14, %213, %218 : vector<8x128xi1>, vector<8x128xf32>
    %c96_i32_91 = arith.constant 96 : i32
    %220 = tpu.dynamic_rotate %219 by %c96_i32_91 dim 1 : vector<8x128xf32>, i32 -> vector<8x128xf32>
    %c64_i32_92 = arith.constant 64 : i32
    %221 = tpu.dynamic_rotate %219 by %c64_i32_92 dim 1 : vector<8x128xf32>, i32 -> vector<8x128xf32>
    %c32_i32_93 = arith.constant 32 : i32
    %222 = tpu.dynamic_rotate %219 by %c32_i32_93 dim 1 : vector<8x128xf32>, i32 -> vector<8x128xf32>
    %223 = arith.mulf %220, %184 : vector<8x128xf32>
    %224 = arith.mulf %219, %221 : vector<8x128xf32>
    %225 = arith.addf %223, %224 : vector<8x128xf32>
    %226 = math.tanh %225 : vector<8x128xf32>
    %227 = arith.mulf %222, %226 : vector<8x128xf32>
    %c5_i32 = arith.constant 5 : i32
    %228 = arith.index_cast %c5_i32 : i32 to index
    %c0_94 = arith.constant 0 : index
    %c0_95 = arith.constant 0 : index
    %229 = vector.load %arg1[%228, %c0_94, %c0_95] : memref<8x8x128xf32, #tpu.memory_space<vmem>>, vector<1x8x128xf32>
    %230 = vector.shape_cast %229 : vector<1x8x128xf32> to vector<8x128xf32>
    %231 = tpu.concatenate %230, %208 in 1 : vector<8x128xf32>, vector<8x128xf32> -> vector<8x256xf32>
    %c0_96 = arith.constant 0 : index
    %c0_97 = arith.constant 0 : index
    %232 = vector.load %arg2[%c0_96, %c0_97] : memref<256x128xf32, #tpu.memory_space<vmem>>, vector<256x128xf32>
    %cst_98 = arith.constant dense<0.000000e+00> : vector<8x128xf32>
    %233 = tpu.matmul %231, %232, %cst_98 {dimension_numbers = #tpu.dot_dimension_numbers<[1], [0], [0], [1], [0, 0, 1, 1], [], []>, precision = #tpu.contract_precision<fp32>} : vector<8x256xf32>, vector<256x128xf32>, vector<8x128xf32> -> vector<8x128xf32>
    %234 = arith.addf %233, %5 : vector<8x128xf32>
    %235 = math.tanh %234 : vector<8x128xf32>
    %236 = arith.negf %234 : vector<8x128xf32>
    %237 = math.exp %236 : vector<8x128xf32>
    %cst_99 = arith.constant 1.000000e+00 : f32
    %238 = vector.broadcast %cst_99 : f32 to vector<8x128xf32>
    %239 = arith.addf %238, %237 : vector<8x128xf32>
    %240 = arith.divf %238, %239 : vector<8x128xf32>
    %241 = arith.select %14, %235, %240 : vector<8x128xi1>, vector<8x128xf32>
    %c96_i32_100 = arith.constant 96 : i32
    %242 = tpu.dynamic_rotate %241 by %c96_i32_100 dim 1 : vector<8x128xf32>, i32 -> vector<8x128xf32>
    %c64_i32_101 = arith.constant 64 : i32
    %243 = tpu.dynamic_rotate %241 by %c64_i32_101 dim 1 : vector<8x128xf32>, i32 -> vector<8x128xf32>
    %c32_i32_102 = arith.constant 32 : i32
    %244 = tpu.dynamic_rotate %241 by %c32_i32_102 dim 1 : vector<8x128xf32>, i32 -> vector<8x128xf32>
    %245 = arith.mulf %242, %206 : vector<8x128xf32>
    %246 = arith.mulf %241, %243 : vector<8x128xf32>
    %247 = arith.addf %245, %246 : vector<8x128xf32>
    %248 = math.tanh %247 : vector<8x128xf32>
    %249 = arith.mulf %244, %248 : vector<8x128xf32>
    %250 = tpu.concatenate %249, %227 in 1 : vector<8x128xf32>, vector<8x128xf32> -> vector<8x256xf32>
    %c0_103 = arith.constant 0 : index
    %c0_104 = arith.constant 0 : index
    %251 = vector.load %arg4[%c0_103, %c0_104] : memref<256x128xf32, #tpu.memory_space<vmem>>, vector<256x128xf32>
    %cst_105 = arith.constant dense<0.000000e+00> : vector<8x128xf32>
    %252 = tpu.matmul %250, %251, %cst_105 {dimension_numbers = #tpu.dot_dimension_numbers<[1], [0], [0], [1], [0, 0, 1, 1], [], []>, precision = #tpu.contract_precision<fp32>} : vector<8x256xf32>, vector<256x128xf32>, vector<8x128xf32> -> vector<8x128xf32>
    %253 = arith.addf %252, %8 : vector<8x128xf32>
    %254 = math.tanh %253 : vector<8x128xf32>
    %255 = arith.negf %253 : vector<8x128xf32>
    %256 = math.exp %255 : vector<8x128xf32>
    %cst_106 = arith.constant 1.000000e+00 : f32
    %257 = vector.broadcast %cst_106 : f32 to vector<8x128xf32>
    %258 = arith.addf %257, %256 : vector<8x128xf32>
    %259 = arith.divf %257, %258 : vector<8x128xf32>
    %260 = arith.select %14, %254, %259 : vector<8x128xi1>, vector<8x128xf32>
    %c96_i32_107 = arith.constant 96 : i32
    %261 = tpu.dynamic_rotate %260 by %c96_i32_107 dim 1 : vector<8x128xf32>, i32 -> vector<8x128xf32>
    %c64_i32_108 = arith.constant 64 : i32
    %262 = tpu.dynamic_rotate %260 by %c64_i32_108 dim 1 : vector<8x128xf32>, i32 -> vector<8x128xf32>
    %c32_i32_109 = arith.constant 32 : i32
    %263 = tpu.dynamic_rotate %260 by %c32_i32_109 dim 1 : vector<8x128xf32>, i32 -> vector<8x128xf32>
    %264 = arith.mulf %261, %225 : vector<8x128xf32>
    %265 = arith.mulf %260, %262 : vector<8x128xf32>
    %266 = arith.addf %264, %265 : vector<8x128xf32>
    %267 = math.tanh %266 : vector<8x128xf32>
    %268 = arith.mulf %263, %267 : vector<8x128xf32>
    %c6_i32 = arith.constant 6 : i32
    %269 = arith.index_cast %c6_i32 : i32 to index
    %c0_110 = arith.constant 0 : index
    %c0_111 = arith.constant 0 : index
    %270 = vector.load %arg1[%269, %c0_110, %c0_111] : memref<8x8x128xf32, #tpu.memory_space<vmem>>, vector<1x8x128xf32>
    %271 = vector.shape_cast %270 : vector<1x8x128xf32> to vector<8x128xf32>
    %272 = tpu.concatenate %271, %249 in 1 : vector<8x128xf32>, vector<8x128xf32> -> vector<8x256xf32>
    %c0_112 = arith.constant 0 : index
    %c0_113 = arith.constant 0 : index
    %273 = vector.load %arg2[%c0_112, %c0_113] : memref<256x128xf32, #tpu.memory_space<vmem>>, vector<256x128xf32>
    %cst_114 = arith.constant dense<0.000000e+00> : vector<8x128xf32>
    %274 = tpu.matmul %272, %273, %cst_114 {dimension_numbers = #tpu.dot_dimension_numbers<[1], [0], [0], [1], [0, 0, 1, 1], [], []>, precision = #tpu.contract_precision<fp32>} : vector<8x256xf32>, vector<256x128xf32>, vector<8x128xf32> -> vector<8x128xf32>
    %275 = arith.addf %274, %5 : vector<8x128xf32>
    %276 = math.tanh %275 : vector<8x128xf32>
    %277 = arith.negf %275 : vector<8x128xf32>
    %278 = math.exp %277 : vector<8x128xf32>
    %cst_115 = arith.constant 1.000000e+00 : f32
    %279 = vector.broadcast %cst_115 : f32 to vector<8x128xf32>
    %280 = arith.addf %279, %278 : vector<8x128xf32>
    %281 = arith.divf %279, %280 : vector<8x128xf32>
    %282 = arith.select %14, %276, %281 : vector<8x128xi1>, vector<8x128xf32>
    %c96_i32_116 = arith.constant 96 : i32
    %283 = tpu.dynamic_rotate %282 by %c96_i32_116 dim 1 : vector<8x128xf32>, i32 -> vector<8x128xf32>
    %c64_i32_117 = arith.constant 64 : i32
    %284 = tpu.dynamic_rotate %282 by %c64_i32_117 dim 1 : vector<8x128xf32>, i32 -> vector<8x128xf32>
    %c32_i32_118 = arith.constant 32 : i32
    %285 = tpu.dynamic_rotate %282 by %c32_i32_118 dim 1 : vector<8x128xf32>, i32 -> vector<8x128xf32>
    %286 = arith.mulf %283, %247 : vector<8x128xf32>
    %287 = arith.mulf %282, %284 : vector<8x128xf32>
    %288 = arith.addf %286, %287 : vector<8x128xf32>
    %289 = math.tanh %288 : vector<8x128xf32>
    %290 = arith.mulf %285, %289 : vector<8x128xf32>
    %291 = tpu.concatenate %290, %268 in 1 : vector<8x128xf32>, vector<8x128xf32> -> vector<8x256xf32>
    %c0_119 = arith.constant 0 : index
    %c0_120 = arith.constant 0 : index
    %292 = vector.load %arg4[%c0_119, %c0_120] : memref<256x128xf32, #tpu.memory_space<vmem>>, vector<256x128xf32>
    %cst_121 = arith.constant dense<0.000000e+00> : vector<8x128xf32>
    %293 = tpu.matmul %291, %292, %cst_121 {dimension_numbers = #tpu.dot_dimension_numbers<[1], [0], [0], [1], [0, 0, 1, 1], [], []>, precision = #tpu.contract_precision<fp32>} : vector<8x256xf32>, vector<256x128xf32>, vector<8x128xf32> -> vector<8x128xf32>
    %294 = arith.addf %293, %8 : vector<8x128xf32>
    %295 = math.tanh %294 : vector<8x128xf32>
    %296 = arith.negf %294 : vector<8x128xf32>
    %297 = math.exp %296 : vector<8x128xf32>
    %cst_122 = arith.constant 1.000000e+00 : f32
    %298 = vector.broadcast %cst_122 : f32 to vector<8x128xf32>
    %299 = arith.addf %298, %297 : vector<8x128xf32>
    %300 = arith.divf %298, %299 : vector<8x128xf32>
    %301 = arith.select %14, %295, %300 : vector<8x128xi1>, vector<8x128xf32>
    %c96_i32_123 = arith.constant 96 : i32
    %302 = tpu.dynamic_rotate %301 by %c96_i32_123 dim 1 : vector<8x128xf32>, i32 -> vector<8x128xf32>
    %c64_i32_124 = arith.constant 64 : i32
    %303 = tpu.dynamic_rotate %301 by %c64_i32_124 dim 1 : vector<8x128xf32>, i32 -> vector<8x128xf32>
    %c32_i32_125 = arith.constant 32 : i32
    %304 = tpu.dynamic_rotate %301 by %c32_i32_125 dim 1 : vector<8x128xf32>, i32 -> vector<8x128xf32>
    %305 = arith.mulf %302, %266 : vector<8x128xf32>
    %306 = arith.mulf %301, %303 : vector<8x128xf32>
    %307 = arith.addf %305, %306 : vector<8x128xf32>
    %308 = math.tanh %307 : vector<8x128xf32>
    %309 = arith.mulf %304, %308 : vector<8x128xf32>
    %c7_i32 = arith.constant 7 : i32
    %310 = arith.index_cast %c7_i32 : i32 to index
    %c0_126 = arith.constant 0 : index
    %c0_127 = arith.constant 0 : index
    %311 = vector.load %arg1[%310, %c0_126, %c0_127] : memref<8x8x128xf32, #tpu.memory_space<vmem>>, vector<1x8x128xf32>
    %312 = vector.shape_cast %311 : vector<1x8x128xf32> to vector<8x128xf32>
    %313 = tpu.concatenate %312, %290 in 1 : vector<8x128xf32>, vector<8x128xf32> -> vector<8x256xf32>
    %c0_128 = arith.constant 0 : index
    %c0_129 = arith.constant 0 : index
    %314 = vector.load %arg2[%c0_128, %c0_129] : memref<256x128xf32, #tpu.memory_space<vmem>>, vector<256x128xf32>
    %cst_130 = arith.constant dense<0.000000e+00> : vector<8x128xf32>
    %315 = tpu.matmul %313, %314, %cst_130 {dimension_numbers = #tpu.dot_dimension_numbers<[1], [0], [0], [1], [0, 0, 1, 1], [], []>, precision = #tpu.contract_precision<fp32>} : vector<8x256xf32>, vector<256x128xf32>, vector<8x128xf32> -> vector<8x128xf32>
    %316 = arith.addf %315, %5 : vector<8x128xf32>
    %317 = math.tanh %316 : vector<8x128xf32>
    %318 = arith.negf %316 : vector<8x128xf32>
    %319 = math.exp %318 : vector<8x128xf32>
    %cst_131 = arith.constant 1.000000e+00 : f32
    %320 = vector.broadcast %cst_131 : f32 to vector<8x128xf32>
    %321 = arith.addf %320, %319 : vector<8x128xf32>
    %322 = arith.divf %320, %321 : vector<8x128xf32>
    %323 = arith.select %14, %317, %322 : vector<8x128xi1>, vector<8x128xf32>
    %c96_i32_132 = arith.constant 96 : i32
    %324 = tpu.dynamic_rotate %323 by %c96_i32_132 dim 1 : vector<8x128xf32>, i32 -> vector<8x128xf32>
    %c64_i32_133 = arith.constant 64 : i32
    %325 = tpu.dynamic_rotate %323 by %c64_i32_133 dim 1 : vector<8x128xf32>, i32 -> vector<8x128xf32>
    %c32_i32_134 = arith.constant 32 : i32
    %326 = tpu.dynamic_rotate %323 by %c32_i32_134 dim 1 : vector<8x128xf32>, i32 -> vector<8x128xf32>
    %327 = arith.mulf %324, %288 : vector<8x128xf32>
    %328 = arith.mulf %323, %325 : vector<8x128xf32>
    %329 = arith.addf %327, %328 : vector<8x128xf32>
    %330 = math.tanh %329 : vector<8x128xf32>
    %331 = arith.mulf %326, %330 : vector<8x128xf32>
    %332 = tpu.concatenate %331, %309 in 1 : vector<8x128xf32>, vector<8x128xf32> -> vector<8x256xf32>
    %c0_135 = arith.constant 0 : index
    %c0_136 = arith.constant 0 : index
    %333 = vector.load %arg4[%c0_135, %c0_136] : memref<256x128xf32, #tpu.memory_space<vmem>>, vector<256x128xf32>
    %cst_137 = arith.constant dense<0.000000e+00> : vector<8x128xf32>
    %334 = tpu.matmul %332, %333, %cst_137 {dimension_numbers = #tpu.dot_dimension_numbers<[1], [0], [0], [1], [0, 0, 1, 1], [], []>, precision = #tpu.contract_precision<fp32>} : vector<8x256xf32>, vector<256x128xf32>, vector<8x128xf32> -> vector<8x128xf32>
    %335 = arith.addf %334, %8 : vector<8x128xf32>
    %336 = math.tanh %335 : vector<8x128xf32>
    %337 = arith.negf %335 : vector<8x128xf32>
    %338 = math.exp %337 : vector<8x128xf32>
    %cst_138 = arith.constant 1.000000e+00 : f32
    %339 = vector.broadcast %cst_138 : f32 to vector<8x128xf32>
    %340 = arith.addf %339, %338 : vector<8x128xf32>
    %341 = arith.divf %339, %340 : vector<8x128xf32>
    %342 = arith.select %14, %336, %341 : vector<8x128xi1>, vector<8x128xf32>
    %c96_i32_139 = arith.constant 96 : i32
    %343 = tpu.dynamic_rotate %342 by %c96_i32_139 dim 1 : vector<8x128xf32>, i32 -> vector<8x128xf32>
    %c64_i32_140 = arith.constant 64 : i32
    %344 = tpu.dynamic_rotate %342 by %c64_i32_140 dim 1 : vector<8x128xf32>, i32 -> vector<8x128xf32>
    %c32_i32_141 = arith.constant 32 : i32
    %345 = tpu.dynamic_rotate %342 by %c32_i32_141 dim 1 : vector<8x128xf32>, i32 -> vector<8x128xf32>
    %346 = arith.mulf %343, %307 : vector<8x128xf32>
    %347 = arith.mulf %342, %344 : vector<8x128xf32>
    %348 = arith.addf %346, %347 : vector<8x128xf32>
    %349 = math.tanh %348 : vector<8x128xf32>
    %350 = arith.mulf %345, %349 : vector<8x128xf32>
    %c8_i32 = arith.constant 8 : i32
    %c0_142 = arith.constant 0 : index
    %c0_143 = arith.constant 0 : index
    %c0_144 = arith.constant 0 : index
    %351 = vector.load %arg9[%c0_142, %c0_143, %c0_144] : memref<2x8x128xf32, #tpu.memory_space<vmem>>, vector<1x8x128xf32>
    %352 = vector.shape_cast %351 : vector<1x8x128xf32> to vector<8x128xf32>
    %353 = vector.shape_cast %331 : vector<8x128xf32> to vector<1x8x128xf32>
    tpu.vector_store %arg9[%c0_142, %c0_143, %c0_144], %353 {strides = array<i32>} : memref<2x8x128xf32, #tpu.memory_space<vmem>>, vector<1x8x128xf32>,
    %c0_145 = arith.constant 0 : index
    %c0_146 = arith.constant 0 : index
    %c0_147 = arith.constant 0 : index
    %354 = vector.load %arg10[%c0_145, %c0_146, %c0_147] : memref<2x8x128xf32, #tpu.memory_space<vmem>>, vector<1x8x128xf32>
    %355 = vector.shape_cast %354 : vector<1x8x128xf32> to vector<8x128xf32>
    %356 = vector.shape_cast %329 : vector<8x128xf32> to vector<1x8x128xf32>
    tpu.vector_store %arg10[%c0_145, %c0_146, %c0_147], %356 {strides = array<i32>} : memref<2x8x128xf32, #tpu.memory_space<vmem>>, vector<1x8x128xf32>,
    %c1_148 = arith.constant 1 : index
    %c0_149 = arith.constant 0 : index
    %c0_150 = arith.constant 0 : index
    %357 = vector.load %arg9[%c1_148, %c0_149, %c0_150] : memref<2x8x128xf32, #tpu.memory_space<vmem>>, vector<1x8x128xf32>
    %358 = vector.shape_cast %357 : vector<1x8x128xf32> to vector<8x128xf32>
    %359 = vector.shape_cast %350 : vector<8x128xf32> to vector<1x8x128xf32>
    tpu.vector_store %arg9[%c1_148, %c0_149, %c0_150], %359 {strides = array<i32>} : memref<2x8x128xf32, #tpu.memory_space<vmem>>, vector<1x8x128xf32>,
    %c1_151 = arith.constant 1 : index
    %c0_152 = arith.constant 0 : index
    %c0_153 = arith.constant 0 : index
    %360 = vector.load %arg10[%c1_151, %c0_152, %c0_153] : memref<2x8x128xf32, #tpu.memory_space<vmem>>, vector<1x8x128xf32>
    %361 = vector.shape_cast %360 : vector<1x8x128xf32> to vector<8x128xf32>
    %362 = vector.shape_cast %348 : vector<8x128xf32> to vector<1x8x128xf32>
    tpu.vector_store %arg10[%c1_151, %c0_152, %c0_153], %362 {strides = array<i32>} : memref<2x8x128xf32, #tpu.memory_space<vmem>>, vector<1x8x128xf32>,
    %c0_i32_154 = arith.constant 0 : i32
    %363 = arith.cmpi eq, %arg0, %c0_i32_154 : i32
    %364 = arith.extui %363 : i1 to i32
    %c0_i32_155 = arith.constant 0 : i32
    %365 = arith.cmpi ne, %364, %c0_i32_155 : i32
    scf.if %365 {
      %c0_156 = arith.constant 0 : index
      %c0_157 = arith.constant 0 : index
      %366 = vector.load %arg6[%c0_156, %c0_157] : memref<128x128xf32, #tpu.memory_space<vmem>>, vector<128x128xf32>
      %cst_158 = arith.constant dense<0.000000e+00> : vector<8x128xf32>
      %367 = tpu.matmul %350, %366, %cst_158 {dimension_numbers = #tpu.dot_dimension_numbers<[1], [0], [0], [1], [0, 0, 1, 1], [], []>, precision = #tpu.contract_precision<fp32>} : vector<8x128xf32>, vector<128x128xf32>, vector<8x128xf32> -> vector<8x128xf32>
      %c0_159 = arith.constant 0 : index
      %c0_160 = arith.constant 0 : index
      %368 = vector.load %arg7[%c0_159, %c0_160] : memref<1x128xf32, #tpu.memory_space<vmem>>, vector<1x128xf32>
      %369 = vector.broadcast %368 : vector<1x128xf32> to vector<8x128xf32>
      %370 = arith.addf %367, %369 : vector<8x128xf32>
      %c0_161 = arith.constant 0 : index
      %c0_162 = arith.constant 0 : index
      %371 = vector.load %arg8[%c0_161, %c0_162] : memref<8x128xf32, #tpu.memory_space<vmem>>, vector<8x128xf32>
      tpu.vector_store %arg8[%c0_161, %c0_162], %370 {strides = array<i32>} : memref<8x128xf32, #tpu.memory_space<vmem>>, vector<8x128xf32>,
    } else {
    }
    return
  }
  func.func @transform_0(%arg0: i32) -> (i32, i32, i32) {
    %c0_i32 = arith.constant 0 : i32
    %c0_i32_0 = arith.constant 0 : i32
    %c0_i32_1 = arith.constant 0 : i32
    return %arg0, %c0_i32, %c0_i32_0 : i32, i32, i32
  }
  func.func @transform_1(%arg0: i32) -> (i32, i32) {
    %c0_i32 = arith.constant 0 : i32
    %c0_i32_0 = arith.constant 0 : i32
    %c0_i32_1 = arith.constant 0 : i32
    return %c0_i32, %c0_i32_0 : i32, i32
  }
  func.func @transform_2(%arg0: i32) -> (i32, i32) {
    %c0_i32 = arith.constant 0 : i32
    %c0_i32_0 = arith.constant 0 : i32
    %c0_i32_1 = arith.constant 0 : i32
    return %c0_i32, %c0_i32_0 : i32, i32
  }
  func.func @transform_3(%arg0: i32) -> (i32, i32) {
    %c0_i32 = arith.constant 0 : i32
    %c0_i32_0 = arith.constant 0 : i32
    %c0_i32_1 = arith.constant 0 : i32
    return %c0_i32, %c0_i32_0 : i32, i32
  }
  func.func @transform_4(%arg0: i32) -> (i32, i32) {
    %c0_i32 = arith.constant 0 : i32
    %c0_i32_0 = arith.constant 0 : i32
    %c0_i32_1 = arith.constant 0 : i32
    return %c0_i32, %c0_i32_0 : i32, i32
  }
  func.func @transform_5(%arg0: i32) -> (i32, i32) {
    %c0_i32 = arith.constant 0 : i32
    %c0_i32_0 = arith.constant 0 : i32
    %c0_i32_1 = arith.constant 0 : i32
    return %c0_i32, %c0_i32_0 : i32, i32
  }
  func.func @transform_6(%arg0: i32) -> (i32, i32) {
    %c0_i32 = arith.constant 0 : i32
    %c0_i32_0 = arith.constant 0 : i32
    %c0_i32_1 = arith.constant 0 : i32
    return %c0_i32, %c0_i32_0 : i32, i32
  }
  func.func @transform_7(%arg0: i32) -> (i32, i32) {
    %c0_i32 = arith.constant 0 : i32
    %c0_i32_0 = arith.constant 0 : i32
    %c0_i32_1 = arith.constant 0 : i32
    return %c0_i32, %c0_i32_0 : i32, i32
  }
}

</mosaic_0001>

<bundles_post_ra>
// kernel: _lambda_.1
= control target key start
LH: loop header
LB: loop body
LE: loop exit
PB: predicated region body
PF: predicated region fallthrough
CT: control target
= control target key end

     0   :  { %12 = vsyncpa [#allocation5], 0  ;;  %s25638_s0 = inlined_call_operand.vmem [shape: f32[8,8,128], index: 0, kind: input, shape index: {}]   ;;  %s25639_s1 = inlined_call_operand.hbm [shape: f32[256,128], index: 1, kind: input, shape index: {}]   ;;  %s25640_s2 = inlined_call_operand.vmem [shape: f32[1,128], index: 2, kind: input, shape index: {}]   ;;  %s25641_s3 = inlined_call_operand.hbm [shape: f32[256,128], index: 3, kind: input, shape index: {}]   ;;  %s25642_s4 = inlined_call_operand.vmem [shape: f32[1,128], index: 4, kind: input, shape index: {}]   ;;  %s25643_s5 = inlined_call_operand.hbm [shape: f32[128,128], index: 5, kind: input, shape index: {}]   ;;  %s25644_s6 = inlined_call_operand.vmem [shape: f32[1,128], index: 6, kind: input, shape index: {}]   ;;  %s25645_s7 = inlined_call_operand.vmem [shape: f32[8,128], index: 7, kind: output, shape index: {}]  }
   0x1   :  { %13 = vsyncpa [#allocation7], 0  ;;  %s22094_s24 = smov [#allocation6]   ;;  %s22095_s26 = smov [#allocation4]  }
   0x2   :  { %s35_s25 = sshll.u32 %s22094_s24, 4  ;;  %s21_s27 = sshll.u32 %s22095_s26, 4  ;;  %s36_s25 = int_to_ptr.vmem [resolvable:$true] %s35_s25  ;;  %s22145_s27 = int_to_ptr.vmem [resolvable:$true] %s21_s27 }
   0x3   :  { %s22024_s30 = scalar_lea.hbm %s25641_s3, 4096 }
   0x4   :  { %p22025_p0 = scmp.ne.s32.totalorder %s25641_s3, %s22024_s30  ;;  %p22028_p1 = scmp.lt.u32.totalorder %s22024_s30, %s25641_s3 }
   0x6   :  { %p22030_p2 = pnand %p22028_p1, %p22025_p0 }
   0x8   :  { %22033 = shalt.err (!%p22030_p2)
}
   0x9   :  { %s22034_s12 = scalar_lea.vmem %s36_s25, 4096  ;;  %p22039_p4 = scmp.lt.s32.totalorder %s36_s25, %s36_s25 }
   0xa   :  { %p22035_p3 = scmp.ne.s32.totalorder %s36_s25, %s22034_s12  ;;  %p22040_p5 = scmp.lt.s32.totalorder %s22034_s12, %s22034_s12 }
   0xc   :  { %p22041_p6 = por %p22040_p5, %p22039_p4 }
   0xe   :  { %p22042_p7 = pnand %p22041_p6, %p22035_p3 }
  0x10   :  { %22045 = shalt.err (!%p22042_p7)
}
  0x11   :  { %s22096_s13 = smov 128   ;;  %s22097_s14 = smov 8  }
  0x12   :  { %41 = dma.hbm_to_vmem [thread:$0]  %s25641_s3, 4096, %s36_s25, [#allocation7], %s22096_s13, %s22096_s13, %s22097_s14  }
  0x13   :  { %s22046_s19 = scalar_lea.hbm %s25639_s1, 4096 }
  0x14   :  { %p22047_p8 = scmp.ne.s32.totalorder %s25639_s1, %s22046_s19  ;;  %p22050_p9 = scmp.lt.u32.totalorder %s22046_s19, %s25639_s1 }
  0x16   :  { %p22052_p10 = pnand %p22050_p9, %p22047_p8 }
  0x18   :  { %22055 = shalt.err (!%p22052_p10)
}
  0x19   :  { %s22056_s24 = scalar_lea.vmem %s22145_s27, 4096  ;;  %p22061_p12 = scmp.lt.s32.totalorder %s22145_s27, %s22145_s27 }
  0x1a   :  { %p22057_p11 = scmp.ne.s32.totalorder %s22145_s27, %s22056_s24  ;;  %p22062_p13 = scmp.lt.s32.totalorder %s22056_s24, %s22056_s24 }
  0x1c   :  { %p22063_p0 = por %p22062_p13, %p22061_p12 }
  0x1e   :  { %p22064_p1 = pnand %p22063_p0, %p22057_p11 }
  0x20   :  { %22067 = shalt.err (!%p22064_p1)
}
  0x21   :  { %27 = dma.hbm_to_vmem [thread:$0]  %s25639_s1, 4096, %s22145_s27, [#allocation5], %s22096_s13, %s22096_s13, %s22097_s14  }
  0x22   :  { %s22098_s26 = smov [#allocation8]   ;;  %s22068_s8 = scalar_lea.hbm %s25643_s5, 2048 }
  0x23   :  { %s49_s28 = sshll.u32 %s22098_s26, 4  ;;  %p22069_p2 = scmp.ne.s32.totalorder %s25643_s5, %s22068_s8  ;;  %s50_s28 = int_to_ptr.vmem [resolvable:$true] %s49_s28 }
  0x24   :  { %p22072_p3 = scmp.lt.u32.totalorder %s22068_s8, %s25643_s5 }
  0x26   :  { %p22074_p4 = pnand %p22072_p3, %p22069_p2 }
  0x28   :  { %22077 = shalt.err (!%p22074_p4)
}
  0x29   :  { %s22078_s15 = scalar_lea.vmem %s50_s28, 2048  ;;  %p22083_p6 = scmp.lt.s32.totalorder %s50_s28, %s50_s28 }
  0x2a   :  { %p22079_p5 = scmp.ne.s32.totalorder %s50_s28, %s22078_s15  ;;  %p22084_p7 = scmp.lt.s32.totalorder %s22078_s15, %s22078_s15 }
  0x2c   :  { %p22085_p8 = por %p22084_p7, %p22083_p6 }
  0x2e   :  { %p22086_p9 = pnand %p22085_p8, %p22079_p5 }
  0x30   :  { %22089 = shalt.err (!%p22086_p9)
}
  0x31   :  { %55 = dma.hbm_to_vmem [thread:$0]  %s25643_s5, 2048, %s50_s28, [#allocation7], %s22096_s13, %s22096_s13, %s22097_s14  }
  0x32   :  { %22090 = dma.done.wait [#allocation5], 4096  }
  0x33   :  { %22091 = vsyncadd [#allocation5], 4294963200 }
  0x34   :  { %22092 = dma.done.wait [#allocation7], 6144  }
  0x35   :  { %22093 = vsyncadd [#allocation7], 4294961152  ;;  %v25646_v0 = vmov 0.0   ;;  %v22199_v1 = vld [vmem:[#allocation4 + $0x80] sm:$0xff]  ;;  %v22201_v2 = vld [vmem:[#allocation4 + $0x88] sm:$0xff]  ;;  %s22100_s17 = smov 32  }
  0x36   :  { %234 = vmatprep.mubr.f32.mxu1 %v25646_v0  ;;  %1147 = vmatprep.mubr.f32.mxu0 %v25646_v0  ;;  %v22203_v3 = vld [vmem:[#allocation4] sm:$0xff]  ;;  %v182_v4 = vand.u32 4294901760, %v22199_v1  ;;  %v185_v5 = vand.u32 4294901760, %v22201_v2  ;;  %v22207_v6 = vld [vmem:[#allocation4 + $0x8] sm:$0xff]  ;;  %v22210_v8 = vld [vmem:[#allocation4 + $0x90] sm:$0xff]  ;;  %s22101_s18 = smov 96  }
  0x37   :  { %v134_v7 = vand.u32 4294901760, %v22203_v3  ;;  %v22212_v9 = vld [vmem:[#allocation4 + $0x98] sm:$0xff]  ;;  %v137_v10 = vand.u32 4294901760, %v22207_v6  ;;  %v188_v11 = vand.u32 4294901760, %v22210_v8  ;;  %v22217_v13 = vld [vmem:[#allocation4 + $0x10] sm:$0xff]  ;;  %v22221_v15 = vld [vmem:[#allocation4 + $0xa0] sm:$0xff] }
  0x38   :  { %v191_v12 = vand.u32 4294901760, %v22212_v9  ;;  %v22219_v14 = vld [vmem:[#allocation4 + $0x18] sm:$0xff]  ;;  %v22227_v16 = vpack.c.bf16 %v185_v5, %v182_v4  ;;  %v140_v17 = vand.u32 4294901760, %v22217_v13  ;;  %v22231_v19 = vld [vmem:[#allocation4 + $0xa8] sm:$0xff]  ;;  %v25659_v20 = vand.u32 4294901760, %v22221_v15  ;;  %v22234_v21 = vld [vmem:[#allocation4 + $0x20] sm:$0xff] }
  0x39   :  { %v143_v18 = vand.u32 4294901760, %v22219_v14  ;;  %v22236_v22 = vld [vmem:[#allocation4 + $0x28] sm:$0xff]  ;;  %v22242_v23 = vpack.c.bf16 %v137_v10, %v134_v7  ;;  %v25658_v25 = vand.u32 4294901760, %v22231_v19  ;;  %v22251_v26 = vld [vmem:[#allocation4 + $0xb0] sm:$0xff]  ;;  %v22253_v27 = vld [vmem:[#allocation4 + $0xb8] sm:$0xff]  ;;  %v25657_v30 = vand.u32 4294901760, %v22234_v21 }
  0x3a   :  { %26024 = vst [vmem:[#allocation11_spill] sm:$0xff] %v22227_v16  ;;  %v22248_v24 = vpack.c.bf16 %v191_v12, %v188_v11  ;;  %v22255_v28 = vld [vmem:[#allocation4 + $0x30] sm:$0xff]  ;;  %18652 = vmatprep.subr.bf16.mxu1 %v22227_v16  ;;  %v25656_v31 = vand.u32 4294901760, %v22236_v22  ;;  %v22266_v32 = vld [vmem:[#allocation4 + $0x38] sm:$0xff]  ;;  %v22268_v33 = vld [vmem:[#allocation4 + $0xc0] sm:$0xff]  ;;  %v25655_v35 = vand.u32 4294901760, %v22251_v26 }
  0x3b   :  { %26025 = vst [vmem:[#allocation12_spill] sm:$0xff] %v22242_v23  ;;  %v22262_v29 = vpack.c.bf16 %v143_v18, %v140_v17  ;;  %v22270_v34 = vld [vmem:[#allocation4 + $0xc8] sm:$0xff]  ;;  %18654 = vmatpush3.bf16.msra.mxu1 %v22242_v23  ;;  %v25654_v36 = vand.u32 4294901760, %v22253_v27  ;;  %v25651_v37 = vand.u32 4294901760, %v22255_v28  ;;  %v25650_v38 = vand.u32 4294901760, %v22266_v32  ;;  %v22277_v39 = vld [vmem:[#allocation4 + $0x40] sm:$0xff] }
  0x3c   :  { %26026 = vst [vmem:[#allocation13_spill] sm:$0xff] %v22248_v24  ;;  %v22279_v40 = vld [vmem:[#allocation4 + $0x48] sm:$0xff]  ;;  %18656 = vmatprep.subr.bf16.mxu1 %v22248_v24  ;;  %v22286_v41 = vpack.c.bf16 %v25658_v25, %v25659_v20  ;;  %v25649_v42 = vand.u32 4294901760, %v22268_v33  ;;  %v25648_v43 = vand.u32 4294901760, %v22270_v34  ;;  %v25653_v44 = vand.u32 4294901760, %v22277_v39  ;;  %v22292_v46 = vld [vmem:[#allocation4 + $0xd0] sm:$0xff] }
  0x3d   :  { %26027 = vst [vmem:[#allocation14_spill] sm:$0xff] %v22262_v29  ;;  %v25652_v45 = vand.u32 4294901760, %v22279_v40  ;;  %v22294_v47 = vld [vmem:[#allocation4 + $0xd8] sm:$0xff]  ;;  %v22296_v48 = vld [vmem:[#allocation4 + $0x50] sm:$0xff]  ;;  %v22300_v50 = vld [vmem:[#allocation4 + $0xe0] sm:$0xff]  ;;  %v22307_v51 = vpack.c.bf16 %v25656_v31, %v25657_v30  ;;  %v22313_v52 = vpack.c.bf16 %v25654_v36, %v25655_v35  ;;  %v22319_v53 = vpack.c.bf16 %v25650_v38, %v25651_v37  ;;  %s22102_s19 = smov 64  }
  0x3e   :  { %26028 = vst [vmem:[#allocation15_spill] sm:$0xff] %v22286_v41  ;;  %v22298_v49 = vld [vmem:[#allocation4 + $0x58] sm:$0xff]  ;;  %v22321_v54 = vld [vmem:[#allocation4 + $0xe8] sm:$0xff]  ;;  %v22323_v55 = vld [vmem:[#allocation4 + $0x60] sm:$0xff]  ;;  %v22333_v57 = vpack.c.bf16 %v25648_v43, %v25649_v42  ;;  %v25663_v58 = vand.u32 4294901760, %v22292_v46  ;;  %v25661_v59 = vand.u32 4294901760, %v22294_v47  ;;  %v22355_v37 = vsub.f32 %v22199_v1, %v182_v4 }
  0x3f   :  { %18658 = vmatpush3.bf16.msra.mxu1 %v22262_v29  ;;  %26029 = vst [vmem:[#allocation16_spill] sm:$0xff] %v22307_v51  ;;  %26030 = vst [vmem:[#allocation17_spill] sm:$0xff] %v22313_v52  ;;  %v100_v56 = vld [vmem:[%s25638_s0] sm:$0xff]  ;;  %v25665_v60 = vand.u32 4294901760, %v22296_v48  ;;  %v22338_v61 = vld [vmem:[#allocation4 + $0x68] sm:$0xff]  ;;  %v22344_v62 = vpack.c.bf16 %v25652_v45, %v25653_v44  ;;  %v25664_v63 = vand.u32 4294901760, %v22298_v49  ;;  %v22360_v45 = vsub.f32 %v22201_v2, %v185_v5 }
  0x40   :  { %26031 = vst [vmem:[#allocation18_spill] sm:$0xff] %v22319_v53  ;;  %18660 = vmatprep.subr.bf16.mxu1 %v22286_v41  ;;  %26032 = vst [vmem:[#allocation19_spill] sm:$0xff] %v22333_v57  ;;  %v25668_v0 = vand.u32 4294901760, %v22300_v50  ;;  %v22348_v43 = vand.u32 4294901760, %v100_v56  ;;  %v25667_v42 = vand.u32 4294901760, %v22321_v54  ;;  %v25671_v38 = vand.u32 4294901760, %v22323_v55 }
  0x41   :  { %26033 = vst [vmem:[#allocation20_spill] sm:$0xff] %v22344_v62  ;;  %v25670_v44 = vand.u32 4294901760, %v22338_v61  ;;  %v22370_v35 = vsub.f32 %v22203_v3, %v134_v7  ;;  %v22375_v1 = vsub.f32 %v22207_v6, %v137_v10  ;;  %v22378_v2 = vld [vmem:[#allocation4 + $0xf0] sm:$0xff]  ;;  %v25660_v4 = vand.u32 4294901760, %v22355_v37  ;;  %v22392_v6 = vld [vmem:[#allocation4 + $0xf8] sm:$0xff] }
  0x42   :  { %v22365_v36 = vsub.f32 %v100_v56, %v22348_v43  ;;  %v25662_v5 = vand.u32 4294901760, %v22360_v45  ;;  %v22385_v56 = vsub.f32 %v22210_v8, %v188_v11  ;;  %v22390_v3 = vsub.f32 %v22212_v9, %v191_v12  ;;  %v22394_v7 = vld [vmem:[#allocation4 + $0x70] sm:$0xff]  ;;  %v22410_v11 = vld [vmem:[#allocation4 + $0x78] sm:$0xff] }
  0x43   :  { %18662 = vmatpush3.bf16.msra.mxu1 %v22307_v51  ;;  %v25666_v31 = vand.u32 4294901760, %v22370_v35  ;;  %v25669_v30 = vand.u32 4294901760, %v22375_v1  ;;  %v22402_v8 = vsub.f32 %v22217_v13, %v140_v17  ;;  %v22408_v9 = vpack.c.bf16 %v25661_v59, %v25663_v58 }
  0x44   :  { %26034 = vst [vmem:[#allocation21_spill] sm:$0xff] %v22365_v36  ;;  %18664 = vmatprep.subr.bf16.mxu1 %v22313_v52  ;;  %v25672_v10 = vand.u32 4294901760, %v22365_v36  ;;  %v361_v12 = vsub.f32 %v22355_v37, %v25660_v4  ;;  %v368_v25 = vsub.f32 %v22360_v45, %v25662_v5  ;;  %v25673_v20 = vand.u32 4294901760, %v22385_v56 }
  0x45   :  { %26035 = vst [vmem:[#allocation22_spill] sm:$0xff] %v22408_v9  ;;  %v22424_v13 = vpack.c.bf16 %v25664_v63, %v25665_v60  ;;  %v249_v4 = vsub.f32 %v22370_v35, %v25666_v31  ;;  %v25674_v59 = vand.u32 4294901760, %v22390_v3  ;;  %v22436_v5 = vpack.c.bf16 %v25667_v42, %v25668_v0 }
  0x46   :  { %v256_v60 = vsub.f32 %v22375_v1, %v25669_v30  ;;  %v22447_v31 = vpack.c.bf16 %v25670_v44, %v25671_v38  ;;  %v22453_v42 = vsub.f32 %v22365_v36, %v25672_v10  ;;  %v362_v63 = vand.u32 4294901760, %v361_v12 }
  0x47   :  { %18666 = vmatpush3.bf16.msra.mxu1 %v22319_v53  ;;  %26036 = vst [vmem:[#allocation23_spill] sm:$0xff] %v22424_v13  ;;  %26037 = vst [vmem:[#allocation24_spill] sm:$0xff] %v22436_v5  ;;  %v369_v58 = vand.u32 4294901760, %v368_v25  ;;  %v22459_v30 = vsub.f32 %v22385_v56, %v25673_v20  ;;  %v22464_v44 = vsub.f32 %v22219_v14, %v143_v18  ;;  %v250_v38 = vand.u32 4294901760, %v249_v4 }
  0x48   :  { %18668 = vmatprep.subr.bf16.mxu1 %v22333_v57  ;;  %26038 = vst [vmem:[#allocation25_spill] sm:$0xff] %v22447_v31  ;;  %v382_v10 = vsub.f32 %v22390_v3, %v25674_v59  ;;  %v26039_v12 = vand.u32 4294901760, %v22221_v15  ;;  %v26040_v20 = vand.u32 4294901760, %v22231_v19  ;;  %v257_v14 = vand.u32 4294901760, %v256_v60 }
  0x49   :  { %v26041_v4 = vand.u32 4294901760, %v22234_v21  ;;  %v26042_v59 = vand.u32 4294901760, %v22236_v22  ;;  %v26044_v18 = vand.u32 4294901760, %v22253_v27  ;;  %v22540_v57 = vpack.c.bf16 %v369_v58, %v362_v63 }
  0x4a   :  { %v22473_v25 = vsub.f32 %v22221_v15, %v26039_v12  ;;  %v22478_v17 = vsub.f32 %v22231_v19, %v26040_v20  ;;  %v26043_v20 = vand.u32 4294901760, %v22251_v26  ;;  %v26046_v19 = vand.u32 4294901760, %v22255_v28 }
  0x4b   :  { %18670 = vmatpush3.bf16.msra.mxu1 %v22344_v62  ;;  %v22485_v0 = vsub.f32 %v22234_v21, %v26041_v4  ;;  %v22490_v15 = vsub.f32 %v22236_v22, %v26042_v59  ;;  %v26045_v21 = vand.u32 4294901760, %v22402_v8  ;;  %v239_v62 = vand.u32 4294901760, %v22453_v42  ;;  %26056 = vst [vmem:[#allocation28_spill] sm:$0xff] %v22540_v57 }
  0x4c   :  { %18672 = vmatprep.subr.bf16.mxu1 %v22408_v9  ;;  %v22497_v60 = vsub.f32 %v22251_v26, %v26043_v20  ;;  %v22502_v9 = vsub.f32 %v22253_v27, %v26044_v18  ;;  %v22512_v12 = vsub.f32 %v22255_v28, %v26046_v19  ;;  %v26047_v26 = vand.u32 4294901760, %v22378_v2 }
  0x4d   :  { %v263_v4 = vsub.f32 %v22402_v8, %v26045_v21  ;;  %v26048_v27 = vand.u32 4294901760, %v22392_v6  ;;  %v26050_v20 = vand.u32 4294901760, %v22464_v44  ;;  %v26051_v28 = vand.u32 4294901760, %v22394_v7 }
  0x4e   :  { %v26052_v19 = vand.u32 4294901760, %v22410_v11  ;;  %v376_v59 = vand.u32 4294901760, %v22459_v30  ;;  %v26057_v53 = vand.u32 4294901760, %v22485_v0  ;;  %v26059_v52 = vand.u32 4294901760, %v22490_v15 }
  0x4f   :  { %18674 = vmatpush3.bf16.msra.mxu1 %v22424_v13  ;;  %v22519_v18 = vpack.c.bf16 %v26048_v27, %v26047_v26  ;;  %v270_v21 = vsub.f32 %v22464_v44, %v26050_v20  ;;  %v26054_v26 = vand.u32 4294901760, %v22473_v25  ;;  %v26055_v20 = vand.u32 4294901760, %v22478_v17 }
  0x50   :  { %18676 = vmatprep.subr.bf16.mxu1 %v22436_v5  ;;  %v22531_v13 = vpack.c.bf16 %v26052_v19, %v26051_v28  ;;  %v383_v5 = vand.u32 4294901760, %v382_v10  ;;  %v277_v28 = vsub.f32 %v22485_v0, %v26057_v53  ;;  %v22546_v19 = vpack.c.bf16 %v257_v14, %v250_v38 }
  0x51   :  { %26049 = vst [vmem:[#allocation26_spill] sm:$0xff] %v22519_v18  ;;  %v389_v27 = vsub.f32 %v22473_v25, %v26054_v26  ;;  %v396_v22 = vsub.f32 %v22478_v17, %v26055_v20  ;;  %v264_v42 = vand.u32 4294901760, %v263_v4  ;;  %v284_v26 = vsub.f32 %v22490_v15, %v26059_v52 }
  0x52   :  { %26053 = vst [vmem:[#allocation27_spill] sm:$0xff] %v22531_v13  ;;  %26058 = vst [vmem:[#allocation29_spill] sm:$0xff] %v22546_v19  ;;  %v271_v58 = vand.u32 4294901760, %v270_v21  ;;  %v26060_v63 = vand.u32 4294901760, %v22497_v60  ;;  %v26061_v10 = vand.u32 4294901760, %v22502_v9  ;;  %v26062_v38 = vand.u32 4294901760, %v22266_v32 }
  0x53   :  { %18678 = vmatpush3.bf16.msra.mxu1 %v22447_v31  ;;  %v390_v52 = vand.u32 4294901760, %v389_v27  ;;  %v397_v4 = vand.u32 4294901760, %v396_v22  ;;  %v26063_v20 = vand.u32 4294901760, %v22268_v33  ;;  %v26066_v22 = vand.u32 4294901760, %v22279_v40 }
  0x54   :  { %v403_v30 = vsub.f32 %v22497_v60, %v26060_v63  ;;  %v410_v53 = vsub.f32 %v22502_v9, %v26061_v10  ;;  %v22562_v14 = vsub.f32 %v22266_v32, %v26062_v38  ;;  %18680 = vmatprep.subr.bf16.mxu1 %v22519_v18  ;;  %v26064_v63 = vand.u32 4294901760, %v22270_v34 }
  0x55   :  { %v22568_v21 = vsub.f32 %v22268_v33, %v26063_v20  ;;  %v278_v10 = vand.u32 4294901760, %v277_v28  ;;  %v26065_v32 = vand.u32 4294901760, %v22277_v39  ;;  %v22584_v27 = vsub.f32 %v22279_v40, %v26066_v22 }
  0x56   :  { %v22573_v51 = vsub.f32 %v22270_v34, %v26064_v63  ;;  %v285_v33 = vand.u32 4294901760, %v284_v26  ;;  %v26067_v20 = vand.u32 4294901760, %v22512_v12  ;;  %v404_v63 = vand.u32 4294901760, %v403_v30 }
  0x57   :  { %v22579_v38 = vsub.f32 %v22277_v39, %v26065_v32  ;;  %v25695_v34 = vand.u32 4294901760, %v22568_v21  ;;  %18682 = vmatpush3.bf16.msra.mxu1 %v22531_v13  ;;  %v411_v31 = vand.u32 4294901760, %v410_v53  ;;  %v26068_v39 = vand.u32 4294901760, %v22292_v46 }
  0x58   :  { %v291_v18 = vsub.f32 %v22512_v12, %v26067_v20  ;;  %v26069_v40 = vand.u32 4294901760, %v22294_v47  ;;  %18684 = vmatprep.subr.bf16.mxu1 %v22540_v57  ;;  %v22603_v22 = vpack.c.bf16 %v383_v5, %v376_v59  ;;  %v26071_v20 = vand.u32 4294901760, %v22562_v14 }
  0x59   :  { %v22595_v32 = vsub.f32 %v22292_v46, %v26068_v39  ;;  %v417_v46 = vsub.f32 %v22568_v21, %v25695_v34  ;;  %v26072_v39 = vand.u32 4294901760, %v22296_v48  ;;  %v22618_v5 = vpack.c.bf16 %v271_v58, %v264_v42 }
  0x5a   :  { %v22600_v26 = vsub.f32 %v22294_v47, %v26069_v40  ;;  %26070 = vst [vmem:[#allocation30_spill] sm:$0xff] %v22603_v22  ;;  %v298_v28 = vsub.f32 %v22562_v14, %v26071_v20  ;;  %240 = vmatmul.mubr.f32.vlgmr.msra.gmra.mrb[0].mxu1 %v239_v62  ;;  %v22620_v59 = vpack.c.bf16 %v397_v4, %v390_v52  ;;  %v26076_v20 = vand.u32 4294901760, %v22573_v51 }
  0x5b   :  { %v22616_v47 = vsub.f32 %v22296_v48, %v26072_v39  ;;  %26073 = vst [vmem:[#allocation31_spill] sm:$0xff] %v22618_v5  ;;  %v22622_v40 = vpack.c.bf16 %v285_v33, %v278_v10  ;;  %18686 = vmatpush3.bf16.msra.mxu1 %v22546_v19  ;;  %v22628_v30 = vpack.c.bf16 %v411_v31, %v404_v63  ;;  %v292_v34 = vand.u32 4294901760, %v291_v18 }
  0x5c   :  { %26074 = vst [vmem:[#allocation32_spill] sm:$0xff] %v22620_v59  ;;  %v424_v53 = vsub.f32 %v22573_v51, %v26076_v20  ;;  %v26078_v62 = vmov 0.0   ;;  %18688 = vmatprep.subr.bf16.mxu1 %v22603_v22  ;;  %v299_v42 = vand.u32 4294901760, %v298_v28  ;;  %v26079_v58 = vand.u32 4294901760, %v22579_v38 }
  0x5d   :  { %26075 = vst [vmem:[#allocation33_spill] sm:$0xff] %v22622_v40  ;;  %26077 = vst [vmem:[#allocation34_spill] sm:$0xff] %v22628_v30  ;;  %470 = vmatprep.mubr.f32.mxu1 %v26078_v62  ;;  %v26080_v4 = vand.u32 4294901760, %v22584_v27  ;;  %v26081_v31 = vand.u32 4294901760, %v22298_v49  ;;  %v418_v33 = vand.u32 4294901760, %v417_v46  ;;  %v25706_v63 = vand.u32 4294901760, %v22616_v47 }
  0x5e   :  { %v305_v52 = vsub.f32 %v22579_v38, %v26079_v58  ;;  %v26082_v39 = vand.u32 4294901760, %v22300_v50  ;;  %v26083_v20 = vand.u32 4294901760, %v22321_v54  ;;  %v425_v48 = vand.u32 4294901760, %v424_v53 }
  0x5f   :  { %v312_v10 = vsub.f32 %v22584_v27, %v26080_v4  ;;  %v22643_v18 = vsub.f32 %v22298_v49, %v26081_v31  ;;  %v26084_v57 = vand.u32 4294901760, %v22323_v55  ;;  %v26085_v46 = vand.u32 4294901760, %v22338_v61  ;;  %18690 = vmatpush3.bf16.msra.mxu1 %v22618_v5 }
  0x60   :  { %v22649_v28 = vsub.f32 %v22300_v50, %v26082_v39  ;;  %v22654_v58 = vsub.f32 %v22321_v54, %v26083_v20  ;;  %v26087_v53 = vand.u32 4294901760, %v22378_v2  ;;  %v26088_v20 = vand.u32 4294901760, %v22392_v6  ;;  %18692 = vmatprep.subr.bf16.mxu1 %v22620_v59 }
  0x61   :  { %v22660_v49 = vsub.f32 %v22323_v55, %v26084_v57  ;;  %v22665_v31 = vsub.f32 %v22338_v61, %v26085_v46  ;;  %v26089_v57 = vand.u32 4294901760, %v22595_v32  ;;  %v26090_v46 = vand.u32 4294901760, %v22600_v26 }
  0x62   :  { %v451_v54 = vand.u32 4294901760, %v22654_v58  ;;  %v22673_v39 = vsub.f32 %v22378_v2, %v26087_v53  ;;  %v22678_v55 = vsub.f32 %v22392_v6, %v26088_v20  ;;  %v22689_v53 = vpack.c.bf16 %v299_v42, %v292_v34 }
  0x63   :  { %26086 = vst [vmem:[#allocation35_spill] sm:$0xff] %v22665_v31  ;;  %v431_v61 = vsub.f32 %v22595_v32, %v26089_v57  ;;  %v438_v50 = vsub.f32 %v22600_v26, %v26090_v46  ;;  %v332_v4 = vand.u32 4294901760, %v22660_v49  ;;  %v339_v2 = vand.u32 4294901760, %v22665_v31  ;;  %18694 = vmatpush3.bf16.msra.mxu1 %v22622_v40 }
  0x64   :  { %26091 = vst [vmem:[#allocation36_spill] sm:$0xff] %v22689_v53  ;;  %v319_v6 = vsub.f32 %v22616_v47, %v25706_v63  ;;  %v26092_v20 = vand.u32 4294901760, %v22643_v18  ;;  %v26093_v57 = vand.u32 4294901760, %v22394_v7  ;;  %v26094_v46 = vand.u32 4294901760, %v22649_v28  ;;  %18696 = vmatprep.subr.bf16.mxu1 %v22628_v30 }
  0x65   :  { %v452_v34 = vsub.f32 %v22654_v58, %v451_v54  ;;  %v458_v42 = vand.u32 4294901760, %v22673_v39  ;;  %v465_v19 = vand.u32 4294901760, %v22678_v55  ;;  %v306_v63 = vand.u32 4294901760, %v305_v52 }
  0x66   :  { %v326_v59 = vsub.f32 %v22643_v18, %v26092_v20  ;;  %v22700_v5 = vsub.f32 %v22394_v7, %v26093_v57  ;;  %v445_v22 = vsub.f32 %v22649_v28, %v26094_v46  ;;  %v313_v13 = vand.u32 4294901760, %v312_v10 }
  0x67   :  { %v333_v20 = vsub.f32 %v22660_v49, %v332_v4  ;;  %v340_v41 = vsub.f32 %v22665_v31, %v339_v2  ;;  %v22712_v7 = vpack.c.bf16 %v425_v48, %v418_v33  ;;  %v432_v57 = vand.u32 4294901760, %v431_v61  ;;  %18698 = vmatpush3.bf16.msra.mxu1 %v22689_v53 }
  0x68   :  { %v439_v46 = vand.u32 4294901760, %v438_v50  ;;  %v320_v29 = vand.u32 4294901760, %v319_v6  ;;  %v327_v24 = vand.u32 4294901760, %v326_v59  ;;  %v346_v23 = vand.u32 4294901760, %v22700_v5 }
  0x69   :  { %26095 = vst [vmem:[#allocation37_spill] sm:$0xff] %v22712_v7  ;;  %v26096_v36 = vand.u32 4294901760, %v22410_v11  ;;  %v446_v52 = vand.u32 4294901760, %v445_v22  ;;  %v453_v10 = vand.u32 4294901760, %v452_v34  ;;  %v459_v16 = vsub.f32 %v22673_v39, %v458_v42  ;;  %18700 = vmatprep.subr.bf16.mxu1 %v22712_v7 }
  0x6a   :  { %v466_v31 = vsub.f32 %v22678_v55, %v465_v19  ;;  %v22723_v48 = vpack.c.bf16 %v313_v13, %v306_v63  ;;  %v334_v33 = vand.u32 4294901760, %v333_v20  ;;  %v341_v50 = vand.u32 4294901760, %v340_v41 }
  0x6b   :  { %v22718_v40 = vsub.f32 %v22410_v11, %v26096_v36  ;;  %v22727_v61 = vpack.c.bf16 %v439_v46, %v432_v57  ;;  %v347_v36 = vsub.f32 %v22700_v5, %v346_v23  ;;  %v22730_v11 = vpack.c.bf16 %v327_v24, %v320_v29 }
  0x6c   :  { %26097 = vst [vmem:[#allocation38_spill] sm:$0xff] %v22723_v48  ;;  %v22732_v22 = vpack.c.bf16 %v453_v10, %v446_v52  ;;  %v460_v6 = vand.u32 4294901760, %v459_v16  ;;  %v467_v34 = vand.u32 4294901760, %v466_v31  ;;  %18702 = vmatpush3.bf16.msra.mxu1 %v22723_v48  ;;  %v22735_v13 = vpack.c.bf16 %v341_v50, %v334_v33 }
  0x6d   :  { %v353_v59 = vand.u32 4294901760, %v22718_v40  ;;  %26098 = vst [vmem:[#allocation39_spill] sm:$0xff] %v22727_v61  ;;  %26099 = vst [vmem:[#allocation40_spill] sm:$0xff] %v22730_v11  ;;  %v26102_v63 = vand.u32 4294901760, %v22355_v37  ;;  %v26103_v20 = vand.u32 4294901760, %v22360_v45  ;;  %v26105_v46 = vand.u32 4294901760, %v22370_v35  ;;  %18704 = vmatprep.subr.bf16.mxu1 %v22727_v61 }
  0x6e   :  { %26100 = vst [vmem:[#allocation41_spill] sm:$0xff] %v22732_v22  ;;  %26101 = vst [vmem:[#allocation42_spill] sm:$0xff] %v22735_v13  ;;  %v26106_v24 = vand.u32 4294901760, %v22375_v1  ;;  %v26108_v16 = vand.u32 4294901760, %v22385_v56  ;;  %v26109_v31 = vand.u32 4294901760, %v22390_v3  ;;  %v26111_v10 = vand.u32 4294901760, %v22402_v8 }
  0x6f   :  { %v354_v41 = vsub.f32 %v22718_v40, %v353_v59  ;;  %v22742_v57 = vpack.c.bf16 %v26103_v20, %v26102_v63  ;;  %v26112_v33 = vand.u32 4294901760, %v22464_v44  ;;  %v26114_v63 = vand.u32 4294901760, %v22473_v25 }
  0x70   :  { %v22748_v29 = vpack.c.bf16 %v26106_v24, %v26105_v46  ;;  %v22755_v52 = vpack.c.bf16 %v26109_v31, %v26108_v16  ;;  %v26115_v20 = vand.u32 4294901760, %v22478_v17  ;;  %v26117_v24 = vand.u32 4294901760, %v22485_v0  ;;  %18706 = vmatpush3.bf16.msra.mxu1 %v22730_v11 }
  0x71   :  { %26104 = vst [vmem:[#allocation43_spill] sm:$0xff] %v22742_v57  ;;  %v22761_v50 = vpack.c.bf16 %v26112_v33, %v26111_v10  ;;  %v26118_v61 = vand.u32 4294901760, %v22490_v15  ;;  %v348_v16 = vand.u32 4294901760, %v347_v36  ;;  %v26120_v31 = vand.u32 4294901760, %v22497_v60  ;;  %18708 = vmatprep.subr.bf16.mxu1 %v22732_v22 }
  0x72   :  { %26107 = vst [vmem:[#allocation44_spill] sm:$0xff] %v22748_v29  ;;  %26110 = vst [vmem:[#allocation45_spill] sm:$0xff] %v22755_v52  ;;  %v22767_v46 = vpack.c.bf16 %v26115_v20, %v26114_v63  ;;  %v26121_v7 = vand.u32 4294901760, %v22502_v9  ;;  %v26123_v10 = vand.u32 4294901760, %v22512_v12  ;;  %v26124_v33 = vand.u32 4294901760, %v22562_v14 }
  0x73   :  { %26113 = vst [vmem:[#allocation46_spill] sm:$0xff] %v22761_v50  ;;  %v22773_v48 = vpack.c.bf16 %v26118_v61, %v26117_v24  ;;  %v26126_v63 = vand.u32 4294901760, %v22568_v21  ;;  %v26127_v20 = vand.u32 4294901760, %v22573_v51  ;;  %v26129_v61 = vand.u32 4294901760, %v22579_v38 }
  0x74   :  { %26116 = vst [vmem:[#allocation47_spill] sm:$0xff] %v22767_v46  ;;  %v22779_v53 = vpack.c.bf16 %v26121_v7, %v26120_v31  ;;  %v22785_v30 = vpack.c.bf16 %v26124_v33, %v26123_v10  ;;  %v26130_v36 = vand.u32 4294901760, %v22584_v27  ;;  %v26132_v7 = vand.u32 4294901760, %v22595_v32  ;;  %18710 = vmatpush3.bf16.msra.mxu1 %v22735_v13 }
  0x75   :  { %26119 = vst [vmem:[#allocation48_spill] sm:$0xff] %v22773_v48  ;;  %v22791_v46 = vpack.c.bf16 %v26127_v20, %v26126_v63  ;;  %v26133_v31 = vand.u32 4294901760, %v22600_v26  ;;  %v26135_v10 = vand.u32 4294901760, %v22616_v47  ;;  %v26136_v33 = vand.u32 4294901760, %v22643_v18 }
  0x76   :  { %26122 = vst [vmem:[#allocation49_spill] sm:$0xff] %v22779_v53  ;;  %26125 = vst [vmem:[#allocation50_spill] sm:$0xff] %v22785_v30  ;;  %v22797_v24 = vpack.c.bf16 %v26130_v36, %v26129_v61  ;;  %v26138_v63 = vand.u32 4294901760, %v22649_v28  ;;  %v355_v61 = vand.u32 4294901760, %v354_v41  ;;  %v22816_v36 = vpack.c.bf16 %v339_v2, %v332_v4  ;;  %v26176_v4 = vld [vmem:[#allocation25_spill] sm:$0xff] }
  0x77   :  { %26128 = vst [vmem:[#allocation51_spill] sm:$0xff] %v22791_v46  ;;  %v22803_v53 = vpack.c.bf16 %v26133_v31, %v26132_v7  ;;  %v22809_v30 = vpack.c.bf16 %v26136_v33, %v26135_v10  ;;  %v22820_v46 = vpack.c.bf16 %v353_v59, %v346_v23  ;;  %v22823_v7 = vpack.c.bf16 %v467_v34, %v460_v6  ;;  %v14953_v33 = vld [vmem:[%s25640_s2] ss:$0 sm:$0xff] }
  0x78   :  { %26131 = vst [vmem:[#allocation52_spill] sm:$0xff] %v22797_v24  ;;  %v22813_v20 = vpack.c.bf16 %v451_v54, %v26138_v63  ;;  %26140 = vst [vmem:[#allocation56_spill] sm:$0xff] %v22816_v36  ;;  %v22818_v24 = vpack.c.bf16 %v465_v19, %v458_v42  ;;  %v22826_v31 = vpack.c.bf16 %v355_v61, %v348_v16  ;;  %vm22104_vm3 = vmmov 0  }
  0x79   :  { %26134 = vst [vmem:[#allocation53_spill] sm:$0xff] %v22803_v53  ;;  %26137 = vst [vmem:[#allocation54_spill] sm:$0xff] %v22809_v30  ;;  %18712 = vmatprep.subr.bf16.mxu1 %v22823_v7  ;;  %v22831_v54 = vpack.c.bf16 %v22360_v45, %v22355_v37  ;;  %v22836_v23 = vpack.c.bf16 %v22375_v1, %v22370_v35  ;;  %v22841_v19 = vpack.c.bf16 %v22390_v3, %v22385_v56 }
  0x7a   :  { %26139 = vst [vmem:[#allocation55_spill] sm:$0xff] %v22813_v20  ;;  %26141 = vst [vmem:[#allocation57_spill] sm:$0xff] %v22818_v24  ;;  %18714 = vmatpush3.bf16.msra.mxu1 %v22826_v31  ;;  %v22847_v37 = vpack.c.bf16 %v22464_v44, %v22402_v8  ;;  %v22853_v35 = vpack.c.bf16 %v22478_v17, %v22473_v25  ;;  %v22858_v45 = vpack.c.bf16 %v22490_v15, %v22485_v0 }
  0x7b   :  { %26142 = vst [vmem:[#allocation58_spill] sm:$0xff] %v22820_v46  ;;  %26143 = vst [vmem:[#allocation59_spill] sm:$0xff] %v22823_v7  ;;  %18716 = vmatprep.subr.bf16.mxu1 %v22831_v54  ;;  %v22863_v44 = vpack.c.bf16 %v22502_v9, %v22497_v60  ;;  %v22868_v1 = vpack.c.bf16 %v22562_v14, %v22512_v12  ;;  %v22873_v56 = vpack.c.bf16 %v22573_v51, %v22568_v21  ;;  %v26158_v9 = vld [vmem:[#allocation35_spill] sm:$0xff]  ;;  %v26163_v60 = vld [vmem:[#allocation21_spill] sm:$0xff] }
  0x7c   :  { %26144 = vst [vmem:[#allocation60_spill] sm:$0xff] %v22826_v31  ;;  %26145 = vst [vmem:[#allocation61_spill] sm:$0xff] %v22831_v54  ;;  %v22878_v0 = vpack.c.bf16 %v22584_v27, %v22579_v38  ;;  %v22883_v3 = vpack.c.bf16 %v22600_v26, %v22595_v32  ;;  %v22888_v8 = vpack.c.bf16 %v22643_v18, %v22616_v47  ;;  %v26162_v12 = vld [vmem:[#allocation11_spill] sm:$0xff]  ;;  %v26164_v14 = vld [vmem:[#allocation12_spill] sm:$0xff] }
  0x7d   :  { %26146 = vst [vmem:[#allocation62_spill] sm:$0xff] %v22836_v23  ;;  %26147 = vst [vmem:[#allocation63_spill] sm:$0xff] %v22841_v19  ;;  %472 = vmatmul.mubr.f32.vlgmr.msra.gmra.mrb[2].mxu1 %v22348_v43  ;;  %v22893_v51 = vpack.c.bf16 %v22654_v58, %v22649_v28  ;;  %v22898_v17 = vpack.c.bf16 %v26158_v9, %v22660_v49  ;;  %v22903_v25 = vpack.c.bf16 %v22678_v55, %v22673_v39  ;;  %v26165_v21 = vld [vmem:[#allocation13_spill] sm:$0xff]  ;;  %v26166_v38 = vld [vmem:[#allocation14_spill] sm:$0xff] }
  0x7e   :  { %18718 = vmatpush3.bf16.msra.mxu1 %v22836_v23  ;;  %26148 = vst [vmem:[#allocation64_spill] sm:$0xff] %v22847_v37  ;;  %607 = vmatprep.mubr.f32.mxu1 %v26078_v62  ;;  %26149 = vst [vmem:[#allocation65_spill] sm:$0xff] %v22853_v35  ;;  %v22908_v15 = vpack.c.bf16 %v22718_v40, %v22700_v5  ;;  %v26167_v27 = vld [vmem:[#allocation15_spill] sm:$0xff]  ;;  %v26168_v32 = vld [vmem:[#allocation16_spill] sm:$0xff]  ;;  %v26179_v55 = vand.u32 4294901760, %v26163_v60 }
  0x7f   :  { %18720 = vmatprep.subr.bf16.mxu1 %v22841_v19  ;;  %26150 = vst [vmem:[#allocation66_spill] sm:$0xff] %v22858_v45  ;;  %26151 = vst [vmem:[#allocation67_spill] sm:$0xff] %v22863_v44  ;;  %v26169_v26 = vld [vmem:[#allocation17_spill] sm:$0xff]  ;;  %v26170_v47 = vld [vmem:[#allocation18_spill] sm:$0xff] }
  0x80   :  { %26152 = vst [vmem:[#allocation68_spill] sm:$0xff] %v22868_v1  ;;  %26153 = vst [vmem:[#allocation69_spill] sm:$0xff] %v22873_v56  ;;  %v26171_v5 = vld [vmem:[#allocation19_spill] sm:$0xff]  ;;  %v26172_v40 = vld [vmem:[#allocation20_spill] sm:$0xff] }
  0x81   :  { %26154 = vst [vmem:[#allocation70_spill] sm:$0xff] %v22878_v0  ;;  %26155 = vst [vmem:[#allocation71_spill] sm:$0xff] %v22883_v3  ;;  %v26173_v18 = vld [vmem:[#allocation22_spill] sm:$0xff]  ;;  %v26174_v28 = vld [vmem:[#allocation23_spill] sm:$0xff] }
  0x82   :  { %18722 = vmatpush3.bf16.msra.mxu1 %v22847_v37  ;;  %26156 = vst [vmem:[#allocation72_spill] sm:$0xff] %v22888_v8  ;;  %26157 = vst [vmem:[#allocation73_spill] sm:$0xff] %v22893_v51  ;;  %v26175_v58 = vld [vmem:[#allocation24_spill] sm:$0xff]  ;;  %v26177_v49 = vld [vmem:[#allocation26_spill] sm:$0xff] }
  0x83   :  { %18724 = vmatprep.subr.bf16.mxu1 %v22853_v35  ;;  %26159 = vst [vmem:[#allocation35_spill] sm:$0xff] %v22898_v17  ;;  %26160 = vst [vmem:[#allocation74_spill] sm:$0xff] %v22903_v25  ;;  %v26178_v39 = vld [vmem:[#allocation27_spill] sm:$0xff]  ;;  %v26181_v42 = vld [vmem:[#allocation49_spill] sm:$0xff] }
  0x84   :  { %26161 = vst [vmem:[#allocation75_spill] sm:$0xff] %v22908_v15  ;;  %v26180_v2 = vld [vmem:[#allocation47_spill] sm:$0xff]  ;;  %v26182_v59 = vld [vmem:[#allocation50_spill] sm:$0xff]  ;;  %v26184_v34 = vld [vmem:[#allocation52_spill] sm:$0xff] }
  0x85   :  { %v26183_v6 = vld [vmem:[#allocation51_spill] sm:$0xff]  ;;  %v1020_v35 = vld [vmem:[#allocation6 + $0x30] sm:$0xff]  ;;  %v1021_v37 = vld [vmem:[#allocation6 + $0x38] sm:$0xff] }
  0x86   :  { %18726 = vmatpush3.bf16.msra.mxu1 %v22858_v45 }
  0x87   :  { %18728 = vmatprep.subr.bf16.mxu1 %v22863_v44 }
  0x8a   :  { %18730 = vmatpush3.bf16.msra.mxu1 %v22868_v1 }
  0x8b   :  { %18732 = vmatprep.subr.bf16.mxu1 %v22873_v56 }
  0x8e   :  { %18734 = vmatpush3.bf16.msra.mxu1 %v22878_v0 }
  0x8f   :  { %18736 = vmatprep.subr.bf16.mxu1 %v22883_v3 }
  0x92   :  { %18738 = vmatpush3.bf16.msra.mxu1 %v22888_v8  ;;  %v1018_v8 = vld [vmem:[#allocation6 + $0x20] sm:$0xff] }
  0x93   :  { %18740 = vmatprep.subr.bf16.mxu1 %v22893_v51 }
  0x96   :  { %18742 = vmatpush3.bf16.msra.mxu1 %v22898_v17 }
  0x97   :  { %18744 = vmatprep.subr.bf16.mxu1 %v22903_v25 }
  0x9a   :  { %18746 = vmatpush3.bf16.msra.mxu1 %v22908_v15  ;;  %v1035_v15 = vld [vmem:[#allocation6 + $0xa8] sm:$0xff] }
  0x9b   :  { %18748 = vmatprep.subr.bf16.mxu1 %v26162_v12 }
  0x9d   :  { %610 = vmatmul.mubr.f32.vlgmr.msra.gmra.mrb[4].mxu1 %v26163_v60 }
  0x9e   :  { %18750 = vmatpush3.bf16.msra.mxu1 %v26164_v14  ;;  %714 = vmatprep.mubr.f32.mxu1 %v26078_v62 }
  0x9f   :  { %18752 = vmatprep.subr.bf16.mxu1 %v26165_v21 }
  0xa2   :  { %18754 = vmatpush3.bf16.msra.mxu1 %v26166_v38 }
  0xa3   :  { %18756 = vmatprep.subr.bf16.mxu1 %v26167_v27 }
  0xa6   :  { %18758 = vmatpush3.bf16.msra.mxu1 %v26168_v32 }
  0xa7   :  { %18760 = vmatprep.subr.bf16.mxu1 %v26169_v26 }
  0xaa   :  { %18762 = vmatpush3.bf16.msra.mxu1 %v26170_v47 }
  0xab   :  { %18764 = vmatprep.subr.bf16.mxu1 %v26171_v5 }
  0xae   :  { %18766 = vmatpush3.bf16.msra.mxu1 %v26172_v40 }
  0xaf   :  { %18768 = vmatprep.subr.bf16.mxu1 %v26173_v18 }
  0xb2   :  { %18770 = vmatpush3.bf16.msra.mxu1 %v26174_v28 }
  0xb3   :  { %18772 = vmatprep.subr.bf16.mxu1 %v26175_v58 }
  0xb6   :  { %18774 = vmatpush3.bf16.msra.mxu1 %v26176_v4 }
  0xb7   :  { %18776 = vmatprep.subr.bf16.mxu1 %v26177_v49 }
  0xba   :  { %18778 = vmatpush3.bf16.msra.mxu1 %v26178_v39 }
  0xbb   :  { %18780 = vmatprep.subr.bf16.mxu1 %v22742_v57 }
  0xbd   :  { %718 = vmatmul.mubr.f32.vlgmr.msra.gmra.mrb[6].mxu1 %v26179_v55 }
  0xbe   :  { %18782 = vmatpush3.bf16.msra.mxu1 %v22748_v29  ;;  %884 = vmatprep.mubr.f32.mxu1 %v26078_v62 }
  0xbf   :  { %18784 = vmatprep.subr.bf16.mxu1 %v22755_v52 }
  0xc2   :  { %18786 = vmatpush3.bf16.msra.mxu1 %v22761_v50 }
  0xc3   :  { %18788 = vmatprep.subr.bf16.mxu1 %v26180_v2 }
  0xc6   :  { %18790 = vmatpush3.bf16.msra.mxu1 %v22773_v48 }
  0xc7   :  { %18792 = vmatprep.subr.bf16.mxu1 %v26181_v42  ;;  %v1033_v42 = vld [vmem:[#allocation6 + $0x98] sm:$0xff] }
  0xc8   :  { %v1104_v50 = vand.u32 4294901760, %v1033_v42 }
  0xca   :  { %18794 = vmatpush3.bf16.msra.mxu1 %v26182_v59  ;;  %v1032_v59 = vld [vmem:[#allocation6 + $0x90] sm:$0xff] }
  0xcb   :  { %18796 = vmatprep.subr.bf16.mxu1 %v26183_v6  ;;  %v1101_v2 = vand.u32 4294901760, %v1032_v59 }
  0xce   :  { %18798 = vmatpush3.bf16.msra.mxu1 %v26184_v34 }
  0xcf   :  { %18800 = vmatprep.subr.bf16.mxu1 %v22803_v53  ;;  %v1014_v53 = vld [vmem:[#allocation6] sm:$0xff] }
  0xd2   :  { %18802 = vmatpush3.bf16.msra.mxu1 %v22809_v30  ;;  %v1031_v30 = vld [vmem:[#allocation6 + $0x88] sm:$0xff] }
  0xd3   :  { %18804 = vmatprep.subr.bf16.mxu1 %v22813_v20  ;;  %v1098_v6 = vand.u32 4294901760, %v1031_v30 }
  0xd6   :  { %18806 = vmatpush3.bf16.msra.mxu1 %v22816_v36 }
  0xd7   :  { %18808 = vmatprep.subr.bf16.mxu1 %v22818_v24 }
  0xda   :  { %18810 = vmatpush3.bf16.msra.mxu1 %v22820_v46 }
  0xdb   :  { %18812 = vmatprep.subr.bf16.mxu1 %v26162_v12 }
  0xdd   :  { %886 = vmatmul.mubr.f32.vlgmr.msra.gmra.mrb[8].mxu1 %v22348_v43 }
  0xde   :  { %18814 = vmatpush3.bf16.msra.mxu1 %v26164_v14  ;;  %988 = vmatprep.mubr.f32.mxu1 %v26078_v62 }
  0xdf   :  { %18816 = vmatprep.subr.bf16.mxu1 %v26165_v21 }
  0xe2   :  { %18818 = vmatpush3.bf16.msra.mxu1 %v26166_v38 }
  0xe3   :  { %18820 = vmatprep.subr.bf16.mxu1 %v26167_v27 }
  0xe6   :  { %18822 = vmatpush3.bf16.msra.mxu1 %v26168_v32 }
  0xe7   :  { %18824 = vmatprep.subr.bf16.mxu1 %v26169_v26  ;;  %v23220_v26 = vld [vmem:[#allocation6 + $0x68] sm:$0xff] }
  0xea   :  { %18826 = vmatpush3.bf16.msra.mxu1 %v26170_v47 }
  0xeb   :  { %18828 = vmatprep.subr.bf16.mxu1 %v26171_v5 }
  0xee   :  { %18830 = vmatpush3.bf16.msra.mxu1 %v26172_v40 }
  0xef   :  { %18832 = vmatprep.subr.bf16.mxu1 %v26173_v18  ;;  %v23146_v18 = vld [vmem:[#allocation6 + $0xd0] sm:$0xff] }
  0xf2   :  { %18834 = vmatpush3.bf16.msra.mxu1 %v26174_v28 }
  0xf3   :  { %18836 = vmatprep.subr.bf16.mxu1 %v26175_v58 }
  0xf6   :  { %18838 = vmatpush3.bf16.msra.mxu1 %v26176_v4 }
  0xf7   :  { %18840 = vmatprep.subr.bf16.mxu1 %v26177_v49 }
  0xfa   :  { %18842 = vmatpush3.bf16.msra.mxu1 %v26178_v39 }
  0xfd   :  { %990 = vmatmul.mubr.f32.vlgmr.msra.gmra.mrb[10].mxu1 %v22348_v43  ;;  %v1030_v43 = vld [vmem:[#allocation6 + $0x80] sm:$0xff] }
  0xfe   :  { %1383 = vmatprep.mubr.f32.mxu1 %v26078_v62  ;;  %v1095_v34 = vand.u32 4294901760, %v1030_v43 }
 0x12d   :  { %v15011_v41 = vpop.f32.mrb[0].mxu1 }
 0x12e   :  { %v15012_v16 = vpop.f32.mrb[1].mxu1 }
 0x12f   :  { %v15013_v10 = vadd.f32 %v15012_v16, %v15011_v41  ;;  %v1015_v41 = vld [vmem:[#allocation6 + $0x8] sm:$0xff]  ;;  %v1047_v16 = vand.u32 4294901760, %v1014_v53 }
 0x130   :  { %v1050_v48 = vand.u32 4294901760, %v1015_v41 }
 0x131   :  { %v242_v9 = vadd.f32 %v15013_v10, %v14953_v33  ;;  %v22974_v10 = vpack.c.bf16 %v1098_v6, %v1095_v34  ;;  %v22976_v33 = vsub.f32 %v1030_v43, %v1095_v34 }
 0x133   :  { %v25759_v52 = vand.u32 4294901760, %v22976_v33  ;;  %18844 = vmatprep.subr.bf16.mxu0 %v22974_v10 }
 0x150   :  { %v15046_v63 = vpop.f32.mrb[2].mxu1 }
 0x151   :  { %v15047_v61 = vpop.f32.mrb[3].mxu1 }
 0x152   :  { %v15048_v60 = vadd.f32 %v15047_v61, %v15046_v63  ;;  %v22978_v63 = vsub.f32 %v1031_v30, %v1098_v6  ;;  %v22982_v61 = vpack.c.bf16 %v1050_v48, %v1047_v16  ;;  %v22993_v30 = vsub.f32 %v1033_v42, %v1104_v50 }
 0x154   :  { %v474_v55 = vadd.f32 %v15048_v60, %v242_v9  ;;  %v22984_v9 = vsub.f32 %v1015_v41, %v1050_v48  ;;  %v22986_v60 = vpack.c.bf16 %v1104_v50, %v1101_v2  ;;  %v25762_v29 = vand.u32 4294901760, %v22978_v63  ;;  %18846 = vmatpush3.bf16.msra.mxu0 %v22982_v61 }
 0x155   :  { %v25782_v42 = vand.u32 4294901760, %v22993_v30 }
 0x156   :  { %18848 = vmatprep.subr.bf16.mxu0 %v22986_v60 }
 0x157   :  { %v1295_v51 = vsub.f32 %v22993_v30, %v25782_v42 }
 0x170   :  { %v15081_v46 = vpop.f32.mrb[4].mxu1 }
 0x171   :  { %v15082_v24 = vpop.f32.mrb[5].mxu1 }
 0x172   :  { %v15083_v36 = vadd.f32 %v15082_v24, %v15081_v46  ;;  %v22980_v46 = vsub.f32 %v1014_v53, %v1047_v16  ;;  %v1016_v24 = vld [vmem:[#allocation6 + $0x10] sm:$0xff]  ;;  %v25776_v53 = vand.u32 4294901760, %v22984_v9 }
 0x173   :  { %v1053_v48 = vand.u32 4294901760, %v1016_v24 }
 0x174   :  { %v22972_v20 = vadd.f32 %v15083_v36, %v474_v55  ;;  %v1017_v36 = vld [vmem:[#allocation6 + $0x18] sm:$0xff]  ;;  %v22988_v55 = vsub.f32 %v1032_v59, %v1101_v2  ;;  %v25767_v34 = vand.u32 4294901760, %v22980_v46  ;;  %v1274_v2 = vsub.f32 %v22976_v33, %v25759_v52 }
 0x175   :  { %v1056_v43 = vand.u32 4294901760, %v1017_v36  ;;  %v1281_v59 = vsub.f32 %v22978_v63, %v25762_v29  ;;  %v1169_v41 = vsub.f32 %v22984_v9, %v25776_v53  ;;  %v23018_v57 = vsub.f32 %v1016_v24, %v1053_v48  ;;  %v1034_v29 = vld [vmem:[#allocation6 + $0xa0] sm:$0xff] }
 0x176   :  { %v25781_v6 = vand.u32 4294901760, %v22988_v55  ;;  %v1162_v50 = vsub.f32 %v22980_v46, %v25767_v34  ;;  %v1275_v25 = vand.u32 4294901760, %v1274_v2  ;;  %v1110_v2 = vand.u32 4294901760, %v1035_v15 }
 0x177   :  { %v23016_v52 = vpack.c.bf16 %v1056_v43, %v1053_v48  ;;  %v1282_v34 = vand.u32 4294901760, %v1281_v59  ;;  %v1170_v3 = vand.u32 4294901760, %v1169_v41  ;;  %v25783_v0 = vand.u32 4294901760, %v23018_v57  ;;  %v1019_v59 = vld [vmem:[#allocation6 + $0x28] sm:$0xff] }
 0x178   :  { %v1288_v16 = vsub.f32 %v22988_v55, %v25781_v6  ;;  %v1163_v17 = vand.u32 4294901760, %v1162_v50  ;;  %v23024_v56 = vsub.f32 %v1017_v36, %v1056_v43  ;;  %v1296_v48 = vand.u32 4294901760, %v1295_v51 }
 0x179   :  { %18850 = vmatpush3.bf16.msra.mxu0 %v23016_v52  ;;  %v23027_v24 = vpack.c.bf16 %v1282_v34, %v1275_v25  ;;  %v1107_v6 = vand.u32 4294901760, %v1034_v29  ;;  %v1176_v42 = vsub.f32 %v23018_v57, %v25783_v0  ;;  %v23042_v51 = vsub.f32 %v1035_v15, %v1110_v2 }
 0x17a   :  { %v1289_v53 = vand.u32 4294901760, %v1288_v16  ;;  %v23029_v50 = vpack.c.bf16 %v1170_v3, %v1163_v17  ;;  %v25784_v41 = vand.u32 4294901760, %v23024_v56  ;;  %v1059_v16 = vand.u32 4294901760, %v1018_v8 }
 0x17b   :  { %26185 = vst [vmem:[#allocation21_spill] sm:$0xff] %v23027_v24  ;;  %18876 = vmatprep.subr.bf16.mxu1 %v23027_v24  ;;  %v23038_v43 = vpack.c.bf16 %v1110_v2, %v1107_v6  ;;  %v23040_v25 = vsub.f32 %v1034_v29, %v1107_v6  ;;  %26189 = vst [vmem:[#allocation79_spill] sm:$0xff] %v23042_v51  ;;  %v1177_v3 = vand.u32 4294901760, %v1176_v42  ;;  %v1062_v34 = vand.u32 4294901760, %v1019_v59 }
 0x17c   :  { %26186 = vst [vmem:[#allocation76_spill] sm:$0xff] %v23029_v50  ;;  %v23036_v36 = vpack.c.bf16 %v1296_v48, %v1289_v53  ;;  %18878 = vmatpush3.bf16.msra.mxu1 %v23029_v50  ;;  %v1183_v17 = vsub.f32 %v23024_v56, %v25784_v41  ;;  %v23048_v0 = vsub.f32 %v1018_v8, %v1059_v16  ;;  %v25788_v48 = vand.u32 4294901760, %v23042_v51 }
 0x17d   :  { %26188 = vst [vmem:[#allocation78_spill] sm:$0xff] %v23040_v25  ;;  %v25787_v53 = vand.u32 4294901760, %v23040_v25  ;;  %18852 = vmatprep.subr.bf16.mxu0 %v23038_v43  ;;  %v23054_v15 = vpack.c.bf16 %v1062_v34, %v1059_v16  ;;  %v23057_v42 = vsub.f32 %v1019_v59, %v1062_v34 }
 0x17e   :  { %26187 = vst [vmem:[#allocation77_spill] sm:$0xff] %v23036_v36  ;;  %26190 = vst [vmem:[#allocation80_spill] sm:$0xff] %v23048_v0  ;;  %18880 = vmatprep.subr.bf16.mxu1 %v23036_v36  ;;  %v1184_v29 = vand.u32 4294901760, %v1183_v17  ;;  %v25789_v6 = vand.u32 4294901760, %v23048_v0  ;;  %v1309_v2 = vsub.f32 %v23042_v51, %v25788_v48 }
 0x17f   :  { %26191 = vst [vmem:[#allocation81_spill] sm:$0xff] %v23057_v42  ;;  %v1302_v8 = vsub.f32 %v23040_v25, %v25787_v53  ;;  %v25800_v16 = vand.u32 4294901760, %v23057_v42  ;;  %18854 = vmatpush3.bf16.msra.mxu0 %v23054_v15 }
 0x180   :  { %v23065_v41 = vpack.c.bf16 %v1184_v29, %v1177_v3  ;;  %v1190_v17 = vsub.f32 %v23048_v0, %v25789_v6  ;;  %v1310_v34 = vand.u32 4294901760, %v1309_v2 }
 0x181   :  { %v1303_v59 = vand.u32 4294901760, %v1302_v8  ;;  %v1197_v53 = vsub.f32 %v23057_v42, %v25800_v16 }
 0x182   :  { %26192 = vst [vmem:[#allocation82_spill] sm:$0xff] %v23065_v41  ;;  %18882 = vmatpush3.bf16.msra.mxu1 %v23065_v41  ;;  %v1191_v36 = vand.u32 4294901760, %v1190_v17 }
 0x183   :  { %v23076_v48 = vpack.c.bf16 %v1310_v34, %v1303_v59  ;;  %v1198_v3 = vand.u32 4294901760, %v1197_v53 }
 0x185   :  { %26193 = vst [vmem:[#allocation83_spill] sm:$0xff] %v23076_v48  ;;  %18884 = vmatprep.subr.bf16.mxu1 %v23076_v48  ;;  %v23079_v29 = vpack.c.bf16 %v1198_v3, %v1191_v36  ;;  %v89_v48 = vlaneseq  ;;  %v1036_v36 = vld [vmem:[#allocation6 + $0xb0] sm:$0xff]  ;;  %v1037_v3 = vld [vmem:[#allocation6 + $0xb8] sm:$0xff] }
 0x186   :  { %v1113_v45 = vand.u32 4294901760, %v1036_v36 }
 0x187   :  { %26194 = vst [vmem:[#allocation84_spill] sm:$0xff] %v23079_v29  ;;  %18886 = vmatpush3.bf16.msra.mxu1 %v23079_v29  ;;  %v1116_v29 = vand.u32 4294901760, %v1037_v3 }
 0x189   :  { %v23150_v13 = vpack.c.bf16 %v1116_v29, %v1113_v45 }
 0x18b   :  { %18856 = vmatprep.subr.bf16.mxu0 %v23150_v13 }
 0x190   :  { %v15116_v6 = vpop.f32.mrb[6].mxu1 }
 0x191   :  { %v15117_v50 = vpop.f32.mrb[7].mxu1 }
 0x192   :  { %v15118_v8 = vadd.f32 %v15117_v50, %v15116_v6  ;;  %v1065_v50 = vand.u32 4294901760, %v1020_v35  ;;  %v1068_v6 = vand.u32 4294901760, %v1021_v37 }
 0x194   :  { %v720_v2 = vadd.f32 %v15118_v8, %v22972_v20  ;;  %v23083_v20 = vsub.f32 %v1036_v36, %v1113_v45  ;;  %v23085_v8 = vsub.f32 %v1037_v3, %v1116_v29  ;;  %v23101_v36 = vld [vmem:[#allocation6 + $0x40] sm:$0xff]  ;;  %v23154_v22 = vpack.c.bf16 %v1068_v6, %v1065_v50 }
 0x195   :  { %v23171_v29 = vld [vmem:[#allocation6 + $0xe0] sm:$0xff] }
 0x196   :  { %26203 = vst [vmem:[#allocation86_spill] sm:$0xff] %v23154_v22  ;;  %18858 = vmatpush3.bf16.msra.mxu0 %v23154_v22  ;;  %v1028_v22 = vld [vmem:[#allocation6 + $0x70] sm:$0xff] }
 0x1b0   :  { %v15151_v41 = vpop.f32.mrb[8].mxu1 }
 0x1b1   :  { %v15152_v17 = vpop.f32.mrb[9].mxu1 }
 0x1b2   :  { %v15153_v24 = vadd.f32 %v15152_v17, %v15151_v41  ;;  %v23093_v41 = vld [vmem:[#allocation6 + $0xc0] sm:$0xff] }
 0x1b3   :  { %v26196_v19 = vand.u32 4294901760, %v23093_v41 }
 0x1b4   :  { %v888_v1 = vadd.f32 %v15153_v24, %v720_v2  ;;  %v23087_v24 = vand.u32 127, %v89_v48  ;;  %v25815_v2 = vand.u32 4294901760, %v23083_v20  ;;  %v23103_v48 = vld [vmem:[#allocation6 + $0x48] sm:$0xff] }
 0x1b5   :  { %v23118_v23 = vsub.f32 %v23093_v41, %v26196_v19  ;;  %v26201_v19 = vand.u32 4294901760, %v23103_v48 }
 0x1b6   :  { %v1316_v17 = vsub.f32 %v23083_v20, %v25815_v2  ;;  %vm91_vm0 = vcmp.ge.s32.totalorder %v23087_v24, 64  ;;  %vm92_vm1 = vcmp.lt.s32.totalorder %v23087_v24, 96 }
 0x1b7   :  { %v23139_v49 = vsub.f32 %v23103_v48, %v26201_v19  ;;  %v25835_v58 = vand.u32 4294901760, %v23118_v23  ;;  %v23148_v19 = vld [vmem:[#allocation6 + $0xd8] sm:$0xff]  ;;  %vm23244_vm2 = vmand %vm91_vm0, %vm92_vm1 }
 0x1d0   :  { %v15186_v44 = vpop.f32.mrb[10].mxu1 }
 0x1d1   :  { %v15187_v16 = vpop.f32.mrb[11].mxu1 }
 0x1d2   :  { %v15188_v59 = vadd.f32 %v15187_v16, %v15186_v44  ;;  %v23089_v44 = vsub.f32 %v1020_v35, %v1065_v50  ;;  %v23095_v16 = vld [vmem:[#allocation6 + $0xc8] sm:$0xff] }
 0x1d3   :  { %v26197_v35 = vand.u32 4294901760, %v23095_v16  ;;  %v26220_v51 = vand.u32 4294901760, %v23095_v16 }
 0x1d4   :  { %v992_v34 = vadd.f32 %v15188_v59, %v888_v1  ;;  %v23091_v1 = vsub.f32 %v1021_v37, %v1068_v6  ;;  %v26195_v59 = vand.u32 4294901760, %v23085_v8  ;;  %v26198_v3 = vand.u32 4294901760, %v23089_v44 }
 0x1d5   :  { %v23123_v37 = vsub.f32 %v23095_v16, %v26197_v35  ;;  %v25840_v6 = vand.u32 4294901760, %v23139_v49 }
 0x1d6   :  { %v14955_v53 = vmul.f32 -1.442695, %v992_v34  ;;  %v26199_v2 = vand.u32 4294901760, %v23091_v1 }
 0x1d8   :  { %21889 = vpow2.f32 %v14955_v53  ;;  %v1323_v53 = vsub.f32 %v23085_v8, %v26195_v59  ;;  %v1211_v54 = vsub.f32 %v23091_v1, %v26199_v2  ;;  %v26200_v59 = vand.u32 4294901760, %v23101_v36 }
 0x1d9   :  { %21891 = vtanh.f32 %v992_v34  ;;  %v1204_v34 = vsub.f32 %v23089_v44, %v26198_v3  ;;  %v1317_v3 = vand.u32 4294901760, %v1316_v17  ;;  %v25834_v2 = vand.u32 4294901760, %v23123_v37 }
 0x1da   :  { %v23134_v39 = vsub.f32 %v23101_v36, %v26200_v59  ;;  %v1324_v4 = vand.u32 4294901760, %v1323_v53  ;;  %v1212_v59 = vand.u32 4294901760, %v1211_v54  ;;  %v1330_v17 = vsub.f32 %v23118_v23, %v25835_v58  ;;  %v23159_v53 = vld [vmem:[#allocation6 + $0x50] sm:$0xff] }
 0x1db   :  { %v1205_v28 = vand.u32 4294901760, %v1204_v34  ;;  %v23161_v34 = vld [vmem:[#allocation6 + $0x58] sm:$0xff]  ;;  %v1337_v45 = vsub.f32 %v23123_v37, %v25834_v2  ;;  %v1225_v58 = vsub.f32 %v23139_v49, %v25840_v6 }
 0x1dc   :  { %v25833_v7 = vand.u32 4294901760, %v23134_v39  ;;  %v23152_v40 = vpack.c.bf16 %v1324_v4, %v1317_v3  ;;  %v1331_v50 = vand.u32 4294901760, %v1330_v17  ;;  %v26207_v17 = vand.u32 4294901760, %v23159_v53 }
 0x1dd   :  { %v23163_v54 = vpack.c.bf16 %v1212_v59, %v1205_v28  ;;  %v1338_v59 = vand.u32 4294901760, %v1337_v45  ;;  %v26208_v5 = vand.u32 4294901760, %v23161_v34 }
 0x1de   :  { %26202 = vst [vmem:[#allocation85_spill] sm:$0xff] %v23152_v40  ;;  %v1218_v4 = vsub.f32 %v23134_v39, %v25833_v7  ;;  %18888 = vmatprep.subr.bf16.mxu1 %v23152_v40  ;;  %v26205_v40 = vand.u32 4294901760, %v23148_v19  ;;  %v23205_v6 = vsub.f32 %v23159_v53, %v26207_v17 }
 0x1df   :  { %26204 = vst [vmem:[#allocation87_spill] sm:$0xff] %v23163_v54  ;;  %18890 = vmatpush3.bf16.msra.mxu1 %v23163_v54  ;;  %v23198_v54 = vld [vmem:[#allocation6 + $0x60] sm:$0xff]  ;;  %v23200_v2 = vpack.c.bf16 %v1338_v59, %v1331_v50  ;;  %v26209_v50 = vand.u32 4294901760, %v23171_v29 }
 0x1e0   :  { %v1219_v7 = vand.u32 4294901760, %v1218_v4  ;;  %v23195_v45 = vsub.f32 %v23148_v19, %v26205_v40  ;;  %v1226_v40 = vand.u32 4294901760, %v1225_v58  ;;  %v1086_v4 = vand.u32 4294901760, %v23220_v26 }
 0x1e1   :  { %26206 = vst [vmem:[#allocation88_spill] sm:$0xff] %v23200_v2  ;;  %v23218_v59 = vsub.f32 %v23171_v29, %v26209_v50  ;;  %18892 = vmatprep.subr.bf16.mxu1 %v23200_v2  ;;  %v26218_v14 = vand.u32 4294901760, %v23198_v54 }
 0x1e2   :  { %v21890_v35 = vpop.eup %21889  ;;  %v23231_v47 = vpack.c.bf16 %v1226_v40, %v1219_v7  ;;  %v26212_v27 = vand.u32 4294901760, %v23195_v45  ;;  %v26216_v7 = vand.u32 4294901760, %v23205_v6 }
 0x1e3   :  { %v999_v31 = vadd.f32 1.0, %v21890_v35  ;;  %v23178_v35 = vld [vmem:[#allocation6 + $0xe8] sm:$0xff]  ;;  %v21892_v3 = vpop.eup %21891  ;;  %v26217_v38 = vand.u32 4294901760, %v23218_v59 }
 0x1e4   :  { %v25851_v11 = vand.u32 4294901760, %v23178_v35  ;;  %26210 = vst [vmem:[#allocation89_spill] sm:$0xff] %v23231_v47  ;;  %v1351_v2 = vsub.f32 %v23195_v45, %v26212_v27  ;;  %v1232_v40 = vsub.f32 %v23205_v6, %v26216_v7  ;;  %18894 = vmatpush3.bf16.msra.mxu1 %v23231_v47  ;;  %v23263_v7 = vsub.f32 %v23198_v54, %v26218_v14 }
 0x1e5   :  { %21893 = vrcp.f32 %v999_v31  ;;  %v25842_v31 = vand.u32 4294901760, %v23146_v18  ;;  %v1358_v21 = vsub.f32 %v23218_v59, %v26217_v38  ;;  %v23269_v47 = vsub.f32 %v23220_v26, %v1086_v4 }
 0x1e6   :  { %v23228_v58 = vsub.f32 %v23178_v35, %v25851_v11  ;;  %v26213_v11 = vmov 0  ;;  %v1352_v24 = vand.u32 4294901760, %v1351_v2  ;;  %v1233_v42 = vand.u32 4294901760, %v1232_v40  ;;  %v1045_v2 = vld [vmem:[#allocation6 + $0xf8] sm:$0xff] }
 0x1e7   :  { %v23190_v28 = vsub.f32 %v23146_v18, %v25842_v31  ;;  %v23210_v31 = vsub.f32 %v23161_v34, %v26208_v5  ;;  %v26214_v11 = vsel %vm23244_vm2, 4294967295, %v26213_v11  ;;  %v26219_v14 = vand.u32 4294901760, %v23093_v41 }
 0x1e8   :  { %26215 = vst [vmem:[#allocation90_spill] sm:$0xff] %v26214_v11  ;;  %v25869_v27 = vand.u32 4294901760, %v23228_v58  ;;  %v1359_v25 = vand.u32 4294901760, %v1358_v21  ;;  %v26223_v26 = vand.u32 4294901760, %v23103_v48  ;;  %v25872_v21 = vand.u32 4294901760, %v23263_v7 }
 0x1e9   :  { %v25858_v5 = vand.u32 4294901760, %v23210_v31  ;;  %v26211_v50 = vand.u32 4294901760, %v23190_v28  ;;  %v23279_v40 = vpack.c.bf16 %v26220_v51, %v26219_v14  ;;  %v1089_v14 = vand.u32 4294901760, %v1028_v22 }
 0x1ea   :  { %v1365_v0 = vsub.f32 %v23228_v58, %v25869_v27  ;;  %v1029_v27 = vld [vmem:[#allocation6 + $0x78] sm:$0xff]  ;;  %v26226_v48 = vand.u32 4294901760, %v23146_v18  ;;  %v26230_v18 = vand.u32 4294901760, %v23161_v34 }
 0x1eb   :  { %v1344_v32 = vsub.f32 %v23190_v28, %v26211_v50  ;;  %v1239_v50 = vsub.f32 %v23210_v31, %v25858_v5  ;;  %18860 = vmatprep.subr.bf16.mxu0 %v23279_v40 }
 0x1ec   :  { %v1366_v16 = vand.u32 4294901760, %v1365_v0  ;;  %v1246_v0 = vsub.f32 %v23263_v7, %v25872_v21 }
 0x1ed   :  { %v1345_v17 = vand.u32 4294901760, %v1344_v32  ;;  %v1240_v5 = vand.u32 4294901760, %v1239_v50  ;;  %v1044_v32 = vld [vmem:[#allocation6 + $0xf0] sm:$0xff] }
 0x1ef   :  { %v21894_v12 = vpop.eup %21893  ;;  %v23281_v50 = vpack.c.bf16 %v1352_v24, %v1345_v17  ;;  %v23293_v51 = vpack.c.bf16 %v1240_v5, %v1233_v42  ;;  %v1137_v17 = vand.u32 4294901760, %v1044_v32  ;;  %v1140_v24 = vand.u32 4294901760, %v1045_v2 }
 0x1f0   :  { %v23273_v38 = vsel %vm23244_vm2, %v21892_v3, %v21894_v12  ;;  %v26222_v12 = vand.u32 4294901760, %v23101_v36  ;;  %v25873_v3 = vand.u32 4294901760, %v23269_v47  ;;  %v23300_v36 = vpack.c.bf16 %v1366_v16, %v1359_v25 }
 0x1f1   :  { %26221 = vst [vmem:[#allocation91_spill] sm:$0xff] %v23281_v50  ;;  %1007 = vrot.lane.b32.xlu1 %v23273_v38, %s22100_s17  ;;  %1003 = vrot.lane.b32.xlu0 %v23273_v38, %s22101_s18  ;;  %26224 = vst [vmem:[#allocation92_spill] sm:$0xff] %v23293_v51  ;;  %v1092_v42 = vand.u32 4294901760, %v1029_v27  ;;  %v26227_v5 = vand.u32 4294901760, %v23148_v19  ;;  %v23315_v11 = vsub.f32 %v1044_v32, %v1137_v17  ;;  %v26229_v16 = vand.u32 4294901760, %v23159_v53 }
 0x1f2   :  { %v23291_v41 = vpack.c.bf16 %v26223_v26, %v26222_v12  ;;  %18896 = vmatprep.subr.bf16.mxu1 %v23281_v50  ;;  %26225 = vst [vmem:[#allocation93_spill] sm:$0xff] %v23300_v36  ;;  %v1253_v26 = vsub.f32 %v23269_v47, %v25873_v3  ;;  %v23317_v25 = vsub.f32 %v1045_v2, %v1140_v24  ;;  %v1247_v19 = vand.u32 4294901760, %v1246_v0 }
 0x1f3   :  { %18898 = vmatpush3.bf16.msra.mxu1 %v23293_v51  ;;  %v23310_v12 = vpack.c.bf16 %v26227_v5, %v26226_v48  ;;  %v23325_v21 = vpack.c.bf16 %v26230_v18, %v26229_v16  ;;  %v23328_v48 = vsub.f32 %v1028_v22, %v1089_v14  ;;  %v23330_v5 = vsub.f32 %v1029_v27, %v1092_v42 }
 0x1f4   :  { %18862 = vmatpush3.bf16.msra.mxu0 %v23291_v41  ;;  %26228 = vst [vmem:[#allocation94_spill] sm:$0xff] %v23317_v25  ;;  %18900 = vmatprep.subr.bf16.mxu1 %v23300_v36  ;;  %v1254_v32 = vand.u32 4294901760, %v1253_v26  ;;  %v25877_v2 = vand.u32 4294901760, %v23315_v11  ;;  %v25876_v3 = vand.u32 4294901760, %v23317_v25  ;;  %v26232_v16 = vand.u32 4294901760, %v23171_v29 }
 0x1f5   :  { %1005 = vrot.lane.b32.xlu0 %v23273_v38, %s22102_s19  ;;  %26231 = vst [vmem:[#allocation95_spill] sm:$0xff] %v23330_v5  ;;  %18864 = vmatprep.subr.bf16.mxu0 %v23310_v12  ;;  %v26233_v22 = vand.u32 4294901760, %v23178_v35  ;;  %v26235_v53 = vand.u32 4294901760, %v23198_v54  ;;  %v23356_v34 = vpack.c.bf16 %v1140_v24, %v1137_v17  ;;  %v26236_v29 = vand.u32 4294901760, %v23328_v48 }
 0x1f6   :  { %v23344_v27 = vpack.c.bf16 %v1254_v32, %v1247_v19  ;;  %v1372_v26 = vsub.f32 %v23315_v11, %v25877_v2  ;;  %v1379_v18 = vsub.f32 %v23317_v25, %v25876_v3  ;;  %v23366_v3 = vpack.c.bf16 %v1092_v42, %v1089_v14 }
 0x1f7   :  { %v23342_v0 = vpack.c.bf16 %v26233_v22, %v26232_v16  ;;  %v23354_v36 = vpack.c.bf16 %v1086_v4, %v26235_v53  ;;  %v1260_v35 = vsub.f32 %v23328_v48, %v26236_v29  ;;  %v26237_v16 = vand.u32 4294901760, %v23330_v5 }
 0x1f8   :  { %18866 = vmatpush3.bf16.msra.mxu0 %v23325_v21  ;;  %26234 = vst [vmem:[#allocation96_spill] sm:$0xff] %v23344_v27  ;;  %18902 = vmatpush3.bf16.msra.mxu1 %v23344_v27  ;;  %v1373_v19 = vand.u32 4294901760, %v1372_v26  ;;  %v1380_v32 = vand.u32 4294901760, %v1379_v18  ;;  %v23379_v14 = vpack.c.bf16 %v22978_v63, %v22976_v33  ;;  %v23385_v42 = vpack.c.bf16 %v23085_v8, %v23083_v20 }
 0x1f9   :  { %v1267_v22 = vsub.f32 %v23330_v5, %v26237_v16  ;;  %18868 = vmatprep.subr.bf16.mxu0 %v23342_v0  ;;  %v1261_v54 = vand.u32 4294901760, %v1260_v35  ;;  %v23389_v53 = vpack.c.bf16 %v23091_v1, %v23089_v44  ;;  %v23393_v26 = vpack.c.bf16 %v23123_v37, %v23118_v23 }
 0x1fa   :  { %v23369_v4 = vpack.c.bf16 %v1380_v32, %v1373_v19  ;;  %26240 = vst [vmem:[#allocation99_spill] sm:$0xff] %v23379_v14  ;;  %v23397_v18 = vpack.c.bf16 %v23139_v49, %v23134_v39  ;;  %v23401_v29 = vpack.c.bf16 %v23195_v45, %v23190_v28  ;;  %v23405_v35 = vpack.c.bf16 %v23210_v31, %v23205_v6 }
 0x1fb   :  { %v1268_v17 = vand.u32 4294901760, %v1267_v22  ;;  %26241 = vst [vmem:[#allocation100_spill] sm:$0xff] %v23393_v26  ;;  %v23409_v19 = vpack.c.bf16 %v23228_v58, %v23218_v59  ;;  %v23413_v32 = vpack.c.bf16 %v23269_v47, %v23263_v7  ;;  %v23417_v16 = vpack.c.bf16 %v23317_v25, %v23315_v11 }
 0x1fc   :  { %18870 = vmatpush3.bf16.msra.mxu0 %v23354_v36  ;;  %26238 = vst [vmem:[#allocation97_spill] sm:$0xff] %v23369_v4  ;;  %18904 = vmatprep.subr.bf16.mxu1 %v23369_v4  ;;  %26242 = vst [vmem:[#allocation101_spill] sm:$0xff] %v23397_v18  ;;  %v23421_v22 = vpack.c.bf16 %v23330_v5, %v23328_v48 }
 0x1fd   :  { %18872 = vmatprep.subr.bf16.mxu0 %v23356_v34  ;;  %v23373_v24 = vpack.c.bf16 %v1268_v17, %v1261_v54  ;;  %26243 = vst [vmem:[#allocation102_spill] sm:$0xff] %v23401_v29  ;;  %26244 = vst [vmem:[#allocation103_spill] sm:$0xff] %v23405_v35 }
 0x1fe   :  { %26245 = vst [vmem:[#allocation104_spill] sm:$0xff] %v23409_v19  ;;  %26246 = vst [vmem:[#allocation105_spill] sm:$0xff] %v23413_v32 }
 0x1ff   :  { %26239 = vst [vmem:[#allocation98_spill] sm:$0xff] %v23373_v24  ;;  %18906 = vmatpush3.bf16.msra.mxu1 %v23373_v24 }
 0x200   :  { %18874 = vmatpush3.bf16.msra.mxu0 %v23366_v3  ;;  %18940 = vmatprep.subr.bf16.mxu1 %v22974_v10 }
 0x201   :  { %18908 = vmatprep.subr.bf16.mxu0 %v23379_v14 }
 0x263   :  { %v1004_v54 = vpop.permute.xlu0 %1003  ;;  %v1008_v27 = vpop.permute.xlu1 %1007 }
 0x264   :  { %v1009_v2 = vmul.f32 0.0, %v1004_v54  ;;  %v26250_v54 = vld [vmem:[#allocation78_spill] sm:$0xff] }
 0x267   :  { %v1006_v17 = vpop.permute.xlu0 %1005 }
 0x268   :  { %v1010_v14 = vmul.f32 %v1006_v17, %v23273_v38  ;;  %v26251_v17 = vld [vmem:[#allocation79_spill] sm:$0xff] }
 0x26a   :  { %v23424_v24 = vadd.f32 %v1010_v14, %v1009_v2  ;;  %v23458_v14 = vpack.c.bf16 %v23024_v56, %v23018_v57 }
 0x26c   :  { %26247 = vst [vmem:[#allocation106_spill] sm:$0xff] %v23424_v24  ;;  %21895 = vtanh.f32 %v23424_v24  ;;  %v26252_v24 = vld [vmem:[#allocation86_spill] sm:$0xff] }
 0x276   :  { %v21896_v4 = vpop.eup %21895 }
 0x277   :  { %v1013_v51 = vmul.f32 %v21896_v4, %v1008_v27  ;;  %v23444_v27 = vpack.c.bf16 %v22984_v9, %v22980_v46  ;;  %v23451_v4 = vpack.c.bf16 %v22993_v30, %v22988_v55 }
 0x279   :  { %v23427_v50 = vand.u32 4294901760, %v1013_v51  ;;  %26248 = vst [vmem:[#allocation107_spill] sm:$0xff] %v23444_v27 }
 0x27b   :  { %1385 = vmatmul.mubr.f32.vlgmr.msra.gmra.mrb[12].mxu1 %v23427_v50  ;;  %v23431_v25 = vsub.f32 %v1013_v51, %v23427_v50 }
 0x27c   :  { %18942 = vmatpush3.bf16.msra.mxu1 %v22982_v61  ;;  %1627 = vmatprep.mubr.f32.mxu1 %v26078_v62 }
 0x27d   :  { %18944 = vmatprep.subr.bf16.mxu1 %v22986_v60  ;;  %v23437_v38 = vand.u32 4294901760, %v23431_v25 }
 0x27f   :  { %v1151_v2 = vsub.f32 %v23431_v25, %v23437_v38 }
 0x280   :  { %18946 = vmatpush3.bf16.msra.mxu1 %v23016_v52 }
 0x281   :  { %18948 = vmatprep.subr.bf16.mxu1 %v23038_v43  ;;  %v23447_v51 = vand.u32 4294901760, %v1151_v2  ;;  %v23464_v2 = vpack.c.bf16 %v26251_v17, %v26250_v54 }
 0x283   :  { %26249 = vst [vmem:[#allocation108_spill] sm:$0xff] %v23447_v51  ;;  %1153 = vmatmul.mubr.f32.vlgmr.msra.gmra.mrb[0].mxu0 %v23447_v51  ;;  %v26254_v51 = vld [vmem:[#allocation81_spill] sm:$0xff] }
 0x284   :  { %18910 = vmatpush3.bf16.msra.mxu0 %v23444_v27  ;;  %18950 = vmatpush3.bf16.msra.mxu1 %v23054_v15  ;;  %v26253_v27 = vld [vmem:[#allocation80_spill] sm:$0xff] }
 0x285   :  { %18912 = vmatprep.subr.bf16.mxu0 %v23451_v4  ;;  %18952 = vmatprep.subr.bf16.mxu1 %v23150_v13  ;;  %v23471_v5 = vpack.c.bf16 %v26254_v51, %v26253_v27 }
 0x286   :  { %1520 = vmatprep.mubr.f32.mxu0 %v26078_v62 }
 0x288   :  { %18914 = vmatpush3.bf16.msra.mxu0 %v23458_v14  ;;  %18954 = vmatpush3.bf16.msra.mxu1 %v26252_v24 }
 0x289   :  { %18916 = vmatprep.subr.bf16.mxu0 %v23464_v2  ;;  %18956 = vmatprep.subr.bf16.mxu1 %v23279_v40 }
 0x28c   :  { %18918 = vmatpush3.bf16.msra.mxu0 %v23471_v5  ;;  %18958 = vmatpush3.bf16.msra.mxu1 %v23291_v41 }
 0x28d   :  { %18920 = vmatprep.subr.bf16.mxu0 %v23385_v42  ;;  %18960 = vmatprep.subr.bf16.mxu1 %v23310_v12 }
 0x290   :  { %18922 = vmatpush3.bf16.msra.mxu0 %v23389_v53  ;;  %18962 = vmatpush3.bf16.msra.mxu1 %v23325_v21 }
 0x291   :  { %18924 = vmatprep.subr.bf16.mxu0 %v23393_v26  ;;  %18964 = vmatprep.subr.bf16.mxu1 %v23342_v0 }
 0x294   :  { %18926 = vmatpush3.bf16.msra.mxu0 %v23397_v18  ;;  %18966 = vmatpush3.bf16.msra.mxu1 %v23354_v36 }
 0x295   :  { %18928 = vmatprep.subr.bf16.mxu0 %v23401_v29  ;;  %18968 = vmatprep.subr.bf16.mxu1 %v23356_v34  ;;  %v26255_v29 = vand.u32 4294901760, %v22976_v33  ;;  %v26259_v33 = vand.u32 4294901760, %v22988_v55  ;;  %v26265_v55 = vand.u32 4294901760, %v26250_v54  ;;  %v26271_v54 = vand.u32 4294901760, %v23083_v20 }
 0x296   :  { %v26277_v20 = vand.u32 4294901760, %v23118_v23  ;;  %v26283_v23 = vand.u32 4294901760, %v23190_v28  ;;  %v26289_v28 = vand.u32 4294901760, %v23218_v59  ;;  %v26296_v59 = vand.u32 4294901760, %v23315_v11  ;;  %v26305_v11 = vld [vmem:[#allocation30_spill] sm:$0xff] }
 0x298   :  { %18930 = vmatpush3.bf16.msra.mxu0 %v23405_v35  ;;  %18970 = vmatpush3.bf16.msra.mxu1 %v23366_v3  ;;  %v26256_v35 = vand.u32 4294901760, %v22978_v63  ;;  %v26260_v63 = vand.u32 4294901760, %v22993_v30  ;;  %v26266_v30 = vand.u32 4294901760, %v26251_v17  ;;  %v26272_v17 = vand.u32 4294901760, %v23085_v8 }
 0x299   :  { %18932 = vmatprep.subr.bf16.mxu0 %v23409_v19  ;;  %19004 = vmatprep.subr.bf16.mxu1 %v22974_v10  ;;  %v26258_v19 = vand.u32 4294901760, %v22984_v9  ;;  %v26263_v9 = vand.u32 4294901760, %v23024_v56  ;;  %v26269_v56 = vand.u32 4294901760, %v26254_v51  ;;  %v26275_v51 = vand.u32 4294901760, %v23091_v1 }
 0x29a   :  { %v23500_v18 = vpack.c.bf16 %v26256_v35, %v26255_v29  ;;  %v23517_v29 = vpack.c.bf16 %v26260_v63, %v26259_v33  ;;  %v23551_v33 = vpack.c.bf16 %v26272_v17, %v26271_v54  ;;  %v26278_v8 = vand.u32 4294901760, %v23123_v37  ;;  %v26295_v54 = vld [vmem:[#allocation28_spill] sm:$0xff]  ;;  %v26297_v17 = vld [vmem:[#allocation94_spill] sm:$0xff] }
 0x29b   :  { %1631 = vmatmul.mubr.f32.vlgmr.msra.gmra.mrb[14].mxu1 %v23437_v38  ;;  %v26281_v1 = vand.u32 4294901760, %v23139_v49  ;;  %v26284_v37 = vand.u32 4294901760, %v23195_v45  ;;  %v26287_v49 = vand.u32 4294901760, %v23210_v31  ;;  %v26290_v45 = vand.u32 4294901760, %v23228_v58 }
 0x29c   :  { %18934 = vmatpush3.bf16.msra.mxu0 %v23413_v32  ;;  %19006 = vmatpush3.bf16.msra.mxu1 %v22982_v61  ;;  %v26257_v32 = vand.u32 4294901760, %v22980_v46  ;;  %26261 = vst [vmem:[#allocation78_spill] sm:$0xff] %v23517_v29  ;;  %v26262_v46 = vand.u32 4294901760, %v23018_v57  ;;  %v26268_v57 = vand.u32 4294901760, %v26253_v27  ;;  %26273 = vst [vmem:[#allocation81_spill] sm:$0xff] %v23551_v33  ;;  %v26274_v27 = vand.u32 4294901760, %v23089_v44 }
 0x29d   :  { %18936 = vmatprep.subr.bf16.mxu0 %v23417_v16  ;;  %19008 = vmatprep.subr.bf16.mxu1 %v22986_v60  ;;  %v26280_v44 = vand.u32 4294901760, %v23134_v39  ;;  %v26286_v39 = vand.u32 4294901760, %v23205_v6  ;;  %v26292_v6 = vand.u32 4294901760, %v23263_v7  ;;  %v26293_v31 = vand.u32 4294901760, %v23269_v47  ;;  %v26302_v7 = vld [vmem:[#allocation95_spill] sm:$0xff] }
 0x29e   :  { %1901 = vmatprep.mubr.f32.mxu1 %v26078_v62  ;;  %v23509_v26 = vpack.c.bf16 %v26258_v19, %v26257_v32  ;;  %v23526_v35 = vpack.c.bf16 %v26263_v9, %v26262_v46  ;;  %v23534_v19 = vpack.c.bf16 %v26266_v30, %v26265_v55  ;;  %v23543_v32 = vpack.c.bf16 %v26269_v56, %v26268_v57 }
 0x29f   :  { %v23559_v63 = vpack.c.bf16 %v26275_v51, %v26274_v27  ;;  %v23567_v46 = vpack.c.bf16 %v26278_v8, %v26277_v20  ;;  %v23575_v9 = vpack.c.bf16 %v26281_v1, %v26280_v44  ;;  %v23583_v55 = vpack.c.bf16 %v26284_v37, %v26283_v23  ;;  %v26300_v51 = vld [vmem:[#allocation29_spill] sm:$0xff]  ;;  %v26306_v44 = vld [vmem:[#allocation31_spill] sm:$0xff]  ;;  %v26308_v23 = vld [vmem:[#allocation32_spill] sm:$0xff] }
 0x2a0   :  { %18938 = vmatpush3.bf16.msra.mxu0 %v23421_v22  ;;  %19010 = vmatpush3.bf16.msra.mxu1 %v23016_v52  ;;  %26264 = vst [vmem:[#allocation79_spill] sm:$0xff] %v23526_v35  ;;  %26267 = vst [vmem:[#allocation86_spill] sm:$0xff] %v23534_v19  ;;  %v23591_v30 = vpack.c.bf16 %v26287_v49, %v26286_v39  ;;  %v23599_v57 = vpack.c.bf16 %v26290_v45, %v26289_v28  ;;  %v26298_v58 = vand.u32 4294901760, %v26297_v17  ;;  %v26307_v1 = vld [vmem:[#allocation11_spill] sm:$0xff]  ;;  %v26310_v37 = vld [vmem:[#allocation108_spill] sm:$0xff] }
 0x2a1   :  { %18972 = vmatprep.subr.bf16.mxu0 %v23500_v18  ;;  %19012 = vmatprep.subr.bf16.mxu1 %v23038_v43  ;;  %26270 = vst [vmem:[#allocation80_spill] sm:$0xff] %v23543_v32  ;;  %26276 = vst [vmem:[#allocation109_spill] sm:$0xff] %v23559_v63  ;;  %v23607_v56 = vpack.c.bf16 %v26293_v31, %v26292_v6  ;;  %v26301_v47 = vand.u32 4294901760, %v23328_v48  ;;  %v26303_v20 = vand.u32 4294901760, %v26302_v7  ;;  %v26309_v48 = vld [vmem:[#allocation12_spill] sm:$0xff]  ;;  %v26311_v39 = vld [vmem:[#allocation33_spill] sm:$0xff] }
 0x2a2   :  { %26279 = vst [vmem:[#allocation110_spill] sm:$0xff] %v23567_v46  ;;  %26282 = vst [vmem:[#allocation111_spill] sm:$0xff] %v23575_v9  ;;  %v23615_v27 = vpack.c.bf16 %v26298_v58, %v26296_v59  ;;  %v26312_v49 = vld [vmem:[#allocation13_spill] sm:$0xff]  ;;  %v26313_v28 = vld [vmem:[#allocation34_spill] sm:$0xff] }
 0x2a3   :  { %1523 = vmatmul.mubr.f32.vlgmr.msra.gmra.mrb[2].mxu0 %v23431_v25  ;;  %26285 = vst [vmem:[#allocation112_spill] sm:$0xff] %v23583_v55  ;;  %26288 = vst [vmem:[#allocation113_spill] sm:$0xff] %v23591_v30  ;;  %v23624_v8 = vpack.c.bf16 %v26303_v20, %v26301_v47  ;;  %v26314_v45 = vld [vmem:[#allocation14_spill] sm:$0xff]  ;;  %v26315_v6 = vld [vmem:[#allocation36_spill] sm:$0xff] }
 0x2a4   :  { %18974 = vmatpush3.bf16.msra.mxu0 %v23509_v26  ;;  %19014 = vmatpush3.bf16.msra.mxu1 %v23054_v15  ;;  %26291 = vst [vmem:[#allocation114_spill] sm:$0xff] %v23599_v57  ;;  %26294 = vst [vmem:[#allocation115_spill] sm:$0xff] %v23607_v56  ;;  %v26316_v31 = vld [vmem:[#allocation15_spill] sm:$0xff]  ;;  %v26317_v59 = vld [vmem:[#allocation37_spill] sm:$0xff] }
 0x2a5   :  { %18976 = vmatprep.subr.bf16.mxu0 %v23517_v29  ;;  %19016 = vmatprep.subr.bf16.mxu1 %v23150_v13  ;;  %26299 = vst [vmem:[#allocation94_spill] sm:$0xff] %v23615_v27  ;;  %26304 = vst [vmem:[#allocation95_spill] sm:$0xff] %v23624_v8  ;;  %v26318_v17 = vld [vmem:[#allocation16_spill] sm:$0xff]  ;;  %v26319_v47 = vld [vmem:[#allocation38_spill] sm:$0xff] }
 0x2a6   :  { %1797 = vmatprep.mubr.f32.mxu0 %v26078_v62  ;;  %v14957_v58 = vld [vmem:[%s25638_s0 + $0x8] sm:$0xff]  ;;  %v26320_v7 = vld [vmem:[#allocation17_spill] sm:$0xff]  ;;  %v26321_v20 = vld [vmem:[#allocation39_spill] sm:$0xff] }
 0x2a7   :  { %v26322_v62 = vld [vmem:[#allocation18_spill] sm:$0xff] }
 0x2a8   :  { %18978 = vmatpush3.bf16.msra.mxu0 %v23526_v35  ;;  %19018 = vmatpush3.bf16.msra.mxu1 %v26252_v24 }
 0x2a9   :  { %18980 = vmatprep.subr.bf16.mxu0 %v23534_v19  ;;  %19020 = vmatprep.subr.bf16.mxu1 %v23279_v40 }
 0x2ac   :  { %18982 = vmatpush3.bf16.msra.mxu0 %v23543_v32  ;;  %19022 = vmatpush3.bf16.msra.mxu1 %v23291_v41 }
 0x2ad   :  { %18984 = vmatprep.subr.bf16.mxu0 %v23551_v33  ;;  %19024 = vmatprep.subr.bf16.mxu1 %v23310_v12 }
 0x2b0   :  { %18986 = vmatpush3.bf16.msra.mxu0 %v23559_v63  ;;  %19026 = vmatpush3.bf16.msra.mxu1 %v23325_v21 }
 0x2b1   :  { %18988 = vmatprep.subr.bf16.mxu0 %v23567_v46  ;;  %19028 = vmatprep.subr.bf16.mxu1 %v23342_v0 }
 0x2b4   :  { %18990 = vmatpush3.bf16.msra.mxu0 %v23575_v9  ;;  %19030 = vmatpush3.bf16.msra.mxu1 %v23354_v36 }
 0x2b5   :  { %18992 = vmatprep.subr.bf16.mxu0 %v23583_v55  ;;  %19032 = vmatprep.subr.bf16.mxu1 %v23356_v34 }
 0x2b8   :  { %18994 = vmatpush3.bf16.msra.mxu0 %v23591_v30  ;;  %19034 = vmatpush3.bf16.msra.mxu1 %v23366_v3 }
 0x2b9   :  { %18996 = vmatprep.subr.bf16.mxu0 %v23599_v57  ;;  %19068 = vmatprep.subr.bf16.mxu1 %v26295_v54  ;;  %v26340_v54 = vld [vmem:[#allocation65_spill] sm:$0xff] }
 0x2bb   :  { %1903 = vmatmul.mubr.f32.vlgmr.msra.gmra.mrb[16].mxu1 %v23427_v50 }
 0x2bc   :  { %18998 = vmatpush3.bf16.msra.mxu0 %v23607_v56  ;;  %19070 = vmatpush3.bf16.msra.mxu1 %v26300_v51  ;;  %v26335_v51 = vld [vmem:[#allocation27_spill] sm:$0xff]  ;;  %v26337_v56 = vld [vmem:[#allocation62_spill] sm:$0xff] }
 0x2bd   :  { %2266 = vmatprep.mubr.f32.mxu1 %v23427_v50  ;;  %19000 = vmatprep.subr.bf16.mxu0 %v23615_v27  ;;  %v26331_v27 = vld [vmem:[#allocation60_spill] sm:$0xff] }
 0x2be   :  { %19072 = vmatprep.subr.bf16.mxu1 %v26305_v11  ;;  %v26330_v11 = vld [vmem:[#allocation23_spill] sm:$0xff] }
 0x2c0   :  { %19002 = vmatpush3.bf16.msra.mxu0 %v23624_v8  ;;  %19074 = vmatpush3.bf16.msra.mxu1 %v26306_v44  ;;  %v26327_v44 = vld [vmem:[#allocation42_spill] sm:$0xff]  ;;  %v26329_v8 = vld [vmem:[#allocation59_spill] sm:$0xff] }
 0x2c1   :  { %19036 = vmatprep.subr.bf16.mxu0 %v26307_v1  ;;  %19076 = vmatprep.subr.bf16.mxu1 %v26308_v23  ;;  %v26326_v23 = vld [vmem:[#allocation20_spill] sm:$0xff] }
 0x2c3   :  { %1799 = vmatmul.mubr.f32.vlgmr.msra.gmra.mrb[4].mxu0 %v23427_v50 }
 0x2c4   :  { %19038 = vmatpush3.bf16.msra.mxu0 %v26309_v48  ;;  %2030 = vmatprep.mubr.f32.mxu0 %v26310_v37  ;;  %v23650_v37 = vand.u32 4294901760, %v14957_v58 }
 0x2c5   :  { %19078 = vmatpush3.bf16.msra.mxu1 %v26311_v39  ;;  %19040 = vmatprep.subr.bf16.mxu0 %v26312_v49 }
 0x2c6   :  { %19080 = vmatprep.subr.bf16.mxu1 %v26313_v28  ;;  %v26324_v28 = vld [vmem:[#allocation19_spill] sm:$0xff]  ;;  %v2032_v39 = vsub.f32 %v14957_v58, %v23650_v37  ;;  %v26333_v58 = vld [vmem:[#allocation25_spill] sm:$0xff] }
 0x2c8   :  { %19042 = vmatpush3.bf16.msra.mxu0 %v26314_v45 }
 0x2c9   :  { %19082 = vmatpush3.bf16.msra.mxu1 %v26315_v6  ;;  %19044 = vmatprep.subr.bf16.mxu0 %v26316_v31  ;;  %v26323_v6 = vld [vmem:[#allocation40_spill] sm:$0xff] }
 0x2ca   :  { %19084 = vmatprep.subr.bf16.mxu1 %v26317_v59  ;;  %v26325_v59 = vld [vmem:[#allocation41_spill] sm:$0xff] }
 0x2cc   :  { %19046 = vmatpush3.bf16.msra.mxu0 %v26318_v17 }
 0x2cd   :  { %19086 = vmatpush3.bf16.msra.mxu1 %v26319_v47  ;;  %19048 = vmatprep.subr.bf16.mxu0 %v26320_v7  ;;  %v26328_v47 = vld [vmem:[#allocation22_spill] sm:$0xff] }
 0x2ce   :  { %19088 = vmatprep.subr.bf16.mxu1 %v26321_v20  ;;  %v2033_v20 = vand.u32 4294901760, %v2032_v39 }
 0x2d0   :  { %19050 = vmatpush3.bf16.msra.mxu0 %v26322_v62 }
 0x2d1   :  { %19090 = vmatpush3.bf16.msra.mxu1 %v26323_v6  ;;  %19052 = vmatprep.subr.bf16.mxu0 %v26324_v28  ;;  %v26332_v6 = vld [vmem:[#allocation24_spill] sm:$0xff] }
 0x2d2   :  { %19092 = vmatprep.subr.bf16.mxu1 %v26325_v59  ;;  %v2034_v59 = vsub.f32 %v2032_v39, %v2033_v20 }
 0x2d4   :  { %19054 = vmatpush3.bf16.msra.mxu0 %v26326_v23 }
 0x2d5   :  { %19094 = vmatpush3.bf16.msra.mxu1 %v26327_v44  ;;  %19056 = vmatprep.subr.bf16.mxu0 %v26328_v47  ;;  %v26334_v44 = vld [vmem:[#allocation26_spill] sm:$0xff] }
 0x2d6   :  { %19096 = vmatprep.subr.bf16.mxu1 %v26329_v8  ;;  %v2035_v8 = vand.u32 4294901760, %v2034_v59  ;;  %v26339_v59 = vld [vmem:[#allocation64_spill] sm:$0xff] }
 0x2d8   :  { %19058 = vmatpush3.bf16.msra.mxu0 %v26330_v11 }
 0x2d9   :  { %19098 = vmatpush3.bf16.msra.mxu1 %v26331_v27  ;;  %19060 = vmatprep.subr.bf16.mxu0 %v26332_v6  ;;  %v26336_v27 = vld [vmem:[#allocation61_spill] sm:$0xff] }
 0x2da   :  { %19132 = vmatprep.subr.bf16.mxu1 %v26307_v1 }
 0x2dc   :  { %2268 = vmatmul.mubr.f32.vlgmr.msra.gmra.mrb[18].mxu1 %v23650_v37  ;;  %19062 = vmatpush3.bf16.msra.mxu0 %v26333_v58 }
 0x2dd   :  { %19134 = vmatpush3.bf16.msra.mxu1 %v26309_v48  ;;  %2510 = vmatprep.mubr.f32.mxu1 %v23437_v38  ;;  %v26338_v38 = vld [vmem:[#allocation63_spill] sm:$0xff] }
 0x2de   :  { %19064 = vmatprep.subr.bf16.mxu0 %v26334_v44  ;;  %19136 = vmatprep.subr.bf16.mxu1 %v26312_v49 }
 0x2e0   :  { %19066 = vmatpush3.bf16.msra.mxu0 %v26335_v51 }
 0x2e1   :  { %19138 = vmatpush3.bf16.msra.mxu1 %v26314_v45  ;;  %19100 = vmatprep.subr.bf16.mxu0 %v26336_v27  ;;  %v26341_v27 = vld [vmem:[#allocation66_spill] sm:$0xff] }
 0x2e2   :  { %19140 = vmatprep.subr.bf16.mxu1 %v26316_v31 }
 0x2e3   :  { %2036 = vmatmul.mubr.f32.vlgmr.msra.gmra.mrb[6].mxu0 %v2035_v8  ;;  %v26342_v8 = vld [vmem:[#allocation67_spill] sm:$0xff] }
 0x2e4   :  { %19102 = vmatpush3.bf16.msra.mxu0 %v26337_v56  ;;  %2403 = vmatprep.mubr.f32.mxu0 %v23431_v25  ;;  %v26343_v25 = vld [vmem:[#allocation68_spill] sm:$0xff] }
 0x2e5   :  { %19142 = vmatpush3.bf16.msra.mxu1 %v26318_v17  ;;  %19104 = vmatprep.subr.bf16.mxu0 %v26338_v38  ;;  %v26344_v38 = vld [vmem:[#allocation69_spill] sm:$0xff] }
 0x2e6   :  { %19144 = vmatprep.subr.bf16.mxu1 %v26320_v7 }
 0x2e8   :  { %19106 = vmatpush3.bf16.msra.mxu0 %v26339_v59  ;;  %v26345_v59 = vld [vmem:[#allocation70_spill] sm:$0xff] }
 0x2e9   :  { %19146 = vmatpush3.bf16.msra.mxu1 %v26322_v62  ;;  %19108 = vmatprep.subr.bf16.mxu0 %v26340_v54  ;;  %v26346_v54 = vld [vmem:[#allocation71_spill] sm:$0xff] }
 0x2ea   :  { %19148 = vmatprep.subr.bf16.mxu1 %v26324_v28 }
 0x2ec   :  { %19110 = vmatpush3.bf16.msra.mxu0 %v26341_v27  ;;  %v26347_v27 = vld [vmem:[#allocation72_spill] sm:$0xff] }
 0x2ed   :  { %19150 = vmatpush3.bf16.msra.mxu1 %v26326_v23  ;;  %19112 = vmatprep.subr.bf16.mxu0 %v26342_v8  ;;  %v26348_v8 = vld [vmem:[#allocation73_spill] sm:$0xff] }
 0x2ee   :  { %19152 = vmatprep.subr.bf16.mxu1 %v26328_v47 }
 0x2f0   :  { %19114 = vmatpush3.bf16.msra.mxu0 %v26343_v25 }
 0x2f1   :  { %19154 = vmatpush3.bf16.msra.mxu1 %v26330_v11  ;;  %19116 = vmatprep.subr.bf16.mxu0 %v26344_v38  ;;  %v26349_v38 = vld [vmem:[#allocation35_spill] sm:$0xff] }
 0x2f2   :  { %19156 = vmatprep.subr.bf16.mxu1 %v26332_v6 }
 0x2f4   :  { %19118 = vmatpush3.bf16.msra.mxu0 %v26345_v59  ;;  %v26350_v59 = vld [vmem:[#allocation74_spill] sm:$0xff] }
 0x2f5   :  { %19158 = vmatpush3.bf16.msra.mxu1 %v26333_v58  ;;  %19120 = vmatprep.subr.bf16.mxu0 %v26346_v54  ;;  %v26351_v54 = vld [vmem:[#allocation75_spill] sm:$0xff] }
 0x2f6   :  { %19160 = vmatprep.subr.bf16.mxu1 %v26334_v44 }
 0x2f8   :  { %19122 = vmatpush3.bf16.msra.mxu0 %v26347_v27  ;;  %v26352_v27 = vld [vmem:[#allocation43_spill] sm:$0xff] }
 0x2f9   :  { %19162 = vmatpush3.bf16.msra.mxu1 %v26335_v51  ;;  %19124 = vmatprep.subr.bf16.mxu0 %v26348_v8  ;;  %v26370_v8 = vld [vmem:[#allocation58_spill] sm:$0xff] }
 0x2fa   :  { %19196 = vmatprep.subr.bf16.mxu1 %v26307_v1 }
 0x2fc   :  { %2514 = vmatmul.mubr.f32.vlgmr.msra.gmra.mrb[20].mxu1 %v2033_v20  ;;  %19126 = vmatpush3.bf16.msra.mxu0 %v26349_v38  ;;  %v26353_v20 = vld [vmem:[#allocation44_spill] sm:$0xff]  ;;  %v26354_v38 = vld [vmem:[#allocation45_spill] sm:$0xff] }
 0x2fd   :  { %2784 = vmatprep.mubr.f32.mxu1 %v23427_v50  ;;  %19128 = vmatprep.subr.bf16.mxu0 %v26350_v59  ;;  %v26355_v59 = vld [vmem:[#allocation46_spill] sm:$0xff] }
 0x2fe   :  { %19198 = vmatpush3.bf16.msra.mxu1 %v26309_v48 }
 0x2ff   :  { %19200 = vmatprep.subr.bf16.mxu1 %v26312_v49 }
 0x300   :  { %19130 = vmatpush3.bf16.msra.mxu0 %v26351_v54  ;;  %v26356_v54 = vld [vmem:[#allocation47_spill] sm:$0xff] }
 0x301   :  { %19164 = vmatprep.subr.bf16.mxu0 %v26352_v27  ;;  %v26358_v27 = vld [vmem:[#allocation49_spill] sm:$0xff] }
 0x302   :  { %19202 = vmatpush3.bf16.msra.mxu1 %v26314_v45 }
 0x303   :  { %2406 = vmatmul.mubr.f32.vlgmr.msra.gmra.mrb[8].mxu0 %v2032_v39  ;;  %19204 = vmatprep.subr.bf16.mxu1 %v26316_v31  ;;  %v26357_v39 = vld [vmem:[#allocation48_spill] sm:$0xff] }
 0x304   :  { %19166 = vmatpush3.bf16.msra.mxu0 %v26353_v20  ;;  %2680 = vmatprep.mubr.f32.mxu0 %v23427_v50  ;;  %v26359_v50 = vld [vmem:[#allocation50_spill] sm:$0xff]  ;;  %v26367_v20 = vld [vmem:[#allocation57_spill] sm:$0xff] }
 0x305   :  { %19168 = vmatprep.subr.bf16.mxu0 %v26354_v38  ;;  %v26360_v38 = vld [vmem:[#allocation51_spill] sm:$0xff] }
 0x306   :  { %19206 = vmatpush3.bf16.msra.mxu1 %v26318_v17 }
 0x307   :  { %19208 = vmatprep.subr.bf16.mxu1 %v26320_v7 }
 0x308   :  { %19170 = vmatpush3.bf16.msra.mxu0 %v26355_v59  ;;  %v26362_v59 = vld [vmem:[#allocation53_spill] sm:$0xff] }
 0x309   :  { %19172 = vmatprep.subr.bf16.mxu0 %v26356_v54  ;;  %v26361_v54 = vld [vmem:[#allocation52_spill] sm:$0xff] }
 0x30a   :  { %19210 = vmatpush3.bf16.msra.mxu1 %v26322_v62 }
 0x30b   :  { %19212 = vmatprep.subr.bf16.mxu1 %v26324_v28 }
 0x30c   :  { %19174 = vmatpush3.bf16.msra.mxu0 %v26357_v39  ;;  %v26364_v39 = vld [vmem:[#allocation55_spill] sm:$0xff] }
 0x30d   :  { %19176 = vmatprep.subr.bf16.mxu0 %v26358_v27  ;;  %v26363_v27 = vld [vmem:[#allocation54_spill] sm:$0xff] }
 0x30e   :  { %19214 = vmatpush3.bf16.msra.mxu1 %v26326_v23 }
 0x30f   :  { %19216 = vmatprep.subr.bf16.mxu1 %v26328_v47 }
 0x310   :  { %19178 = vmatpush3.bf16.msra.mxu0 %v26359_v50  ;;  %v26365_v50 = vld [vmem:[#allocation21_spill] sm:$0xff] }
 0x311   :  { %19180 = vmatprep.subr.bf16.mxu0 %v26360_v38  ;;  %v26366_v38 = vld [vmem:[#allocation56_spill] sm:$0xff] }
 0x312   :  { %19218 = vmatpush3.bf16.msra.mxu1 %v26330_v11 }
 0x313   :  { %19220 = vmatprep.subr.bf16.mxu1 %v26332_v6 }
 0x314   :  { %19182 = vmatpush3.bf16.msra.mxu0 %v26361_v54  ;;  %v26368_v54 = vld [vmem:[#allocation76_spill] sm:$0xff] }
 0x315   :  { %19184 = vmatprep.subr.bf16.mxu0 %v26362_v59  ;;  %v26369_v59 = vld [vmem:[#allocation77_spill] sm:$0xff] }
 0x316   :  { %19222 = vmatpush3.bf16.msra.mxu1 %v26333_v58 }
 0x317   :  { %19224 = vmatprep.subr.bf16.mxu1 %v26334_v44 }
 0x318   :  { %19186 = vmatpush3.bf16.msra.mxu0 %v26363_v27  ;;  %v26371_v27 = vld [vmem:[#allocation82_spill] sm:$0xff] }
 0x319   :  { %19188 = vmatprep.subr.bf16.mxu0 %v26364_v39  ;;  %v26372_v39 = vld [vmem:[#allocation83_spill] sm:$0xff] }
 0x31a   :  { %19226 = vmatpush3.bf16.msra.mxu1 %v26335_v51 }
 0x31b   :  { %19260 = vmatprep.subr.bf16.mxu1 %v26365_v50 }
 0x31c   :  { %19190 = vmatpush3.bf16.msra.mxu0 %v26366_v38  ;;  %v26374_v38 = vld [vmem:[#allocation85_spill] sm:$0xff] }
 0x31d   :  { %19192 = vmatprep.subr.bf16.mxu0 %v26367_v20  ;;  %2786 = vmatmul.mubr.f32.vlgmr.msra.gmra.mrb[22].mxu1 %v23650_v37  ;;  %v26373_v20 = vld [vmem:[#allocation84_spill] sm:$0xff] }
 0x31e   :  { %19262 = vmatpush3.bf16.msra.mxu1 %v26368_v54 }
 0x31f   :  { %19264 = vmatprep.subr.bf16.mxu1 %v26369_v59  ;;  %v26376_v59 = vld [vmem:[#allocation88_spill] sm:$0xff] }
 0x320   :  { %19194 = vmatpush3.bf16.msra.mxu0 %v26370_v8  ;;  %v26375_v8 = vld [vmem:[#allocation87_spill] sm:$0xff] }
 0x321   :  { %19228 = vmatprep.subr.bf16.mxu0 %v22974_v10 }
 0x322   :  { %19266 = vmatpush3.bf16.msra.mxu1 %v26371_v27  ;;  %v23775_v27 = vld [vmem:[%s25642_s4] ss:$0 sm:$0xff] }
 0x323   :  { %2682 = vmatmul.mubr.f32.vlgmr.msra.gmra.mrb[10].mxu0 %v23650_v37  ;;  %19268 = vmatprep.subr.bf16.mxu1 %v26372_v39  ;;  %v26377_v37 = vld [vmem:[#allocation89_spill] sm:$0xff]  ;;  %v26378_v39 = vld [vmem:[#allocation91_spill] sm:$0xff]  ;;  %26385 = vst [vmem:[#allocation11_spill] sm:$0xff] %v23775_v27 }
 0x324   :  { %19230 = vmatpush3.bf16.msra.mxu0 %v22982_v61 }
 0x325   :  { %19232 = vmatprep.subr.bf16.mxu0 %v22986_v60 }
 0x326   :  { %19270 = vmatpush3.bf16.msra.mxu1 %v26373_v20  ;;  %v26380_v20 = vld [vmem:[#allocation93_spill] sm:$0xff] }
 0x327   :  { %19272 = vmatprep.subr.bf16.mxu1 %v26374_v38  ;;  %v26379_v38 = vld [vmem:[#allocation92_spill] sm:$0xff] }
 0x328   :  { %19234 = vmatpush3.bf16.msra.mxu0 %v23016_v52 }
 0x329   :  { %19236 = vmatprep.subr.bf16.mxu0 %v23038_v43 }
 0x32a   :  { %19274 = vmatpush3.bf16.msra.mxu1 %v26375_v8  ;;  %v26382_v8 = vld [vmem:[#allocation97_spill] sm:$0xff] }
 0x32b   :  { %19276 = vmatprep.subr.bf16.mxu1 %v26376_v59  ;;  %v26381_v59 = vld [vmem:[#allocation96_spill] sm:$0xff] }
 0x32c   :  { %19238 = vmatpush3.bf16.msra.mxu0 %v23054_v15 }
 0x32d   :  { %19240 = vmatprep.subr.bf16.mxu0 %v23150_v13 }
 0x32e   :  { %19278 = vmatpush3.bf16.msra.mxu1 %v26377_v37 }
 0x32f   :  { %19280 = vmatprep.subr.bf16.mxu1 %v26378_v39  ;;  %v26383_v39 = vld [vmem:[#allocation98_spill] sm:$0xff] }
 0x330   :  { %19242 = vmatpush3.bf16.msra.mxu0 %v26252_v24 }
 0x331   :  { %19244 = vmatprep.subr.bf16.mxu0 %v23279_v40 }
 0x332   :  { %19282 = vmatpush3.bf16.msra.mxu1 %v26379_v38 }
 0x333   :  { %19284 = vmatprep.subr.bf16.mxu1 %v26380_v20  ;;  %v26384_v20 = vld [vmem:[#allocation99_spill] sm:$0xff] }
 0x334   :  { %19246 = vmatpush3.bf16.msra.mxu0 %v23291_v41 }
 0x335   :  { %19248 = vmatprep.subr.bf16.mxu0 %v23310_v12 }
 0x336   :  { %19286 = vmatpush3.bf16.msra.mxu1 %v26381_v59 }
 0x337   :  { %19288 = vmatprep.subr.bf16.mxu1 %v26382_v8 }
 0x338   :  { %19250 = vmatpush3.bf16.msra.mxu0 %v23325_v21 }
 0x339   :  { %19252 = vmatprep.subr.bf16.mxu0 %v23342_v0 }
 0x33a   :  { %19290 = vmatpush3.bf16.msra.mxu1 %v26383_v39 }
 0x33b   :  { %19324 = vmatprep.subr.bf16.mxu1 %v22974_v10 }
 0x33c   :  { %19254 = vmatpush3.bf16.msra.mxu0 %v23354_v36 }
 0x33d   :  { %19256 = vmatprep.subr.bf16.mxu0 %v23356_v34 }
 0x340   :  { %19258 = vmatpush3.bf16.msra.mxu0 %v23366_v3 }
 0x341   :  { %19292 = vmatprep.subr.bf16.mxu0 %v26384_v20 }
 0x34e   :  { %v15256_v38 = vpop.f32.mrb[12].mxu1 }
 0x34f   :  { %v15257_v59 = vpop.f32.mrb[13].mxu1 }
 0x350   :  { %v15258_v37 = vadd.f32 %v15257_v59, %v15256_v38 }
 0x356   :  { %v15221_v8 = vpop.f32.mrb[0].mxu0 }
 0x357   :  { %v15222_v39 = vpop.f32.mrb[1].mxu0 }
 0x358   :  { %v15223_v54 = vadd.f32 %v15222_v39, %v15221_v8 }
 0x35a   :  { %v1155_v50 = vadd.f32 %v15223_v54, %v23775_v27 }
 0x35c   :  { %v1387_v25 = vadd.f32 %v15258_v37, %v1155_v50 }
 0x36e   :  { %v15326_v56 = vpop.f32.mrb[14].mxu1 }
 0x36f   :  { %v15327_v51 = vpop.f32.mrb[15].mxu1 }
 0x370   :  { %v15328_v44 = vadd.f32 %v15327_v51, %v15326_v56 }
 0x376   :  { %v15291_v58 = vpop.f32.mrb[2].mxu0 }
 0x377   :  { %v15292_v6 = vpop.f32.mrb[3].mxu0 }
 0x378   :  { %v15293_v20 = vadd.f32 %v15292_v6, %v15291_v58 }
 0x37a   :  { %v1525_v11 = vadd.f32 %v15293_v20, %v1387_v25 }
 0x37c   :  { %v1633_v47 = vadd.f32 %v15328_v44, %v1525_v11 }
 0x38e   :  { %v15396_v38 = vpop.f32.mrb[16].mxu1 }
 0x38f   :  { %v15397_v59 = vpop.f32.mrb[17].mxu1 }
 0x390   :  { %v15398_v23 = vadd.f32 %v15397_v59, %v15396_v38 }
 0x396   :  { %v15361_v28 = vpop.f32.mrb[4].mxu0 }
 0x397   :  { %v15362_v62 = vpop.f32.mrb[5].mxu0 }
 0x398   :  { %v15363_v7 = vadd.f32 %v15362_v62, %v15361_v28  ;;  %v23785_v62 = vld [vmem:[%s25640_s2] ss:$0 sm:$0xff] }
 0x39a   :  { %v1801_v17 = vadd.f32 %v15363_v7, %v1633_v47 }
 0x39c   :  { %v1905_v31 = vadd.f32 %v15398_v23, %v1801_v17 }
 0x39e   :  { %v14956_v8 = vmul.f32 -1.442695, %v1905_v31 }
 0x3a0   :  { %21897 = vpow2.f32 %v14956_v8 }
 0x3a1   :  { %21899 = vtanh.f32 %v1905_v31 }
 0x3aa   :  { %v21898_v54 = vpop.eup %21897 }
 0x3ab   :  { %v1912_v39 = vadd.f32 1.0, %v21898_v54  ;;  %v21900_v6 = vpop.eup %21899 }
 0x3ad   :  { %21901 = vrcp.f32 %v1912_v39 }
 0x3af   :  { %v15466_v56 = vpop.f32.mrb[18].mxu1 }
 0x3b0   :  { %v15467_v51 = vpop.f32.mrb[19].mxu1 }
 0x3b1   :  { %v15468_v50 = vadd.f32 %v15467_v51, %v15466_v56 }
 0x3b6   :  { %v15431_v58 = vpop.f32.mrb[6].mxu0 }
 0x3b7   :  { %v21902_v11 = vpop.eup %21901  ;;  %v15432_v44 = vpop.f32.mrb[7].mxu0 }
 0x3b8   :  { %v15433_v25 = vadd.f32 %v15432_v44, %v15431_v58  ;;  %v1915_v37 = vsel %vm23244_vm2, %v21900_v6, %v21902_v11 }
 0x3b9   :  { %1918 = vrot.lane.b32.xlu0 %v1915_v37, %s22102_s19  ;;  %1916 = vrot.lane.b32.xlu1 %v1915_v37, %s22101_s18 }
 0x3ba   :  { %v2038_v23 = vadd.f32 %v23785_v62, %v15433_v25 }
 0x3bc   :  { %v2270_v28 = vadd.f32 %v15468_v50, %v2038_v23 }
 0x3cf   :  { %v15536_v31 = vpop.f32.mrb[20].mxu1 }
 0x3d0   :  { %v15537_v17 = vpop.f32.mrb[21].mxu1 }
 0x3d1   :  { %v15538_v47 = vadd.f32 %v15537_v17, %v15536_v31 }
 0x3d6   :  { %v15501_v7 = vpop.f32.mrb[8].mxu0 }
 0x3d7   :  { %v15502_v38 = vpop.f32.mrb[9].mxu0 }
 0x3d8   :  { %v15503_v59 = vadd.f32 %v15502_v38, %v15501_v7 }
 0x3da   :  { %v2408_v8 = vadd.f32 %v15503_v59, %v2270_v28 }
 0x3dc   :  { %v2516_v54 = vadd.f32 %v15538_v47, %v2408_v8 }
 0x3f0   :  { %v15606_v39 = vpop.f32.mrb[22].mxu1 }
 0x3f1   :  { %v15607_v56 = vpop.f32.mrb[23].mxu1 }
 0x3f2   :  { %v15608_v51 = vadd.f32 %v15607_v56, %v15606_v39 }
 0x3f6   :  { %v15571_v6 = vpop.f32.mrb[10].mxu0 }
 0x3f7   :  { %v15572_v58 = vpop.f32.mrb[11].mxu0 }
 0x3f8   :  { %v15573_v11 = vadd.f32 %v15572_v58, %v15571_v6 }
 0x3fa   :  { %v2684_v44 = vadd.f32 %v15573_v11, %v2516_v54  ;;  %v26387_v54 = vld [vmem:[#allocation106_spill] sm:$0xff] }
 0x3fc   :  { %v2788_v27 = vadd.f32 %v15608_v51, %v2684_v44 }
 0x3fe   :  { %v14958_v45 = vmul.f32 -1.442695, %v2788_v27 }
 0x400   :  { %21903 = vpow2.f32 %v14958_v45 }
 0x401   :  { %21905 = vtanh.f32 %v2788_v27 }
 0x40a   :  { %v21904_v25 = vpop.eup %21903 }
 0x40b   :  { %v2795_v50 = vadd.f32 1.0, %v21904_v25  ;;  %v21906_v23 = vpop.eup %21905 }
 0x40d   :  { %21907 = vrcp.f32 %v2795_v50 }
 0x417   :  { %v21908_v31 = vpop.eup %21907 }
 0x418   :  { %v2798_v28 = vsel %vm23244_vm2, %v21906_v23, %v21908_v31 }
 0x419   :  { %2801 = vrot.lane.b32.xlu0 %v2798_v28, %s22102_s19  ;;  %2799 = vrot.lane.b32.xlu1 %v2798_v28, %s22101_s18 }
 0x41d   :  { %2803 = vrot.lane.b32.xlu0 %v2798_v28, %s22100_s17  ;;  %1920 = vrot.lane.b32.xlu1 %v1915_v37, %s22100_s17 }
 0x42b   :  { %v1919_v17 = vpop.permute.xlu0 %1918  ;;  %v1917_v47 = vpop.permute.xlu1 %1916 }
 0x42c   :  { %v1923_v45 = vmul.f32 %v1919_v17, %v1915_v37  ;;  %v1922_v7 = vmul.f32 0.0, %v1917_v47 }
 0x42e   :  { %v23794_v38 = vadd.f32 %v1923_v45, %v1922_v7 }
 0x430   :  { %21909 = vtanh.f32 %v23794_v38 }
 0x43a   :  { %v21910_v51 = vpop.eup %21909 }
 0x48b   :  { %v2802_v27 = vpop.permute.xlu0 %2801  ;;  %v2800_v59 = vpop.permute.xlu1 %2799 }
 0x48c   :  { %v2806_v8 = vmul.f32 %v2802_v27, %v2798_v28  ;;  %v2805_v39 = vmul.f32 %v2800_v59, %v26387_v54  ;;  %v26388_v59 = vld [vmem:[#allocation107_spill] sm:$0xff]  ;;  %v26390_v54 = vld [vmem:[#allocation101_spill] sm:$0xff] }
 0x48e   :  { %v23798_v56 = vadd.f32 %v2806_v8, %v2805_v39  ;;  %v26389_v8 = vld [vmem:[#allocation100_spill] sm:$0xff]  ;;  %v26391_v39 = vld [vmem:[#allocation102_spill] sm:$0xff] }
 0x48f   :  { %v1921_v6 = vpop.permute.xlu1 %1920  ;;  %v2804_v23 = vpop.permute.xlu0 %2803 }
 0x490   :  { %21911 = vtanh.f32 %v23798_v56  ;;  %v1926_v58 = vmul.f32 %v21910_v51, %v1921_v6  ;;  %v26392_v51 = vld [vmem:[#allocation103_spill] sm:$0xff]  ;;  %v26393_v6 = vld [vmem:[#allocation104_spill] sm:$0xff] }
 0x492   :  { %v2906_v11 = vand.u32 4294901760, %v1926_v58 }
 0x494   :  { %v2907_v44 = vsub.f32 %v1926_v58, %v2906_v11  ;;  %3147 = vmatprep.mubr.f32.mxu1 %v2906_v11  ;;  %v26394_v58 = vld [vmem:[#allocation105_spill] sm:$0xff] }
 0x496   :  { %v2908_v37 = vand.u32 4294901760, %v2907_v44 }
 0x498   :  { %v2909_v25 = vsub.f32 %v2907_v44, %v2908_v37 }
 0x49a   :  { %v21912_v50 = vpop.eup %21911  ;;  %v2910_v31 = vand.u32 4294901760, %v2909_v25  ;;  %v26398_v25 = vld [vmem:[#allocation94_spill] sm:$0xff] }
 0x49b   :  { %v2809_v17 = vmul.f32 %v21912_v50, %v2804_v23  ;;  %v26399_v50 = vld [vmem:[#allocation30_spill] sm:$0xff]  ;;  %v26400_v23 = vld [vmem:[#allocation95_spill] sm:$0xff] }
 0x49c   :  { %2911 = vmatprep.mubr.f32.mxu0 %v2910_v31  ;;  %v26401_v31 = vld [vmem:[#allocation31_spill] sm:$0xff] }
 0x49d   :  { %v23801_v28 = vand.u32 4294901760, %v2809_v17 }
 0x49f   :  { %v23804_v47 = vsub.f32 %v2809_v17, %v23801_v28  ;;  %3149 = vmatmul.mubr.f32.vlgmr.msra.gmra.mrb[24].mxu1 %v23801_v28  ;;  %v26402_v17 = vld [vmem:[#allocation32_spill] sm:$0xff] }
 0x4a0   :  { %19326 = vmatpush3.bf16.msra.mxu1 %v22982_v61  ;;  %3391 = vmatprep.mubr.f32.mxu1 %v2908_v37  ;;  %v26397_v37 = vld [vmem:[#allocation29_spill] sm:$0xff] }
 0x4a1   :  { %v23809_v45 = vand.u32 4294901760, %v23804_v47  ;;  %19328 = vmatprep.subr.bf16.mxu1 %v22986_v60 }
 0x4a3   :  { %v2915_v7 = vsub.f32 %v23804_v47, %v23809_v45 }
 0x4a4   :  { %19330 = vmatpush3.bf16.msra.mxu1 %v23016_v52 }
 0x4a5   :  { %19332 = vmatprep.subr.bf16.mxu1 %v23038_v43  ;;  %v23816_v27 = vand.u32 4294901760, %v2915_v7  ;;  %v26403_v7 = vld [vmem:[#allocation33_spill] sm:$0xff] }
 0x4a7   :  { %2917 = vmatmul.mubr.f32.vlgmr.msra.gmra.mrb[12].mxu0 %v23816_v27 }
 0x4a8   :  { %19294 = vmatpush3.bf16.msra.mxu0 %v26388_v59  ;;  %19334 = vmatpush3.bf16.msra.mxu1 %v23054_v15 }
 0x4a9   :  { %3284 = vmatprep.mubr.f32.mxu0 %v2907_v44  ;;  %19296 = vmatprep.subr.bf16.mxu0 %v23451_v4  ;;  %v26396_v44 = vld [vmem:[#allocation115_spill] sm:$0xff] }
 0x4aa   :  { %19336 = vmatprep.subr.bf16.mxu1 %v23150_v13 }
 0x4ac   :  { %19298 = vmatpush3.bf16.msra.mxu0 %v23458_v14  ;;  %19338 = vmatpush3.bf16.msra.mxu1 %v26252_v24 }
 0x4ad   :  { %19300 = vmatprep.subr.bf16.mxu0 %v23464_v2  ;;  %19340 = vmatprep.subr.bf16.mxu1 %v23279_v40 }
 0x4b0   :  { %19302 = vmatpush3.bf16.msra.mxu0 %v23471_v5  ;;  %19342 = vmatpush3.bf16.msra.mxu1 %v23291_v41 }
 0x4b1   :  { %19304 = vmatprep.subr.bf16.mxu0 %v23385_v42  ;;  %19344 = vmatprep.subr.bf16.mxu1 %v23310_v12 }
 0x4b4   :  { %19306 = vmatpush3.bf16.msra.mxu0 %v23389_v53  ;;  %19346 = vmatpush3.bf16.msra.mxu1 %v23325_v21 }
 0x4b5   :  { %19308 = vmatprep.subr.bf16.mxu0 %v26389_v8  ;;  %19348 = vmatprep.subr.bf16.mxu1 %v23342_v0 }
 0x4b8   :  { %19310 = vmatpush3.bf16.msra.mxu0 %v26390_v54  ;;  %19350 = vmatpush3.bf16.msra.mxu1 %v23354_v36 }
 0x4b9   :  { %19312 = vmatprep.subr.bf16.mxu0 %v26391_v39  ;;  %19352 = vmatprep.subr.bf16.mxu1 %v23356_v34 }
 0x4bc   :  { %19314 = vmatpush3.bf16.msra.mxu0 %v26392_v51  ;;  %19354 = vmatpush3.bf16.msra.mxu1 %v23366_v3 }
 0x4bd   :  { %19316 = vmatprep.subr.bf16.mxu0 %v26393_v6  ;;  %19388 = vmatprep.subr.bf16.mxu1 %v22974_v10 }
 0x4bf   :  { %3395 = vmatmul.mubr.f32.vlgmr.msra.gmra.mrb[26].mxu1 %v23809_v45 }
 0x4c0   :  { %19318 = vmatpush3.bf16.msra.mxu0 %v26394_v58  ;;  %19390 = vmatpush3.bf16.msra.mxu1 %v22982_v61 }
 0x4c1   :  { %3665 = vmatprep.mubr.f32.mxu1 %v2906_v11  ;;  %19320 = vmatprep.subr.bf16.mxu0 %v23417_v16 }
 0x4c2   :  { %19392 = vmatprep.subr.bf16.mxu1 %v22986_v60 }
 0x4c4   :  { %19322 = vmatpush3.bf16.msra.mxu0 %v23421_v22  ;;  %19394 = vmatpush3.bf16.msra.mxu1 %v23016_v52 }
 0x4c5   :  { %19356 = vmatprep.subr.bf16.mxu0 %v23500_v18  ;;  %19396 = vmatprep.subr.bf16.mxu1 %v23038_v43 }
 0x4c7   :  { %3287 = vmatmul.mubr.f32.vlgmr.msra.gmra.mrb[14].mxu0 %v23804_v47 }
 0x4c8   :  { %19358 = vmatpush3.bf16.msra.mxu0 %v23509_v26  ;;  %3561 = vmatprep.mubr.f32.mxu0 %v2906_v11  ;;  %v26395_v11 = vld [vmem:[#allocation28_spill] sm:$0xff] }
 0x4c9   :  { %19398 = vmatpush3.bf16.msra.mxu1 %v23054_v15  ;;  %19360 = vmatprep.subr.bf16.mxu0 %v23517_v29  ;;  %v26431_v29 = vld [vmem:[#allocation65_spill] sm:$0xff] }
 0x4ca   :  { %19400 = vmatprep.subr.bf16.mxu1 %v23150_v13 }
 0x4cc   :  { %19362 = vmatpush3.bf16.msra.mxu0 %v23526_v35  ;;  %v26428_v35 = vld [vmem:[#allocation62_spill] sm:$0xff] }
 0x4cd   :  { %19402 = vmatpush3.bf16.msra.mxu1 %v26252_v24  ;;  %19364 = vmatprep.subr.bf16.mxu0 %v23534_v19  ;;  %v26426_v19 = vld [vmem:[#allocation27_spill] sm:$0xff] }
 0x4ce   :  { %19404 = vmatprep.subr.bf16.mxu1 %v23279_v40 }
 0x4d0   :  { %19366 = vmatpush3.bf16.msra.mxu0 %v23543_v32  ;;  %v26422_v32 = vld [vmem:[#allocation60_spill] sm:$0xff] }
 0x4d1   :  { %19406 = vmatpush3.bf16.msra.mxu1 %v23291_v41  ;;  %19368 = vmatprep.subr.bf16.mxu0 %v23551_v33  ;;  %v26421_v33 = vld [vmem:[#allocation23_spill] sm:$0xff] }
 0x4d2   :  { %19408 = vmatprep.subr.bf16.mxu1 %v23310_v12 }
 0x4d4   :  { %19370 = vmatpush3.bf16.msra.mxu0 %v23559_v63  ;;  %v26420_v63 = vld [vmem:[#allocation59_spill] sm:$0xff] }
 0x4d5   :  { %19410 = vmatpush3.bf16.msra.mxu1 %v23325_v21  ;;  %19372 = vmatprep.subr.bf16.mxu0 %v23567_v46  ;;  %v26418_v46 = vld [vmem:[#allocation42_spill] sm:$0xff] }
 0x4d6   :  { %19412 = vmatprep.subr.bf16.mxu1 %v23342_v0 }
 0x4d8   :  { %19374 = vmatpush3.bf16.msra.mxu0 %v23575_v9  ;;  %v26417_v9 = vld [vmem:[#allocation20_spill] sm:$0xff] }
 0x4d9   :  { %19414 = vmatpush3.bf16.msra.mxu1 %v23354_v36  ;;  %19376 = vmatprep.subr.bf16.mxu0 %v23583_v55 }
 0x4da   :  { %19416 = vmatprep.subr.bf16.mxu1 %v23356_v34 }
 0x4dc   :  { %19378 = vmatpush3.bf16.msra.mxu0 %v23591_v30  ;;  %v26415_v30 = vld [vmem:[#allocation19_spill] sm:$0xff] }
 0x4dd   :  { %19418 = vmatpush3.bf16.msra.mxu1 %v23366_v3  ;;  %19380 = vmatprep.subr.bf16.mxu0 %v23599_v57  ;;  %v26413_v57 = vld [vmem:[#allocation18_spill] sm:$0xff] }
 0x4de   :  { %19452 = vmatprep.subr.bf16.mxu1 %v26395_v11  ;;  %v26412_v11 = vld [vmem:[#allocation39_spill] sm:$0xff] }
 0x4e0   :  { %3667 = vmatmul.mubr.f32.vlgmr.msra.gmra.mrb[28].mxu1 %v23801_v28  ;;  %19382 = vmatpush3.bf16.msra.mxu0 %v26396_v44  ;;  %v26410_v44 = vld [vmem:[#allocation38_spill] sm:$0xff] }
 0x4e1   :  { %19454 = vmatpush3.bf16.msra.mxu1 %v26397_v37  ;;  %4030 = vmatprep.mubr.f32.mxu1 %v23801_v28  ;;  %v26408_v37 = vld [vmem:[#allocation37_spill] sm:$0xff] }
 0x4e2   :  { %19384 = vmatprep.subr.bf16.mxu0 %v26398_v25  ;;  %19456 = vmatprep.subr.bf16.mxu1 %v26399_v50  ;;  %v26404_v25 = vld [vmem:[#allocation34_spill] sm:$0xff] }
 0x4e3   :  { %v26405_v50 = vld [vmem:[#allocation14_spill] sm:$0xff] }
 0x4e4   :  { %19386 = vmatpush3.bf16.msra.mxu0 %v26400_v23  ;;  %v26406_v23 = vld [vmem:[#allocation36_spill] sm:$0xff] }
 0x4e5   :  { %19458 = vmatpush3.bf16.msra.mxu1 %v26401_v31  ;;  %19420 = vmatprep.subr.bf16.mxu0 %v26307_v1  ;;  %v26407_v31 = vld [vmem:[#allocation15_spill] sm:$0xff] }
 0x4e6   :  { %19460 = vmatprep.subr.bf16.mxu1 %v26402_v17  ;;  %v26409_v17 = vld [vmem:[#allocation16_spill] sm:$0xff] }
 0x4e7   :  { %3563 = vmatmul.mubr.f32.vlgmr.msra.gmra.mrb[16].mxu0 %v23801_v28 }
 0x4e8   :  { %19422 = vmatpush3.bf16.msra.mxu0 %v26309_v48  ;;  %3794 = vmatprep.mubr.f32.mxu0 %v23816_v27  ;;  %v14960_v27 = vld [vmem:[%s25638_s0 + $0x10] sm:$0xff] }
 0x4e9   :  { %19462 = vmatpush3.bf16.msra.mxu1 %v26403_v7  ;;  %19424 = vmatprep.subr.bf16.mxu0 %v26312_v49  ;;  %v26411_v7 = vld [vmem:[#allocation17_spill] sm:$0xff] }
 0x4ea   :  { %19464 = vmatprep.subr.bf16.mxu1 %v26404_v25  ;;  %v23904_v25 = vand.u32 4294901760, %v14960_v27 }
 0x4ec   :  { %19426 = vmatpush3.bf16.msra.mxu0 %v26405_v50  ;;  %v3796_v55 = vsub.f32 %v14960_v27, %v23904_v25  ;;  %v26424_v27 = vld [vmem:[#allocation25_spill] sm:$0xff] }
 0x4ed   :  { %19466 = vmatpush3.bf16.msra.mxu1 %v26406_v23  ;;  %19428 = vmatprep.subr.bf16.mxu0 %v26407_v31  ;;  %v26414_v23 = vld [vmem:[#allocation40_spill] sm:$0xff] }
 0x4ee   :  { %19468 = vmatprep.subr.bf16.mxu1 %v26408_v37  ;;  %v26416_v37 = vld [vmem:[#allocation41_spill] sm:$0xff] }
 0x4f0   :  { %19430 = vmatpush3.bf16.msra.mxu0 %v26409_v17 }
 0x4f1   :  { %19470 = vmatpush3.bf16.msra.mxu1 %v26410_v44  ;;  %19432 = vmatprep.subr.bf16.mxu0 %v26411_v7  ;;  %v26419_v44 = vld [vmem:[#allocation22_spill] sm:$0xff] }
 0x4f2   :  { %19472 = vmatprep.subr.bf16.mxu1 %v26412_v11  ;;  %v3797_v11 = vand.u32 4294901760, %v3796_v55 }
 0x4f4   :  { %19434 = vmatpush3.bf16.msra.mxu0 %v26413_v57 }
 0x4f5   :  { %19474 = vmatpush3.bf16.msra.mxu1 %v26414_v23  ;;  %19436 = vmatprep.subr.bf16.mxu0 %v26415_v30  ;;  %v26423_v23 = vld [vmem:[#allocation24_spill] sm:$0xff] }
 0x4f6   :  { %19476 = vmatprep.subr.bf16.mxu1 %v26416_v37  ;;  %v3798_v37 = vsub.f32 %v3796_v55, %v3797_v11 }
 0x4f8   :  { %19438 = vmatpush3.bf16.msra.mxu0 %v26417_v9 }
 0x4f9   :  { %19478 = vmatpush3.bf16.msra.mxu1 %v26418_v46  ;;  %19440 = vmatprep.subr.bf16.mxu0 %v26419_v44  ;;  %v26425_v46 = vld [vmem:[#allocation26_spill] sm:$0xff] }
 0x4fa   :  { %19480 = vmatprep.subr.bf16.mxu1 %v26420_v63  ;;  %v3799_v63 = vand.u32 4294901760, %v3798_v37  ;;  %v26430_v37 = vld [vmem:[#allocation64_spill] sm:$0xff] }
 0x4fc   :  { %19442 = vmatpush3.bf16.msra.mxu0 %v26421_v33 }
 0x4fd   :  { %19482 = vmatpush3.bf16.msra.mxu1 %v26422_v32  ;;  %19444 = vmatprep.subr.bf16.mxu0 %v26423_v23  ;;  %v26427_v32 = vld [vmem:[#allocation61_spill] sm:$0xff] }
 0x4fe   :  { %19516 = vmatprep.subr.bf16.mxu1 %v26307_v1 }
 0x500   :  { %4032 = vmatmul.mubr.f32.vlgmr.msra.gmra.mrb[30].mxu1 %v23904_v25  ;;  %19446 = vmatpush3.bf16.msra.mxu0 %v26424_v27 }
 0x501   :  { %19518 = vmatpush3.bf16.msra.mxu1 %v26309_v48  ;;  %4274 = vmatprep.mubr.f32.mxu1 %v23809_v45  ;;  %v26429_v45 = vld [vmem:[#allocation63_spill] sm:$0xff] }
 0x502   :  { %19448 = vmatprep.subr.bf16.mxu0 %v26425_v46  ;;  %19520 = vmatprep.subr.bf16.mxu1 %v26312_v49 }
 0x504   :  { %19450 = vmatpush3.bf16.msra.mxu0 %v26426_v19 }
 0x505   :  { %19522 = vmatpush3.bf16.msra.mxu1 %v26405_v50  ;;  %19484 = vmatprep.subr.bf16.mxu0 %v26427_v32  ;;  %v26432_v32 = vld [vmem:[#allocation66_spill] sm:$0xff] }
 0x506   :  { %19524 = vmatprep.subr.bf16.mxu1 %v26407_v31 }
 0x507   :  { %3800 = vmatmul.mubr.f32.vlgmr.msra.gmra.mrb[18].mxu0 %v3799_v63  ;;  %v26433_v63 = vld [vmem:[#allocation67_spill] sm:$0xff] }
 0x508   :  { %19486 = vmatpush3.bf16.msra.mxu0 %v26428_v35  ;;  %4167 = vmatprep.mubr.f32.mxu0 %v23804_v47  ;;  %v26434_v47 = vld [vmem:[#allocation68_spill] sm:$0xff] }
 0x509   :  { %19526 = vmatpush3.bf16.msra.mxu1 %v26409_v17  ;;  %19488 = vmatprep.subr.bf16.mxu0 %v26429_v45  ;;  %v26435_v45 = vld [vmem:[#allocation69_spill] sm:$0xff] }
 0x50a   :  { %19528 = vmatprep.subr.bf16.mxu1 %v26411_v7 }
 0x50c   :  { %19490 = vmatpush3.bf16.msra.mxu0 %v26430_v37  ;;  %v26436_v37 = vld [vmem:[#allocation70_spill] sm:$0xff] }
 0x50d   :  { %19530 = vmatpush3.bf16.msra.mxu1 %v26413_v57  ;;  %19492 = vmatprep.subr.bf16.mxu0 %v26431_v29  ;;  %v26437_v29 = vld [vmem:[#allocation71_spill] sm:$0xff] }
 0x50e   :  { %19532 = vmatprep.subr.bf16.mxu1 %v26415_v30 }
 0x510   :  { %19494 = vmatpush3.bf16.msra.mxu0 %v26432_v32  ;;  %v26438_v32 = vld [vmem:[#allocation72_spill] sm:$0xff] }
 0x511   :  { %19534 = vmatpush3.bf16.msra.mxu1 %v26417_v9  ;;  %19496 = vmatprep.subr.bf16.mxu0 %v26433_v63  ;;  %v26439_v63 = vld [vmem:[#allocation73_spill] sm:$0xff] }
 0x512   :  { %19536 = vmatprep.subr.bf16.mxu1 %v26419_v44 }
 0x514   :  { %19498 = vmatpush3.bf16.msra.mxu0 %v26434_v47 }
 0x515   :  { %19538 = vmatpush3.bf16.msra.mxu1 %v26421_v33  ;;  %19500 = vmatprep.subr.bf16.mxu0 %v26435_v45  ;;  %v26440_v45 = vld [vmem:[#allocation35_spill] sm:$0xff] }
 0x516   :  { %19540 = vmatprep.subr.bf16.mxu1 %v26423_v23 }
 0x518   :  { %19502 = vmatpush3.bf16.msra.mxu0 %v26436_v37  ;;  %v26441_v37 = vld [vmem:[#allocation74_spill] sm:$0xff] }
 0x519   :  { %19542 = vmatpush3.bf16.msra.mxu1 %v26424_v27  ;;  %19504 = vmatprep.subr.bf16.mxu0 %v26437_v29  ;;  %v26442_v29 = vld [vmem:[#allocation75_spill] sm:$0xff] }
 0x51a   :  { %19544 = vmatprep.subr.bf16.mxu1 %v26425_v46 }
 0x51c   :  { %19506 = vmatpush3.bf16.msra.mxu0 %v26438_v32  ;;  %v26443_v32 = vld [vmem:[#allocation43_spill] sm:$0xff] }
 0x51d   :  { %19546 = vmatpush3.bf16.msra.mxu1 %v26426_v19  ;;  %19508 = vmatprep.subr.bf16.mxu0 %v26439_v63  ;;  %v26461_v63 = vld [vmem:[#allocation58_spill] sm:$0xff] }
 0x51e   :  { %19580 = vmatprep.subr.bf16.mxu1 %v26307_v1 }
 0x520   :  { %4278 = vmatmul.mubr.f32.vlgmr.msra.gmra.mrb[32].mxu1 %v3797_v11  ;;  %19510 = vmatpush3.bf16.msra.mxu0 %v26440_v45  ;;  %v26444_v11 = vld [vmem:[#allocation44_spill] sm:$0xff]  ;;  %v26445_v45 = vld [vmem:[#allocation45_spill] sm:$0xff] }
 0x521   :  { %4548 = vmatprep.mubr.f32.mxu1 %v23801_v28  ;;  %19512 = vmatprep.subr.bf16.mxu0 %v26441_v37  ;;  %v26446_v37 = vld [vmem:[#allocation46_spill] sm:$0xff] }
 0x522   :  { %19582 = vmatpush3.bf16.msra.mxu1 %v26309_v48 }
 0x523   :  { %19584 = vmatprep.subr.bf16.mxu1 %v26312_v49 }
 0x524   :  { %19514 = vmatpush3.bf16.msra.mxu0 %v26442_v29  ;;  %v26447_v29 = vld [vmem:[#allocation47_spill] sm:$0xff] }
 0x525   :  { %19548 = vmatprep.subr.bf16.mxu0 %v26443_v32  ;;  %v26449_v32 = vld [vmem:[#allocation49_spill] sm:$0xff] }
 0x526   :  { %19586 = vmatpush3.bf16.msra.mxu1 %v26405_v50 }
 0x527   :  { %4170 = vmatmul.mubr.f32.vlgmr.msra.gmra.mrb[20].mxu0 %v3796_v55  ;;  %19588 = vmatprep.subr.bf16.mxu1 %v26407_v31  ;;  %v26448_v55 = vld [vmem:[#allocation48_spill] sm:$0xff] }
 0x528   :  { %19550 = vmatpush3.bf16.msra.mxu0 %v26444_v11  ;;  %4444 = vmatprep.mubr.f32.mxu0 %v23801_v28  ;;  %v26450_v28 = vld [vmem:[#allocation50_spill] sm:$0xff]  ;;  %v26458_v11 = vld [vmem:[#allocation57_spill] sm:$0xff] }
 0x529   :  { %19552 = vmatprep.subr.bf16.mxu0 %v26445_v45  ;;  %v26451_v45 = vld [vmem:[#allocation51_spill] sm:$0xff] }
 0x52a   :  { %19590 = vmatpush3.bf16.msra.mxu1 %v26409_v17 }
 0x52b   :  { %19592 = vmatprep.subr.bf16.mxu1 %v26411_v7 }
 0x52c   :  { %19554 = vmatpush3.bf16.msra.mxu0 %v26446_v37  ;;  %v26453_v37 = vld [vmem:[#allocation53_spill] sm:$0xff] }
 0x52d   :  { %19556 = vmatprep.subr.bf16.mxu0 %v26447_v29  ;;  %v26452_v29 = vld [vmem:[#allocation52_spill] sm:$0xff] }
 0x52e   :  { %19594 = vmatpush3.bf16.msra.mxu1 %v26413_v57 }
 0x52f   :  { %19596 = vmatprep.subr.bf16.mxu1 %v26415_v30 }
 0x530   :  { %19558 = vmatpush3.bf16.msra.mxu0 %v26448_v55  ;;  %v26455_v55 = vld [vmem:[#allocation55_spill] sm:$0xff] }
 0x531   :  { %19560 = vmatprep.subr.bf16.mxu0 %v26449_v32  ;;  %v26454_v32 = vld [vmem:[#allocation54_spill] sm:$0xff] }
 0x532   :  { %19598 = vmatpush3.bf16.msra.mxu1 %v26417_v9 }
 0x533   :  { %19600 = vmatprep.subr.bf16.mxu1 %v26419_v44 }
 0x534   :  { %19562 = vmatpush3.bf16.msra.mxu0 %v26450_v28  ;;  %v26456_v28 = vld [vmem:[#allocation21_spill] sm:$0xff] }
 0x535   :  { %19564 = vmatprep.subr.bf16.mxu0 %v26451_v45  ;;  %v26457_v45 = vld [vmem:[#allocation56_spill] sm:$0xff] }
 0x536   :  { %19602 = vmatpush3.bf16.msra.mxu1 %v26421_v33 }
 0x537   :  { %19604 = vmatprep.subr.bf16.mxu1 %v26423_v23 }
 0x538   :  { %19566 = vmatpush3.bf16.msra.mxu0 %v26452_v29  ;;  %v26459_v29 = vld [vmem:[#allocation76_spill] sm:$0xff] }
 0x539   :  { %19568 = vmatprep.subr.bf16.mxu0 %v26453_v37  ;;  %v26460_v37 = vld [vmem:[#allocation77_spill] sm:$0xff] }
 0x53a   :  { %19606 = vmatpush3.bf16.msra.mxu1 %v26424_v27 }
 0x53b   :  { %19608 = vmatprep.subr.bf16.mxu1 %v26425_v46 }
 0x53c   :  { %19570 = vmatpush3.bf16.msra.mxu0 %v26454_v32  ;;  %v26462_v32 = vld [vmem:[#allocation82_spill] sm:$0xff] }
 0x53d   :  { %19572 = vmatprep.subr.bf16.mxu0 %v26455_v55  ;;  %v26463_v55 = vld [vmem:[#allocation83_spill] sm:$0xff] }
 0x53e   :  { %19610 = vmatpush3.bf16.msra.mxu1 %v26426_v19 }
 0x53f   :  { %19644 = vmatprep.subr.bf16.mxu1 %v26456_v28  ;;  %v26476_v28 = vld [vmem:[#allocation11_spill] sm:$0xff] }
 0x540   :  { %19574 = vmatpush3.bf16.msra.mxu0 %v26457_v45  ;;  %v26465_v45 = vld [vmem:[#allocation85_spill] sm:$0xff] }
 0x541   :  { %19576 = vmatprep.subr.bf16.mxu0 %v26458_v11  ;;  %4550 = vmatmul.mubr.f32.vlgmr.msra.gmra.mrb[34].mxu1 %v23904_v25  ;;  %v26464_v11 = vld [vmem:[#allocation84_spill] sm:$0xff] }
 0x542   :  { %19646 = vmatpush3.bf16.msra.mxu1 %v26459_v29 }
 0x543   :  { %19648 = vmatprep.subr.bf16.mxu1 %v26460_v37  ;;  %v26467_v37 = vld [vmem:[#allocation88_spill] sm:$0xff] }
 0x544   :  { %19578 = vmatpush3.bf16.msra.mxu0 %v26461_v63  ;;  %v26466_v63 = vld [vmem:[#allocation87_spill] sm:$0xff] }
 0x545   :  { %19612 = vmatprep.subr.bf16.mxu0 %v22974_v10 }
 0x546   :  { %19650 = vmatpush3.bf16.msra.mxu1 %v26462_v32 }
 0x547   :  { %4446 = vmatmul.mubr.f32.vlgmr.msra.gmra.mrb[22].mxu0 %v23904_v25  ;;  %19652 = vmatprep.subr.bf16.mxu1 %v26463_v55  ;;  %v26468_v25 = vld [vmem:[#allocation89_spill] sm:$0xff]  ;;  %v26469_v55 = vld [vmem:[#allocation91_spill] sm:$0xff] }
 0x548   :  { %19614 = vmatpush3.bf16.msra.mxu0 %v22982_v61 }
 0x549   :  { %19616 = vmatprep.subr.bf16.mxu0 %v22986_v60 }
 0x54a   :  { %19654 = vmatpush3.bf16.msra.mxu1 %v26464_v11  ;;  %v26471_v11 = vld [vmem:[#allocation93_spill] sm:$0xff] }
 0x54b   :  { %19656 = vmatprep.subr.bf16.mxu1 %v26465_v45  ;;  %v26470_v45 = vld [vmem:[#allocation92_spill] sm:$0xff] }
 0x54c   :  { %19618 = vmatpush3.bf16.msra.mxu0 %v23016_v52 }
 0x54d   :  { %19620 = vmatprep.subr.bf16.mxu0 %v23038_v43 }
 0x54e   :  { %19658 = vmatpush3.bf16.msra.mxu1 %v26466_v63  ;;  %v26473_v63 = vld [vmem:[#allocation97_spill] sm:$0xff] }
 0x54f   :  { %19660 = vmatprep.subr.bf16.mxu1 %v26467_v37  ;;  %v26472_v37 = vld [vmem:[#allocation96_spill] sm:$0xff] }
 0x550   :  { %19622 = vmatpush3.bf16.msra.mxu0 %v23054_v15 }
 0x551   :  { %19624 = vmatprep.subr.bf16.mxu0 %v23150_v13 }
 0x552   :  { %19662 = vmatpush3.bf16.msra.mxu1 %v26468_v25 }
 0x553   :  { %19664 = vmatprep.subr.bf16.mxu1 %v26469_v55  ;;  %v26474_v55 = vld [vmem:[#allocation98_spill] sm:$0xff] }
 0x554   :  { %19626 = vmatpush3.bf16.msra.mxu0 %v26252_v24 }
 0x555   :  { %19628 = vmatprep.subr.bf16.mxu0 %v23279_v40 }
 0x556   :  { %19666 = vmatpush3.bf16.msra.mxu1 %v26470_v45 }
 0x557   :  { %19668 = vmatprep.subr.bf16.mxu1 %v26471_v11  ;;  %v26475_v11 = vld [vmem:[#allocation99_spill] sm:$0xff] }
 0x558   :  { %19630 = vmatpush3.bf16.msra.mxu0 %v23291_v41 }
 0x559   :  { %19632 = vmatprep.subr.bf16.mxu0 %v23310_v12 }
 0x55a   :  { %19670 = vmatpush3.bf16.msra.mxu1 %v26472_v37 }
 0x55b   :  { %19672 = vmatprep.subr.bf16.mxu1 %v26473_v63 }
 0x55c   :  { %19634 = vmatpush3.bf16.msra.mxu0 %v23325_v21 }
 0x55d   :  { %19636 = vmatprep.subr.bf16.mxu0 %v23342_v0 }
 0x55e   :  { %19674 = vmatpush3.bf16.msra.mxu1 %v26474_v55 }
 0x55f   :  { %19708 = vmatprep.subr.bf16.mxu1 %v22974_v10 }
 0x560   :  { %19638 = vmatpush3.bf16.msra.mxu0 %v23354_v36 }
 0x561   :  { %19640 = vmatprep.subr.bf16.mxu0 %v23356_v34 }
 0x564   :  { %19642 = vmatpush3.bf16.msra.mxu0 %v23366_v3 }
 0x565   :  { %19676 = vmatprep.subr.bf16.mxu0 %v26475_v11 }
 0x572   :  { %v15676_v45 = vpop.f32.mrb[24].mxu1 }
 0x573   :  { %v15677_v37 = vpop.f32.mrb[25].mxu1 }
 0x574   :  { %v15678_v25 = vadd.f32 %v15677_v37, %v15676_v45 }
 0x57a   :  { %v15641_v63 = vpop.f32.mrb[12].mxu0 }
 0x57b   :  { %v15642_v32 = vpop.f32.mrb[13].mxu0 }
 0x57c   :  { %v15643_v29 = vadd.f32 %v15642_v32, %v15641_v63 }
 0x57e   :  { %v2919_v47 = vadd.f32 %v15643_v29, %v26476_v28 }
 0x580   :  { %v3151_v35 = vadd.f32 %v15678_v25, %v2919_v47 }
 0x592   :  { %v15746_v55 = vpop.f32.mrb[26].mxu1 }
 0x593   :  { %v15747_v19 = vpop.f32.mrb[27].mxu1 }
 0x594   :  { %v15748_v46 = vadd.f32 %v15747_v19, %v15746_v55 }
 0x59a   :  { %v15711_v27 = vpop.f32.mrb[14].mxu0 }
 0x59b   :  { %v15712_v23 = vpop.f32.mrb[15].mxu0 }
 0x59c   :  { %v15713_v33 = vadd.f32 %v15712_v23, %v15711_v27 }
 0x59e   :  { %v3289_v44 = vadd.f32 %v15713_v33, %v3151_v35 }
 0x5a0   :  { %v3397_v9 = vadd.f32 %v15748_v46, %v3289_v44 }
 0x5b3   :  { %v15816_v30 = vpop.f32.mrb[28].mxu1 }
 0x5b4   :  { %v15817_v57 = vpop.f32.mrb[29].mxu1 }
 0x5b5   :  { %v15818_v11 = vadd.f32 %v15817_v57, %v15816_v30 }
 0x5ba   :  { %v15781_v7 = vpop.f32.mrb[16].mxu0 }
 0x5bb   :  { %v15782_v17 = vpop.f32.mrb[17].mxu0 }
 0x5bc   :  { %v15783_v45 = vadd.f32 %v15782_v17, %v15781_v7 }
 0x5be   :  { %v3565_v37 = vadd.f32 %v15783_v45, %v3397_v9 }
 0x5c0   :  { %v3669_v31 = vadd.f32 %v15818_v11, %v3565_v37 }
 0x5c2   :  { %v14959_v32 = vmul.f32 -1.442695, %v3669_v31 }
 0x5c4   :  { %21913 = vpow2.f32 %v14959_v32 }
 0x5c5   :  { %21915 = vtanh.f32 %v3669_v31 }
 0x5ce   :  { %v21914_v29 = vpop.eup %21913 }
 0x5cf   :  { %v3676_v63 = vadd.f32 1.0, %v21914_v29  ;;  %v21916_v23 = vpop.eup %21915 }
 0x5d1   :  { %21917 = vrcp.f32 %v3676_v63 }
 0x5d3   :  { %v15886_v19 = vpop.f32.mrb[30].mxu1 }
 0x5d4   :  { %v15887_v47 = vpop.f32.mrb[31].mxu1 }
 0x5d5   :  { %v15888_v55 = vadd.f32 %v15887_v47, %v15886_v19 }
 0x5da   :  { %v15851_v35 = vpop.f32.mrb[18].mxu0 }
 0x5db   :  { %v21918_v33 = vpop.eup %21917  ;;  %v15852_v46 = vpop.f32.mrb[19].mxu0 }
 0x5dc   :  { %v15853_v44 = vadd.f32 %v15852_v46, %v15851_v35  ;;  %v3679_v30 = vsel %vm23244_vm2, %v21916_v23, %v21918_v33 }
 0x5dd   :  { %3682 = vrot.lane.b32.xlu0 %v3679_v30, %s22102_s19  ;;  %3680 = vrot.lane.b32.xlu1 %v3679_v30, %s22101_s18 }
 0x5de   :  { %v3802_v9 = vadd.f32 %v23785_v62, %v15853_v44 }
 0x5e0   :  { %v4034_v57 = vadd.f32 %v15888_v55, %v3802_v9 }
 0x5f3   :  { %v15956_v31 = vpop.f32.mrb[32].mxu1 }
 0x5f4   :  { %v15957_v17 = vpop.f32.mrb[33].mxu1 }
 0x5f5   :  { %v15958_v7 = vadd.f32 %v15957_v17, %v15956_v31 }
 0x5fa   :  { %v15921_v27 = vpop.f32.mrb[20].mxu0 }
 0x5fb   :  { %v15922_v11 = vpop.f32.mrb[21].mxu0 }
 0x5fc   :  { %v15923_v28 = vadd.f32 %v15922_v11, %v15921_v27 }
 0x5fe   :  { %v4172_v25 = vadd.f32 %v15923_v28, %v4034_v57 }
 0x600   :  { %v4280_v45 = vadd.f32 %v15958_v7, %v4172_v25 }
 0x614   :  { %v16026_v37 = vpop.f32.mrb[34].mxu1 }
 0x615   :  { %v16027_v32 = vpop.f32.mrb[35].mxu1 }
 0x616   :  { %v16028_v29 = vadd.f32 %v16027_v32, %v16026_v37 }
 0x61a   :  { %v15991_v63 = vpop.f32.mrb[22].mxu0 }
 0x61b   :  { %v15992_v19 = vpop.f32.mrb[23].mxu0 }
 0x61c   :  { %v15993_v47 = vadd.f32 %v15992_v19, %v15991_v63 }
 0x61e   :  { %v4448_v23 = vadd.f32 %v15993_v47, %v4280_v45 }
 0x620   :  { %v4552_v35 = vadd.f32 %v16028_v29, %v4448_v23 }
 0x622   :  { %v14961_v33 = vmul.f32 -1.442695, %v4552_v35 }
 0x624   :  { %21919 = vpow2.f32 %v14961_v33 }
 0x625   :  { %21921 = vtanh.f32 %v4552_v35 }
 0x62e   :  { %v21920_v62 = vpop.eup %21919 }
 0x62f   :  { %v4559_v55 = vadd.f32 1.0, %v21920_v62  ;;  %v21922_v46 = vpop.eup %21921 }
 0x631   :  { %21923 = vrcp.f32 %v4559_v55 }
 0x63b   :  { %v21924_v44 = vpop.eup %21923 }
 0x63c   :  { %v4562_v9 = vsel %vm23244_vm2, %v21922_v46, %v21924_v44 }
 0x63d   :  { %4565 = vrot.lane.b32.xlu0 %v4562_v9, %s22102_s19  ;;  %4563 = vrot.lane.b32.xlu1 %v4562_v9, %s22101_s18 }
 0x641   :  { %4567 = vrot.lane.b32.xlu0 %v4562_v9, %s22100_s17  ;;  %3684 = vrot.lane.b32.xlu1 %v3679_v30, %s22100_s17 }
 0x64f   :  { %v3683_v57 = vpop.permute.xlu0 %3682  ;;  %v3681_v31 = vpop.permute.xlu1 %3680 }
 0x650   :  { %v3687_v17 = vmul.f32 %v3683_v57, %v3679_v30  ;;  %v3686_v7 = vmul.f32 %v3681_v31, %v23794_v38  ;;  %v26477_v57 = vld [vmem:[#allocation78_spill] sm:$0xff]  ;;  %v26478_v31 = vld [vmem:[#allocation79_spill] sm:$0xff] }
 0x652   :  { %v24039_v27 = vadd.f32 %v3687_v17, %v3686_v7  ;;  %v26479_v17 = vld [vmem:[#allocation86_spill] sm:$0xff]  ;;  %v26480_v7 = vld [vmem:[#allocation80_spill] sm:$0xff] }
 0x654   :  { %21925 = vtanh.f32 %v24039_v27 }
 0x65e   :  { %v21926_v32 = vpop.eup %21925 }
 0x6af   :  { %v4566_v11 = vpop.permute.xlu0 %4565  ;;  %v4564_v28 = vpop.permute.xlu1 %4563 }
 0x6b0   :  { %v4570_v25 = vmul.f32 %v4566_v11, %v4562_v9  ;;  %v4569_v45 = vmul.f32 %v4564_v28, %v23798_v56  ;;  %v26481_v11 = vld [vmem:[#allocation81_spill] sm:$0xff] }
 0x6b1   :  { %v26482_v28 = vld [vmem:[#allocation109_spill] sm:$0xff] }
 0x6b2   :  { %v24043_v37 = vadd.f32 %v4570_v25, %v4569_v45  ;;  %v26483_v25 = vld [vmem:[#allocation110_spill] sm:$0xff]  ;;  %v26484_v45 = vld [vmem:[#allocation111_spill] sm:$0xff] }
 0x6b3   :  { %v3685_v29 = vpop.permute.xlu1 %3684  ;;  %v4568_v35 = vpop.permute.xlu0 %4567 }
 0x6b4   :  { %21927 = vtanh.f32 %v24043_v37  ;;  %v3690_v63 = vmul.f32 %v21926_v32, %v3685_v29  ;;  %v26485_v32 = vld [vmem:[#allocation112_spill] sm:$0xff]  ;;  %v26486_v29 = vld [vmem:[#allocation113_spill] sm:$0xff] }
 0x6b6   :  { %v4670_v19 = vand.u32 4294901760, %v3690_v63 }
 0x6b8   :  { %v4671_v30 = vsub.f32 %v3690_v63, %v4670_v19  ;;  %4911 = vmatprep.mubr.f32.mxu1 %v4670_v19  ;;  %v26487_v63 = vld [vmem:[#allocation114_spill] sm:$0xff] }
 0x6ba   :  { %v4672_v38 = vand.u32 4294901760, %v4671_v30 }
 0x6bc   :  { %v4673_v47 = vsub.f32 %v4671_v30, %v4672_v38 }
 0x6be   :  { %v21928_v23 = vpop.eup %21927  ;;  %v4674_v33 = vand.u32 4294901760, %v4673_v47  ;;  %v26491_v47 = vld [vmem:[#allocation94_spill] sm:$0xff] }
 0x6bf   :  { %v4573_v62 = vmul.f32 %v21928_v23, %v4568_v35  ;;  %v26492_v23 = vld [vmem:[#allocation30_spill] sm:$0xff]  ;;  %v26493_v35 = vld [vmem:[#allocation95_spill] sm:$0xff] }
 0x6c0   :  { %4675 = vmatprep.mubr.f32.mxu0 %v4674_v33  ;;  %v26494_v33 = vld [vmem:[#allocation31_spill] sm:$0xff] }
 0x6c1   :  { %v24046_v55 = vand.u32 4294901760, %v4573_v62 }
 0x6c3   :  { %v24049_v56 = vsub.f32 %v4573_v62, %v24046_v55  ;;  %4913 = vmatmul.mubr.f32.vlgmr.msra.gmra.mrb[36].mxu1 %v24046_v55  ;;  %v26495_v62 = vld [vmem:[#allocation32_spill] sm:$0xff] }
 0x6c4   :  { %19710 = vmatpush3.bf16.msra.mxu1 %v22982_v61  ;;  %5155 = vmatprep.mubr.f32.mxu1 %v4672_v38  ;;  %v26490_v38 = vld [vmem:[#allocation29_spill] sm:$0xff] }
 0x6c5   :  { %v24054_v46 = vand.u32 4294901760, %v24049_v56  ;;  %19712 = vmatprep.subr.bf16.mxu1 %v22986_v60 }
 0x6c7   :  { %v4679_v44 = vsub.f32 %v24049_v56, %v24054_v46 }
 0x6c8   :  { %19714 = vmatpush3.bf16.msra.mxu1 %v23016_v52 }
 0x6c9   :  { %19716 = vmatprep.subr.bf16.mxu1 %v23038_v43  ;;  %v24061_v9 = vand.u32 4294901760, %v4679_v44  ;;  %v26496_v44 = vld [vmem:[#allocation33_spill] sm:$0xff] }
 0x6cb   :  { %4681 = vmatmul.mubr.f32.vlgmr.msra.gmra.mrb[24].mxu0 %v24061_v9 }
 0x6cc   :  { %19678 = vmatpush3.bf16.msra.mxu0 %v26388_v59  ;;  %19718 = vmatpush3.bf16.msra.mxu1 %v23054_v15 }
 0x6cd   :  { %5048 = vmatprep.mubr.f32.mxu0 %v4671_v30  ;;  %19680 = vmatprep.subr.bf16.mxu0 %v23451_v4  ;;  %v26489_v30 = vld [vmem:[#allocation115_spill] sm:$0xff] }
 0x6ce   :  { %19720 = vmatprep.subr.bf16.mxu1 %v23150_v13 }
 0x6d0   :  { %19682 = vmatpush3.bf16.msra.mxu0 %v23458_v14  ;;  %19722 = vmatpush3.bf16.msra.mxu1 %v26252_v24 }
 0x6d1   :  { %19684 = vmatprep.subr.bf16.mxu0 %v23464_v2  ;;  %19724 = vmatprep.subr.bf16.mxu1 %v23279_v40 }
 0x6d4   :  { %19686 = vmatpush3.bf16.msra.mxu0 %v23471_v5  ;;  %19726 = vmatpush3.bf16.msra.mxu1 %v23291_v41 }
 0x6d5   :  { %19688 = vmatprep.subr.bf16.mxu0 %v23385_v42  ;;  %19728 = vmatprep.subr.bf16.mxu1 %v23310_v12 }
 0x6d8   :  { %19690 = vmatpush3.bf16.msra.mxu0 %v23389_v53  ;;  %19730 = vmatpush3.bf16.msra.mxu1 %v23325_v21 }
 0x6d9   :  { %19692 = vmatprep.subr.bf16.mxu0 %v26389_v8  ;;  %19732 = vmatprep.subr.bf16.mxu1 %v23342_v0 }
 0x6dc   :  { %19694 = vmatpush3.bf16.msra.mxu0 %v26390_v54  ;;  %19734 = vmatpush3.bf16.msra.mxu1 %v23354_v36 }
 0x6dd   :  { %19696 = vmatprep.subr.bf16.mxu0 %v26391_v39  ;;  %19736 = vmatprep.subr.bf16.mxu1 %v23356_v34 }
 0x6e0   :  { %19698 = vmatpush3.bf16.msra.mxu0 %v26392_v51  ;;  %19738 = vmatpush3.bf16.msra.mxu1 %v23366_v3 }
 0x6e1   :  { %19700 = vmatprep.subr.bf16.mxu0 %v26393_v6  ;;  %19772 = vmatprep.subr.bf16.mxu1 %v22974_v10 }
 0x6e3   :  { %5159 = vmatmul.mubr.f32.vlgmr.msra.gmra.mrb[38].mxu1 %v24054_v46 }
 0x6e4   :  { %19702 = vmatpush3.bf16.msra.mxu0 %v26394_v58  ;;  %19774 = vmatpush3.bf16.msra.mxu1 %v22982_v61 }
 0x6e5   :  { %5429 = vmatprep.mubr.f32.mxu1 %v4670_v19  ;;  %19704 = vmatprep.subr.bf16.mxu0 %v23417_v16 }
 0x6e6   :  { %19776 = vmatprep.subr.bf16.mxu1 %v22986_v60 }
 0x6e8   :  { %19706 = vmatpush3.bf16.msra.mxu0 %v23421_v22  ;;  %19778 = vmatpush3.bf16.msra.mxu1 %v23016_v52 }
 0x6e9   :  { %19740 = vmatprep.subr.bf16.mxu0 %v23500_v18  ;;  %19780 = vmatprep.subr.bf16.mxu1 %v23038_v43 }
 0x6eb   :  { %5051 = vmatmul.mubr.f32.vlgmr.msra.gmra.mrb[26].mxu0 %v24049_v56 }
 0x6ec   :  { %19742 = vmatpush3.bf16.msra.mxu0 %v23509_v26  ;;  %5325 = vmatprep.mubr.f32.mxu0 %v4670_v19  ;;  %v26488_v19 = vld [vmem:[#allocation28_spill] sm:$0xff] }
 0x6ed   :  { %19782 = vmatpush3.bf16.msra.mxu1 %v23054_v15  ;;  %19744 = vmatprep.subr.bf16.mxu0 %v26477_v57 }
 0x6ee   :  { %19784 = vmatprep.subr.bf16.mxu1 %v23150_v13 }
 0x6f0   :  { %19746 = vmatpush3.bf16.msra.mxu0 %v26478_v31  ;;  %v26523_v31 = vld [vmem:[#allocation65_spill] sm:$0xff] }
 0x6f1   :  { %19786 = vmatpush3.bf16.msra.mxu1 %v26252_v24  ;;  %19748 = vmatprep.subr.bf16.mxu0 %v26479_v17  ;;  %v26520_v17 = vld [vmem:[#allocation62_spill] sm:$0xff] }
 0x6f2   :  { %19788 = vmatprep.subr.bf16.mxu1 %v23279_v40 }
 0x6f4   :  { %19750 = vmatpush3.bf16.msra.mxu0 %v26480_v7  ;;  %v26518_v7 = vld [vmem:[#allocation27_spill] sm:$0xff] }
 0x6f5   :  { %19790 = vmatpush3.bf16.msra.mxu1 %v23291_v41  ;;  %19752 = vmatprep.subr.bf16.mxu0 %v26481_v11  ;;  %v26514_v11 = vld [vmem:[#allocation60_spill] sm:$0xff] }
 0x6f6   :  { %19792 = vmatprep.subr.bf16.mxu1 %v23310_v12 }
 0x6f8   :  { %19754 = vmatpush3.bf16.msra.mxu0 %v26482_v28  ;;  %v26513_v28 = vld [vmem:[#allocation23_spill] sm:$0xff] }
 0x6f9   :  { %19794 = vmatpush3.bf16.msra.mxu1 %v23325_v21  ;;  %19756 = vmatprep.subr.bf16.mxu0 %v26483_v25  ;;  %v26512_v25 = vld [vmem:[#allocation59_spill] sm:$0xff] }
 0x6fa   :  { %19796 = vmatprep.subr.bf16.mxu1 %v23342_v0 }
 0x6fc   :  { %19758 = vmatpush3.bf16.msra.mxu0 %v26484_v45  ;;  %v26510_v45 = vld [vmem:[#allocation42_spill] sm:$0xff] }
 0x6fd   :  { %19798 = vmatpush3.bf16.msra.mxu1 %v23354_v36  ;;  %19760 = vmatprep.subr.bf16.mxu0 %v26485_v32  ;;  %v26509_v32 = vld [vmem:[#allocation20_spill] sm:$0xff] }
 0x6fe   :  { %19800 = vmatprep.subr.bf16.mxu1 %v23356_v34 }
 0x700   :  { %19762 = vmatpush3.bf16.msra.mxu0 %v26486_v29 }
 0x701   :  { %19802 = vmatpush3.bf16.msra.mxu1 %v23366_v3  ;;  %19764 = vmatprep.subr.bf16.mxu0 %v26487_v63  ;;  %v26507_v63 = vld [vmem:[#allocation19_spill] sm:$0xff] }
 0x702   :  { %19836 = vmatprep.subr.bf16.mxu1 %v26488_v19  ;;  %v26505_v19 = vld [vmem:[#allocation18_spill] sm:$0xff] }
 0x704   :  { %5431 = vmatmul.mubr.f32.vlgmr.msra.gmra.mrb[40].mxu1 %v24046_v55  ;;  %19766 = vmatpush3.bf16.msra.mxu0 %v26489_v30  ;;  %v26504_v30 = vld [vmem:[#allocation39_spill] sm:$0xff] }
 0x705   :  { %19838 = vmatpush3.bf16.msra.mxu1 %v26490_v38  ;;  %5794 = vmatprep.mubr.f32.mxu1 %v24046_v55  ;;  %v26502_v38 = vld [vmem:[#allocation38_spill] sm:$0xff] }
 0x706   :  { %19768 = vmatprep.subr.bf16.mxu0 %v26491_v47  ;;  %19840 = vmatprep.subr.bf16.mxu1 %v26492_v23  ;;  %v26497_v47 = vld [vmem:[#allocation34_spill] sm:$0xff]  ;;  %v26500_v23 = vld [vmem:[#allocation37_spill] sm:$0xff] }
 0x708   :  { %19770 = vmatpush3.bf16.msra.mxu0 %v26493_v35  ;;  %v26498_v35 = vld [vmem:[#allocation36_spill] sm:$0xff] }
 0x709   :  { %19842 = vmatpush3.bf16.msra.mxu1 %v26494_v33  ;;  %19804 = vmatprep.subr.bf16.mxu0 %v26307_v1  ;;  %v26499_v33 = vld [vmem:[#allocation15_spill] sm:$0xff] }
 0x70a   :  { %19844 = vmatprep.subr.bf16.mxu1 %v26495_v62  ;;  %v26501_v62 = vld [vmem:[#allocation16_spill] sm:$0xff] }
 0x70b   :  { %5327 = vmatmul.mubr.f32.vlgmr.msra.gmra.mrb[28].mxu0 %v24046_v55 }
 0x70c   :  { %19806 = vmatpush3.bf16.msra.mxu0 %v26309_v48  ;;  %5558 = vmatprep.mubr.f32.mxu0 %v24061_v9  ;;  %v14963_v9 = vld [vmem:[%s25638_s0 + $0x18] sm:$0xff] }
 0x70d   :  { %19846 = vmatpush3.bf16.msra.mxu1 %v26496_v44  ;;  %19808 = vmatprep.subr.bf16.mxu0 %v26312_v49  ;;  %v26503_v44 = vld [vmem:[#allocation17_spill] sm:$0xff] }
 0x70e   :  { %19848 = vmatprep.subr.bf16.mxu1 %v26497_v47  ;;  %v24149_v47 = vand.u32 4294901760, %v14963_v9 }
 0x710   :  { %19810 = vmatpush3.bf16.msra.mxu0 %v26405_v50  ;;  %v5560_v29 = vsub.f32 %v14963_v9, %v24149_v47  ;;  %v26516_v9 = vld [vmem:[#allocation25_spill] sm:$0xff] }
 0x711   :  { %19850 = vmatpush3.bf16.msra.mxu1 %v26498_v35  ;;  %19812 = vmatprep.subr.bf16.mxu0 %v26499_v33  ;;  %v26506_v35 = vld [vmem:[#allocation40_spill] sm:$0xff] }
 0x712   :  { %19852 = vmatprep.subr.bf16.mxu1 %v26500_v23  ;;  %v26508_v23 = vld [vmem:[#allocation41_spill] sm:$0xff] }
 0x714   :  { %19814 = vmatpush3.bf16.msra.mxu0 %v26501_v62 }
 0x715   :  { %19854 = vmatpush3.bf16.msra.mxu1 %v26502_v38  ;;  %19816 = vmatprep.subr.bf16.mxu0 %v26503_v44  ;;  %v26511_v38 = vld [vmem:[#allocation22_spill] sm:$0xff] }
 0x716   :  { %19856 = vmatprep.subr.bf16.mxu1 %v26504_v30  ;;  %v5561_v30 = vand.u32 4294901760, %v5560_v29 }
 0x718   :  { %19818 = vmatpush3.bf16.msra.mxu0 %v26505_v19 }
 0x719   :  { %19858 = vmatpush3.bf16.msra.mxu1 %v26506_v35  ;;  %19820 = vmatprep.subr.bf16.mxu0 %v26507_v63  ;;  %v26515_v35 = vld [vmem:[#allocation24_spill] sm:$0xff] }
 0x71a   :  { %19860 = vmatprep.subr.bf16.mxu1 %v26508_v23  ;;  %v5562_v23 = vsub.f32 %v5560_v29, %v5561_v30 }
 0x71c   :  { %19822 = vmatpush3.bf16.msra.mxu0 %v26509_v32 }
 0x71d   :  { %19862 = vmatpush3.bf16.msra.mxu1 %v26510_v45  ;;  %19824 = vmatprep.subr.bf16.mxu0 %v26511_v38  ;;  %v26517_v45 = vld [vmem:[#allocation26_spill] sm:$0xff] }
 0x71e   :  { %19864 = vmatprep.subr.bf16.mxu1 %v26512_v25  ;;  %v5563_v25 = vand.u32 4294901760, %v5562_v23  ;;  %v26522_v23 = vld [vmem:[#allocation64_spill] sm:$0xff] }
 0x720   :  { %19826 = vmatpush3.bf16.msra.mxu0 %v26513_v28 }
 0x721   :  { %19866 = vmatpush3.bf16.msra.mxu1 %v26514_v11  ;;  %19828 = vmatprep.subr.bf16.mxu0 %v26515_v35  ;;  %v26519_v11 = vld [vmem:[#allocation61_spill] sm:$0xff] }
 0x722   :  { %19900 = vmatprep.subr.bf16.mxu1 %v26307_v1 }
 0x724   :  { %5796 = vmatmul.mubr.f32.vlgmr.msra.gmra.mrb[42].mxu1 %v24149_v47  ;;  %19830 = vmatpush3.bf16.msra.mxu0 %v26516_v9 }
 0x725   :  { %19902 = vmatpush3.bf16.msra.mxu1 %v26309_v48  ;;  %6038 = vmatprep.mubr.f32.mxu1 %v24054_v46  ;;  %v26521_v46 = vld [vmem:[#allocation63_spill] sm:$0xff] }
 0x726   :  { %19832 = vmatprep.subr.bf16.mxu0 %v26517_v45  ;;  %19904 = vmatprep.subr.bf16.mxu1 %v26312_v49 }
 0x728   :  { %19834 = vmatpush3.bf16.msra.mxu0 %v26518_v7 }
 0x729   :  { %19906 = vmatpush3.bf16.msra.mxu1 %v26405_v50  ;;  %19868 = vmatprep.subr.bf16.mxu0 %v26519_v11  ;;  %v26524_v11 = vld [vmem:[#allocation66_spill] sm:$0xff] }
 0x72a   :  { %19908 = vmatprep.subr.bf16.mxu1 %v26499_v33 }
 0x72b   :  { %5564 = vmatmul.mubr.f32.vlgmr.msra.gmra.mrb[30].mxu0 %v5563_v25  ;;  %v26525_v25 = vld [vmem:[#allocation67_spill] sm:$0xff] }
 0x72c   :  { %19870 = vmatpush3.bf16.msra.mxu0 %v26520_v17  ;;  %5931 = vmatprep.mubr.f32.mxu0 %v24049_v56  ;;  %v26526_v56 = vld [vmem:[#allocation68_spill] sm:$0xff] }
 0x72d   :  { %19910 = vmatpush3.bf16.msra.mxu1 %v26501_v62  ;;  %19872 = vmatprep.subr.bf16.mxu0 %v26521_v46  ;;  %v26527_v46 = vld [vmem:[#allocation69_spill] sm:$0xff] }
 0x72e   :  { %19912 = vmatprep.subr.bf16.mxu1 %v26503_v44 }
 0x730   :  { %19874 = vmatpush3.bf16.msra.mxu0 %v26522_v23  ;;  %v26528_v23 = vld [vmem:[#allocation70_spill] sm:$0xff] }
 0x731   :  { %19914 = vmatpush3.bf16.msra.mxu1 %v26505_v19  ;;  %19876 = vmatprep.subr.bf16.mxu0 %v26523_v31  ;;  %v26529_v31 = vld [vmem:[#allocation71_spill] sm:$0xff] }
 0x732   :  { %19916 = vmatprep.subr.bf16.mxu1 %v26507_v63 }
 0x734   :  { %19878 = vmatpush3.bf16.msra.mxu0 %v26524_v11  ;;  %v26530_v11 = vld [vmem:[#allocation72_spill] sm:$0xff] }
 0x735   :  { %19918 = vmatpush3.bf16.msra.mxu1 %v26509_v32  ;;  %19880 = vmatprep.subr.bf16.mxu0 %v26525_v25  ;;  %v26531_v25 = vld [vmem:[#allocation73_spill] sm:$0xff] }
 0x736   :  { %19920 = vmatprep.subr.bf16.mxu1 %v26511_v38 }
 0x738   :  { %19882 = vmatpush3.bf16.msra.mxu0 %v26526_v56 }
 0x739   :  { %19922 = vmatpush3.bf16.msra.mxu1 %v26513_v28  ;;  %19884 = vmatprep.subr.bf16.mxu0 %v26527_v46  ;;  %v26532_v46 = vld [vmem:[#allocation35_spill] sm:$0xff] }
 0x73a   :  { %19924 = vmatprep.subr.bf16.mxu1 %v26515_v35 }
 0x73c   :  { %19886 = vmatpush3.bf16.msra.mxu0 %v26528_v23  ;;  %v26533_v23 = vld [vmem:[#allocation74_spill] sm:$0xff] }
 0x73d   :  { %19926 = vmatpush3.bf16.msra.mxu1 %v26516_v9  ;;  %19888 = vmatprep.subr.bf16.mxu0 %v26529_v31  ;;  %v26534_v31 = vld [vmem:[#allocation75_spill] sm:$0xff] }
 0x73e   :  { %19928 = vmatprep.subr.bf16.mxu1 %v26517_v45 }
 0x740   :  { %19890 = vmatpush3.bf16.msra.mxu0 %v26530_v11  ;;  %v26535_v11 = vld [vmem:[#allocation43_spill] sm:$0xff] }
 0x741   :  { %19930 = vmatpush3.bf16.msra.mxu1 %v26518_v7  ;;  %19892 = vmatprep.subr.bf16.mxu0 %v26531_v25  ;;  %v26553_v25 = vld [vmem:[#allocation58_spill] sm:$0xff] }
 0x742   :  { %19964 = vmatprep.subr.bf16.mxu1 %v26307_v1 }
 0x744   :  { %6042 = vmatmul.mubr.f32.vlgmr.msra.gmra.mrb[44].mxu1 %v5561_v30  ;;  %19894 = vmatpush3.bf16.msra.mxu0 %v26532_v46  ;;  %v26536_v30 = vld [vmem:[#allocation44_spill] sm:$0xff]  ;;  %v26537_v46 = vld [vmem:[#allocation45_spill] sm:$0xff] }
 0x745   :  { %6312 = vmatprep.mubr.f32.mxu1 %v24046_v55  ;;  %19896 = vmatprep.subr.bf16.mxu0 %v26533_v23  ;;  %v26538_v23 = vld [vmem:[#allocation46_spill] sm:$0xff] }
 0x746   :  { %19966 = vmatpush3.bf16.msra.mxu1 %v26309_v48 }
 0x747   :  { %19968 = vmatprep.subr.bf16.mxu1 %v26312_v49 }
 0x748   :  { %19898 = vmatpush3.bf16.msra.mxu0 %v26534_v31  ;;  %v26539_v31 = vld [vmem:[#allocation47_spill] sm:$0xff] }
 0x749   :  { %19932 = vmatprep.subr.bf16.mxu0 %v26535_v11  ;;  %v26541_v11 = vld [vmem:[#allocation49_spill] sm:$0xff] }
 0x74a   :  { %19970 = vmatpush3.bf16.msra.mxu1 %v26405_v50 }
 0x74b   :  { %5934 = vmatmul.mubr.f32.vlgmr.msra.gmra.mrb[32].mxu0 %v5560_v29  ;;  %19972 = vmatprep.subr.bf16.mxu1 %v26499_v33  ;;  %v26540_v29 = vld [vmem:[#allocation48_spill] sm:$0xff] }
 0x74c   :  { %19934 = vmatpush3.bf16.msra.mxu0 %v26536_v30  ;;  %6208 = vmatprep.mubr.f32.mxu0 %v24046_v55  ;;  %v26542_v55 = vld [vmem:[#allocation50_spill] sm:$0xff]  ;;  %v26550_v30 = vld [vmem:[#allocation57_spill] sm:$0xff] }
 0x74d   :  { %19936 = vmatprep.subr.bf16.mxu0 %v26537_v46  ;;  %v26543_v46 = vld [vmem:[#allocation51_spill] sm:$0xff] }
 0x74e   :  { %19974 = vmatpush3.bf16.msra.mxu1 %v26501_v62 }
 0x74f   :  { %19976 = vmatprep.subr.bf16.mxu1 %v26503_v44 }
 0x750   :  { %19938 = vmatpush3.bf16.msra.mxu0 %v26538_v23  ;;  %v26545_v23 = vld [vmem:[#allocation53_spill] sm:$0xff] }
 0x751   :  { %19940 = vmatprep.subr.bf16.mxu0 %v26539_v31  ;;  %v26544_v31 = vld [vmem:[#allocation52_spill] sm:$0xff] }
 0x752   :  { %19978 = vmatpush3.bf16.msra.mxu1 %v26505_v19 }
 0x753   :  { %19980 = vmatprep.subr.bf16.mxu1 %v26507_v63 }
 0x754   :  { %19942 = vmatpush3.bf16.msra.mxu0 %v26540_v29  ;;  %v26547_v29 = vld [vmem:[#allocation55_spill] sm:$0xff] }
 0x755   :  { %19944 = vmatprep.subr.bf16.mxu0 %v26541_v11  ;;  %v26546_v11 = vld [vmem:[#allocation54_spill] sm:$0xff] }
 0x756   :  { %19982 = vmatpush3.bf16.msra.mxu1 %v26509_v32 }
 0x757   :  { %19984 = vmatprep.subr.bf16.mxu1 %v26511_v38 }
 0x758   :  { %19946 = vmatpush3.bf16.msra.mxu0 %v26542_v55  ;;  %v26548_v55 = vld [vmem:[#allocation21_spill] sm:$0xff] }
 0x759   :  { %19948 = vmatprep.subr.bf16.mxu0 %v26543_v46  ;;  %v26549_v46 = vld [vmem:[#allocation56_spill] sm:$0xff] }
 0x75a   :  { %19986 = vmatpush3.bf16.msra.mxu1 %v26513_v28 }
 0x75b   :  { %19988 = vmatprep.subr.bf16.mxu1 %v26515_v35 }
 0x75c   :  { %19950 = vmatpush3.bf16.msra.mxu0 %v26544_v31  ;;  %v26551_v31 = vld [vmem:[#allocation76_spill] sm:$0xff] }
 0x75d   :  { %19952 = vmatprep.subr.bf16.mxu0 %v26545_v23  ;;  %v26552_v23 = vld [vmem:[#allocation77_spill] sm:$0xff] }
 0x75e   :  { %19990 = vmatpush3.bf16.msra.mxu1 %v26516_v9 }
 0x75f   :  { %19992 = vmatprep.subr.bf16.mxu1 %v26517_v45 }
 0x760   :  { %19954 = vmatpush3.bf16.msra.mxu0 %v26546_v11  ;;  %v26554_v11 = vld [vmem:[#allocation82_spill] sm:$0xff] }
 0x761   :  { %19956 = vmatprep.subr.bf16.mxu0 %v26547_v29  ;;  %v26555_v29 = vld [vmem:[#allocation83_spill] sm:$0xff] }
 0x762   :  { %19994 = vmatpush3.bf16.msra.mxu1 %v26518_v7 }
 0x763   :  { %20028 = vmatprep.subr.bf16.mxu1 %v26548_v55 }
 0x764   :  { %19958 = vmatpush3.bf16.msra.mxu0 %v26549_v46  ;;  %v26557_v46 = vld [vmem:[#allocation85_spill] sm:$0xff] }
 0x765   :  { %19960 = vmatprep.subr.bf16.mxu0 %v26550_v30  ;;  %6314 = vmatmul.mubr.f32.vlgmr.msra.gmra.mrb[46].mxu1 %v24149_v47  ;;  %v26556_v30 = vld [vmem:[#allocation84_spill] sm:$0xff] }
 0x766   :  { %20030 = vmatpush3.bf16.msra.mxu1 %v26551_v31 }
 0x767   :  { %20032 = vmatprep.subr.bf16.mxu1 %v26552_v23  ;;  %v26559_v23 = vld [vmem:[#allocation88_spill] sm:$0xff] }
 0x768   :  { %19962 = vmatpush3.bf16.msra.mxu0 %v26553_v25  ;;  %v26558_v25 = vld [vmem:[#allocation87_spill] sm:$0xff] }
 0x769   :  { %19996 = vmatprep.subr.bf16.mxu0 %v22974_v10 }
 0x76a   :  { %20034 = vmatpush3.bf16.msra.mxu1 %v26554_v11 }
 0x76b   :  { %6210 = vmatmul.mubr.f32.vlgmr.msra.gmra.mrb[34].mxu0 %v24149_v47  ;;  %20036 = vmatprep.subr.bf16.mxu1 %v26555_v29  ;;  %v26560_v47 = vld [vmem:[#allocation89_spill] sm:$0xff]  ;;  %v26561_v29 = vld [vmem:[#allocation91_spill] sm:$0xff] }
 0x76c   :  { %19998 = vmatpush3.bf16.msra.mxu0 %v22982_v61 }
 0x76d   :  { %20000 = vmatprep.subr.bf16.mxu0 %v22986_v60 }
 0x76e   :  { %20038 = vmatpush3.bf16.msra.mxu1 %v26556_v30  ;;  %v26563_v30 = vld [vmem:[#allocation93_spill] sm:$0xff] }
 0x76f   :  { %20040 = vmatprep.subr.bf16.mxu1 %v26557_v46  ;;  %v26562_v46 = vld [vmem:[#allocation92_spill] sm:$0xff] }
 0x770   :  { %20002 = vmatpush3.bf16.msra.mxu0 %v23016_v52 }
 0x771   :  { %20004 = vmatprep.subr.bf16.mxu0 %v23038_v43 }
 0x772   :  { %20042 = vmatpush3.bf16.msra.mxu1 %v26558_v25  ;;  %v26565_v25 = vld [vmem:[#allocation97_spill] sm:$0xff] }
 0x773   :  { %20044 = vmatprep.subr.bf16.mxu1 %v26559_v23  ;;  %v26564_v23 = vld [vmem:[#allocation96_spill] sm:$0xff] }
 0x774   :  { %20006 = vmatpush3.bf16.msra.mxu0 %v23054_v15 }
 0x775   :  { %20008 = vmatprep.subr.bf16.mxu0 %v23150_v13 }
 0x776   :  { %20046 = vmatpush3.bf16.msra.mxu1 %v26560_v47 }
 0x777   :  { %20048 = vmatprep.subr.bf16.mxu1 %v26561_v29  ;;  %v26566_v29 = vld [vmem:[#allocation98_spill] sm:$0xff] }
 0x778   :  { %20010 = vmatpush3.bf16.msra.mxu0 %v26252_v24 }
 0x779   :  { %20012 = vmatprep.subr.bf16.mxu0 %v23279_v40 }
 0x77a   :  { %20050 = vmatpush3.bf16.msra.mxu1 %v26562_v46 }
 0x77b   :  { %20052 = vmatprep.subr.bf16.mxu1 %v26563_v30  ;;  %v26567_v30 = vld [vmem:[#allocation99_spill] sm:$0xff] }
 0x77c   :  { %20014 = vmatpush3.bf16.msra.mxu0 %v23291_v41 }
 0x77d   :  { %20016 = vmatprep.subr.bf16.mxu0 %v23310_v12 }
 0x77e   :  { %20054 = vmatpush3.bf16.msra.mxu1 %v26564_v23 }
 0x77f   :  { %20056 = vmatprep.subr.bf16.mxu1 %v26565_v25 }
 0x780   :  { %20018 = vmatpush3.bf16.msra.mxu0 %v23325_v21 }
 0x781   :  { %20020 = vmatprep.subr.bf16.mxu0 %v23342_v0 }
 0x782   :  { %20058 = vmatpush3.bf16.msra.mxu1 %v26566_v29  ;;  %v24274_v29 = vld [vmem:[%s25642_s4] ss:$0 sm:$0xff] }
 0x783   :  { %20092 = vmatprep.subr.bf16.mxu1 %v22974_v10  ;;  %26568 = vst [vmem:[#allocation12_spill] sm:$0xff] %v24274_v29 }
 0x784   :  { %20022 = vmatpush3.bf16.msra.mxu0 %v23354_v36 }
 0x785   :  { %20024 = vmatprep.subr.bf16.mxu0 %v23356_v34 }
 0x788   :  { %20026 = vmatpush3.bf16.msra.mxu0 %v23366_v3 }
 0x789   :  { %20060 = vmatprep.subr.bf16.mxu0 %v26567_v30 }
 0x796   :  { %v16096_v46 = vpop.f32.mrb[36].mxu1 }
 0x797   :  { %v16097_v23 = vpop.f32.mrb[37].mxu1 }
 0x798   :  { %v16098_v47 = vadd.f32 %v16097_v23, %v16096_v46 }
 0x79e   :  { %v16061_v25 = vpop.f32.mrb[24].mxu0 }
 0x79f   :  { %v16062_v11 = vpop.f32.mrb[25].mxu0 }
 0x7a0   :  { %v16063_v31 = vadd.f32 %v16062_v11, %v16061_v25 }
 0x7a2   :  { %v4683_v55 = vadd.f32 %v24274_v29, %v16063_v31 }
 0x7a4   :  { %v4915_v56 = vadd.f32 %v16098_v47, %v4683_v55 }
 0x7b6   :  { %v16166_v17 = vpop.f32.mrb[38].mxu1 }
 0x7b7   :  { %v16167_v7 = vpop.f32.mrb[39].mxu1 }
 0x7b8   :  { %v16168_v45 = vadd.f32 %v16167_v7, %v16166_v17 }
 0x7be   :  { %v16131_v9 = vpop.f32.mrb[26].mxu0 }
 0x7bf   :  { %v16132_v35 = vpop.f32.mrb[27].mxu0 }
 0x7c0   :  { %v16133_v30 = vadd.f32 %v16132_v35, %v16131_v9 }
 0x7c2   :  { %v5053_v28 = vadd.f32 %v16133_v30, %v4915_v56 }
 0x7c4   :  { %v5161_v38 = vadd.f32 %v16168_v45, %v5053_v28 }
 0x7d7   :  { %v16236_v46 = vpop.f32.mrb[40].mxu1 }
 0x7d8   :  { %v16237_v23 = vpop.f32.mrb[41].mxu1 }
 0x7d9   :  { %v16238_v32 = vadd.f32 %v16237_v23, %v16236_v46 }
 0x7de   :  { %v16201_v11 = vpop.f32.mrb[28].mxu0 }
 0x7df   :  { %v16202_v25 = vpop.f32.mrb[29].mxu0 }
 0x7e0   :  { %v16203_v63 = vadd.f32 %v16202_v25, %v16201_v11 }
 0x7e2   :  { %v5329_v19 = vadd.f32 %v16203_v63, %v5161_v38 }
 0x7e4   :  { %v5433_v44 = vadd.f32 %v16238_v32, %v5329_v19  ;;  %v24284_v32 = vld [vmem:[%s25640_s2] ss:$0 sm:$0xff] }
 0x7e6   :  { %v14962_v62 = vmul.f32 -1.442695, %v5433_v44 }
 0x7e8   :  { %21929 = vpow2.f32 %v14962_v62 }
 0x7e9   :  { %21931 = vtanh.f32 %v5433_v44 }
 0x7f2   :  { %v21930_v31 = vpop.eup %21929 }
 0x7f3   :  { %v5440_v55 = vadd.f32 1.0, %v21930_v31  ;;  %v21932_v35 = vpop.eup %21931 }
 0x7f5   :  { %21933 = vrcp.f32 %v5440_v55 }
 0x7f7   :  { %v16306_v17 = vpop.f32.mrb[42].mxu1 }
 0x7f8   :  { %v16307_v7 = vpop.f32.mrb[43].mxu1 }
 0x7f9   :  { %v16308_v47 = vadd.f32 %v16307_v7, %v16306_v17 }
 0x7fe   :  { %v16271_v9 = vpop.f32.mrb[30].mxu0 }
 0x7ff   :  { %v21934_v28 = vpop.eup %21933  ;;  %v16272_v45 = vpop.f32.mrb[31].mxu0 }
 0x800   :  { %v16273_v56 = vadd.f32 %v16272_v45, %v16271_v9  ;;  %v5443_v30 = vsel %vm23244_vm2, %v21932_v35, %v21934_v28 }
 0x801   :  { %5446 = vrot.lane.b32.xlu0 %v5443_v30, %s22102_s19  ;;  %5444 = vrot.lane.b32.xlu1 %v5443_v30, %s22101_s18 }
 0x802   :  { %v5566_v63 = vadd.f32 %v24284_v32, %v16273_v56 }
 0x804   :  { %v5798_v19 = vadd.f32 %v16308_v47, %v5566_v63 }
 0x817   :  { %v16376_v38 = vpop.f32.mrb[44].mxu1 }
 0x818   :  { %v16377_v62 = vpop.f32.mrb[45].mxu1 }
 0x819   :  { %v16378_v44 = vadd.f32 %v16377_v62, %v16376_v38 }
 0x81e   :  { %v16341_v46 = vpop.f32.mrb[32].mxu0 }
 0x81f   :  { %v16342_v23 = vpop.f32.mrb[33].mxu0 }
 0x820   :  { %v16343_v11 = vadd.f32 %v16342_v23, %v16341_v46 }
 0x822   :  { %v5936_v25 = vadd.f32 %v16343_v11, %v5798_v19 }
 0x824   :  { %v6044_v31 = vadd.f32 %v16378_v44, %v5936_v25 }
 0x838   :  { %v16446_v55 = vpop.f32.mrb[46].mxu1 }
 0x839   :  { %v16447_v17 = vpop.f32.mrb[47].mxu1 }
 0x83a   :  { %v16448_v7 = vadd.f32 %v16447_v17, %v16446_v55 }
 0x83e   :  { %v16411_v35 = vpop.f32.mrb[34].mxu0 }
 0x83f   :  { %v16412_v9 = vpop.f32.mrb[35].mxu0 }
 0x840   :  { %v16413_v28 = vadd.f32 %v16412_v9, %v16411_v35 }
 0x842   :  { %v6212_v45 = vadd.f32 %v16413_v28, %v6044_v31 }
 0x844   :  { %v6316_v29 = vadd.f32 %v16448_v7, %v6212_v45 }
 0x846   :  { %v14964_v33 = vmul.f32 -1.442695, %v6316_v29 }
 0x848   :  { %21935 = vpow2.f32 %v14964_v33 }
 0x849   :  { %21937 = vtanh.f32 %v6316_v29 }
 0x852   :  { %v21936_v56 = vpop.eup %21935 }
 0x853   :  { %v6323_v47 = vadd.f32 1.0, %v21936_v56  ;;  %v21938_v63 = vpop.eup %21937 }
 0x855   :  { %21939 = vrcp.f32 %v6323_v47 }
 0x85f   :  { %v21940_v38 = vpop.eup %21939 }
 0x860   :  { %v6326_v19 = vsel %vm23244_vm2, %v21938_v63, %v21940_v38 }
 0x861   :  { %6329 = vrot.lane.b32.xlu0 %v6326_v19, %s22102_s19  ;;  %6327 = vrot.lane.b32.xlu1 %v6326_v19, %s22101_s18 }
 0x865   :  { %6331 = vrot.lane.b32.xlu0 %v6326_v19, %s22100_s17  ;;  %5448 = vrot.lane.b32.xlu1 %v5443_v30, %s22100_s17 }
 0x873   :  { %v5447_v62 = vpop.permute.xlu0 %5446  ;;  %v5445_v44 = vpop.permute.xlu1 %5444 }
 0x874   :  { %v5451_v33 = vmul.f32 %v5447_v62, %v5443_v30  ;;  %v5450_v46 = vmul.f32 %v5445_v44, %v24039_v27 }
 0x876   :  { %v24294_v29 = vadd.f32 %v5451_v33, %v5450_v46  ;;  %v26569_v33 = vld [vmem:[#allocation79_spill] sm:$0xff]  ;;  %v26570_v46 = vld [vmem:[#allocation86_spill] sm:$0xff] }
 0x878   :  { %21941 = vtanh.f32 %v24294_v29 }
 0x882   :  { %v21942_v17 = vpop.eup %21941 }
 0x8d3   :  { %v6330_v23 = vpop.permute.xlu0 %6329  ;;  %v6328_v11 = vpop.permute.xlu1 %6327 }
 0x8d4   :  { %v6334_v25 = vmul.f32 %v6330_v23, %v6326_v19  ;;  %v6333_v31 = vmul.f32 %v6328_v11, %v24043_v37  ;;  %v26571_v23 = vld [vmem:[#allocation80_spill] sm:$0xff]  ;;  %v26572_v11 = vld [vmem:[#allocation81_spill] sm:$0xff] }
 0x8d6   :  { %v24298_v55 = vadd.f32 %v6334_v25, %v6333_v31  ;;  %v26573_v25 = vld [vmem:[#allocation109_spill] sm:$0xff]  ;;  %v26574_v31 = vld [vmem:[#allocation110_spill] sm:$0xff] }
 0x8d7   :  { %v5449_v7 = vpop.permute.xlu1 %5448  ;;  %v6332_v56 = vpop.permute.xlu0 %6331 }
 0x8d8   :  { %21943 = vtanh.f32 %v24298_v55  ;;  %v5454_v35 = vmul.f32 %v21942_v17, %v5449_v7  ;;  %v26575_v17 = vld [vmem:[#allocation111_spill] sm:$0xff]  ;;  %v26576_v7 = vld [vmem:[#allocation112_spill] sm:$0xff] }
 0x8da   :  { %v6434_v9 = vand.u32 4294901760, %v5454_v35 }
 0x8dc   :  { %v6435_v30 = vsub.f32 %v5454_v35, %v6434_v9  ;;  %6675 = vmatprep.mubr.f32.mxu1 %v6434_v9  ;;  %v26577_v35 = vld [vmem:[#allocation113_spill] sm:$0xff] }
 0x8de   :  { %v6436_v27 = vand.u32 4294901760, %v6435_v30 }
 0x8e0   :  { %v6437_v28 = vsub.f32 %v6435_v30, %v6436_v27 }
 0x8e2   :  { %v21944_v45 = vpop.eup %21943  ;;  %v6438_v47 = vand.u32 4294901760, %v6437_v28  ;;  %v26581_v28 = vld [vmem:[#allocation29_spill] sm:$0xff] }
 0x8e3   :  { %v6337_v63 = vmul.f32 %v21944_v45, %v6332_v56  ;;  %v26582_v45 = vld [vmem:[#allocation94_spill] sm:$0xff] }
 0x8e4   :  { %6439 = vmatprep.mubr.f32.mxu0 %v6438_v47  ;;  %v26583_v56 = vld [vmem:[#allocation30_spill] sm:$0xff]  ;;  %v26584_v47 = vld [vmem:[#allocation95_spill] sm:$0xff] }
 0x8e5   :  { %v24301_v38 = vand.u32 4294901760, %v6337_v63 }
 0x8e7   :  { %v24304_v37 = vsub.f32 %v6337_v63, %v24301_v38  ;;  %6677 = vmatmul.mubr.f32.vlgmr.msra.gmra.mrb[48].mxu1 %v24301_v38  ;;  %v26585_v63 = vld [vmem:[#allocation31_spill] sm:$0xff] }
 0x8e8   :  { %20094 = vmatpush3.bf16.msra.mxu1 %v22982_v61  ;;  %6919 = vmatprep.mubr.f32.mxu1 %v6436_v27  ;;  %v26580_v27 = vld [vmem:[#allocation115_spill] sm:$0xff] }
 0x8e9   :  { %v24309_v19 = vand.u32 4294901760, %v24304_v37  ;;  %20096 = vmatprep.subr.bf16.mxu1 %v22986_v60 }
 0x8eb   :  { %v6443_v62 = vsub.f32 %v24304_v37, %v24309_v19 }
 0x8ec   :  { %20098 = vmatpush3.bf16.msra.mxu1 %v23016_v52 }
 0x8ed   :  { %20100 = vmatprep.subr.bf16.mxu1 %v23038_v43  ;;  %v24316_v44 = vand.u32 4294901760, %v6443_v62  ;;  %v26586_v62 = vld [vmem:[#allocation32_spill] sm:$0xff] }
 0x8ef   :  { %6445 = vmatmul.mubr.f32.vlgmr.msra.gmra.mrb[36].mxu0 %v24316_v44 }
 0x8f0   :  { %20062 = vmatpush3.bf16.msra.mxu0 %v26388_v59  ;;  %20102 = vmatpush3.bf16.msra.mxu1 %v23054_v15 }
 0x8f1   :  { %6812 = vmatprep.mubr.f32.mxu0 %v6435_v30  ;;  %20064 = vmatprep.subr.bf16.mxu0 %v23451_v4  ;;  %v26579_v30 = vld [vmem:[#allocation28_spill] sm:$0xff] }
 0x8f2   :  { %20104 = vmatprep.subr.bf16.mxu1 %v23150_v13 }
 0x8f4   :  { %20066 = vmatpush3.bf16.msra.mxu0 %v23458_v14  ;;  %20106 = vmatpush3.bf16.msra.mxu1 %v26252_v24 }
 0x8f5   :  { %20068 = vmatprep.subr.bf16.mxu0 %v23464_v2  ;;  %20108 = vmatprep.subr.bf16.mxu1 %v23279_v40 }
 0x8f8   :  { %20070 = vmatpush3.bf16.msra.mxu0 %v23471_v5  ;;  %20110 = vmatpush3.bf16.msra.mxu1 %v23291_v41 }
 0x8f9   :  { %20072 = vmatprep.subr.bf16.mxu0 %v23385_v42  ;;  %20112 = vmatprep.subr.bf16.mxu1 %v23310_v12 }
 0x8fc   :  { %20074 = vmatpush3.bf16.msra.mxu0 %v23389_v53  ;;  %20114 = vmatpush3.bf16.msra.mxu1 %v23325_v21 }
 0x8fd   :  { %20076 = vmatprep.subr.bf16.mxu0 %v26389_v8  ;;  %20116 = vmatprep.subr.bf16.mxu1 %v23342_v0 }
 0x900   :  { %20078 = vmatpush3.bf16.msra.mxu0 %v26390_v54  ;;  %20118 = vmatpush3.bf16.msra.mxu1 %v23354_v36 }
 0x901   :  { %20080 = vmatprep.subr.bf16.mxu0 %v26391_v39  ;;  %20120 = vmatprep.subr.bf16.mxu1 %v23356_v34 }
 0x904   :  { %20082 = vmatpush3.bf16.msra.mxu0 %v26392_v51  ;;  %20122 = vmatpush3.bf16.msra.mxu1 %v23366_v3 }
 0x905   :  { %20084 = vmatprep.subr.bf16.mxu0 %v26393_v6  ;;  %20156 = vmatprep.subr.bf16.mxu1 %v22974_v10 }
 0x907   :  { %6923 = vmatmul.mubr.f32.vlgmr.msra.gmra.mrb[50].mxu1 %v24309_v19 }
 0x908   :  { %20086 = vmatpush3.bf16.msra.mxu0 %v26394_v58  ;;  %20158 = vmatpush3.bf16.msra.mxu1 %v22982_v61 }
 0x909   :  { %7193 = vmatprep.mubr.f32.mxu1 %v6434_v9  ;;  %20088 = vmatprep.subr.bf16.mxu0 %v23417_v16 }
 0x90a   :  { %20160 = vmatprep.subr.bf16.mxu1 %v22986_v60 }
 0x90c   :  { %20090 = vmatpush3.bf16.msra.mxu0 %v23421_v22  ;;  %20162 = vmatpush3.bf16.msra.mxu1 %v23016_v52 }
 0x90d   :  { %20124 = vmatprep.subr.bf16.mxu0 %v23500_v18  ;;  %20164 = vmatprep.subr.bf16.mxu1 %v23038_v43 }
 0x90f   :  { %6815 = vmatmul.mubr.f32.vlgmr.msra.gmra.mrb[38].mxu0 %v24304_v37 }
 0x910   :  { %20126 = vmatpush3.bf16.msra.mxu0 %v23509_v26  ;;  %7089 = vmatprep.mubr.f32.mxu0 %v6434_v9  ;;  %v26578_v9 = vld [vmem:[#allocation114_spill] sm:$0xff] }
 0x911   :  { %20166 = vmatpush3.bf16.msra.mxu1 %v23054_v15  ;;  %20128 = vmatprep.subr.bf16.mxu0 %v26477_v57  ;;  %v26614_v57 = vld [vmem:[#allocation65_spill] sm:$0xff] }
 0x912   :  { %20168 = vmatprep.subr.bf16.mxu1 %v23150_v13 }
 0x914   :  { %20130 = vmatpush3.bf16.msra.mxu0 %v26569_v33  ;;  %v26611_v33 = vld [vmem:[#allocation62_spill] sm:$0xff] }
 0x915   :  { %20170 = vmatpush3.bf16.msra.mxu1 %v26252_v24  ;;  %20132 = vmatprep.subr.bf16.mxu0 %v26570_v46  ;;  %v26609_v46 = vld [vmem:[#allocation27_spill] sm:$0xff] }
 0x916   :  { %20172 = vmatprep.subr.bf16.mxu1 %v23279_v40 }
 0x918   :  { %20134 = vmatpush3.bf16.msra.mxu0 %v26571_v23  ;;  %v26605_v23 = vld [vmem:[#allocation60_spill] sm:$0xff] }
 0x919   :  { %20174 = vmatpush3.bf16.msra.mxu1 %v23291_v41  ;;  %20136 = vmatprep.subr.bf16.mxu0 %v26572_v11  ;;  %v26604_v11 = vld [vmem:[#allocation23_spill] sm:$0xff] }
 0x91a   :  { %20176 = vmatprep.subr.bf16.mxu1 %v23310_v12 }
 0x91c   :  { %20138 = vmatpush3.bf16.msra.mxu0 %v26573_v25  ;;  %v26603_v25 = vld [vmem:[#allocation59_spill] sm:$0xff] }
 0x91d   :  { %20178 = vmatpush3.bf16.msra.mxu1 %v23325_v21  ;;  %20140 = vmatprep.subr.bf16.mxu0 %v26574_v31  ;;  %v26601_v31 = vld [vmem:[#allocation42_spill] sm:$0xff] }
 0x91e   :  { %20180 = vmatprep.subr.bf16.mxu1 %v23342_v0 }
 0x920   :  { %20142 = vmatpush3.bf16.msra.mxu0 %v26575_v17  ;;  %v26600_v17 = vld [vmem:[#allocation20_spill] sm:$0xff] }
 0x921   :  { %20182 = vmatpush3.bf16.msra.mxu1 %v23354_v36  ;;  %20144 = vmatprep.subr.bf16.mxu0 %v26576_v7 }
 0x922   :  { %20184 = vmatprep.subr.bf16.mxu1 %v23356_v34 }
 0x924   :  { %20146 = vmatpush3.bf16.msra.mxu0 %v26577_v35  ;;  %v26598_v35 = vld [vmem:[#allocation19_spill] sm:$0xff] }
 0x925   :  { %20186 = vmatpush3.bf16.msra.mxu1 %v23366_v3  ;;  %20148 = vmatprep.subr.bf16.mxu0 %v26578_v9  ;;  %v26596_v9 = vld [vmem:[#allocation18_spill] sm:$0xff] }
 0x926   :  { %20220 = vmatprep.subr.bf16.mxu1 %v26579_v30  ;;  %v26595_v30 = vld [vmem:[#allocation39_spill] sm:$0xff] }
 0x928   :  { %7195 = vmatmul.mubr.f32.vlgmr.msra.gmra.mrb[52].mxu1 %v24301_v38  ;;  %20150 = vmatpush3.bf16.msra.mxu0 %v26580_v27  ;;  %v26593_v27 = vld [vmem:[#allocation38_spill] sm:$0xff] }
 0x929   :  { %20222 = vmatpush3.bf16.msra.mxu1 %v26581_v28  ;;  %7558 = vmatprep.mubr.f32.mxu1 %v24301_v38  ;;  %v26587_v28 = vld [vmem:[#allocation33_spill] sm:$0xff] }
 0x92a   :  { %20152 = vmatprep.subr.bf16.mxu0 %v26582_v45  ;;  %20224 = vmatprep.subr.bf16.mxu1 %v26583_v56  ;;  %v26588_v45 = vld [vmem:[#allocation34_spill] sm:$0xff]  ;;  %v26591_v56 = vld [vmem:[#allocation37_spill] sm:$0xff] }
 0x92c   :  { %20154 = vmatpush3.bf16.msra.mxu0 %v26584_v47  ;;  %v26589_v47 = vld [vmem:[#allocation36_spill] sm:$0xff] }
 0x92d   :  { %20226 = vmatpush3.bf16.msra.mxu1 %v26585_v63  ;;  %20188 = vmatprep.subr.bf16.mxu0 %v26307_v1  ;;  %v26590_v63 = vld [vmem:[#allocation15_spill] sm:$0xff] }
 0x92e   :  { %20228 = vmatprep.subr.bf16.mxu1 %v26586_v62  ;;  %v26592_v62 = vld [vmem:[#allocation16_spill] sm:$0xff] }
 0x92f   :  { %7091 = vmatmul.mubr.f32.vlgmr.msra.gmra.mrb[40].mxu0 %v24301_v38 }
 0x930   :  { %20190 = vmatpush3.bf16.msra.mxu0 %v26309_v48  ;;  %7322 = vmatprep.mubr.f32.mxu0 %v24316_v44  ;;  %v14966_v44 = vld [vmem:[%s25638_s0 + $0x20] sm:$0xff] }
 0x931   :  { %20230 = vmatpush3.bf16.msra.mxu1 %v26587_v28  ;;  %20192 = vmatprep.subr.bf16.mxu0 %v26312_v49  ;;  %v26594_v28 = vld [vmem:[#allocation17_spill] sm:$0xff] }
 0x932   :  { %20232 = vmatprep.subr.bf16.mxu1 %v26588_v45  ;;  %v24404_v45 = vand.u32 4294901760, %v14966_v44 }
 0x934   :  { %20194 = vmatpush3.bf16.msra.mxu0 %v26405_v50  ;;  %v7324_v7 = vsub.f32 %v14966_v44, %v24404_v45  ;;  %v26607_v44 = vld [vmem:[#allocation25_spill] sm:$0xff] }
 0x935   :  { %20234 = vmatpush3.bf16.msra.mxu1 %v26589_v47  ;;  %20196 = vmatprep.subr.bf16.mxu0 %v26590_v63  ;;  %v26597_v47 = vld [vmem:[#allocation40_spill] sm:$0xff] }
 0x936   :  { %20236 = vmatprep.subr.bf16.mxu1 %v26591_v56  ;;  %v26599_v56 = vld [vmem:[#allocation41_spill] sm:$0xff] }
 0x938   :  { %20198 = vmatpush3.bf16.msra.mxu0 %v26592_v62 }
 0x939   :  { %20238 = vmatpush3.bf16.msra.mxu1 %v26593_v27  ;;  %20200 = vmatprep.subr.bf16.mxu0 %v26594_v28  ;;  %v26602_v27 = vld [vmem:[#allocation22_spill] sm:$0xff] }
 0x93a   :  { %20240 = vmatprep.subr.bf16.mxu1 %v26595_v30  ;;  %v7325_v30 = vand.u32 4294901760, %v7324_v7 }
 0x93c   :  { %20202 = vmatpush3.bf16.msra.mxu0 %v26596_v9 }
 0x93d   :  { %20242 = vmatpush3.bf16.msra.mxu1 %v26597_v47  ;;  %20204 = vmatprep.subr.bf16.mxu0 %v26598_v35  ;;  %v26606_v47 = vld [vmem:[#allocation24_spill] sm:$0xff] }
 0x93e   :  { %20244 = vmatprep.subr.bf16.mxu1 %v26599_v56  ;;  %v7326_v56 = vsub.f32 %v7324_v7, %v7325_v30 }
 0x940   :  { %20206 = vmatpush3.bf16.msra.mxu0 %v26600_v17 }
 0x941   :  { %20246 = vmatpush3.bf16.msra.mxu1 %v26601_v31  ;;  %20208 = vmatprep.subr.bf16.mxu0 %v26602_v27  ;;  %v26608_v31 = vld [vmem:[#allocation26_spill] sm:$0xff] }
 0x942   :  { %20248 = vmatprep.subr.bf16.mxu1 %v26603_v25  ;;  %v7327_v25 = vand.u32 4294901760, %v7326_v56  ;;  %v26613_v56 = vld [vmem:[#allocation64_spill] sm:$0xff] }
 0x944   :  { %20210 = vmatpush3.bf16.msra.mxu0 %v26604_v11 }
 0x945   :  { %20250 = vmatpush3.bf16.msra.mxu1 %v26605_v23  ;;  %20212 = vmatprep.subr.bf16.mxu0 %v26606_v47  ;;  %v26610_v23 = vld [vmem:[#allocation61_spill] sm:$0xff] }
 0x946   :  { %20284 = vmatprep.subr.bf16.mxu1 %v26307_v1 }
 0x948   :  { %7560 = vmatmul.mubr.f32.vlgmr.msra.gmra.mrb[54].mxu1 %v24404_v45  ;;  %20214 = vmatpush3.bf16.msra.mxu0 %v26607_v44 }
 0x949   :  { %20286 = vmatpush3.bf16.msra.mxu1 %v26309_v48  ;;  %7802 = vmatprep.mubr.f32.mxu1 %v24309_v19  ;;  %v26612_v19 = vld [vmem:[#allocation63_spill] sm:$0xff] }
 0x94a   :  { %20216 = vmatprep.subr.bf16.mxu0 %v26608_v31  ;;  %20288 = vmatprep.subr.bf16.mxu1 %v26312_v49 }
 0x94c   :  { %20218 = vmatpush3.bf16.msra.mxu0 %v26609_v46 }
 0x94d   :  { %20290 = vmatpush3.bf16.msra.mxu1 %v26405_v50  ;;  %20252 = vmatprep.subr.bf16.mxu0 %v26610_v23  ;;  %v26615_v23 = vld [vmem:[#allocation66_spill] sm:$0xff] }
 0x94e   :  { %20292 = vmatprep.subr.bf16.mxu1 %v26590_v63 }
 0x94f   :  { %7328 = vmatmul.mubr.f32.vlgmr.msra.gmra.mrb[42].mxu0 %v7327_v25  ;;  %v26616_v25 = vld [vmem:[#allocation67_spill] sm:$0xff] }
 0x950   :  { %20254 = vmatpush3.bf16.msra.mxu0 %v26611_v33  ;;  %7695 = vmatprep.mubr.f32.mxu0 %v24304_v37  ;;  %v26617_v37 = vld [vmem:[#allocation68_spill] sm:$0xff] }
 0x951   :  { %20294 = vmatpush3.bf16.msra.mxu1 %v26592_v62  ;;  %20256 = vmatprep.subr.bf16.mxu0 %v26612_v19  ;;  %v26618_v19 = vld [vmem:[#allocation69_spill] sm:$0xff] }
 0x952   :  { %20296 = vmatprep.subr.bf16.mxu1 %v26594_v28 }
 0x954   :  { %20258 = vmatpush3.bf16.msra.mxu0 %v26613_v56  ;;  %v26619_v56 = vld [vmem:[#allocation70_spill] sm:$0xff] }
 0x955   :  { %20298 = vmatpush3.bf16.msra.mxu1 %v26596_v9  ;;  %20260 = vmatprep.subr.bf16.mxu0 %v26614_v57  ;;  %v26620_v57 = vld [vmem:[#allocation71_spill] sm:$0xff] }
 0x956   :  { %20300 = vmatprep.subr.bf16.mxu1 %v26598_v35 }
 0x958   :  { %20262 = vmatpush3.bf16.msra.mxu0 %v26615_v23  ;;  %v26621_v23 = vld [vmem:[#allocation72_spill] sm:$0xff] }
 0x959   :  { %20302 = vmatpush3.bf16.msra.mxu1 %v26600_v17  ;;  %20264 = vmatprep.subr.bf16.mxu0 %v26616_v25  ;;  %v26622_v25 = vld [vmem:[#allocation73_spill] sm:$0xff] }
 0x95a   :  { %20304 = vmatprep.subr.bf16.mxu1 %v26602_v27 }
 0x95c   :  { %20266 = vmatpush3.bf16.msra.mxu0 %v26617_v37 }
 0x95d   :  { %20306 = vmatpush3.bf16.msra.mxu1 %v26604_v11  ;;  %20268 = vmatprep.subr.bf16.mxu0 %v26618_v19  ;;  %v26623_v19 = vld [vmem:[#allocation35_spill] sm:$0xff] }
 0x95e   :  { %20308 = vmatprep.subr.bf16.mxu1 %v26606_v47 }
 0x960   :  { %20270 = vmatpush3.bf16.msra.mxu0 %v26619_v56  ;;  %v26624_v56 = vld [vmem:[#allocation74_spill] sm:$0xff] }
 0x961   :  { %20310 = vmatpush3.bf16.msra.mxu1 %v26607_v44  ;;  %20272 = vmatprep.subr.bf16.mxu0 %v26620_v57  ;;  %v26625_v57 = vld [vmem:[#allocation75_spill] sm:$0xff] }
 0x962   :  { %20312 = vmatprep.subr.bf16.mxu1 %v26608_v31 }
 0x964   :  { %20274 = vmatpush3.bf16.msra.mxu0 %v26621_v23  ;;  %v26626_v23 = vld [vmem:[#allocation43_spill] sm:$0xff] }
 0x965   :  { %20314 = vmatpush3.bf16.msra.mxu1 %v26609_v46  ;;  %20276 = vmatprep.subr.bf16.mxu0 %v26622_v25  ;;  %v26644_v25 = vld [vmem:[#allocation58_spill] sm:$0xff] }
 0x966   :  { %20348 = vmatprep.subr.bf16.mxu1 %v26307_v1 }
 0x968   :  { %7806 = vmatmul.mubr.f32.vlgmr.msra.gmra.mrb[56].mxu1 %v7325_v30  ;;  %20278 = vmatpush3.bf16.msra.mxu0 %v26623_v19  ;;  %v26627_v30 = vld [vmem:[#allocation44_spill] sm:$0xff]  ;;  %v26628_v19 = vld [vmem:[#allocation45_spill] sm:$0xff] }
 0x969   :  { %8076 = vmatprep.mubr.f32.mxu1 %v24301_v38  ;;  %20280 = vmatprep.subr.bf16.mxu0 %v26624_v56  ;;  %v26629_v56 = vld [vmem:[#allocation46_spill] sm:$0xff] }
 0x96a   :  { %20350 = vmatpush3.bf16.msra.mxu1 %v26309_v48 }
 0x96b   :  { %20352 = vmatprep.subr.bf16.mxu1 %v26312_v49 }
 0x96c   :  { %20282 = vmatpush3.bf16.msra.mxu0 %v26625_v57  ;;  %v26630_v57 = vld [vmem:[#allocation47_spill] sm:$0xff] }
 0x96d   :  { %20316 = vmatprep.subr.bf16.mxu0 %v26626_v23  ;;  %v26632_v23 = vld [vmem:[#allocation49_spill] sm:$0xff] }
 0x96e   :  { %20354 = vmatpush3.bf16.msra.mxu1 %v26405_v50 }
 0x96f   :  { %7698 = vmatmul.mubr.f32.vlgmr.msra.gmra.mrb[44].mxu0 %v7324_v7  ;;  %20356 = vmatprep.subr.bf16.mxu1 %v26590_v63  ;;  %v26631_v7 = vld [vmem:[#allocation48_spill] sm:$0xff] }
 0x970   :  { %20318 = vmatpush3.bf16.msra.mxu0 %v26627_v30  ;;  %7972 = vmatprep.mubr.f32.mxu0 %v24301_v38  ;;  %v26633_v38 = vld [vmem:[#allocation50_spill] sm:$0xff]  ;;  %v26641_v30 = vld [vmem:[#allocation57_spill] sm:$0xff] }
 0x971   :  { %20320 = vmatprep.subr.bf16.mxu0 %v26628_v19  ;;  %v26634_v19 = vld [vmem:[#allocation51_spill] sm:$0xff] }
 0x972   :  { %20358 = vmatpush3.bf16.msra.mxu1 %v26592_v62 }
 0x973   :  { %20360 = vmatprep.subr.bf16.mxu1 %v26594_v28 }
 0x974   :  { %20322 = vmatpush3.bf16.msra.mxu0 %v26629_v56  ;;  %v26636_v56 = vld [vmem:[#allocation53_spill] sm:$0xff] }
 0x975   :  { %20324 = vmatprep.subr.bf16.mxu0 %v26630_v57  ;;  %v26635_v57 = vld [vmem:[#allocation52_spill] sm:$0xff] }
 0x976   :  { %20362 = vmatpush3.bf16.msra.mxu1 %v26596_v9 }
 0x977   :  { %20364 = vmatprep.subr.bf16.mxu1 %v26598_v35 }
 0x978   :  { %20326 = vmatpush3.bf16.msra.mxu0 %v26631_v7  ;;  %v26638_v7 = vld [vmem:[#allocation55_spill] sm:$0xff] }
 0x979   :  { %20328 = vmatprep.subr.bf16.mxu0 %v26632_v23  ;;  %v26637_v23 = vld [vmem:[#allocation54_spill] sm:$0xff] }
 0x97a   :  { %20366 = vmatpush3.bf16.msra.mxu1 %v26600_v17 }
 0x97b   :  { %20368 = vmatprep.subr.bf16.mxu1 %v26602_v27 }
 0x97c   :  { %20330 = vmatpush3.bf16.msra.mxu0 %v26633_v38  ;;  %v26639_v38 = vld [vmem:[#allocation21_spill] sm:$0xff] }
 0x97d   :  { %20332 = vmatprep.subr.bf16.mxu0 %v26634_v19  ;;  %v26640_v19 = vld [vmem:[#allocation56_spill] sm:$0xff] }
 0x97e   :  { %20370 = vmatpush3.bf16.msra.mxu1 %v26604_v11 }
 0x97f   :  { %20372 = vmatprep.subr.bf16.mxu1 %v26606_v47 }
 0x980   :  { %20334 = vmatpush3.bf16.msra.mxu0 %v26635_v57  ;;  %v26642_v57 = vld [vmem:[#allocation76_spill] sm:$0xff] }
 0x981   :  { %20336 = vmatprep.subr.bf16.mxu0 %v26636_v56  ;;  %v26643_v56 = vld [vmem:[#allocation77_spill] sm:$0xff] }
 0x982   :  { %20374 = vmatpush3.bf16.msra.mxu1 %v26607_v44 }
 0x983   :  { %20376 = vmatprep.subr.bf16.mxu1 %v26608_v31 }
 0x984   :  { %20338 = vmatpush3.bf16.msra.mxu0 %v26637_v23  ;;  %v26645_v23 = vld [vmem:[#allocation82_spill] sm:$0xff] }
 0x985   :  { %20340 = vmatprep.subr.bf16.mxu0 %v26638_v7  ;;  %v26646_v7 = vld [vmem:[#allocation83_spill] sm:$0xff] }
 0x986   :  { %20378 = vmatpush3.bf16.msra.mxu1 %v26609_v46 }
 0x987   :  { %20412 = vmatprep.subr.bf16.mxu1 %v26639_v38  ;;  %v26659_v38 = vld [vmem:[#allocation12_spill] sm:$0xff] }
 0x988   :  { %20342 = vmatpush3.bf16.msra.mxu0 %v26640_v19  ;;  %v26648_v19 = vld [vmem:[#allocation85_spill] sm:$0xff] }
 0x989   :  { %20344 = vmatprep.subr.bf16.mxu0 %v26641_v30  ;;  %8078 = vmatmul.mubr.f32.vlgmr.msra.gmra.mrb[58].mxu1 %v24404_v45  ;;  %v26647_v30 = vld [vmem:[#allocation84_spill] sm:$0xff] }
 0x98a   :  { %20414 = vmatpush3.bf16.msra.mxu1 %v26642_v57 }
 0x98b   :  { %20416 = vmatprep.subr.bf16.mxu1 %v26643_v56  ;;  %v26650_v56 = vld [vmem:[#allocation88_spill] sm:$0xff] }
 0x98c   :  { %20346 = vmatpush3.bf16.msra.mxu0 %v26644_v25  ;;  %v26649_v25 = vld [vmem:[#allocation87_spill] sm:$0xff] }
 0x98d   :  { %20380 = vmatprep.subr.bf16.mxu0 %v22974_v10 }
 0x98e   :  { %20418 = vmatpush3.bf16.msra.mxu1 %v26645_v23 }
 0x98f   :  { %7974 = vmatmul.mubr.f32.vlgmr.msra.gmra.mrb[46].mxu0 %v24404_v45  ;;  %20420 = vmatprep.subr.bf16.mxu1 %v26646_v7  ;;  %v26651_v45 = vld [vmem:[#allocation89_spill] sm:$0xff]  ;;  %v26652_v7 = vld [vmem:[#allocation91_spill] sm:$0xff] }
 0x990   :  { %20382 = vmatpush3.bf16.msra.mxu0 %v22982_v61 }
 0x991   :  { %20384 = vmatprep.subr.bf16.mxu0 %v22986_v60 }
 0x992   :  { %20422 = vmatpush3.bf16.msra.mxu1 %v26647_v30  ;;  %v26654_v30 = vld [vmem:[#allocation93_spill] sm:$0xff] }
 0x993   :  { %20424 = vmatprep.subr.bf16.mxu1 %v26648_v19  ;;  %v26653_v19 = vld [vmem:[#allocation92_spill] sm:$0xff] }
 0x994   :  { %20386 = vmatpush3.bf16.msra.mxu0 %v23016_v52 }
 0x995   :  { %20388 = vmatprep.subr.bf16.mxu0 %v23038_v43 }
 0x996   :  { %20426 = vmatpush3.bf16.msra.mxu1 %v26649_v25  ;;  %v26656_v25 = vld [vmem:[#allocation97_spill] sm:$0xff] }
 0x997   :  { %20428 = vmatprep.subr.bf16.mxu1 %v26650_v56  ;;  %v26655_v56 = vld [vmem:[#allocation96_spill] sm:$0xff] }
 0x998   :  { %20390 = vmatpush3.bf16.msra.mxu0 %v23054_v15 }
 0x999   :  { %20392 = vmatprep.subr.bf16.mxu0 %v23150_v13 }
 0x99a   :  { %20430 = vmatpush3.bf16.msra.mxu1 %v26651_v45 }
 0x99b   :  { %20432 = vmatprep.subr.bf16.mxu1 %v26652_v7  ;;  %v26657_v7 = vld [vmem:[#allocation98_spill] sm:$0xff] }
 0x99c   :  { %20394 = vmatpush3.bf16.msra.mxu0 %v26252_v24 }
 0x99d   :  { %20396 = vmatprep.subr.bf16.mxu0 %v23279_v40 }
 0x99e   :  { %20434 = vmatpush3.bf16.msra.mxu1 %v26653_v19 }
 0x99f   :  { %20436 = vmatprep.subr.bf16.mxu1 %v26654_v30  ;;  %v26658_v30 = vld [vmem:[#allocation99_spill] sm:$0xff] }
 0x9a0   :  { %20398 = vmatpush3.bf16.msra.mxu0 %v23291_v41 }
 0x9a1   :  { %20400 = vmatprep.subr.bf16.mxu0 %v23310_v12 }
 0x9a2   :  { %20438 = vmatpush3.bf16.msra.mxu1 %v26655_v56 }
 0x9a3   :  { %20440 = vmatprep.subr.bf16.mxu1 %v26656_v25 }
 0x9a4   :  { %20402 = vmatpush3.bf16.msra.mxu0 %v23325_v21 }
 0x9a5   :  { %20404 = vmatprep.subr.bf16.mxu0 %v23342_v0 }
 0x9a6   :  { %20442 = vmatpush3.bf16.msra.mxu1 %v26657_v7 }
 0x9a7   :  { %20476 = vmatprep.subr.bf16.mxu1 %v22974_v10 }
 0x9a8   :  { %20406 = vmatpush3.bf16.msra.mxu0 %v23354_v36 }
 0x9a9   :  { %20408 = vmatprep.subr.bf16.mxu0 %v23356_v34 }
 0x9ac   :  { %20410 = vmatpush3.bf16.msra.mxu0 %v23366_v3 }
 0x9ad   :  { %20444 = vmatprep.subr.bf16.mxu0 %v26658_v30 }
 0x9ba   :  { %v16516_v19 = vpop.f32.mrb[48].mxu1 }
 0x9bb   :  { %v16517_v56 = vpop.f32.mrb[49].mxu1 }
 0x9bc   :  { %v16518_v45 = vadd.f32 %v16517_v56, %v16516_v19 }
 0x9c2   :  { %v16481_v25 = vpop.f32.mrb[36].mxu0 }
 0x9c3   :  { %v16482_v23 = vpop.f32.mrb[37].mxu0 }
 0x9c4   :  { %v16483_v57 = vadd.f32 %v16482_v23, %v16481_v25 }
 0x9c6   :  { %v6447_v37 = vadd.f32 %v26659_v38, %v16483_v57 }
 0x9c8   :  { %v6679_v33 = vadd.f32 %v16518_v45, %v6447_v37 }
 0x9da   :  { %v16586_v7 = vpop.f32.mrb[50].mxu1 }
 0x9db   :  { %v16587_v46 = vpop.f32.mrb[51].mxu1 }
 0x9dc   :  { %v16588_v31 = vadd.f32 %v16587_v46, %v16586_v7 }
 0x9e2   :  { %v16551_v44 = vpop.f32.mrb[38].mxu0 }
 0x9e3   :  { %v16552_v47 = vpop.f32.mrb[39].mxu0 }
 0x9e4   :  { %v16553_v11 = vadd.f32 %v16552_v47, %v16551_v44 }
 0x9e6   :  { %v6817_v27 = vadd.f32 %v16553_v11, %v6679_v33 }
 0x9e8   :  { %v6925_v17 = vadd.f32 %v16588_v31, %v6817_v27 }
 0x9fb   :  { %v16656_v35 = vpop.f32.mrb[52].mxu1 }
 0x9fc   :  { %v16657_v9 = vpop.f32.mrb[53].mxu1 }
 0x9fd   :  { %v16658_v30 = vadd.f32 %v16657_v9, %v16656_v35 }
 0xa02   :  { %v16621_v28 = vpop.f32.mrb[40].mxu0 }
 0xa03   :  { %v16622_v62 = vpop.f32.mrb[41].mxu0 }
 0xa04   :  { %v16623_v19 = vadd.f32 %v16622_v62, %v16621_v28 }
 0xa06   :  { %v7093_v56 = vadd.f32 %v16623_v19, %v6925_v17 }
 0xa08   :  { %v7197_v63 = vadd.f32 %v16658_v30, %v7093_v56 }
 0xa0a   :  { %v14965_v23 = vmul.f32 -1.442695, %v7197_v63 }
 0xa0c   :  { %21945 = vpow2.f32 %v14965_v23 }
 0xa0d   :  { %21947 = vtanh.f32 %v7197_v63 }
 0xa16   :  { %v21946_v57 = vpop.eup %21945 }
 0xa17   :  { %v7204_v25 = vadd.f32 1.0, %v21946_v57  ;;  %v21948_v47 = vpop.eup %21947 }
 0xa19   :  { %21949 = vrcp.f32 %v7204_v25 }
 0xa1b   :  { %v16726_v46 = vpop.f32.mrb[54].mxu1 }
 0xa1c   :  { %v16727_v37 = vpop.f32.mrb[55].mxu1 }
 0xa1d   :  { %v16728_v7 = vadd.f32 %v16727_v37, %v16726_v46 }
 0xa22   :  { %v16691_v33 = vpop.f32.mrb[42].mxu0 }
 0xa23   :  { %v21950_v11 = vpop.eup %21949  ;;  %v16692_v31 = vpop.f32.mrb[43].mxu0 }
 0xa24   :  { %v16693_v27 = vadd.f32 %v16692_v31, %v16691_v33  ;;  %v7207_v35 = vsel %vm23244_vm2, %v21948_v47, %v21950_v11 }
 0xa25   :  { %7210 = vrot.lane.b32.xlu0 %v7207_v35, %s22102_s19  ;;  %7208 = vrot.lane.b32.xlu1 %v7207_v35, %s22101_s18 }
 0xa26   :  { %v7330_v17 = vadd.f32 %v24284_v32, %v16693_v27 }
 0xa28   :  { %v7562_v9 = vadd.f32 %v16728_v7, %v7330_v17 }
 0xa3b   :  { %v16796_v28 = vpop.f32.mrb[56].mxu1 }
 0xa3c   :  { %v16797_v63 = vpop.f32.mrb[57].mxu1 }
 0xa3d   :  { %v16798_v62 = vadd.f32 %v16797_v63, %v16796_v28 }
 0xa42   :  { %v16761_v44 = vpop.f32.mrb[44].mxu0 }
 0xa43   :  { %v16762_v30 = vpop.f32.mrb[45].mxu0 }
 0xa44   :  { %v16763_v38 = vadd.f32 %v16762_v30, %v16761_v44 }
 0xa46   :  { %v7700_v45 = vadd.f32 %v16763_v38, %v7562_v9 }
 0xa48   :  { %v7808_v19 = vadd.f32 %v16798_v62, %v7700_v45 }
 0xa5c   :  { %v16866_v56 = vpop.f32.mrb[58].mxu1 }
 0xa5d   :  { %v16867_v23 = vpop.f32.mrb[59].mxu1 }
 0xa5e   :  { %v16868_v57 = vadd.f32 %v16867_v23, %v16866_v56 }
 0xa62   :  { %v16831_v25 = vpop.f32.mrb[46].mxu0 }
 0xa63   :  { %v16832_v46 = vpop.f32.mrb[47].mxu0 }
 0xa64   :  { %v16833_v37 = vadd.f32 %v16832_v46, %v16831_v25 }
 0xa66   :  { %v7976_v47 = vadd.f32 %v16833_v37, %v7808_v19 }
 0xa68   :  { %v8080_v33 = vadd.f32 %v16868_v57, %v7976_v47 }
 0xa6a   :  { %v14967_v11 = vmul.f32 -1.442695, %v8080_v33 }
 0xa6c   :  { %21951 = vpow2.f32 %v14967_v11 }
 0xa6d   :  { %21953 = vtanh.f32 %v8080_v33 }
 0xa76   :  { %v21952_v32 = vpop.eup %21951 }
 0xa77   :  { %v8087_v7 = vadd.f32 1.0, %v21952_v32  ;;  %v21954_v31 = vpop.eup %21953 }
 0xa79   :  { %21955 = vrcp.f32 %v8087_v7 }
 0xa83   :  { %v21956_v27 = vpop.eup %21955 }
 0xa84   :  { %v8090_v17 = vsel %vm23244_vm2, %v21954_v31, %v21956_v27 }
 0xa85   :  { %8093 = vrot.lane.b32.xlu0 %v8090_v17, %s22102_s19  ;;  %8091 = vrot.lane.b32.xlu1 %v8090_v17, %s22101_s18 }
 0xa89   :  { %8095 = vrot.lane.b32.xlu0 %v8090_v17, %s22100_s17  ;;  %7212 = vrot.lane.b32.xlu1 %v7207_v35, %s22100_s17 }
 0xa97   :  { %v7211_v9 = vpop.permute.xlu0 %7210  ;;  %v7209_v28 = vpop.permute.xlu1 %7208 }
 0xa98   :  { %v7215_v63 = vmul.f32 %v7211_v9, %v7207_v35  ;;  %v7214_v62 = vmul.f32 %v7209_v28, %v24294_v29  ;;  %v26660_v9 = vld [vmem:[#allocation78_spill] sm:$0xff]  ;;  %v26661_v28 = vld [vmem:[#allocation79_spill] sm:$0xff] }
 0xa9a   :  { %v24539_v44 = vadd.f32 %v7215_v63, %v7214_v62  ;;  %v26662_v63 = vld [vmem:[#allocation86_spill] sm:$0xff]  ;;  %v26663_v62 = vld [vmem:[#allocation80_spill] sm:$0xff] }
 0xa9c   :  { %21957 = vtanh.f32 %v24539_v44 }
 0xaa6   :  { %v21958_v23 = vpop.eup %21957 }
 0xaf7   :  { %v8094_v30 = vpop.permute.xlu0 %8093  ;;  %v8092_v38 = vpop.permute.xlu1 %8091 }
 0xaf8   :  { %v8098_v45 = vmul.f32 %v8094_v30, %v8090_v17  ;;  %v8097_v19 = vmul.f32 %v8092_v38, %v24298_v55  ;;  %v26664_v30 = vld [vmem:[#allocation81_spill] sm:$0xff] }
 0xaf9   :  { %v26665_v38 = vld [vmem:[#allocation109_spill] sm:$0xff] }
 0xafa   :  { %v24543_v56 = vadd.f32 %v8098_v45, %v8097_v19  ;;  %v26666_v45 = vld [vmem:[#allocation110_spill] sm:$0xff]  ;;  %v26667_v19 = vld [vmem:[#allocation111_spill] sm:$0xff] }
 0xafb   :  { %v7213_v57 = vpop.permute.xlu1 %7212  ;;  %v8096_v33 = vpop.permute.xlu0 %8095 }
 0xafc   :  { %21959 = vtanh.f32 %v24543_v56  ;;  %v7218_v25 = vmul.f32 %v21958_v23, %v7213_v57  ;;  %v26668_v23 = vld [vmem:[#allocation112_spill] sm:$0xff]  ;;  %v26669_v57 = vld [vmem:[#allocation113_spill] sm:$0xff] }
 0xafe   :  { %v8198_v46 = vand.u32 4294901760, %v7218_v25 }
 0xb00   :  { %v8199_v35 = vsub.f32 %v7218_v25, %v8198_v46  ;;  %8439 = vmatprep.mubr.f32.mxu1 %v8198_v46  ;;  %v26670_v25 = vld [vmem:[#allocation114_spill] sm:$0xff] }
 0xb02   :  { %v8200_v29 = vand.u32 4294901760, %v8199_v35 }
 0xb04   :  { %v8201_v37 = vsub.f32 %v8199_v35, %v8200_v29 }
 0xb06   :  { %v21960_v47 = vpop.eup %21959  ;;  %v8202_v11 = vand.u32 4294901760, %v8201_v37  ;;  %v26674_v37 = vld [vmem:[#allocation94_spill] sm:$0xff] }
 0xb07   :  { %v8101_v32 = vmul.f32 %v21960_v47, %v8096_v33  ;;  %v26675_v47 = vld [vmem:[#allocation30_spill] sm:$0xff]  ;;  %v26676_v33 = vld [vmem:[#allocation95_spill] sm:$0xff] }
 0xb08   :  { %8203 = vmatprep.mubr.f32.mxu0 %v8202_v11  ;;  %v26677_v11 = vld [vmem:[#allocation31_spill] sm:$0xff] }
 0xb09   :  { %v24546_v7 = vand.u32 4294901760, %v8101_v32 }
 0xb0b   :  { %v24549_v55 = vsub.f32 %v8101_v32, %v24546_v7  ;;  %8441 = vmatmul.mubr.f32.vlgmr.msra.gmra.mrb[60].mxu1 %v24546_v7  ;;  %v26678_v32 = vld [vmem:[#allocation32_spill] sm:$0xff] }
 0xb0c   :  { %20478 = vmatpush3.bf16.msra.mxu1 %v22982_v61  ;;  %8683 = vmatprep.mubr.f32.mxu1 %v8200_v29  ;;  %v26673_v29 = vld [vmem:[#allocation29_spill] sm:$0xff] }
 0xb0d   :  { %v24554_v31 = vand.u32 4294901760, %v24549_v55  ;;  %20480 = vmatprep.subr.bf16.mxu1 %v22986_v60 }
 0xb0f   :  { %v8207_v27 = vsub.f32 %v24549_v55, %v24554_v31 }
 0xb10   :  { %20482 = vmatpush3.bf16.msra.mxu1 %v23016_v52 }
 0xb11   :  { %20484 = vmatprep.subr.bf16.mxu1 %v23038_v43  ;;  %v24561_v17 = vand.u32 4294901760, %v8207_v27  ;;  %v26679_v27 = vld [vmem:[#allocation33_spill] sm:$0xff] }
 0xb13   :  { %8209 = vmatmul.mubr.f32.vlgmr.msra.gmra.mrb[48].mxu0 %v24561_v17 }
 0xb14   :  { %20446 = vmatpush3.bf16.msra.mxu0 %v26388_v59  ;;  %20486 = vmatpush3.bf16.msra.mxu1 %v23054_v15 }
 0xb15   :  { %8576 = vmatprep.mubr.f32.mxu0 %v8199_v35  ;;  %20448 = vmatprep.subr.bf16.mxu0 %v23451_v4  ;;  %v26672_v35 = vld [vmem:[#allocation115_spill] sm:$0xff] }
 0xb16   :  { %20488 = vmatprep.subr.bf16.mxu1 %v23150_v13 }
 0xb18   :  { %20450 = vmatpush3.bf16.msra.mxu0 %v23458_v14  ;;  %20490 = vmatpush3.bf16.msra.mxu1 %v26252_v24 }
 0xb19   :  { %20452 = vmatprep.subr.bf16.mxu0 %v23464_v2  ;;  %20492 = vmatprep.subr.bf16.mxu1 %v23279_v40 }
 0xb1c   :  { %20454 = vmatpush3.bf16.msra.mxu0 %v23471_v5  ;;  %20494 = vmatpush3.bf16.msra.mxu1 %v23291_v41 }
 0xb1d   :  { %20456 = vmatprep.subr.bf16.mxu0 %v23385_v42  ;;  %20496 = vmatprep.subr.bf16.mxu1 %v23310_v12 }
 0xb20   :  { %20458 = vmatpush3.bf16.msra.mxu0 %v23389_v53  ;;  %20498 = vmatpush3.bf16.msra.mxu1 %v23325_v21 }
 0xb21   :  { %20460 = vmatprep.subr.bf16.mxu0 %v26389_v8  ;;  %20500 = vmatprep.subr.bf16.mxu1 %v23342_v0 }
 0xb24   :  { %20462 = vmatpush3.bf16.msra.mxu0 %v26390_v54  ;;  %20502 = vmatpush3.bf16.msra.mxu1 %v23354_v36 }
 0xb25   :  { %20464 = vmatprep.subr.bf16.mxu0 %v26391_v39  ;;  %20504 = vmatprep.subr.bf16.mxu1 %v23356_v34 }
 0xb28   :  { %20466 = vmatpush3.bf16.msra.mxu0 %v26392_v51  ;;  %20506 = vmatpush3.bf16.msra.mxu1 %v23366_v3 }
 0xb29   :  { %20468 = vmatprep.subr.bf16.mxu0 %v26393_v6  ;;  %20540 = vmatprep.subr.bf16.mxu1 %v22974_v10 }
 0xb2b   :  { %8687 = vmatmul.mubr.f32.vlgmr.msra.gmra.mrb[62].mxu1 %v24554_v31 }
 0xb2c   :  { %20470 = vmatpush3.bf16.msra.mxu0 %v26394_v58  ;;  %20542 = vmatpush3.bf16.msra.mxu1 %v22982_v61 }
 0xb2d   :  { %8957 = vmatprep.mubr.f32.mxu1 %v8198_v46  ;;  %20472 = vmatprep.subr.bf16.mxu0 %v23417_v16 }
 0xb2e   :  { %20544 = vmatprep.subr.bf16.mxu1 %v22986_v60 }
 0xb30   :  { %20474 = vmatpush3.bf16.msra.mxu0 %v23421_v22  ;;  %20546 = vmatpush3.bf16.msra.mxu1 %v23016_v52 }
 0xb31   :  { %20508 = vmatprep.subr.bf16.mxu0 %v23500_v18  ;;  %20548 = vmatprep.subr.bf16.mxu1 %v23038_v43 }
 0xb33   :  { %8579 = vmatmul.mubr.f32.vlgmr.msra.gmra.mrb[50].mxu0 %v24549_v55 }
 0xb34   :  { %20510 = vmatpush3.bf16.msra.mxu0 %v23509_v26  ;;  %8853 = vmatprep.mubr.f32.mxu0 %v8198_v46  ;;  %v26671_v46 = vld [vmem:[#allocation28_spill] sm:$0xff] }
 0xb35   :  { %20550 = vmatpush3.bf16.msra.mxu1 %v23054_v15  ;;  %20512 = vmatprep.subr.bf16.mxu0 %v26660_v9 }
 0xb36   :  { %20552 = vmatprep.subr.bf16.mxu1 %v23150_v13 }
 0xb38   :  { %20514 = vmatpush3.bf16.msra.mxu0 %v26661_v28  ;;  %v26706_v28 = vld [vmem:[#allocation65_spill] sm:$0xff] }
 0xb39   :  { %20554 = vmatpush3.bf16.msra.mxu1 %v26252_v24  ;;  %20516 = vmatprep.subr.bf16.mxu0 %v26662_v63  ;;  %v26703_v63 = vld [vmem:[#allocation62_spill] sm:$0xff] }
 0xb3a   :  { %20556 = vmatprep.subr.bf16.mxu1 %v23279_v40 }
 0xb3c   :  { %20518 = vmatpush3.bf16.msra.mxu0 %v26663_v62  ;;  %v26701_v62 = vld [vmem:[#allocation27_spill] sm:$0xff] }
 0xb3d   :  { %20558 = vmatpush3.bf16.msra.mxu1 %v23291_v41  ;;  %20520 = vmatprep.subr.bf16.mxu0 %v26664_v30  ;;  %v26697_v30 = vld [vmem:[#allocation60_spill] sm:$0xff] }
 0xb3e   :  { %20560 = vmatprep.subr.bf16.mxu1 %v23310_v12 }
 0xb40   :  { %20522 = vmatpush3.bf16.msra.mxu0 %v26665_v38  ;;  %v26696_v38 = vld [vmem:[#allocation23_spill] sm:$0xff] }
 0xb41   :  { %20562 = vmatpush3.bf16.msra.mxu1 %v23325_v21  ;;  %20524 = vmatprep.subr.bf16.mxu0 %v26666_v45  ;;  %v26695_v45 = vld [vmem:[#allocation59_spill] sm:$0xff] }
 0xb42   :  { %20564 = vmatprep.subr.bf16.mxu1 %v23342_v0 }
 0xb44   :  { %20526 = vmatpush3.bf16.msra.mxu0 %v26667_v19  ;;  %v26693_v19 = vld [vmem:[#allocation42_spill] sm:$0xff] }
 0xb45   :  { %20566 = vmatpush3.bf16.msra.mxu1 %v23354_v36  ;;  %20528 = vmatprep.subr.bf16.mxu0 %v26668_v23  ;;  %v26692_v23 = vld [vmem:[#allocation20_spill] sm:$0xff] }
 0xb46   :  { %20568 = vmatprep.subr.bf16.mxu1 %v23356_v34 }
 0xb48   :  { %20530 = vmatpush3.bf16.msra.mxu0 %v26669_v57 }
 0xb49   :  { %20570 = vmatpush3.bf16.msra.mxu1 %v23366_v3  ;;  %20532 = vmatprep.subr.bf16.mxu0 %v26670_v25  ;;  %v26690_v25 = vld [vmem:[#allocation19_spill] sm:$0xff] }
 0xb4a   :  { %20604 = vmatprep.subr.bf16.mxu1 %v26671_v46  ;;  %v26688_v46 = vld [vmem:[#allocation18_spill] sm:$0xff] }
 0xb4c   :  { %8959 = vmatmul.mubr.f32.vlgmr.msra.gmra.mrb[64].mxu1 %v24546_v7  ;;  %20534 = vmatpush3.bf16.msra.mxu0 %v26672_v35  ;;  %v26687_v35 = vld [vmem:[#allocation39_spill] sm:$0xff] }
 0xb4d   :  { %20606 = vmatpush3.bf16.msra.mxu1 %v26673_v29  ;;  %9322 = vmatprep.mubr.f32.mxu1 %v24546_v7  ;;  %v26685_v29 = vld [vmem:[#allocation38_spill] sm:$0xff] }
 0xb4e   :  { %20536 = vmatprep.subr.bf16.mxu0 %v26674_v37  ;;  %20608 = vmatprep.subr.bf16.mxu1 %v26675_v47  ;;  %v26680_v37 = vld [vmem:[#allocation34_spill] sm:$0xff]  ;;  %v26683_v47 = vld [vmem:[#allocation37_spill] sm:$0xff] }
 0xb50   :  { %20538 = vmatpush3.bf16.msra.mxu0 %v26676_v33  ;;  %v26681_v33 = vld [vmem:[#allocation36_spill] sm:$0xff] }
 0xb51   :  { %20610 = vmatpush3.bf16.msra.mxu1 %v26677_v11  ;;  %20572 = vmatprep.subr.bf16.mxu0 %v26307_v1  ;;  %v26682_v11 = vld [vmem:[#allocation15_spill] sm:$0xff] }
 0xb52   :  { %20612 = vmatprep.subr.bf16.mxu1 %v26678_v32  ;;  %v26684_v32 = vld [vmem:[#allocation16_spill] sm:$0xff] }
 0xb53   :  { %8855 = vmatmul.mubr.f32.vlgmr.msra.gmra.mrb[52].mxu0 %v24546_v7 }
 0xb54   :  { %20574 = vmatpush3.bf16.msra.mxu0 %v26309_v48  ;;  %9086 = vmatprep.mubr.f32.mxu0 %v24561_v17  ;;  %v14969_v17 = vld [vmem:[%s25638_s0 + $0x28] sm:$0xff] }
 0xb55   :  { %20614 = vmatpush3.bf16.msra.mxu1 %v26679_v27  ;;  %20576 = vmatprep.subr.bf16.mxu0 %v26312_v49  ;;  %v26686_v27 = vld [vmem:[#allocation17_spill] sm:$0xff] }
 0xb56   :  { %20616 = vmatprep.subr.bf16.mxu1 %v26680_v37  ;;  %v24649_v37 = vand.u32 4294901760, %v14969_v17 }
 0xb58   :  { %20578 = vmatpush3.bf16.msra.mxu0 %v26405_v50  ;;  %v9088_v57 = vsub.f32 %v14969_v17, %v24649_v37  ;;  %v26699_v17 = vld [vmem:[#allocation25_spill] sm:$0xff] }
 0xb59   :  { %20618 = vmatpush3.bf16.msra.mxu1 %v26681_v33  ;;  %20580 = vmatprep.subr.bf16.mxu0 %v26682_v11  ;;  %v26689_v33 = vld [vmem:[#allocation40_spill] sm:$0xff] }
 0xb5a   :  { %20620 = vmatprep.subr.bf16.mxu1 %v26683_v47  ;;  %v26691_v47 = vld [vmem:[#allocation41_spill] sm:$0xff] }
 0xb5c   :  { %20582 = vmatpush3.bf16.msra.mxu0 %v26684_v32 }
 0xb5d   :  { %20622 = vmatpush3.bf16.msra.mxu1 %v26685_v29  ;;  %20584 = vmatprep.subr.bf16.mxu0 %v26686_v27  ;;  %v26694_v29 = vld [vmem:[#allocation22_spill] sm:$0xff] }
 0xb5e   :  { %20624 = vmatprep.subr.bf16.mxu1 %v26687_v35  ;;  %v9089_v35 = vand.u32 4294901760, %v9088_v57 }
 0xb60   :  { %20586 = vmatpush3.bf16.msra.mxu0 %v26688_v46 }
 0xb61   :  { %20626 = vmatpush3.bf16.msra.mxu1 %v26689_v33  ;;  %20588 = vmatprep.subr.bf16.mxu0 %v26690_v25  ;;  %v26698_v33 = vld [vmem:[#allocation24_spill] sm:$0xff] }
 0xb62   :  { %20628 = vmatprep.subr.bf16.mxu1 %v26691_v47  ;;  %v9090_v47 = vsub.f32 %v9088_v57, %v9089_v35 }
 0xb64   :  { %20590 = vmatpush3.bf16.msra.mxu0 %v26692_v23 }
 0xb65   :  { %20630 = vmatpush3.bf16.msra.mxu1 %v26693_v19  ;;  %20592 = vmatprep.subr.bf16.mxu0 %v26694_v29  ;;  %v26700_v19 = vld [vmem:[#allocation26_spill] sm:$0xff] }
 0xb66   :  { %20632 = vmatprep.subr.bf16.mxu1 %v26695_v45  ;;  %v9091_v45 = vand.u32 4294901760, %v9090_v47  ;;  %v26705_v47 = vld [vmem:[#allocation64_spill] sm:$0xff] }
 0xb68   :  { %20594 = vmatpush3.bf16.msra.mxu0 %v26696_v38 }
 0xb69   :  { %20634 = vmatpush3.bf16.msra.mxu1 %v26697_v30  ;;  %20596 = vmatprep.subr.bf16.mxu0 %v26698_v33  ;;  %v26702_v30 = vld [vmem:[#allocation61_spill] sm:$0xff] }
 0xb6a   :  { %20668 = vmatprep.subr.bf16.mxu1 %v26307_v1 }
 0xb6c   :  { %9324 = vmatmul.mubr.f32.vlgmr.msra.gmra.mrb[66].mxu1 %v24649_v37  ;;  %20598 = vmatpush3.bf16.msra.mxu0 %v26699_v17 }
 0xb6d   :  { %20670 = vmatpush3.bf16.msra.mxu1 %v26309_v48  ;;  %9566 = vmatprep.mubr.f32.mxu1 %v24554_v31  ;;  %v26704_v31 = vld [vmem:[#allocation63_spill] sm:$0xff] }
 0xb6e   :  { %20600 = vmatprep.subr.bf16.mxu0 %v26700_v19  ;;  %20672 = vmatprep.subr.bf16.mxu1 %v26312_v49 }
 0xb70   :  { %20602 = vmatpush3.bf16.msra.mxu0 %v26701_v62 }
 0xb71   :  { %20674 = vmatpush3.bf16.msra.mxu1 %v26405_v50  ;;  %20636 = vmatprep.subr.bf16.mxu0 %v26702_v30  ;;  %v26707_v30 = vld [vmem:[#allocation66_spill] sm:$0xff] }
 0xb72   :  { %20676 = vmatprep.subr.bf16.mxu1 %v26682_v11 }
 0xb73   :  { %9092 = vmatmul.mubr.f32.vlgmr.msra.gmra.mrb[54].mxu0 %v9091_v45  ;;  %v26708_v45 = vld [vmem:[#allocation67_spill] sm:$0xff] }
 0xb74   :  { %20638 = vmatpush3.bf16.msra.mxu0 %v26703_v63  ;;  %9459 = vmatprep.mubr.f32.mxu0 %v24549_v55  ;;  %v26709_v55 = vld [vmem:[#allocation68_spill] sm:$0xff] }
 0xb75   :  { %20678 = vmatpush3.bf16.msra.mxu1 %v26684_v32  ;;  %20640 = vmatprep.subr.bf16.mxu0 %v26704_v31  ;;  %v26710_v31 = vld [vmem:[#allocation69_spill] sm:$0xff] }
 0xb76   :  { %20680 = vmatprep.subr.bf16.mxu1 %v26686_v27 }
 0xb78   :  { %20642 = vmatpush3.bf16.msra.mxu0 %v26705_v47  ;;  %v26711_v47 = vld [vmem:[#allocation70_spill] sm:$0xff] }
 0xb79   :  { %20682 = vmatpush3.bf16.msra.mxu1 %v26688_v46  ;;  %20644 = vmatprep.subr.bf16.mxu0 %v26706_v28  ;;  %v26712_v28 = vld [vmem:[#allocation71_spill] sm:$0xff] }
 0xb7a   :  { %20684 = vmatprep.subr.bf16.mxu1 %v26690_v25 }
 0xb7c   :  { %20646 = vmatpush3.bf16.msra.mxu0 %v26707_v30  ;;  %v26713_v30 = vld [vmem:[#allocation72_spill] sm:$0xff] }
 0xb7d   :  { %20686 = vmatpush3.bf16.msra.mxu1 %v26692_v23  ;;  %20648 = vmatprep.subr.bf16.mxu0 %v26708_v45  ;;  %v26714_v45 = vld [vmem:[#allocation73_spill] sm:$0xff] }
 0xb7e   :  { %20688 = vmatprep.subr.bf16.mxu1 %v26694_v29 }
 0xb80   :  { %20650 = vmatpush3.bf16.msra.mxu0 %v26709_v55 }
 0xb81   :  { %20690 = vmatpush3.bf16.msra.mxu1 %v26696_v38  ;;  %20652 = vmatprep.subr.bf16.mxu0 %v26710_v31  ;;  %v26715_v31 = vld [vmem:[#allocation35_spill] sm:$0xff] }
 0xb82   :  { %20692 = vmatprep.subr.bf16.mxu1 %v26698_v33 }
 0xb84   :  { %20654 = vmatpush3.bf16.msra.mxu0 %v26711_v47  ;;  %v26716_v47 = vld [vmem:[#allocation74_spill] sm:$0xff] }
 0xb85   :  { %20694 = vmatpush3.bf16.msra.mxu1 %v26699_v17  ;;  %20656 = vmatprep.subr.bf16.mxu0 %v26712_v28  ;;  %v26717_v28 = vld [vmem:[#allocation75_spill] sm:$0xff] }
 0xb86   :  { %20696 = vmatprep.subr.bf16.mxu1 %v26700_v19 }
 0xb88   :  { %20658 = vmatpush3.bf16.msra.mxu0 %v26713_v30  ;;  %v26718_v30 = vld [vmem:[#allocation43_spill] sm:$0xff] }
 0xb89   :  { %20698 = vmatpush3.bf16.msra.mxu1 %v26701_v62  ;;  %20660 = vmatprep.subr.bf16.mxu0 %v26714_v45  ;;  %v26736_v45 = vld [vmem:[#allocation58_spill] sm:$0xff] }
 0xb8a   :  { %20732 = vmatprep.subr.bf16.mxu1 %v26307_v1 }
 0xb8c   :  { %9570 = vmatmul.mubr.f32.vlgmr.msra.gmra.mrb[68].mxu1 %v9089_v35  ;;  %20662 = vmatpush3.bf16.msra.mxu0 %v26715_v31  ;;  %v26719_v35 = vld [vmem:[#allocation44_spill] sm:$0xff]  ;;  %v26720_v31 = vld [vmem:[#allocation45_spill] sm:$0xff] }
 0xb8d   :  { %9840 = vmatprep.mubr.f32.mxu1 %v24546_v7  ;;  %20664 = vmatprep.subr.bf16.mxu0 %v26716_v47  ;;  %v26721_v47 = vld [vmem:[#allocation46_spill] sm:$0xff] }
 0xb8e   :  { %20734 = vmatpush3.bf16.msra.mxu1 %v26309_v48 }
 0xb8f   :  { %20736 = vmatprep.subr.bf16.mxu1 %v26312_v49 }
 0xb90   :  { %20666 = vmatpush3.bf16.msra.mxu0 %v26717_v28  ;;  %v26722_v28 = vld [vmem:[#allocation47_spill] sm:$0xff] }
 0xb91   :  { %20700 = vmatprep.subr.bf16.mxu0 %v26718_v30  ;;  %v26724_v30 = vld [vmem:[#allocation49_spill] sm:$0xff] }
 0xb92   :  { %20738 = vmatpush3.bf16.msra.mxu1 %v26405_v50 }
 0xb93   :  { %9462 = vmatmul.mubr.f32.vlgmr.msra.gmra.mrb[56].mxu0 %v9088_v57  ;;  %20740 = vmatprep.subr.bf16.mxu1 %v26682_v11  ;;  %v26723_v57 = vld [vmem:[#allocation48_spill] sm:$0xff] }
 0xb94   :  { %20702 = vmatpush3.bf16.msra.mxu0 %v26719_v35  ;;  %9736 = vmatprep.mubr.f32.mxu0 %v24546_v7  ;;  %v26725_v7 = vld [vmem:[#allocation50_spill] sm:$0xff]  ;;  %v26733_v35 = vld [vmem:[#allocation57_spill] sm:$0xff] }
 0xb95   :  { %20704 = vmatprep.subr.bf16.mxu0 %v26720_v31  ;;  %v26726_v31 = vld [vmem:[#allocation51_spill] sm:$0xff] }
 0xb96   :  { %20742 = vmatpush3.bf16.msra.mxu1 %v26684_v32 }
 0xb97   :  { %20744 = vmatprep.subr.bf16.mxu1 %v26686_v27 }
 0xb98   :  { %20706 = vmatpush3.bf16.msra.mxu0 %v26721_v47  ;;  %v26728_v47 = vld [vmem:[#allocation53_spill] sm:$0xff] }
 0xb99   :  { %20708 = vmatprep.subr.bf16.mxu0 %v26722_v28  ;;  %v26727_v28 = vld [vmem:[#allocation52_spill] sm:$0xff] }
 0xb9a   :  { %20746 = vmatpush3.bf16.msra.mxu1 %v26688_v46 }
 0xb9b   :  { %20748 = vmatprep.subr.bf16.mxu1 %v26690_v25 }
 0xb9c   :  { %20710 = vmatpush3.bf16.msra.mxu0 %v26723_v57  ;;  %v26730_v57 = vld [vmem:[#allocation55_spill] sm:$0xff] }
 0xb9d   :  { %20712 = vmatprep.subr.bf16.mxu0 %v26724_v30  ;;  %v26729_v30 = vld [vmem:[#allocation54_spill] sm:$0xff] }
 0xb9e   :  { %20750 = vmatpush3.bf16.msra.mxu1 %v26692_v23 }
 0xb9f   :  { %20752 = vmatprep.subr.bf16.mxu1 %v26694_v29 }
 0xba0   :  { %20714 = vmatpush3.bf16.msra.mxu0 %v26725_v7  ;;  %v26731_v7 = vld [vmem:[#allocation21_spill] sm:$0xff] }
 0xba1   :  { %20716 = vmatprep.subr.bf16.mxu0 %v26726_v31  ;;  %v26732_v31 = vld [vmem:[#allocation56_spill] sm:$0xff] }
 0xba2   :  { %20754 = vmatpush3.bf16.msra.mxu1 %v26696_v38 }
 0xba3   :  { %20756 = vmatprep.subr.bf16.mxu1 %v26698_v33 }
 0xba4   :  { %20718 = vmatpush3.bf16.msra.mxu0 %v26727_v28  ;;  %v26734_v28 = vld [vmem:[#allocation76_spill] sm:$0xff] }
 0xba5   :  { %20720 = vmatprep.subr.bf16.mxu0 %v26728_v47  ;;  %v26735_v47 = vld [vmem:[#allocation77_spill] sm:$0xff] }
 0xba6   :  { %20758 = vmatpush3.bf16.msra.mxu1 %v26699_v17 }
 0xba7   :  { %20760 = vmatprep.subr.bf16.mxu1 %v26700_v19 }
 0xba8   :  { %20722 = vmatpush3.bf16.msra.mxu0 %v26729_v30  ;;  %v26737_v30 = vld [vmem:[#allocation82_spill] sm:$0xff] }
 0xba9   :  { %20724 = vmatprep.subr.bf16.mxu0 %v26730_v57  ;;  %v26738_v57 = vld [vmem:[#allocation83_spill] sm:$0xff] }
 0xbaa   :  { %20762 = vmatpush3.bf16.msra.mxu1 %v26701_v62 }
 0xbab   :  { %20796 = vmatprep.subr.bf16.mxu1 %v26731_v7 }
 0xbac   :  { %20726 = vmatpush3.bf16.msra.mxu0 %v26732_v31  ;;  %v26740_v31 = vld [vmem:[#allocation85_spill] sm:$0xff] }
 0xbad   :  { %20728 = vmatprep.subr.bf16.mxu0 %v26733_v35  ;;  %9842 = vmatmul.mubr.f32.vlgmr.msra.gmra.mrb[70].mxu1 %v24649_v37  ;;  %v26739_v35 = vld [vmem:[#allocation84_spill] sm:$0xff] }
 0xbae   :  { %20798 = vmatpush3.bf16.msra.mxu1 %v26734_v28 }
 0xbaf   :  { %20800 = vmatprep.subr.bf16.mxu1 %v26735_v47  ;;  %v26742_v47 = vld [vmem:[#allocation88_spill] sm:$0xff] }
 0xbb0   :  { %20730 = vmatpush3.bf16.msra.mxu0 %v26736_v45  ;;  %v26741_v45 = vld [vmem:[#allocation87_spill] sm:$0xff] }
 0xbb1   :  { %20764 = vmatprep.subr.bf16.mxu0 %v22974_v10 }
 0xbb2   :  { %20802 = vmatpush3.bf16.msra.mxu1 %v26737_v30 }
 0xbb3   :  { %9738 = vmatmul.mubr.f32.vlgmr.msra.gmra.mrb[58].mxu0 %v24649_v37  ;;  %20804 = vmatprep.subr.bf16.mxu1 %v26738_v57  ;;  %v26743_v37 = vld [vmem:[#allocation89_spill] sm:$0xff]  ;;  %v26744_v57 = vld [vmem:[#allocation91_spill] sm:$0xff] }
 0xbb4   :  { %20766 = vmatpush3.bf16.msra.mxu0 %v22982_v61 }
 0xbb5   :  { %20768 = vmatprep.subr.bf16.mxu0 %v22986_v60 }
 0xbb6   :  { %20806 = vmatpush3.bf16.msra.mxu1 %v26739_v35  ;;  %v26746_v35 = vld [vmem:[#allocation93_spill] sm:$0xff] }
 0xbb7   :  { %20808 = vmatprep.subr.bf16.mxu1 %v26740_v31  ;;  %v26745_v31 = vld [vmem:[#allocation92_spill] sm:$0xff] }
 0xbb8   :  { %20770 = vmatpush3.bf16.msra.mxu0 %v23016_v52 }
 0xbb9   :  { %20772 = vmatprep.subr.bf16.mxu0 %v23038_v43 }
 0xbba   :  { %20810 = vmatpush3.bf16.msra.mxu1 %v26741_v45  ;;  %v26748_v45 = vld [vmem:[#allocation97_spill] sm:$0xff] }
 0xbbb   :  { %20812 = vmatprep.subr.bf16.mxu1 %v26742_v47  ;;  %v26747_v47 = vld [vmem:[#allocation96_spill] sm:$0xff] }
 0xbbc   :  { %20774 = vmatpush3.bf16.msra.mxu0 %v23054_v15 }
 0xbbd   :  { %20776 = vmatprep.subr.bf16.mxu0 %v23150_v13 }
 0xbbe   :  { %20814 = vmatpush3.bf16.msra.mxu1 %v26743_v37 }
 0xbbf   :  { %20816 = vmatprep.subr.bf16.mxu1 %v26744_v57  ;;  %v26749_v57 = vld [vmem:[#allocation98_spill] sm:$0xff] }
 0xbc0   :  { %20778 = vmatpush3.bf16.msra.mxu0 %v26252_v24 }
 0xbc1   :  { %20780 = vmatprep.subr.bf16.mxu0 %v23279_v40 }
 0xbc2   :  { %20818 = vmatpush3.bf16.msra.mxu1 %v26745_v31 }
 0xbc3   :  { %20820 = vmatprep.subr.bf16.mxu1 %v26746_v35  ;;  %v26750_v35 = vld [vmem:[#allocation99_spill] sm:$0xff] }
 0xbc4   :  { %20782 = vmatpush3.bf16.msra.mxu0 %v23291_v41 }
 0xbc5   :  { %20784 = vmatprep.subr.bf16.mxu0 %v23310_v12 }
 0xbc6   :  { %20822 = vmatpush3.bf16.msra.mxu1 %v26747_v47 }
 0xbc7   :  { %20824 = vmatprep.subr.bf16.mxu1 %v26748_v45 }
 0xbc8   :  { %20786 = vmatpush3.bf16.msra.mxu0 %v23325_v21 }
 0xbc9   :  { %20788 = vmatprep.subr.bf16.mxu0 %v23342_v0 }
 0xbca   :  { %20826 = vmatpush3.bf16.msra.mxu1 %v26749_v57  ;;  %v24774_v57 = vld [vmem:[%s25642_s4] ss:$0 sm:$0xff] }
 0xbcb   :  { %20860 = vmatprep.subr.bf16.mxu1 %v22974_v10  ;;  %26751 = vst [vmem:[#allocation108_spill] sm:$0xff] %v24774_v57 }
 0xbcc   :  { %20790 = vmatpush3.bf16.msra.mxu0 %v23354_v36 }
 0xbcd   :  { %20792 = vmatprep.subr.bf16.mxu0 %v23356_v34 }
 0xbd0   :  { %20794 = vmatpush3.bf16.msra.mxu0 %v23366_v3 }
 0xbd1   :  { %20828 = vmatprep.subr.bf16.mxu0 %v26750_v35 }
 0xbde   :  { %v16936_v31 = vpop.f32.mrb[60].mxu1 }
 0xbdf   :  { %v16937_v47 = vpop.f32.mrb[61].mxu1 }
 0xbe0   :  { %v16938_v37 = vadd.f32 %v16937_v47, %v16936_v31 }
 0xbe6   :  { %v16901_v45 = vpop.f32.mrb[48].mxu0 }
 0xbe7   :  { %v16902_v30 = vpop.f32.mrb[49].mxu0 }
 0xbe8   :  { %v16903_v28 = vadd.f32 %v16902_v30, %v16901_v45 }
 0xbea   :  { %v8211_v7 = vadd.f32 %v24774_v57, %v16903_v28 }
 0xbec   :  { %v8443_v55 = vadd.f32 %v16938_v37, %v8211_v7 }
 0xbfe   :  { %v17006_v63 = vpop.f32.mrb[62].mxu1 }
 0xbff   :  { %v17007_v62 = vpop.f32.mrb[63].mxu1 }
 0xc00   :  { %v17008_v19 = vadd.f32 %v17007_v62, %v17006_v63 }
 0xc06   :  { %v16971_v17 = vpop.f32.mrb[50].mxu0 }
 0xc07   :  { %v16972_v33 = vpop.f32.mrb[51].mxu0 }
 0xc08   :  { %v16973_v35 = vadd.f32 %v16972_v33, %v16971_v17 }
 0xc0a   :  { %v8581_v38 = vadd.f32 %v16973_v35, %v8443_v55 }
 0xc0c   :  { %v8689_v29 = vadd.f32 %v17008_v19, %v8581_v38 }
 0xc1f   :  { %v17076_v31 = vpop.f32.mrb[64].mxu1 }
 0xc20   :  { %v17077_v47 = vpop.f32.mrb[65].mxu1 }
 0xc21   :  { %v17078_v23 = vadd.f32 %v17077_v47, %v17076_v31 }
 0xc26   :  { %v17041_v30 = vpop.f32.mrb[52].mxu0 }
 0xc27   :  { %v17042_v45 = vpop.f32.mrb[53].mxu0 }
 0xc28   :  { %v17043_v25 = vadd.f32 %v17042_v45, %v17041_v30 }
 0xc2a   :  { %v8857_v46 = vadd.f32 %v17043_v25, %v8689_v29 }
 0xc2c   :  { %v8961_v27 = vadd.f32 %v17078_v23, %v8857_v46  ;;  %v24784_v23 = vld [vmem:[%s25640_s2] ss:$0 sm:$0xff] }
 0xc2e   :  { %v14968_v32 = vmul.f32 -1.442695, %v8961_v27 }
 0xc30   :  { %21961 = vpow2.f32 %v14968_v32 }
 0xc31   :  { %21963 = vtanh.f32 %v8961_v27 }
 0xc3a   :  { %v21962_v28 = vpop.eup %21961 }
 0xc3b   :  { %v8968_v7 = vadd.f32 1.0, %v21962_v28  ;;  %v21964_v33 = vpop.eup %21963 }
 0xc3d   :  { %21965 = vrcp.f32 %v8968_v7 }
 0xc3f   :  { %v17146_v63 = vpop.f32.mrb[66].mxu1 }
 0xc40   :  { %v17147_v62 = vpop.f32.mrb[67].mxu1 }
 0xc41   :  { %v17148_v37 = vadd.f32 %v17147_v62, %v17146_v63 }
 0xc46   :  { %v17111_v17 = vpop.f32.mrb[54].mxu0 }
 0xc47   :  { %v21966_v38 = vpop.eup %21965  ;;  %v17112_v19 = vpop.f32.mrb[55].mxu0 }
 0xc48   :  { %v17113_v55 = vadd.f32 %v17112_v19, %v17111_v17  ;;  %v8971_v35 = vsel %vm23244_vm2, %v21964_v33, %v21966_v38 }
 0xc49   :  { %8974 = vrot.lane.b32.xlu0 %v8971_v35, %s22102_s19  ;;  %8972 = vrot.lane.b32.xlu1 %v8971_v35, %s22101_s18 }
 0xc4a   :  { %v9094_v25 = vadd.f32 %v24784_v23, %v17113_v55 }
 0xc4c   :  { %v9326_v46 = vadd.f32 %v17148_v37, %v9094_v25 }
 0xc5f   :  { %v17216_v29 = vpop.f32.mrb[68].mxu1 }
 0xc60   :  { %v17217_v32 = vpop.f32.mrb[69].mxu1 }
 0xc61   :  { %v17218_v27 = vadd.f32 %v17217_v32, %v17216_v29 }
 0xc66   :  { %v17181_v31 = vpop.f32.mrb[56].mxu0 }
 0xc67   :  { %v17182_v47 = vpop.f32.mrb[57].mxu0 }
 0xc68   :  { %v17183_v30 = vadd.f32 %v17182_v47, %v17181_v31 }
 0xc6a   :  { %v9464_v45 = vadd.f32 %v17183_v30, %v9326_v46 }
 0xc6c   :  { %v9572_v28 = vadd.f32 %v17218_v27, %v9464_v45 }
 0xc80   :  { %v17286_v7 = vpop.f32.mrb[70].mxu1 }
 0xc81   :  { %v17287_v63 = vpop.f32.mrb[71].mxu1 }
 0xc82   :  { %v17288_v62 = vadd.f32 %v17287_v63, %v17286_v7 }
 0xc86   :  { %v17251_v33 = vpop.f32.mrb[58].mxu0 }
 0xc87   :  { %v17252_v17 = vpop.f32.mrb[59].mxu0 }
 0xc88   :  { %v17253_v38 = vadd.f32 %v17252_v17, %v17251_v33 }
 0xc8a   :  { %v9740_v19 = vadd.f32 %v17253_v38, %v9572_v28 }
 0xc8c   :  { %v9844_v57 = vadd.f32 %v17288_v62, %v9740_v19 }
 0xc8e   :  { %v14970_v11 = vmul.f32 -1.442695, %v9844_v57 }
 0xc90   :  { %21967 = vpow2.f32 %v14970_v11 }
 0xc91   :  { %21969 = vtanh.f32 %v9844_v57 }
 0xc9a   :  { %v21968_v55 = vpop.eup %21967 }
 0xc9b   :  { %v9851_v37 = vadd.f32 1.0, %v21968_v55  ;;  %v21970_v25 = vpop.eup %21969 }
 0xc9d   :  { %21971 = vrcp.f32 %v9851_v37 }
 0xca7   :  { %v21972_v29 = vpop.eup %21971 }
 0xca8   :  { %v9854_v46 = vsel %vm23244_vm2, %v21970_v25, %v21972_v29 }
 0xca9   :  { %9857 = vrot.lane.b32.xlu0 %v9854_v46, %s22102_s19  ;;  %9855 = vrot.lane.b32.xlu1 %v9854_v46, %s22101_s18 }
 0xcad   :  { %9859 = vrot.lane.b32.xlu0 %v9854_v46, %s22100_s17  ;;  %8976 = vrot.lane.b32.xlu1 %v8971_v35, %s22100_s17 }
 0xcbb   :  { %v8975_v32 = vpop.permute.xlu0 %8974  ;;  %v8973_v27 = vpop.permute.xlu1 %8972 }
 0xcbc   :  { %v8979_v11 = vmul.f32 %v8975_v32, %v8971_v35  ;;  %v8978_v31 = vmul.f32 %v8973_v27, %v24539_v44 }
 0xcbe   :  { %v24794_v57 = vadd.f32 %v8979_v11, %v8978_v31  ;;  %v26752_v11 = vld [vmem:[#allocation79_spill] sm:$0xff]  ;;  %v26753_v31 = vld [vmem:[#allocation86_spill] sm:$0xff] }
 0xcc0   :  { %21973 = vtanh.f32 %v24794_v57 }
 0xcca   :  { %v21974_v63 = vpop.eup %21973 }
 0xd1b   :  { %v9858_v47 = vpop.permute.xlu0 %9857  ;;  %v9856_v30 = vpop.permute.xlu1 %9855 }
 0xd1c   :  { %v9862_v45 = vmul.f32 %v9858_v47, %v9854_v46  ;;  %v9861_v28 = vmul.f32 %v9856_v30, %v24543_v56  ;;  %v26754_v47 = vld [vmem:[#allocation80_spill] sm:$0xff]  ;;  %v26755_v30 = vld [vmem:[#allocation81_spill] sm:$0xff] }
 0xd1e   :  { %v24798_v7 = vadd.f32 %v9862_v45, %v9861_v28  ;;  %v26756_v45 = vld [vmem:[#allocation109_spill] sm:$0xff]  ;;  %v26757_v28 = vld [vmem:[#allocation110_spill] sm:$0xff] }
 0xd1f   :  { %v8977_v62 = vpop.permute.xlu1 %8976  ;;  %v9860_v55 = vpop.permute.xlu0 %9859 }
 0xd20   :  { %21975 = vtanh.f32 %v24798_v7  ;;  %v8982_v33 = vmul.f32 %v21974_v63, %v8977_v62  ;;  %v26758_v63 = vld [vmem:[#allocation111_spill] sm:$0xff]  ;;  %v26759_v62 = vld [vmem:[#allocation112_spill] sm:$0xff] }
 0xd22   :  { %v9962_v17 = vand.u32 4294901760, %v8982_v33 }
 0xd24   :  { %v9963_v35 = vsub.f32 %v8982_v33, %v9962_v17  ;;  %10203 = vmatprep.mubr.f32.mxu1 %v9962_v17  ;;  %v26760_v33 = vld [vmem:[#allocation113_spill] sm:$0xff] }
 0xd26   :  { %v9964_v44 = vand.u32 4294901760, %v9963_v35 }
 0xd28   :  { %v9965_v38 = vsub.f32 %v9963_v35, %v9964_v44 }
 0xd2a   :  { %v21976_v19 = vpop.eup %21975  ;;  %v9966_v37 = vand.u32 4294901760, %v9965_v38  ;;  %v26764_v38 = vld [vmem:[#allocation29_spill] sm:$0xff] }
 0xd2b   :  { %v9865_v25 = vmul.f32 %v21976_v19, %v9860_v55  ;;  %v26765_v19 = vld [vmem:[#allocation94_spill] sm:$0xff] }
 0xd2c   :  { %9967 = vmatprep.mubr.f32.mxu0 %v9966_v37  ;;  %v26766_v55 = vld [vmem:[#allocation30_spill] sm:$0xff]  ;;  %v26767_v37 = vld [vmem:[#allocation95_spill] sm:$0xff] }
 0xd2d   :  { %v24801_v29 = vand.u32 4294901760, %v9865_v25 }
 0xd2f   :  { %v24804_v56 = vsub.f32 %v9865_v25, %v24801_v29  ;;  %10205 = vmatmul.mubr.f32.vlgmr.msra.gmra.mrb[72].mxu1 %v24801_v29  ;;  %v26768_v25 = vld [vmem:[#allocation31_spill] sm:$0xff] }
 0xd30   :  { %20862 = vmatpush3.bf16.msra.mxu1 %v22982_v61  ;;  %10447 = vmatprep.mubr.f32.mxu1 %v9964_v44  ;;  %v26763_v44 = vld [vmem:[#allocation115_spill] sm:$0xff] }
 0xd31   :  { %v24809_v46 = vand.u32 4294901760, %v24804_v56  ;;  %20864 = vmatprep.subr.bf16.mxu1 %v22986_v60 }
 0xd33   :  { %v9971_v32 = vsub.f32 %v24804_v56, %v24809_v46 }
 0xd34   :  { %20866 = vmatpush3.bf16.msra.mxu1 %v23016_v52 }
 0xd35   :  { %20868 = vmatprep.subr.bf16.mxu1 %v23038_v43  ;;  %v24816_v27 = vand.u32 4294901760, %v9971_v32  ;;  %v26769_v32 = vld [vmem:[#allocation32_spill] sm:$0xff] }
 0xd37   :  { %9973 = vmatmul.mubr.f32.vlgmr.msra.gmra.mrb[60].mxu0 %v24816_v27 }
 0xd38   :  { %20830 = vmatpush3.bf16.msra.mxu0 %v26388_v59  ;;  %20870 = vmatpush3.bf16.msra.mxu1 %v23054_v15 }
 0xd39   :  { %10340 = vmatprep.mubr.f32.mxu0 %v9963_v35  ;;  %20832 = vmatprep.subr.bf16.mxu0 %v23451_v4  ;;  %v26762_v35 = vld [vmem:[#allocation28_spill] sm:$0xff] }
 0xd3a   :  { %20872 = vmatprep.subr.bf16.mxu1 %v23150_v13 }
 0xd3c   :  { %20834 = vmatpush3.bf16.msra.mxu0 %v23458_v14  ;;  %20874 = vmatpush3.bf16.msra.mxu1 %v26252_v24 }
 0xd3d   :  { %20836 = vmatprep.subr.bf16.mxu0 %v23464_v2  ;;  %20876 = vmatprep.subr.bf16.mxu1 %v23279_v40 }
 0xd40   :  { %20838 = vmatpush3.bf16.msra.mxu0 %v23471_v5  ;;  %20878 = vmatpush3.bf16.msra.mxu1 %v23291_v41 }
 0xd41   :  { %20840 = vmatprep.subr.bf16.mxu0 %v23385_v42  ;;  %20880 = vmatprep.subr.bf16.mxu1 %v23310_v12 }
 0xd44   :  { %20842 = vmatpush3.bf16.msra.mxu0 %v23389_v53  ;;  %20882 = vmatpush3.bf16.msra.mxu1 %v23325_v21 }
 0xd45   :  { %20844 = vmatprep.subr.bf16.mxu0 %v26389_v8  ;;  %20884 = vmatprep.subr.bf16.mxu1 %v23342_v0 }
 0xd48   :  { %20846 = vmatpush3.bf16.msra.mxu0 %v26390_v54  ;;  %20886 = vmatpush3.bf16.msra.mxu1 %v23354_v36 }
 0xd49   :  { %20848 = vmatprep.subr.bf16.mxu0 %v26391_v39  ;;  %20888 = vmatprep.subr.bf16.mxu1 %v23356_v34 }
 0xd4c   :  { %20850 = vmatpush3.bf16.msra.mxu0 %v26392_v51  ;;  %20890 = vmatpush3.bf16.msra.mxu1 %v23366_v3 }
 0xd4d   :  { %20852 = vmatprep.subr.bf16.mxu0 %v26393_v6  ;;  %20924 = vmatprep.subr.bf16.mxu1 %v22974_v10 }
 0xd4f   :  { %10451 = vmatmul.mubr.f32.vlgmr.msra.gmra.mrb[74].mxu1 %v24809_v46 }
 0xd50   :  { %20854 = vmatpush3.bf16.msra.mxu0 %v26394_v58  ;;  %20926 = vmatpush3.bf16.msra.mxu1 %v22982_v61 }
 0xd51   :  { %10721 = vmatprep.mubr.f32.mxu1 %v9962_v17  ;;  %20856 = vmatprep.subr.bf16.mxu0 %v23417_v16 }
 0xd52   :  { %20928 = vmatprep.subr.bf16.mxu1 %v22986_v60 }
 0xd54   :  { %20858 = vmatpush3.bf16.msra.mxu0 %v23421_v22  ;;  %20930 = vmatpush3.bf16.msra.mxu1 %v23016_v52 }
 0xd55   :  { %20892 = vmatprep.subr.bf16.mxu0 %v23500_v18  ;;  %20932 = vmatprep.subr.bf16.mxu1 %v23038_v43 }
 0xd57   :  { %10343 = vmatmul.mubr.f32.vlgmr.msra.gmra.mrb[62].mxu0 %v24804_v56 }
 0xd58   :  { %20894 = vmatpush3.bf16.msra.mxu0 %v23509_v26  ;;  %10617 = vmatprep.mubr.f32.mxu0 %v9962_v17  ;;  %v26761_v17 = vld [vmem:[#allocation114_spill] sm:$0xff] }
 0xd59   :  { %20934 = vmatpush3.bf16.msra.mxu1 %v23054_v15  ;;  %20896 = vmatprep.subr.bf16.mxu0 %v26660_v9  ;;  %v26797_v9 = vld [vmem:[#allocation65_spill] sm:$0xff] }
 0xd5a   :  { %20936 = vmatprep.subr.bf16.mxu1 %v23150_v13 }
 0xd5c   :  { %20898 = vmatpush3.bf16.msra.mxu0 %v26752_v11  ;;  %v26794_v11 = vld [vmem:[#allocation62_spill] sm:$0xff] }
 0xd5d   :  { %20938 = vmatpush3.bf16.msra.mxu1 %v26252_v24  ;;  %20900 = vmatprep.subr.bf16.mxu0 %v26753_v31  ;;  %v26792_v31 = vld [vmem:[#allocation27_spill] sm:$0xff] }
 0xd5e   :  { %20940 = vmatprep.subr.bf16.mxu1 %v23279_v40 }
 0xd60   :  { %20902 = vmatpush3.bf16.msra.mxu0 %v26754_v47  ;;  %v26788_v47 = vld [vmem:[#allocation60_spill] sm:$0xff] }
 0xd61   :  { %20942 = vmatpush3.bf16.msra.mxu1 %v23291_v41  ;;  %20904 = vmatprep.subr.bf16.mxu0 %v26755_v30  ;;  %v26787_v30 = vld [vmem:[#allocation23_spill] sm:$0xff] }
 0xd62   :  { %20944 = vmatprep.subr.bf16.mxu1 %v23310_v12 }
 0xd64   :  { %20906 = vmatpush3.bf16.msra.mxu0 %v26756_v45  ;;  %v26786_v45 = vld [vmem:[#allocation59_spill] sm:$0xff] }
 0xd65   :  { %20946 = vmatpush3.bf16.msra.mxu1 %v23325_v21  ;;  %20908 = vmatprep.subr.bf16.mxu0 %v26757_v28  ;;  %v26784_v28 = vld [vmem:[#allocation42_spill] sm:$0xff] }
 0xd66   :  { %20948 = vmatprep.subr.bf16.mxu1 %v23342_v0 }
 0xd68   :  { %20910 = vmatpush3.bf16.msra.mxu0 %v26758_v63  ;;  %v26783_v63 = vld [vmem:[#allocation20_spill] sm:$0xff] }
 0xd69   :  { %20950 = vmatpush3.bf16.msra.mxu1 %v23354_v36  ;;  %20912 = vmatprep.subr.bf16.mxu0 %v26759_v62 }
 0xd6a   :  { %20952 = vmatprep.subr.bf16.mxu1 %v23356_v34 }
 0xd6c   :  { %20914 = vmatpush3.bf16.msra.mxu0 %v26760_v33  ;;  %v26781_v33 = vld [vmem:[#allocation19_spill] sm:$0xff] }
 0xd6d   :  { %20954 = vmatpush3.bf16.msra.mxu1 %v23366_v3  ;;  %20916 = vmatprep.subr.bf16.mxu0 %v26761_v17  ;;  %v26779_v17 = vld [vmem:[#allocation18_spill] sm:$0xff] }
 0xd6e   :  { %20988 = vmatprep.subr.bf16.mxu1 %v26762_v35  ;;  %v26778_v35 = vld [vmem:[#allocation39_spill] sm:$0xff] }
 0xd70   :  { %10723 = vmatmul.mubr.f32.vlgmr.msra.gmra.mrb[76].mxu1 %v24801_v29  ;;  %20918 = vmatpush3.bf16.msra.mxu0 %v26763_v44  ;;  %v26776_v44 = vld [vmem:[#allocation38_spill] sm:$0xff] }
 0xd71   :  { %20990 = vmatpush3.bf16.msra.mxu1 %v26764_v38  ;;  %11086 = vmatprep.mubr.f32.mxu1 %v24801_v29  ;;  %v26770_v38 = vld [vmem:[#allocation33_spill] sm:$0xff] }
 0xd72   :  { %20920 = vmatprep.subr.bf16.mxu0 %v26765_v19  ;;  %20992 = vmatprep.subr.bf16.mxu1 %v26766_v55  ;;  %v26771_v19 = vld [vmem:[#allocation34_spill] sm:$0xff]  ;;  %v26774_v55 = vld [vmem:[#allocation37_spill] sm:$0xff] }
 0xd74   :  { %20922 = vmatpush3.bf16.msra.mxu0 %v26767_v37  ;;  %v26772_v37 = vld [vmem:[#allocation36_spill] sm:$0xff] }
 0xd75   :  { %20994 = vmatpush3.bf16.msra.mxu1 %v26768_v25  ;;  %20956 = vmatprep.subr.bf16.mxu0 %v26307_v1  ;;  %v26773_v25 = vld [vmem:[#allocation15_spill] sm:$0xff] }
 0xd76   :  { %20996 = vmatprep.subr.bf16.mxu1 %v26769_v32  ;;  %v26775_v32 = vld [vmem:[#allocation16_spill] sm:$0xff] }
 0xd77   :  { %10619 = vmatmul.mubr.f32.vlgmr.msra.gmra.mrb[64].mxu0 %v24801_v29 }
 0xd78   :  { %20958 = vmatpush3.bf16.msra.mxu0 %v26309_v48  ;;  %10850 = vmatprep.mubr.f32.mxu0 %v24816_v27  ;;  %v14972_v27 = vld [vmem:[%s25638_s0 + $0x30] sm:$0xff] }
 0xd79   :  { %20998 = vmatpush3.bf16.msra.mxu1 %v26770_v38  ;;  %20960 = vmatprep.subr.bf16.mxu0 %v26312_v49  ;;  %v26777_v38 = vld [vmem:[#allocation17_spill] sm:$0xff] }
 0xd7a   :  { %21000 = vmatprep.subr.bf16.mxu1 %v26771_v19  ;;  %v24904_v19 = vand.u32 4294901760, %v14972_v27 }
 0xd7c   :  { %20962 = vmatpush3.bf16.msra.mxu0 %v26405_v50  ;;  %v10852_v62 = vsub.f32 %v14972_v27, %v24904_v19  ;;  %v26790_v27 = vld [vmem:[#allocation25_spill] sm:$0xff] }
 0xd7d   :  { %21002 = vmatpush3.bf16.msra.mxu1 %v26772_v37  ;;  %20964 = vmatprep.subr.bf16.mxu0 %v26773_v25  ;;  %v26780_v37 = vld [vmem:[#allocation40_spill] sm:$0xff] }
 0xd7e   :  { %21004 = vmatprep.subr.bf16.mxu1 %v26774_v55  ;;  %v26782_v55 = vld [vmem:[#allocation41_spill] sm:$0xff] }
 0xd80   :  { %20966 = vmatpush3.bf16.msra.mxu0 %v26775_v32 }
 0xd81   :  { %21006 = vmatpush3.bf16.msra.mxu1 %v26776_v44  ;;  %20968 = vmatprep.subr.bf16.mxu0 %v26777_v38  ;;  %v26785_v44 = vld [vmem:[#allocation22_spill] sm:$0xff] }
 0xd82   :  { %21008 = vmatprep.subr.bf16.mxu1 %v26778_v35  ;;  %v10853_v35 = vand.u32 4294901760, %v10852_v62 }
 0xd84   :  { %20970 = vmatpush3.bf16.msra.mxu0 %v26779_v17 }
 0xd85   :  { %21010 = vmatpush3.bf16.msra.mxu1 %v26780_v37  ;;  %20972 = vmatprep.subr.bf16.mxu0 %v26781_v33  ;;  %v26789_v37 = vld [vmem:[#allocation24_spill] sm:$0xff] }
 0xd86   :  { %21012 = vmatprep.subr.bf16.mxu1 %v26782_v55  ;;  %v10854_v55 = vsub.f32 %v10852_v62, %v10853_v35 }
 0xd88   :  { %20974 = vmatpush3.bf16.msra.mxu0 %v26783_v63 }
 0xd89   :  { %21014 = vmatpush3.bf16.msra.mxu1 %v26784_v28  ;;  %20976 = vmatprep.subr.bf16.mxu0 %v26785_v44  ;;  %v26791_v28 = vld [vmem:[#allocation26_spill] sm:$0xff] }
 0xd8a   :  { %21016 = vmatprep.subr.bf16.mxu1 %v26786_v45  ;;  %v10855_v45 = vand.u32 4294901760, %v10854_v55  ;;  %v26796_v55 = vld [vmem:[#allocation64_spill] sm:$0xff] }
 0xd8c   :  { %20978 = vmatpush3.bf16.msra.mxu0 %v26787_v30 }
 0xd8d   :  { %21018 = vmatpush3.bf16.msra.mxu1 %v26788_v47  ;;  %20980 = vmatprep.subr.bf16.mxu0 %v26789_v37  ;;  %v26793_v47 = vld [vmem:[#allocation61_spill] sm:$0xff] }
 0xd8e   :  { %21052 = vmatprep.subr.bf16.mxu1 %v26307_v1 }
 0xd90   :  { %11088 = vmatmul.mubr.f32.vlgmr.msra.gmra.mrb[78].mxu1 %v24904_v19  ;;  %20982 = vmatpush3.bf16.msra.mxu0 %v26790_v27 }
 0xd91   :  { %21054 = vmatpush3.bf16.msra.mxu1 %v26309_v48  ;;  %11330 = vmatprep.mubr.f32.mxu1 %v24809_v46  ;;  %v26795_v46 = vld [vmem:[#allocation63_spill] sm:$0xff] }
 0xd92   :  { %20984 = vmatprep.subr.bf16.mxu0 %v26791_v28  ;;  %21056 = vmatprep.subr.bf16.mxu1 %v26312_v49 }
 0xd94   :  { %20986 = vmatpush3.bf16.msra.mxu0 %v26792_v31 }
 0xd95   :  { %21058 = vmatpush3.bf16.msra.mxu1 %v26405_v50  ;;  %21020 = vmatprep.subr.bf16.mxu0 %v26793_v47  ;;  %v26798_v47 = vld [vmem:[#allocation66_spill] sm:$0xff] }
 0xd96   :  { %21060 = vmatprep.subr.bf16.mxu1 %v26773_v25 }
 0xd97   :  { %10856 = vmatmul.mubr.f32.vlgmr.msra.gmra.mrb[66].mxu0 %v10855_v45  ;;  %v26799_v45 = vld [vmem:[#allocation67_spill] sm:$0xff] }
 0xd98   :  { %21022 = vmatpush3.bf16.msra.mxu0 %v26794_v11  ;;  %11223 = vmatprep.mubr.f32.mxu0 %v24804_v56  ;;  %v26800_v56 = vld [vmem:[#allocation68_spill] sm:$0xff] }
 0xd99   :  { %21062 = vmatpush3.bf16.msra.mxu1 %v26775_v32  ;;  %21024 = vmatprep.subr.bf16.mxu0 %v26795_v46  ;;  %v26801_v46 = vld [vmem:[#allocation69_spill] sm:$0xff] }
 0xd9a   :  { %21064 = vmatprep.subr.bf16.mxu1 %v26777_v38 }
 0xd9c   :  { %21026 = vmatpush3.bf16.msra.mxu0 %v26796_v55  ;;  %v26802_v55 = vld [vmem:[#allocation70_spill] sm:$0xff] }
 0xd9d   :  { %21066 = vmatpush3.bf16.msra.mxu1 %v26779_v17  ;;  %21028 = vmatprep.subr.bf16.mxu0 %v26797_v9  ;;  %v26803_v9 = vld [vmem:[#allocation71_spill] sm:$0xff] }
 0xd9e   :  { %21068 = vmatprep.subr.bf16.mxu1 %v26781_v33 }
 0xda0   :  { %21030 = vmatpush3.bf16.msra.mxu0 %v26798_v47  ;;  %v26804_v47 = vld [vmem:[#allocation72_spill] sm:$0xff] }
 0xda1   :  { %21070 = vmatpush3.bf16.msra.mxu1 %v26783_v63  ;;  %21032 = vmatprep.subr.bf16.mxu0 %v26799_v45  ;;  %v26805_v45 = vld [vmem:[#allocation73_spill] sm:$0xff] }
 0xda2   :  { %21072 = vmatprep.subr.bf16.mxu1 %v26785_v44 }
 0xda4   :  { %21034 = vmatpush3.bf16.msra.mxu0 %v26800_v56 }
 0xda5   :  { %21074 = vmatpush3.bf16.msra.mxu1 %v26787_v30  ;;  %21036 = vmatprep.subr.bf16.mxu0 %v26801_v46  ;;  %v26806_v46 = vld [vmem:[#allocation35_spill] sm:$0xff] }
 0xda6   :  { %21076 = vmatprep.subr.bf16.mxu1 %v26789_v37 }
 0xda8   :  { %21038 = vmatpush3.bf16.msra.mxu0 %v26802_v55  ;;  %v26807_v55 = vld [vmem:[#allocation74_spill] sm:$0xff] }
 0xda9   :  { %21078 = vmatpush3.bf16.msra.mxu1 %v26790_v27  ;;  %21040 = vmatprep.subr.bf16.mxu0 %v26803_v9  ;;  %v26808_v9 = vld [vmem:[#allocation75_spill] sm:$0xff] }
 0xdaa   :  { %21080 = vmatprep.subr.bf16.mxu1 %v26791_v28 }
 0xdac   :  { %21042 = vmatpush3.bf16.msra.mxu0 %v26804_v47  ;;  %v26809_v47 = vld [vmem:[#allocation43_spill] sm:$0xff] }
 0xdad   :  { %21082 = vmatpush3.bf16.msra.mxu1 %v26792_v31  ;;  %21044 = vmatprep.subr.bf16.mxu0 %v26805_v45  ;;  %v26827_v45 = vld [vmem:[#allocation58_spill] sm:$0xff] }
 0xdae   :  { %21116 = vmatprep.subr.bf16.mxu1 %v26307_v1 }
 0xdb0   :  { %11334 = vmatmul.mubr.f32.vlgmr.msra.gmra.mrb[80].mxu1 %v10853_v35  ;;  %21046 = vmatpush3.bf16.msra.mxu0 %v26806_v46  ;;  %v26810_v35 = vld [vmem:[#allocation44_spill] sm:$0xff]  ;;  %v26811_v46 = vld [vmem:[#allocation45_spill] sm:$0xff] }
 0xdb1   :  { %11604 = vmatprep.mubr.f32.mxu1 %v24801_v29  ;;  %21048 = vmatprep.subr.bf16.mxu0 %v26807_v55  ;;  %v26812_v55 = vld [vmem:[#allocation46_spill] sm:$0xff] }
 0xdb2   :  { %21118 = vmatpush3.bf16.msra.mxu1 %v26309_v48 }
 0xdb3   :  { %21120 = vmatprep.subr.bf16.mxu1 %v26312_v49 }
 0xdb4   :  { %21050 = vmatpush3.bf16.msra.mxu0 %v26808_v9  ;;  %v26813_v9 = vld [vmem:[#allocation47_spill] sm:$0xff] }
 0xdb5   :  { %21084 = vmatprep.subr.bf16.mxu0 %v26809_v47  ;;  %v26815_v47 = vld [vmem:[#allocation49_spill] sm:$0xff] }
 0xdb6   :  { %21122 = vmatpush3.bf16.msra.mxu1 %v26405_v50 }
 0xdb7   :  { %11226 = vmatmul.mubr.f32.vlgmr.msra.gmra.mrb[68].mxu0 %v10852_v62  ;;  %21124 = vmatprep.subr.bf16.mxu1 %v26773_v25  ;;  %v26814_v62 = vld [vmem:[#allocation48_spill] sm:$0xff] }
 0xdb8   :  { %21086 = vmatpush3.bf16.msra.mxu0 %v26810_v35  ;;  %11500 = vmatprep.mubr.f32.mxu0 %v24801_v29  ;;  %v26816_v29 = vld [vmem:[#allocation50_spill] sm:$0xff]  ;;  %v26824_v35 = vld [vmem:[#allocation57_spill] sm:$0xff] }
 0xdb9   :  { %21088 = vmatprep.subr.bf16.mxu0 %v26811_v46  ;;  %v26817_v46 = vld [vmem:[#allocation51_spill] sm:$0xff] }
 0xdba   :  { %21126 = vmatpush3.bf16.msra.mxu1 %v26775_v32 }
 0xdbb   :  { %21128 = vmatprep.subr.bf16.mxu1 %v26777_v38 }
 0xdbc   :  { %21090 = vmatpush3.bf16.msra.mxu0 %v26812_v55  ;;  %v26819_v55 = vld [vmem:[#allocation53_spill] sm:$0xff] }
 0xdbd   :  { %21092 = vmatprep.subr.bf16.mxu0 %v26813_v9  ;;  %v26818_v9 = vld [vmem:[#allocation52_spill] sm:$0xff] }
 0xdbe   :  { %21130 = vmatpush3.bf16.msra.mxu1 %v26779_v17 }
 0xdbf   :  { %21132 = vmatprep.subr.bf16.mxu1 %v26781_v33 }
 0xdc0   :  { %21094 = vmatpush3.bf16.msra.mxu0 %v26814_v62  ;;  %v26821_v62 = vld [vmem:[#allocation55_spill] sm:$0xff] }
 0xdc1   :  { %21096 = vmatprep.subr.bf16.mxu0 %v26815_v47  ;;  %v26820_v47 = vld [vmem:[#allocation54_spill] sm:$0xff] }
 0xdc2   :  { %21134 = vmatpush3.bf16.msra.mxu1 %v26783_v63 }
 0xdc3   :  { %21136 = vmatprep.subr.bf16.mxu1 %v26785_v44 }
 0xdc4   :  { %21098 = vmatpush3.bf16.msra.mxu0 %v26816_v29  ;;  %v26822_v29 = vld [vmem:[#allocation21_spill] sm:$0xff] }
 0xdc5   :  { %21100 = vmatprep.subr.bf16.mxu0 %v26817_v46  ;;  %v26823_v46 = vld [vmem:[#allocation56_spill] sm:$0xff] }
 0xdc6   :  { %21138 = vmatpush3.bf16.msra.mxu1 %v26787_v30 }
 0xdc7   :  { %21140 = vmatprep.subr.bf16.mxu1 %v26789_v37 }
 0xdc8   :  { %21102 = vmatpush3.bf16.msra.mxu0 %v26818_v9  ;;  %v26825_v9 = vld [vmem:[#allocation76_spill] sm:$0xff] }
 0xdc9   :  { %21104 = vmatprep.subr.bf16.mxu0 %v26819_v55  ;;  %v26826_v55 = vld [vmem:[#allocation77_spill] sm:$0xff] }
 0xdca   :  { %21142 = vmatpush3.bf16.msra.mxu1 %v26790_v27 }
 0xdcb   :  { %21144 = vmatprep.subr.bf16.mxu1 %v26791_v28 }
 0xdcc   :  { %21106 = vmatpush3.bf16.msra.mxu0 %v26820_v47  ;;  %v26828_v47 = vld [vmem:[#allocation82_spill] sm:$0xff] }
 0xdcd   :  { %21108 = vmatprep.subr.bf16.mxu0 %v26821_v62  ;;  %v26829_v62 = vld [vmem:[#allocation83_spill] sm:$0xff] }
 0xdce   :  { %21146 = vmatpush3.bf16.msra.mxu1 %v26792_v31 }
 0xdcf   :  { %21180 = vmatprep.subr.bf16.mxu1 %v26822_v29  ;;  %v26842_v29 = vld [vmem:[#allocation108_spill] sm:$0xff] }
 0xdd0   :  { %21110 = vmatpush3.bf16.msra.mxu0 %v26823_v46  ;;  %v26831_v46 = vld [vmem:[#allocation85_spill] sm:$0xff] }
 0xdd1   :  { %21112 = vmatprep.subr.bf16.mxu0 %v26824_v35  ;;  %11606 = vmatmul.mubr.f32.vlgmr.msra.gmra.mrb[82].mxu1 %v24904_v19  ;;  %v26830_v35 = vld [vmem:[#allocation84_spill] sm:$0xff] }
 0xdd2   :  { %21182 = vmatpush3.bf16.msra.mxu1 %v26825_v9 }
 0xdd3   :  { %21184 = vmatprep.subr.bf16.mxu1 %v26826_v55  ;;  %v26833_v55 = vld [vmem:[#allocation88_spill] sm:$0xff] }
 0xdd4   :  { %21114 = vmatpush3.bf16.msra.mxu0 %v26827_v45  ;;  %v26832_v45 = vld [vmem:[#allocation87_spill] sm:$0xff] }
 0xdd5   :  { %21148 = vmatprep.subr.bf16.mxu0 %v22974_v10 }
 0xdd6   :  { %21186 = vmatpush3.bf16.msra.mxu1 %v26828_v47 }
 0xdd7   :  { %11502 = vmatmul.mubr.f32.vlgmr.msra.gmra.mrb[70].mxu0 %v24904_v19  ;;  %21188 = vmatprep.subr.bf16.mxu1 %v26829_v62  ;;  %v26834_v19 = vld [vmem:[#allocation89_spill] sm:$0xff]  ;;  %v26835_v62 = vld [vmem:[#allocation91_spill] sm:$0xff] }
 0xdd8   :  { %21150 = vmatpush3.bf16.msra.mxu0 %v22982_v61 }
 0xdd9   :  { %21152 = vmatprep.subr.bf16.mxu0 %v22986_v60 }
 0xdda   :  { %21190 = vmatpush3.bf16.msra.mxu1 %v26830_v35  ;;  %v26837_v35 = vld [vmem:[#allocation93_spill] sm:$0xff] }
 0xddb   :  { %21192 = vmatprep.subr.bf16.mxu1 %v26831_v46  ;;  %v26836_v46 = vld [vmem:[#allocation92_spill] sm:$0xff] }
 0xddc   :  { %21154 = vmatpush3.bf16.msra.mxu0 %v23016_v52 }
 0xddd   :  { %21156 = vmatprep.subr.bf16.mxu0 %v23038_v43 }
 0xdde   :  { %21194 = vmatpush3.bf16.msra.mxu1 %v26832_v45  ;;  %v26839_v45 = vld [vmem:[#allocation97_spill] sm:$0xff] }
 0xddf   :  { %21196 = vmatprep.subr.bf16.mxu1 %v26833_v55  ;;  %v26838_v55 = vld [vmem:[#allocation96_spill] sm:$0xff] }
 0xde0   :  { %21158 = vmatpush3.bf16.msra.mxu0 %v23054_v15 }
 0xde1   :  { %21160 = vmatprep.subr.bf16.mxu0 %v23150_v13 }
 0xde2   :  { %21198 = vmatpush3.bf16.msra.mxu1 %v26834_v19 }
 0xde3   :  { %21200 = vmatprep.subr.bf16.mxu1 %v26835_v62  ;;  %v26840_v62 = vld [vmem:[#allocation98_spill] sm:$0xff] }
 0xde4   :  { %21162 = vmatpush3.bf16.msra.mxu0 %v26252_v24 }
 0xde5   :  { %21164 = vmatprep.subr.bf16.mxu0 %v23279_v40 }
 0xde6   :  { %21202 = vmatpush3.bf16.msra.mxu1 %v26836_v46 }
 0xde7   :  { %21204 = vmatprep.subr.bf16.mxu1 %v26837_v35  ;;  %v26841_v35 = vld [vmem:[#allocation99_spill] sm:$0xff] }
 0xde8   :  { %21166 = vmatpush3.bf16.msra.mxu0 %v23291_v41 }
 0xde9   :  { %21168 = vmatprep.subr.bf16.mxu0 %v23310_v12 }
 0xdea   :  { %21206 = vmatpush3.bf16.msra.mxu1 %v26838_v55 }
 0xdeb   :  { %21208 = vmatprep.subr.bf16.mxu1 %v26839_v45 }
 0xdec   :  { %21170 = vmatpush3.bf16.msra.mxu0 %v23325_v21 }
 0xded   :  { %21172 = vmatprep.subr.bf16.mxu0 %v23342_v0 }
 0xdee   :  { %21210 = vmatpush3.bf16.msra.mxu1 %v26840_v62 }
 0xdef   :  { %21244 = vmatprep.subr.bf16.mxu1 %v22974_v10 }
 0xdf0   :  { %21174 = vmatpush3.bf16.msra.mxu0 %v23354_v36 }
 0xdf1   :  { %21176 = vmatprep.subr.bf16.mxu0 %v23356_v34 }
 0xdf4   :  { %21178 = vmatpush3.bf16.msra.mxu0 %v23366_v3 }
 0xdf5   :  { %21212 = vmatprep.subr.bf16.mxu0 %v26841_v35 }
 0xe02   :  { %v17356_v46 = vpop.f32.mrb[72].mxu1 }
 0xe03   :  { %v17357_v55 = vpop.f32.mrb[73].mxu1 }
 0xe04   :  { %v17358_v19 = vadd.f32 %v17357_v55, %v17356_v46 }
 0xe0a   :  { %v17321_v45 = vpop.f32.mrb[60].mxu0 }
 0xe0b   :  { %v17322_v47 = vpop.f32.mrb[61].mxu0 }
 0xe0c   :  { %v17323_v9 = vadd.f32 %v17322_v47, %v17321_v45 }
 0xe0e   :  { %v9975_v56 = vadd.f32 %v26842_v29, %v17323_v9 }
 0xe10   :  { %v10207_v11 = vadd.f32 %v17358_v19, %v9975_v56 }
 0xe22   :  { %v17426_v62 = vpop.f32.mrb[74].mxu1 }
 0xe23   :  { %v17427_v31 = vpop.f32.mrb[75].mxu1 }
 0xe24   :  { %v17428_v28 = vadd.f32 %v17427_v31, %v17426_v62 }
 0xe2a   :  { %v17391_v27 = vpop.f32.mrb[62].mxu0 }
 0xe2b   :  { %v17392_v37 = vpop.f32.mrb[63].mxu0 }
 0xe2c   :  { %v17393_v30 = vadd.f32 %v17392_v37, %v17391_v27 }
 0xe2e   :  { %v10345_v44 = vadd.f32 %v17393_v30, %v10207_v11 }
 0xe30   :  { %v10453_v63 = vadd.f32 %v17428_v28, %v10345_v44 }
 0xe43   :  { %v17496_v33 = vpop.f32.mrb[76].mxu1 }
 0xe44   :  { %v17497_v17 = vpop.f32.mrb[77].mxu1 }
 0xe45   :  { %v17498_v35 = vadd.f32 %v17497_v17, %v17496_v33 }
 0xe4a   :  { %v17461_v38 = vpop.f32.mrb[64].mxu0 }
 0xe4b   :  { %v17462_v32 = vpop.f32.mrb[65].mxu0 }
 0xe4c   :  { %v17463_v46 = vadd.f32 %v17462_v32, %v17461_v38 }
 0xe4e   :  { %v10621_v55 = vadd.f32 %v17463_v46, %v10453_v63 }
 0xe50   :  { %v10725_v25 = vadd.f32 %v17498_v35, %v10621_v55 }
 0xe52   :  { %v14971_v47 = vmul.f32 -1.442695, %v10725_v25 }
 0xe54   :  { %21977 = vpow2.f32 %v14971_v47 }
 0xe55   :  { %21979 = vtanh.f32 %v10725_v25 }
 0xe5e   :  { %v21978_v9 = vpop.eup %21977 }
 0xe5f   :  { %v10732_v45 = vadd.f32 1.0, %v21978_v9  ;;  %v21980_v37 = vpop.eup %21979 }
 0xe61   :  { %21981 = vrcp.f32 %v10732_v45 }
 0xe63   :  { %v17566_v31 = vpop.f32.mrb[78].mxu1 }
 0xe64   :  { %v17567_v56 = vpop.f32.mrb[79].mxu1 }
 0xe65   :  { %v17568_v62 = vadd.f32 %v17567_v56, %v17566_v31 }
 0xe6a   :  { %v17531_v11 = vpop.f32.mrb[66].mxu0 }
 0xe6b   :  { %v21982_v30 = vpop.eup %21981  ;;  %v17532_v28 = vpop.f32.mrb[67].mxu0 }
 0xe6c   :  { %v17533_v44 = vadd.f32 %v17532_v28, %v17531_v11  ;;  %v10735_v33 = vsel %vm23244_vm2, %v21980_v37, %v21982_v30 }
 0xe6d   :  { %10738 = vrot.lane.b32.xlu0 %v10735_v33, %s22102_s19  ;;  %10736 = vrot.lane.b32.xlu1 %v10735_v33, %s22101_s18 }
 0xe6e   :  { %v10858_v63 = vadd.f32 %v24784_v23, %v17533_v44 }
 0xe70   :  { %v11090_v17 = vadd.f32 %v17568_v62, %v10858_v63 }
 0xe83   :  { %v17636_v38 = vpop.f32.mrb[80].mxu1 }
 0xe84   :  { %v17637_v25 = vpop.f32.mrb[81].mxu1 }
 0xe85   :  { %v17638_v32 = vadd.f32 %v17637_v25, %v17636_v38 }
 0xe8a   :  { %v17601_v27 = vpop.f32.mrb[68].mxu0 }
 0xe8b   :  { %v17602_v35 = vpop.f32.mrb[69].mxu0 }
 0xe8c   :  { %v17603_v29 = vadd.f32 %v17602_v35, %v17601_v27 }
 0xe8e   :  { %v11228_v19 = vadd.f32 %v17603_v29, %v11090_v17 }
 0xe90   :  { %v11336_v46 = vadd.f32 %v17638_v32, %v11228_v19 }
 0xea4   :  { %v17706_v55 = vpop.f32.mrb[82].mxu1 }
 0xea5   :  { %v17707_v47 = vpop.f32.mrb[83].mxu1 }
 0xea6   :  { %v17708_v9 = vadd.f32 %v17707_v47, %v17706_v55 }
 0xeaa   :  { %v17671_v45 = vpop.f32.mrb[70].mxu0 }
 0xeab   :  { %v17672_v31 = vpop.f32.mrb[71].mxu0 }
 0xeac   :  { %v17673_v56 = vadd.f32 %v17672_v31, %v17671_v45 }
 0xeae   :  { %v11504_v37 = vadd.f32 %v17673_v56, %v11336_v46 }
 0xeb0   :  { %v11608_v11 = vadd.f32 %v17708_v9, %v11504_v37 }
 0xeb2   :  { %v14973_v30 = vmul.f32 -1.442695, %v11608_v11 }
 0xeb4   :  { %21983 = vpow2.f32 %v14973_v30 }
 0xeb5   :  { %21985 = vtanh.f32 %v11608_v11 }
 0xebe   :  { %v21984_v23 = vpop.eup %21983 }
 0xebf   :  { %v11615_v62 = vadd.f32 1.0, %v21984_v23  ;;  %v21986_v28 = vpop.eup %21985 }
 0xec1   :  { %21987 = vrcp.f32 %v11615_v62 }
 0xecb   :  { %v21988_v44 = vpop.eup %21987 }
 0xecc   :  { %v11618_v63 = vsel %vm23244_vm2, %v21986_v28, %v21988_v44 }
 0xecd   :  { %11621 = vrot.lane.b32.xlu0 %v11618_v63, %s22102_s19  ;;  %11619 = vrot.lane.b32.xlu1 %v11618_v63, %s22101_s18 }
 0xed1   :  { %11623 = vrot.lane.b32.xlu0 %v11618_v63, %s22100_s17  ;;  %10740 = vrot.lane.b32.xlu1 %v10735_v33, %s22100_s17 }
 0xedf   :  { %v10739_v17 = vpop.permute.xlu0 %10738  ;;  %v10737_v38 = vpop.permute.xlu1 %10736 }
 0xee0   :  { %v10743_v25 = vmul.f32 %v10739_v17, %v10735_v33  ;;  %v10742_v32 = vmul.f32 %v10737_v38, %v24794_v57  ;;  %v26843_v17 = vld [vmem:[#allocation78_spill] sm:$0xff]  ;;  %v26844_v38 = vld [vmem:[#allocation79_spill] sm:$0xff] }
 0xee2   :  { %v25039_v27 = vadd.f32 %v10743_v25, %v10742_v32  ;;  %v26845_v25 = vld [vmem:[#allocation86_spill] sm:$0xff]  ;;  %v26846_v32 = vld [vmem:[#allocation80_spill] sm:$0xff] }
 0xee4   :  { %21989 = vtanh.f32 %v25039_v27 }
 0xeee   :  { %v21990_v47 = vpop.eup %21989 }
 0xf3f   :  { %v11622_v35 = vpop.permute.xlu0 %11621  ;;  %v11620_v29 = vpop.permute.xlu1 %11619 }
 0xf40   :  { %v11626_v19 = vmul.f32 %v11622_v35, %v11618_v63  ;;  %v11625_v46 = vmul.f32 %v11620_v29, %v24798_v7  ;;  %v26847_v35 = vld [vmem:[#allocation81_spill] sm:$0xff] }
 0xf41   :  { %v26848_v29 = vld [vmem:[#allocation109_spill] sm:$0xff] }
 0xf42   :  { %v25043_v55 = vadd.f32 %v11626_v19, %v11625_v46  ;;  %v26849_v19 = vld [vmem:[#allocation110_spill] sm:$0xff]  ;;  %v26850_v46 = vld [vmem:[#allocation111_spill] sm:$0xff] }
 0xf43   :  { %v10741_v9 = vpop.permute.xlu1 %10740  ;;  %v11624_v11 = vpop.permute.xlu0 %11623 }
 0xf44   :  { %21991 = vtanh.f32 %v25043_v55  ;;  %v10746_v45 = vmul.f32 %v21990_v47, %v10741_v9  ;;  %v26851_v47 = vld [vmem:[#allocation112_spill] sm:$0xff]  ;;  %v26852_v9 = vld [vmem:[#allocation113_spill] sm:$0xff] }
 0xf46   :  { %v11726_v31 = vand.u32 4294901760, %v10746_v45 }
 0xf48   :  { %v11727_v33 = vsub.f32 %v10746_v45, %v11726_v31  ;;  %11967 = vmatprep.mubr.f32.mxu1 %v11726_v31  ;;  %v26853_v45 = vld [vmem:[#allocation114_spill] sm:$0xff] }
 0xf4a   :  { %v11728_v57 = vand.u32 4294901760, %v11727_v33 }
 0xf4c   :  { %v11729_v56 = vsub.f32 %v11727_v33, %v11728_v57 }
 0xf4e   :  { %v21992_v37 = vpop.eup %21991  ;;  %v11730_v30 = vand.u32 4294901760, %v11729_v56  ;;  %v26857_v56 = vld [vmem:[#allocation94_spill] sm:$0xff] }
 0xf4f   :  { %v11629_v23 = vmul.f32 %v21992_v37, %v11624_v11  ;;  %v26858_v37 = vld [vmem:[#allocation30_spill] sm:$0xff]  ;;  %v26859_v11 = vld [vmem:[#allocation95_spill] sm:$0xff] }
 0xf50   :  { %11731 = vmatprep.mubr.f32.mxu0 %v11730_v30  ;;  %v26860_v30 = vld [vmem:[#allocation31_spill] sm:$0xff] }
 0xf51   :  { %v25046_v62 = vand.u32 4294901760, %v11629_v23 }
 0xf53   :  { %v25049_v7 = vsub.f32 %v11629_v23, %v25046_v62  ;;  %11969 = vmatmul.mubr.f32.vlgmr.msra.gmra.mrb[84].mxu1 %v25046_v62  ;;  %v26861_v23 = vld [vmem:[#allocation32_spill] sm:$0xff] }
 0xf54   :  { %21246 = vmatpush3.bf16.msra.mxu1 %v22982_v61  ;;  %12211 = vmatprep.mubr.f32.mxu1 %v11728_v57  ;;  %v26856_v57 = vld [vmem:[#allocation29_spill] sm:$0xff] }
 0xf55   :  { %v25054_v28 = vand.u32 4294901760, %v25049_v7  ;;  %21248 = vmatprep.subr.bf16.mxu1 %v22986_v60 }
 0xf57   :  { %v11735_v44 = vsub.f32 %v25049_v7, %v25054_v28 }
 0xf58   :  { %21250 = vmatpush3.bf16.msra.mxu1 %v23016_v52 }
 0xf59   :  { %21252 = vmatprep.subr.bf16.mxu1 %v23038_v43  ;;  %v25061_v63 = vand.u32 4294901760, %v11735_v44  ;;  %v26862_v44 = vld [vmem:[#allocation33_spill] sm:$0xff] }
 0xf5b   :  { %11737 = vmatmul.mubr.f32.vlgmr.msra.gmra.mrb[72].mxu0 %v25061_v63 }
 0xf5c   :  { %21214 = vmatpush3.bf16.msra.mxu0 %v26388_v59  ;;  %21254 = vmatpush3.bf16.msra.mxu1 %v23054_v15 }
 0xf5d   :  { %12104 = vmatprep.mubr.f32.mxu0 %v11727_v33  ;;  %21216 = vmatprep.subr.bf16.mxu0 %v23451_v4  ;;  %v26855_v33 = vld [vmem:[#allocation115_spill] sm:$0xff] }
 0xf5e   :  { %21256 = vmatprep.subr.bf16.mxu1 %v23150_v13 }
 0xf60   :  { %21218 = vmatpush3.bf16.msra.mxu0 %v23458_v14  ;;  %21258 = vmatpush3.bf16.msra.mxu1 %v26252_v24 }
 0xf61   :  { %21220 = vmatprep.subr.bf16.mxu0 %v23464_v2  ;;  %21260 = vmatprep.subr.bf16.mxu1 %v23279_v40 }
 0xf64   :  { %21222 = vmatpush3.bf16.msra.mxu0 %v23471_v5  ;;  %21262 = vmatpush3.bf16.msra.mxu1 %v23291_v41 }
 0xf65   :  { %21224 = vmatprep.subr.bf16.mxu0 %v23385_v42  ;;  %21264 = vmatprep.subr.bf16.mxu1 %v23310_v12 }
 0xf68   :  { %21226 = vmatpush3.bf16.msra.mxu0 %v23389_v53  ;;  %21266 = vmatpush3.bf16.msra.mxu1 %v23325_v21 }
 0xf69   :  { %21228 = vmatprep.subr.bf16.mxu0 %v26389_v8  ;;  %21268 = vmatprep.subr.bf16.mxu1 %v23342_v0 }
 0xf6c   :  { %21230 = vmatpush3.bf16.msra.mxu0 %v26390_v54  ;;  %21270 = vmatpush3.bf16.msra.mxu1 %v23354_v36 }
 0xf6d   :  { %21232 = vmatprep.subr.bf16.mxu0 %v26391_v39  ;;  %21272 = vmatprep.subr.bf16.mxu1 %v23356_v34 }
 0xf70   :  { %21234 = vmatpush3.bf16.msra.mxu0 %v26392_v51  ;;  %21274 = vmatpush3.bf16.msra.mxu1 %v23366_v3 }
 0xf71   :  { %21236 = vmatprep.subr.bf16.mxu0 %v26393_v6  ;;  %21308 = vmatprep.subr.bf16.mxu1 %v22974_v10 }
 0xf73   :  { %12215 = vmatmul.mubr.f32.vlgmr.msra.gmra.mrb[86].mxu1 %v25054_v28 }
 0xf74   :  { %21238 = vmatpush3.bf16.msra.mxu0 %v26394_v58  ;;  %21310 = vmatpush3.bf16.msra.mxu1 %v22982_v61 }
 0xf75   :  { %12485 = vmatprep.mubr.f32.mxu1 %v11726_v31  ;;  %21240 = vmatprep.subr.bf16.mxu0 %v23417_v16 }
 0xf76   :  { %21312 = vmatprep.subr.bf16.mxu1 %v22986_v60 }
 0xf78   :  { %21242 = vmatpush3.bf16.msra.mxu0 %v23421_v22  ;;  %21314 = vmatpush3.bf16.msra.mxu1 %v23016_v52 }
 0xf79   :  { %21276 = vmatprep.subr.bf16.mxu0 %v23500_v18  ;;  %21316 = vmatprep.subr.bf16.mxu1 %v23038_v43 }
 0xf7b   :  { %12107 = vmatmul.mubr.f32.vlgmr.msra.gmra.mrb[74].mxu0 %v25049_v7 }
 0xf7c   :  { %21278 = vmatpush3.bf16.msra.mxu0 %v23509_v26  ;;  %12381 = vmatprep.mubr.f32.mxu0 %v11726_v31  ;;  %v26854_v31 = vld [vmem:[#allocation28_spill] sm:$0xff] }
 0xf7d   :  { %21318 = vmatpush3.bf16.msra.mxu1 %v23054_v15  ;;  %21280 = vmatprep.subr.bf16.mxu0 %v26843_v17 }
 0xf7e   :  { %21320 = vmatprep.subr.bf16.mxu1 %v23150_v13 }
 0xf80   :  { %21282 = vmatpush3.bf16.msra.mxu0 %v26844_v38  ;;  %v26889_v38 = vld [vmem:[#allocation65_spill] sm:$0xff] }
 0xf81   :  { %21322 = vmatpush3.bf16.msra.mxu1 %v26252_v24  ;;  %21284 = vmatprep.subr.bf16.mxu0 %v26845_v25  ;;  %v26886_v25 = vld [vmem:[#allocation62_spill] sm:$0xff] }
 0xf82   :  { %21324 = vmatprep.subr.bf16.mxu1 %v23279_v40 }
 0xf84   :  { %21286 = vmatpush3.bf16.msra.mxu0 %v26846_v32  ;;  %v26884_v32 = vld [vmem:[#allocation27_spill] sm:$0xff] }
 0xf85   :  { %21326 = vmatpush3.bf16.msra.mxu1 %v23291_v41  ;;  %21288 = vmatprep.subr.bf16.mxu0 %v26847_v35  ;;  %v26880_v35 = vld [vmem:[#allocation60_spill] sm:$0xff] }
 0xf86   :  { %21328 = vmatprep.subr.bf16.mxu1 %v23310_v12 }
 0xf88   :  { %21290 = vmatpush3.bf16.msra.mxu0 %v26848_v29  ;;  %v26879_v29 = vld [vmem:[#allocation23_spill] sm:$0xff] }
 0xf89   :  { %21330 = vmatpush3.bf16.msra.mxu1 %v23325_v21  ;;  %21292 = vmatprep.subr.bf16.mxu0 %v26849_v19  ;;  %v26878_v19 = vld [vmem:[#allocation59_spill] sm:$0xff] }
 0xf8a   :  { %21332 = vmatprep.subr.bf16.mxu1 %v23342_v0 }
 0xf8c   :  { %21294 = vmatpush3.bf16.msra.mxu0 %v26850_v46  ;;  %v26876_v46 = vld [vmem:[#allocation42_spill] sm:$0xff] }
 0xf8d   :  { %21334 = vmatpush3.bf16.msra.mxu1 %v23354_v36  ;;  %21296 = vmatprep.subr.bf16.mxu0 %v26851_v47  ;;  %v26875_v47 = vld [vmem:[#allocation20_spill] sm:$0xff] }
 0xf8e   :  { %21336 = vmatprep.subr.bf16.mxu1 %v23356_v34 }
 0xf90   :  { %21298 = vmatpush3.bf16.msra.mxu0 %v26852_v9 }
 0xf91   :  { %21338 = vmatpush3.bf16.msra.mxu1 %v23366_v3  ;;  %21300 = vmatprep.subr.bf16.mxu0 %v26853_v45  ;;  %v26873_v45 = vld [vmem:[#allocation19_spill] sm:$0xff] }
 0xf92   :  { %21372 = vmatprep.subr.bf16.mxu1 %v26854_v31  ;;  %v26863_v31 = vld [vmem:[#allocation34_spill] sm:$0xff] }
 0xf94   :  { %12487 = vmatmul.mubr.f32.vlgmr.msra.gmra.mrb[88].mxu1 %v25046_v62  ;;  %21302 = vmatpush3.bf16.msra.mxu0 %v26855_v33  ;;  %v26871_v33 = vld [vmem:[#allocation18_spill] sm:$0xff] }
 0xf95   :  { %21374 = vmatpush3.bf16.msra.mxu1 %v26856_v57  ;;  %12850 = vmatprep.mubr.f32.mxu1 %v25046_v62  ;;  %v26864_v57 = vld [vmem:[#allocation36_spill] sm:$0xff] }
 0xf96   :  { %21304 = vmatprep.subr.bf16.mxu0 %v26857_v56  ;;  %21376 = vmatprep.subr.bf16.mxu1 %v26858_v37  ;;  %v26865_v37 = vld [vmem:[#allocation15_spill] sm:$0xff] }
 0xf97   :  { %v26870_v56 = vld [vmem:[#allocation39_spill] sm:$0xff] }
 0xf98   :  { %21306 = vmatpush3.bf16.msra.mxu0 %v26859_v11  ;;  %v26868_v11 = vld [vmem:[#allocation38_spill] sm:$0xff] }
 0xf99   :  { %21378 = vmatpush3.bf16.msra.mxu1 %v26860_v30  ;;  %21340 = vmatprep.subr.bf16.mxu0 %v26307_v1  ;;  %v26866_v30 = vld [vmem:[#allocation37_spill] sm:$0xff] }
 0xf9a   :  { %21380 = vmatprep.subr.bf16.mxu1 %v26861_v23  ;;  %v26867_v23 = vld [vmem:[#allocation16_spill] sm:$0xff] }
 0xf9b   :  { %12383 = vmatmul.mubr.f32.vlgmr.msra.gmra.mrb[76].mxu0 %v25046_v62 }
 0xf9c   :  { %21342 = vmatpush3.bf16.msra.mxu0 %v26309_v48  ;;  %12614 = vmatprep.mubr.f32.mxu0 %v25061_v63  ;;  %v14975_v63 = vld [vmem:[%s25638_s0 + $0x38] sm:$0xff] }
 0xf9d   :  { %21382 = vmatpush3.bf16.msra.mxu1 %v26862_v44  ;;  %21344 = vmatprep.subr.bf16.mxu0 %v26312_v49  ;;  %v26869_v44 = vld [vmem:[#allocation17_spill] sm:$0xff] }
 0xf9e   :  { %21384 = vmatprep.subr.bf16.mxu1 %v26863_v31  ;;  %v25149_v31 = vand.u32 4294901760, %v14975_v63 }
 0xfa0   :  { %21346 = vmatpush3.bf16.msra.mxu0 %v26405_v50  ;;  %v12616_v9 = vsub.f32 %v14975_v63, %v25149_v31  ;;  %v26882_v63 = vld [vmem:[#allocation25_spill] sm:$0xff] }
 0xfa1   :  { %21386 = vmatpush3.bf16.msra.mxu1 %v26864_v57  ;;  %21348 = vmatprep.subr.bf16.mxu0 %v26865_v37  ;;  %v26872_v57 = vld [vmem:[#allocation40_spill] sm:$0xff] }
 0xfa2   :  { %21388 = vmatprep.subr.bf16.mxu1 %v26866_v30  ;;  %v26874_v30 = vld [vmem:[#allocation41_spill] sm:$0xff] }
 0xfa4   :  { %21350 = vmatpush3.bf16.msra.mxu0 %v26867_v23 }
 0xfa5   :  { %21390 = vmatpush3.bf16.msra.mxu1 %v26868_v11  ;;  %21352 = vmatprep.subr.bf16.mxu0 %v26869_v44  ;;  %v26877_v11 = vld [vmem:[#allocation22_spill] sm:$0xff] }
 0xfa6   :  { %21392 = vmatprep.subr.bf16.mxu1 %v26870_v56  ;;  %v12617_v56 = vand.u32 4294901760, %v12616_v9 }
 0xfa8   :  { %21354 = vmatpush3.bf16.msra.mxu0 %v26871_v33 }
 0xfa9   :  { %21394 = vmatpush3.bf16.msra.mxu1 %v26872_v57  ;;  %21356 = vmatprep.subr.bf16.mxu0 %v26873_v45  ;;  %v26881_v57 = vld [vmem:[#allocation24_spill] sm:$0xff] }
 0xfaa   :  { %21396 = vmatprep.subr.bf16.mxu1 %v26874_v30  ;;  %v12618_v30 = vsub.f32 %v12616_v9, %v12617_v56 }
 0xfac   :  { %21358 = vmatpush3.bf16.msra.mxu0 %v26875_v47 }
 0xfad   :  { %21398 = vmatpush3.bf16.msra.mxu1 %v26876_v46  ;;  %21360 = vmatprep.subr.bf16.mxu0 %v26877_v11  ;;  %v26883_v46 = vld [vmem:[#allocation26_spill] sm:$0xff] }
 0xfae   :  { %21400 = vmatprep.subr.bf16.mxu1 %v26878_v19  ;;  %v12619_v19 = vand.u32 4294901760, %v12618_v30  ;;  %v26888_v30 = vld [vmem:[#allocation64_spill] sm:$0xff] }
 0xfb0   :  { %21362 = vmatpush3.bf16.msra.mxu0 %v26879_v29 }
 0xfb1   :  { %21402 = vmatpush3.bf16.msra.mxu1 %v26880_v35  ;;  %21364 = vmatprep.subr.bf16.mxu0 %v26881_v57  ;;  %v26885_v35 = vld [vmem:[#allocation61_spill] sm:$0xff] }
 0xfb2   :  { %21436 = vmatprep.subr.bf16.mxu1 %v26307_v1 }
 0xfb4   :  { %12852 = vmatmul.mubr.f32.vlgmr.msra.gmra.mrb[90].mxu1 %v25149_v31  ;;  %21366 = vmatpush3.bf16.msra.mxu0 %v26882_v63 }
 0xfb5   :  { %21438 = vmatpush3.bf16.msra.mxu1 %v26309_v48  ;;  %13094 = vmatprep.mubr.f32.mxu1 %v25054_v28  ;;  %v26887_v28 = vld [vmem:[#allocation63_spill] sm:$0xff] }
 0xfb6   :  { %21368 = vmatprep.subr.bf16.mxu0 %v26883_v46  ;;  %21440 = vmatprep.subr.bf16.mxu1 %v26312_v49 }
 0xfb8   :  { %21370 = vmatpush3.bf16.msra.mxu0 %v26884_v32 }
 0xfb9   :  { %21442 = vmatpush3.bf16.msra.mxu1 %v26405_v50  ;;  %21404 = vmatprep.subr.bf16.mxu0 %v26885_v35  ;;  %v26890_v35 = vld [vmem:[#allocation66_spill] sm:$0xff] }
 0xfba   :  { %21444 = vmatprep.subr.bf16.mxu1 %v26865_v37 }
 0xfbb   :  { %12620 = vmatmul.mubr.f32.vlgmr.msra.gmra.mrb[78].mxu0 %v12619_v19  ;;  %v26893_v19 = vld [vmem:[#allocation69_spill] sm:$0xff] }
 0xfbc   :  { %21406 = vmatpush3.bf16.msra.mxu0 %v26886_v25  ;;  %12987 = vmatprep.mubr.f32.mxu0 %v25049_v7  ;;  %v26891_v25 = vld [vmem:[#allocation67_spill] sm:$0xff]  ;;  %v26892_v7 = vld [vmem:[#allocation68_spill] sm:$0xff] }
 0xfbd   :  { %21446 = vmatpush3.bf16.msra.mxu1 %v26867_v23  ;;  %21408 = vmatprep.subr.bf16.mxu0 %v26887_v28  ;;  %v26894_v28 = vld [vmem:[#allocation70_spill] sm:$0xff] }
 0xfbe   :  { %21448 = vmatprep.subr.bf16.mxu1 %v26869_v44 }
 0xfc0   :  { %21410 = vmatpush3.bf16.msra.mxu0 %v26888_v30  ;;  %v26896_v30 = vld [vmem:[#allocation72_spill] sm:$0xff] }
 0xfc1   :  { %21450 = vmatpush3.bf16.msra.mxu1 %v26871_v33  ;;  %21412 = vmatprep.subr.bf16.mxu0 %v26889_v38  ;;  %v26895_v38 = vld [vmem:[#allocation71_spill] sm:$0xff] }
 0xfc2   :  { %21452 = vmatprep.subr.bf16.mxu1 %v26873_v45 }
 0xfc4   :  { %21414 = vmatpush3.bf16.msra.mxu0 %v26890_v35  ;;  %v26897_v35 = vld [vmem:[#allocation73_spill] sm:$0xff] }
 0xfc5   :  { %21454 = vmatpush3.bf16.msra.mxu1 %v26875_v47  ;;  %21416 = vmatprep.subr.bf16.mxu0 %v26891_v25  ;;  %v26898_v25 = vld [vmem:[#allocation35_spill] sm:$0xff] }
 0xfc6   :  { %21456 = vmatprep.subr.bf16.mxu1 %v26877_v11 }
 0xfc8   :  { %21418 = vmatpush3.bf16.msra.mxu0 %v26892_v7  ;;  %v26899_v7 = vld [vmem:[#allocation74_spill] sm:$0xff] }
 0xfc9   :  { %21458 = vmatpush3.bf16.msra.mxu1 %v26879_v29  ;;  %21420 = vmatprep.subr.bf16.mxu0 %v26893_v19  ;;  %v26900_v19 = vld [vmem:[#allocation75_spill] sm:$0xff] }
 0xfca   :  { %21460 = vmatprep.subr.bf16.mxu1 %v26881_v57 }
 0xfcc   :  { %21422 = vmatpush3.bf16.msra.mxu0 %v26894_v28  ;;  %v26901_v28 = vld [vmem:[#allocation43_spill] sm:$0xff] }
 0xfcd   :  { %21462 = vmatpush3.bf16.msra.mxu1 %v26882_v63  ;;  %21424 = vmatprep.subr.bf16.mxu0 %v26895_v38  ;;  %v26918_v38 = vld [vmem:[#allocation77_spill] sm:$0xff] }
 0xfce   :  { %21464 = vmatprep.subr.bf16.mxu1 %v26883_v46 }
 0xfd0   :  { %21426 = vmatpush3.bf16.msra.mxu0 %v26896_v30  ;;  %v26922_v30 = vld [vmem:[#allocation84_spill] sm:$0xff] }
 0xfd1   :  { %21466 = vmatpush3.bf16.msra.mxu1 %v26884_v32  ;;  %21428 = vmatprep.subr.bf16.mxu0 %v26897_v35  ;;  %v26923_v35 = vld [vmem:[#allocation85_spill] sm:$0xff] }
 0xfd2   :  { %21500 = vmatprep.subr.bf16.mxu1 %v26307_v1  ;;  %v26902_v1 = vld [vmem:[#allocation44_spill] sm:$0xff] }
 0xfd4   :  { %13098 = vmatmul.mubr.f32.vlgmr.msra.gmra.mrb[92].mxu1 %v12617_v56  ;;  %21430 = vmatpush3.bf16.msra.mxu0 %v26898_v25  ;;  %v26903_v56 = vld [vmem:[#allocation45_spill] sm:$0xff]  ;;  %v26924_v25 = vld [vmem:[#allocation87_spill] sm:$0xff] }
 0xfd5   :  { %13368 = vmatprep.mubr.f32.mxu1 %v25046_v62  ;;  %21432 = vmatprep.subr.bf16.mxu0 %v26899_v7  ;;  %v26925_v7 = vld [vmem:[#allocation88_spill] sm:$0xff] }
 0xfd6   :  { %21502 = vmatpush3.bf16.msra.mxu1 %v26309_v48  ;;  %v26904_v48 = vld [vmem:[#allocation46_spill] sm:$0xff] }
 0xfd7   :  { %21504 = vmatprep.subr.bf16.mxu1 %v26312_v49  ;;  %v26905_v49 = vld [vmem:[#allocation47_spill] sm:$0xff] }
 0xfd8   :  { %21434 = vmatpush3.bf16.msra.mxu0 %v26900_v19  ;;  %v26927_v19 = vld [vmem:[#allocation91_spill] sm:$0xff] }
 0xfd9   :  { %21468 = vmatprep.subr.bf16.mxu0 %v26901_v28  ;;  %v26928_v28 = vld [vmem:[#allocation92_spill] sm:$0xff] }
 0xfda   :  { %21506 = vmatpush3.bf16.msra.mxu1 %v26405_v50  ;;  %v26906_v50 = vld [vmem:[#allocation48_spill] sm:$0xff] }
 0xfdb   :  { %12990 = vmatmul.mubr.f32.vlgmr.msra.gmra.mrb[80].mxu0 %v12616_v9  ;;  %21508 = vmatprep.subr.bf16.mxu1 %v26865_v37  ;;  %v26907_v9 = vld [vmem:[#allocation49_spill] sm:$0xff]  ;;  %v26909_v37 = vld [vmem:[#allocation51_spill] sm:$0xff] }
 0xfdc   :  { %21470 = vmatpush3.bf16.msra.mxu0 %v26902_v1  ;;  %13264 = vmatprep.mubr.f32.mxu0 %v25046_v62  ;;  %v26908_v62 = vld [vmem:[#allocation50_spill] sm:$0xff]  ;;  %v26929_v1 = vld [vmem:[#allocation93_spill] sm:$0xff] }
 0xfdd   :  { %21472 = vmatprep.subr.bf16.mxu0 %v26903_v56  ;;  %v26930_v56 = vld [vmem:[#allocation96_spill] sm:$0xff] }
 0xfde   :  { %21510 = vmatpush3.bf16.msra.mxu1 %v26867_v23  ;;  %v26910_v23 = vld [vmem:[#allocation52_spill] sm:$0xff] }
 0xfdf   :  { %21512 = vmatprep.subr.bf16.mxu1 %v26869_v44  ;;  %v26914_v44 = vld [vmem:[#allocation21_spill] sm:$0xff] }
 0xfe0   :  { %21474 = vmatpush3.bf16.msra.mxu0 %v26904_v48  ;;  %v26931_v48 = vld [vmem:[#allocation97_spill] sm:$0xff] }
 0xfe1   :  { %21476 = vmatprep.subr.bf16.mxu0 %v26905_v49  ;;  %v26932_v49 = vld [vmem:[#allocation98_spill] sm:$0xff] }
 0xfe2   :  { %21514 = vmatpush3.bf16.msra.mxu1 %v26871_v33  ;;  %v26911_v33 = vld [vmem:[#allocation53_spill] sm:$0xff] }
 0xfe3   :  { %21516 = vmatprep.subr.bf16.mxu1 %v26873_v45  ;;  %v26912_v45 = vld [vmem:[#allocation54_spill] sm:$0xff] }
 0xfe4   :  { %21478 = vmatpush3.bf16.msra.mxu0 %v26906_v50  ;;  %v26933_v50 = vld [vmem:[#allocation99_spill] sm:$0xff] }
 0xfe5   :  { %21480 = vmatprep.subr.bf16.mxu0 %v26907_v9 }
 0xfe6   :  { %21518 = vmatpush3.bf16.msra.mxu1 %v26875_v47  ;;  %v26913_v47 = vld [vmem:[#allocation55_spill] sm:$0xff] }
 0xfe7   :  { %21520 = vmatprep.subr.bf16.mxu1 %v26877_v11  ;;  %v26915_v11 = vld [vmem:[#allocation56_spill] sm:$0xff] }
 0xfe8   :  { %21482 = vmatpush3.bf16.msra.mxu0 %v26908_v62 }
 0xfe9   :  { %21484 = vmatprep.subr.bf16.mxu0 %v26909_v37 }
 0xfea   :  { %21522 = vmatpush3.bf16.msra.mxu1 %v26879_v29  ;;  %v26916_v29 = vld [vmem:[#allocation57_spill] sm:$0xff] }
 0xfeb   :  { %21524 = vmatprep.subr.bf16.mxu1 %v26881_v57  ;;  %v26917_v57 = vld [vmem:[#allocation76_spill] sm:$0xff] }
 0xfec   :  { %21486 = vmatpush3.bf16.msra.mxu0 %v26910_v23 }
 0xfed   :  { %21488 = vmatprep.subr.bf16.mxu0 %v26911_v33 }
 0xfee   :  { %21526 = vmatpush3.bf16.msra.mxu1 %v26882_v63  ;;  %v26919_v63 = vld [vmem:[#allocation58_spill] sm:$0xff] }
 0xfef   :  { %21528 = vmatprep.subr.bf16.mxu1 %v26883_v46  ;;  %v26920_v46 = vld [vmem:[#allocation82_spill] sm:$0xff] }
 0xff0   :  { %21490 = vmatpush3.bf16.msra.mxu0 %v26912_v45 }
 0xff1   :  { %21492 = vmatprep.subr.bf16.mxu0 %v26913_v47  ;;  %v25274_v47 = vld [vmem:[%s25642_s4] ss:$0 sm:$0xff] }
 0xff2   :  { %21530 = vmatpush3.bf16.msra.mxu1 %v26884_v32  ;;  %v26921_v32 = vld [vmem:[#allocation83_spill] sm:$0xff] }
 0xff3   :  { %21564 = vmatprep.subr.bf16.mxu1 %v26914_v44 }
 0xff4   :  { %21494 = vmatpush3.bf16.msra.mxu0 %v26915_v11 }
 0xff5   :  { %21496 = vmatprep.subr.bf16.mxu0 %v26916_v29  ;;  %13370 = vmatmul.mubr.f32.vlgmr.msra.gmra.mrb[94].mxu1 %v25149_v31 }
 0xff6   :  { %21566 = vmatpush3.bf16.msra.mxu1 %v26917_v57 }
 0xff7   :  { %21568 = vmatprep.subr.bf16.mxu1 %v26918_v38 }
 0xff8   :  { %21498 = vmatpush3.bf16.msra.mxu0 %v26919_v63 }
 0xff9   :  { %21532 = vmatprep.subr.bf16.mxu0 %v22974_v10 }
 0xffa   :  { %21570 = vmatpush3.bf16.msra.mxu1 %v26920_v46 }
 0xffb   :  { %13266 = vmatmul.mubr.f32.vlgmr.msra.gmra.mrb[82].mxu0 %v25149_v31  ;;  %21572 = vmatprep.subr.bf16.mxu1 %v26921_v32  ;;  %v26926_v31 = vld [vmem:[#allocation89_spill] sm:$0xff] }
 0xffc   :  { %21534 = vmatpush3.bf16.msra.mxu0 %v22982_v61 }
 0xffd   :  { %21536 = vmatprep.subr.bf16.mxu0 %v22986_v60 }
 0xffe   :  { %21574 = vmatpush3.bf16.msra.mxu1 %v26922_v30 }
 0xfff   :  { %21576 = vmatprep.subr.bf16.mxu1 %v26923_v35 }
0x1000   :  { %21538 = vmatpush3.bf16.msra.mxu0 %v23016_v52 }
0x1001   :  { %21540 = vmatprep.subr.bf16.mxu0 %v23038_v43 }
0x1002   :  { %21578 = vmatpush3.bf16.msra.mxu1 %v26924_v25 }
0x1003   :  { %21580 = vmatprep.subr.bf16.mxu1 %v26925_v7 }
0x1004   :  { %21542 = vmatpush3.bf16.msra.mxu0 %v23054_v15 }
0x1005   :  { %21544 = vmatprep.subr.bf16.mxu0 %v23150_v13 }
0x1006   :  { %21582 = vmatpush3.bf16.msra.mxu1 %v26926_v31 }
0x1007   :  { %21584 = vmatprep.subr.bf16.mxu1 %v26927_v19 }
0x1008   :  { %21546 = vmatpush3.bf16.msra.mxu0 %v26252_v24 }
0x1009   :  { %21548 = vmatprep.subr.bf16.mxu0 %v23279_v40 }
0x100a   :  { %21586 = vmatpush3.bf16.msra.mxu1 %v26928_v28 }
0x100b   :  { %21588 = vmatprep.subr.bf16.mxu1 %v26929_v1 }
0x100c   :  { %21550 = vmatpush3.bf16.msra.mxu0 %v23291_v41 }
0x100d   :  { %21552 = vmatprep.subr.bf16.mxu0 %v23310_v12 }
0x100e   :  { %21590 = vmatpush3.bf16.msra.mxu1 %v26930_v56 }
0x100f   :  { %21592 = vmatprep.subr.bf16.mxu1 %v26931_v48 }
0x1010   :  { %21554 = vmatpush3.bf16.msra.mxu0 %v23325_v21 }
0x1011   :  { %21556 = vmatprep.subr.bf16.mxu0 %v23342_v0 }
0x1012   :  { %21594 = vmatpush3.bf16.msra.mxu1 %v26932_v49 }
0x1013   :  { %21628 = vmatprep.subr.bf16.mxu1 %v22974_v10 }
0x1014   :  { %21558 = vmatpush3.bf16.msra.mxu0 %v23354_v36 }
0x1015   :  { %21560 = vmatprep.subr.bf16.mxu0 %v23356_v34 }
0x1018   :  { %21562 = vmatpush3.bf16.msra.mxu0 %v23366_v3 }
0x1019   :  { %21596 = vmatprep.subr.bf16.mxu0 %v26933_v50 }
0x1026   :  { %v17776_v9 = vpop.f32.mrb[84].mxu1 }
0x1027   :  { %v17777_v62 = vpop.f32.mrb[85].mxu1 }
0x1028   :  { %v17778_v37 = vadd.f32 %v17777_v62, %v17776_v9 }
0x102e   :  { %v17741_v23 = vpop.f32.mrb[72].mxu0 }
0x102f   :  { %v17742_v33 = vpop.f32.mrb[73].mxu0 }
0x1030   :  { %v17743_v45 = vadd.f32 %v17742_v33, %v17741_v23 }
0x1032   :  { %v11739_v44 = vadd.f32 %v25274_v47, %v17743_v45 }
0x1034   :  { %v11971_v11 = vadd.f32 %v17778_v37, %v11739_v44 }
0x1046   :  { %v17846_v29 = vpop.f32.mrb[86].mxu1 }
0x1047   :  { %v17847_v57 = vpop.f32.mrb[87].mxu1 }
0x1048   :  { %v17848_v38 = vadd.f32 %v17847_v57, %v17846_v29 }
0x104e   :  { %v17811_v63 = vpop.f32.mrb[74].mxu0 }
0x104f   :  { %v17812_v46 = vpop.f32.mrb[75].mxu0 }
0x1050   :  { %v17813_v32 = vadd.f32 %v17812_v46, %v17811_v63 }
0x1052   :  { %v12109_v30 = vadd.f32 %v17813_v32, %v11971_v11 }
0x1054   :  { %v12217_v35 = vadd.f32 %v17848_v38, %v12109_v30  ;;  %v22023_v38 = vld [vmem:[%s25640_s2] ss:$0 sm:$0xff] }
0x1067   :  { %v17916_v25 = vpop.f32.mrb[88].mxu1 }
0x1068   :  { %v17917_v7 = vpop.f32.mrb[89].mxu1 }
0x1069   :  { %v17918_v31 = vadd.f32 %v17917_v7, %v17916_v25 }
0x106e   :  { %v17881_v19 = vpop.f32.mrb[76].mxu0 }
0x106f   :  { %v17882_v28 = vpop.f32.mrb[77].mxu0 }
0x1070   :  { %v17883_v1 = vadd.f32 %v17882_v28, %v17881_v19 }
0x1072   :  { %v12385_v56 = vadd.f32 %v17883_v1, %v12217_v35 }
0x1074   :  { %v12489_v48 = vadd.f32 %v17918_v31, %v12385_v56 }
0x1076   :  { %v14974_v49 = vmul.f32 -1.442695, %v12489_v48 }
0x1078   :  { %21993 = vpow2.f32 %v14974_v49 }
0x1079   :  { %21995 = vtanh.f32 %v12489_v48 }
0x1082   :  { %v21994_v50 = vpop.eup %21993 }
0x1083   :  { %v12496_v9 = vadd.f32 1.0, %v21994_v50  ;;  %v21996_v33 = vpop.eup %21995 }
0x1085   :  { %21997 = vrcp.f32 %v12496_v9 }
0x1087   :  { %v17986_v62 = vpop.f32.mrb[90].mxu1 }
0x1088   :  { %v17987_v37 = vpop.f32.mrb[91].mxu1 }
0x1089   :  { %v17988_v23 = vadd.f32 %v17987_v37, %v17986_v62 }
0x108e   :  { %v17951_v45 = vpop.f32.mrb[78].mxu0 }
0x108f   :  { %v21998_v44 = vpop.eup %21997  ;;  %v17952_v11 = vpop.f32.mrb[79].mxu0 }
0x1090   :  { %v17953_v29 = vadd.f32 %v17952_v11, %v17951_v45  ;;  %v12499_v57 = vsel %vm23244_vm2, %v21996_v33, %v21998_v44 }
0x1091   :  { %12502 = vrot.lane.b32.xlu0 %v12499_v57, %s22102_s19  ;;  %12500 = vrot.lane.b32.xlu1 %v12499_v57, %s22101_s18 }
0x1092   :  { %v12622_v63 = vadd.f32 %v22023_v38, %v17953_v29 }
0x1094   :  { %v12854_v46 = vadd.f32 %v17988_v23, %v12622_v63 }
0x10a7   :  { %v18056_v32 = vpop.f32.mrb[92].mxu1 }
0x10a8   :  { %v18057_v30 = vpop.f32.mrb[93].mxu1 }
0x10a9   :  { %v18058_v35 = vadd.f32 %v18057_v30, %v18056_v32 }
0x10ae   :  { %v18021_v25 = vpop.f32.mrb[80].mxu0 }
0x10af   :  { %v18022_v7 = vpop.f32.mrb[81].mxu0 }
0x10b0   :  { %v18023_v31 = vadd.f32 %v18022_v7, %v18021_v25 }
0x10b2   :  { %v12992_v19 = vadd.f32 %v18023_v31, %v12854_v46 }
0x10b4   :  { %v13100_v28 = vadd.f32 %v18058_v35, %v12992_v19 }
0x10c8   :  { %v18126_v1 = vpop.f32.mrb[94].mxu1 }
0x10c9   :  { %v18127_v56 = vpop.f32.mrb[95].mxu1 }
0x10ca   :  { %v18128_v48 = vadd.f32 %v18127_v56, %v18126_v1 }
0x10ce   :  { %v18091_v49 = vpop.f32.mrb[82].mxu0 }
0x10cf   :  { %v18092_v50 = vpop.f32.mrb[83].mxu0 }
0x10d0   :  { %v18093_v9 = vadd.f32 %v18092_v50, %v18091_v49 }
0x10d2   :  { %v13268_v62 = vadd.f32 %v18093_v9, %v13100_v28 }
0x10d4   :  { %v13372_v37 = vadd.f32 %v18128_v48, %v13268_v62 }
0x10d6   :  { %v14976_v33 = vmul.f32 -1.442695, %v13372_v37 }
0x10d8   :  { %21999 = vpow2.f32 %v14976_v33 }
0x10d9   :  { %22001 = vtanh.f32 %v13372_v37 }
0x10e2   :  { %v22000_v45 = vpop.eup %21999 }
0x10e3   :  { %v13379_v23 = vadd.f32 1.0, %v22000_v45  ;;  %v22002_v44 = vpop.eup %22001 }
0x10e5   :  { %22003 = vrcp.f32 %v13379_v23 }
0x10ef   :  { %v22004_v11 = vpop.eup %22003 }
0x10f0   :  { %v13382_v29 = vsel %vm23244_vm2, %v22002_v44, %v22004_v11 }
0x10f1   :  { %13385 = vrot.lane.b32.xlu0 %v13382_v29, %s22102_s19  ;;  %13383 = vrot.lane.b32.xlu1 %v13382_v29, %s22101_s18 }
0x10f5   :  { %13387 = vrot.lane.b32.xlu0 %v13382_v29, %s22100_s17  ;;  %12504 = vrot.lane.b32.xlu1 %v12499_v57, %s22100_s17 }
0x1103   :  { %v12503_v38 = vpop.permute.xlu0 %12502  ;;  %v12501_v63 = vpop.permute.xlu1 %12500 }
0x1104   :  { %v12507_v46 = vmul.f32 %v12503_v38, %v12499_v57  ;;  %v12506_v32 = vmul.f32 %v12501_v63, %v25039_v27 }
0x1106   :  { %v25291_v30 = vadd.f32 %v12507_v46, %v12506_v32 }
0x1108   :  { %22005 = vtanh.f32 %v25291_v30 }
0x1112   :  { %v22006_v28 = vpop.eup %22005 }
0x1163   :  { %v13386_v35 = vpop.permute.xlu0 %13385  ;;  %v13384_v25 = vpop.permute.xlu1 %13383 }
0x1164   :  { %v13390_v7 = vmul.f32 %v13386_v35, %v13382_v29  ;;  %v13389_v31 = vmul.f32 %v13384_v25, %v25043_v55 }
0x1166   :  { %v13391_v19 = vadd.f32 %v13390_v7, %v13389_v31 }
0x1167   :  { %v12505_v1 = vpop.permute.xlu1 %12504  ;;  %v13388_v9 = vpop.permute.xlu0 %13387 }
0x1168   :  { %22007 = vtanh.f32 %v13391_v19  ;;  %v12510_v56 = vmul.f32 %v22006_v28, %v12505_v1 }
0x116a   :  { %v13490_v48 = vand.u32 4294901760, %v12510_v56 }
0x116c   :  { %v13491_v49 = vsub.f32 %v12510_v56, %v13490_v48  ;;  %13731 = vmatprep.mubr.f32.mxu1 %v13490_v48 }
0x116e   :  { %v13492_v57 = vand.u32 4294901760, %v13491_v49 }
0x1170   :  { %v13493_v50 = vsub.f32 %v13491_v49, %v13492_v57 }
0x1172   :  { %v22008_v27 = vpop.eup %22007  ;;  %v13494_v62 = vand.u32 4294901760, %v13493_v50 }
0x1173   :  { %v13393_v37 = vmul.f32 %v22008_v27, %v13388_v9 }
0x1174   :  { %13495 = vmatprep.mubr.f32.mxu0 %v13494_v62  ;;  %v14286_v62 = vld [vmem:[#allocation8 + $0x20] sm:$0xff] }
0x1175   :  { %v25295_v33 = vand.u32 4294901760, %v13393_v37 }
0x1177   :  { %v13497_v45 = vsub.f32 %v13393_v37, %v25295_v33  ;;  %13733 = vmatmul.mubr.f32.vlgmr.msra.gmra.mrb[96].mxu1 %v25295_v33  ;;  %v14287_v37 = vld [vmem:[#allocation8 + $0x28] sm:$0xff] }
0x1178   :  { %21630 = vmatpush3.bf16.msra.mxu1 %v22982_v61  ;;  %13975 = vmatprep.mubr.f32.mxu1 %v13492_v57 }
0x1179   :  { %v13498_v55 = vand.u32 4294901760, %v13497_v45  ;;  %21632 = vmatprep.subr.bf16.mxu1 %v22986_v60 }
0x117b   :  { %v13499_v23 = vsub.f32 %v13497_v45, %v13498_v55 }
0x117c   :  { %21634 = vmatpush3.bf16.msra.mxu1 %v23016_v52 }
0x117d   :  { %21636 = vmatprep.subr.bf16.mxu1 %v23038_v43  ;;  %v13500_v44 = vand.u32 4294901760, %v13499_v23  ;;  %v14288_v23 = vld [vmem:[#allocation8 + $0x30] sm:$0xff] }
0x117f   :  { %13501 = vmatmul.mubr.f32.vlgmr.msra.gmra.mrb[84].mxu0 %v13500_v44  ;;  %v14289_v44 = vld [vmem:[#allocation8 + $0x38] sm:$0xff] }
0x1180   :  { %21598 = vmatpush3.bf16.msra.mxu0 %v26388_v59  ;;  %21638 = vmatpush3.bf16.msra.mxu1 %v23054_v15 }
0x1181   :  { %13868 = vmatprep.mubr.f32.mxu0 %v13491_v49  ;;  %21600 = vmatprep.subr.bf16.mxu0 %v23451_v4 }
0x1182   :  { %21640 = vmatprep.subr.bf16.mxu1 %v23150_v13 }
0x1184   :  { %21602 = vmatpush3.bf16.msra.mxu0 %v23458_v14  ;;  %21642 = vmatpush3.bf16.msra.mxu1 %v26252_v24 }
0x1185   :  { %21604 = vmatprep.subr.bf16.mxu0 %v23464_v2  ;;  %21644 = vmatprep.subr.bf16.mxu1 %v23279_v40 }
0x1188   :  { %21606 = vmatpush3.bf16.msra.mxu0 %v23471_v5  ;;  %21646 = vmatpush3.bf16.msra.mxu1 %v23291_v41  ;;  %v26945_v5 = vld [vmem:[#allocation94_spill] sm:$0xff] }
0x1189   :  { %21608 = vmatprep.subr.bf16.mxu0 %v23385_v42  ;;  %21648 = vmatprep.subr.bf16.mxu1 %v23310_v12  ;;  %v14284_v42 = vld [vmem:[#allocation8 + $0x10] sm:$0xff] }
0x118c   :  { %21610 = vmatpush3.bf16.msra.mxu0 %v23389_v53  ;;  %21650 = vmatpush3.bf16.msra.mxu1 %v23325_v21 }
0x118d   :  { %21612 = vmatprep.subr.bf16.mxu0 %v26389_v8  ;;  %21652 = vmatprep.subr.bf16.mxu1 %v23342_v0 }
0x1190   :  { %21614 = vmatpush3.bf16.msra.mxu0 %v26390_v54  ;;  %21654 = vmatpush3.bf16.msra.mxu1 %v23354_v36 }
0x1191   :  { %21616 = vmatprep.subr.bf16.mxu0 %v26391_v39  ;;  %21656 = vmatprep.subr.bf16.mxu1 %v23356_v34 }
0x1194   :  { %21618 = vmatpush3.bf16.msra.mxu0 %v26392_v51  ;;  %21658 = vmatpush3.bf16.msra.mxu1 %v23366_v3 }
0x1195   :  { %21620 = vmatprep.subr.bf16.mxu0 %v26393_v6  ;;  %21692 = vmatprep.subr.bf16.mxu1 %v22974_v10  ;;  %v26934_v10 = vld [vmem:[#allocation79_spill] sm:$0xff] }
0x1197   :  { %13979 = vmatmul.mubr.f32.vlgmr.msra.gmra.mrb[98].mxu1 %v13498_v55 }
0x1198   :  { %21622 = vmatpush3.bf16.msra.mxu0 %v26394_v58  ;;  %21694 = vmatpush3.bf16.msra.mxu1 %v22982_v61  ;;  %v26935_v61 = vld [vmem:[#allocation86_spill] sm:$0xff] }
0x1199   :  { %14249 = vmatprep.mubr.f32.mxu1 %v13490_v48  ;;  %21624 = vmatprep.subr.bf16.mxu0 %v23417_v16 }
0x119a   :  { %21696 = vmatprep.subr.bf16.mxu1 %v22986_v60  ;;  %v26937_v60 = vld [vmem:[#allocation81_spill] sm:$0xff] }
0x119c   :  { %21626 = vmatpush3.bf16.msra.mxu0 %v23421_v22  ;;  %21698 = vmatpush3.bf16.msra.mxu1 %v23016_v52  ;;  %v26936_v52 = vld [vmem:[#allocation80_spill] sm:$0xff] }
0x119d   :  { %21660 = vmatprep.subr.bf16.mxu0 %v23500_v18  ;;  %21700 = vmatprep.subr.bf16.mxu1 %v23038_v43  ;;  %v26938_v43 = vld [vmem:[#allocation109_spill] sm:$0xff]  ;;  %v14312_v18 = vand.u32 4294901760, %v14284_v42 }
0x119f   :  { %13871 = vmatmul.mubr.f32.vlgmr.msra.gmra.mrb[86].mxu0 %v13497_v45  ;;  %v25370_v2 = vsub.f32 %v14284_v42, %v14312_v18  ;;  %v14321_v45 = vand.u32 4294901760, %v14287_v37 }
0x11a0   :  { %21662 = vmatpush3.bf16.msra.mxu0 %v23509_v26  ;;  %14145 = vmatprep.mubr.f32.mxu0 %v13490_v48  ;;  %v14285_v26 = vld [vmem:[#allocation8 + $0x18] sm:$0xff] }
0x11a1   :  { %21702 = vmatpush3.bf16.msra.mxu1 %v23054_v15  ;;  %21664 = vmatprep.subr.bf16.mxu0 %v26843_v17  ;;  %v26940_v15 = vld [vmem:[#allocation111_spill] sm:$0xff]  ;;  %v14315_v16 = vand.u32 4294901760, %v14285_v26 }
0x11a2   :  { %21704 = vmatprep.subr.bf16.mxu1 %v23150_v13  ;;  %v26939_v13 = vld [vmem:[#allocation110_spill] sm:$0xff] }
0x11a3   :  { %v25372_v59 = vsub.f32 %v14285_v26, %v14315_v16  ;;  %v25375_v8 = vpack.c.bf16 %v14315_v16, %v14312_v18  ;;  %v14294_v26 = vld [vmem:[#allocation8 + $0x60] sm:$0xff]  ;;  %v14295_v18 = vld [vmem:[#allocation8 + $0x68] sm:$0xff] }
0x11a4   :  { %21666 = vmatpush3.bf16.msra.mxu0 %v26934_v10  ;;  %v14342_v20 = vand.u32 4294901760, %v14294_v26  ;;  %v14345_v16 = vand.u32 4294901760, %v14295_v18 }
0x11a5   :  { %21706 = vmatpush3.bf16.msra.mxu1 %v26252_v24  ;;  %21668 = vmatprep.subr.bf16.mxu0 %v26935_v61  ;;  %v14283_v24 = vld [vmem:[#allocation8 + $0x8] sm:$0xff]  ;;  %v25386_v61 = vsub.f32 %v14287_v37, %v14321_v45 }
0x11a6   :  { %21708 = vmatprep.subr.bf16.mxu1 %v23279_v40  ;;  %v26941_v40 = vld [vmem:[#allocation112_spill] sm:$0xff] }
0x11a8   :  { %21670 = vmatpush3.bf16.msra.mxu0 %v26936_v52  ;;  %v14324_v52 = vand.u32 4294901760, %v14288_v23 }
0x11a9   :  { %21710 = vmatpush3.bf16.msra.mxu1 %v23291_v41  ;;  %21672 = vmatprep.subr.bf16.mxu0 %v26937_v60  ;;  %v26942_v41 = vld [vmem:[#allocation113_spill] sm:$0xff]  ;;  %v14327_v60 = vand.u32 4294901760, %v14289_v44 }
0x11aa   :  { %21712 = vmatprep.subr.bf16.mxu1 %v23310_v12  ;;  %v26943_v12 = vld [vmem:[#allocation114_spill] sm:$0xff] }
0x11ac   :  { %21674 = vmatpush3.bf16.msra.mxu0 %v26938_v43  ;;  %v25389_v43 = vpack.c.bf16 %v14327_v60, %v14324_v52 }
0x11ad   :  { %21714 = vmatpush3.bf16.msra.mxu1 %v23325_v21  ;;  %21676 = vmatprep.subr.bf16.mxu0 %v26939_v13  ;;  %v26944_v21 = vld [vmem:[#allocation115_spill] sm:$0xff] }
0x11ae   :  { %21716 = vmatprep.subr.bf16.mxu1 %v23342_v0  ;;  %v26946_v0 = vld [vmem:[#allocation95_spill] sm:$0xff] }
0x11af   :  { %v14290_v13 = vld [vmem:[#allocation8 + $0x40] sm:$0xff] }
0x11b0   :  { %21678 = vmatpush3.bf16.msra.mxu0 %v26940_v15  ;;  %v14291_v15 = vld [vmem:[#allocation8 + $0x48] sm:$0xff] }
0x11b1   :  { %21718 = vmatpush3.bf16.msra.mxu1 %v23354_v36  ;;  %21680 = vmatprep.subr.bf16.mxu0 %v26941_v40  ;;  %v14282_v36 = vld [vmem:[#allocation8] sm:$0xff]  ;;  %v14330_v40 = vand.u32 4294901760, %v14290_v13 }
0x11b2   :  { %21720 = vmatprep.subr.bf16.mxu1 %v23356_v34  ;;  %v22103_v34 = vmov 0.0|0.0   ;;  %v14306_v53 = vand.u32 4294901760, %v14282_v36 }
0x11b4   :  { %21682 = vmatpush3.bf16.msra.mxu0 %v26942_v41  ;;  %v25366_v4 = vsub.f32 %v14282_v36, %v14306_v53  ;;  %v14333_v41 = vand.u32 4294901760, %v14291_v15  ;;  %v14293_v36 = vld [vmem:[#allocation8 + $0x58] sm:$0xff] }
0x11b5   :  { %21722 = vmatpush3.bf16.msra.mxu1 %v23366_v3  ;;  %21684 = vmatprep.subr.bf16.mxu0 %v26943_v12  ;;  %v14309_v3 = vand.u32 4294901760, %v14283_v24 }
0x11b7   :  { %v25364_v22 = vpack.c.bf16 %v14309_v3, %v14306_v53  ;;  %v25368_v14 = vsub.f32 %v14283_v24, %v14309_v3  ;;  %v14339_v53 = vand.u32 4294901760, %v14293_v36 }
0x11b8   :  { %14251 = vmatmul.mubr.f32.vlgmr.msra.gmra.mrb[100].mxu1 %v25295_v33  ;;  %21686 = vmatpush3.bf16.msra.mxu0 %v26944_v21  ;;  %v25393_v21 = vpack.c.bf16 %v14333_v41, %v14330_v40 }
0x11b9   :  { %21688 = vmatprep.subr.bf16.mxu0 %v26945_v5 }
0x11bc   :  { %21690 = vmatpush3.bf16.msra.mxu0 %v26946_v0  ;;  %v14292_v0 = vld [vmem:[#allocation8 + $0x50] sm:$0xff] }
0x11bd   :  { %21723 = vmatprep.subr.bf16.mxu0 %v22103_v34  ;;  %v14336_v42 = vand.u32 4294901760, %v14292_v0 }
0x11bf   :  { %14147 = vmatmul.mubr.f32.vlgmr.msra.gmra.mrb[88].mxu0 %v25295_v33  ;;  %v14318_v33 = vand.u32 4294901760, %v14286_v62  ;;  %v25405_v3 = vpack.c.bf16 %v14339_v53, %v14336_v42 }
0x11c0   :  { %21725 = vmatpush3.bf16.msra.mxu0 %v25364_v22 }
0x11c1   :  { %21726 = vmatprep.subr.bf16.mxu0 %v22103_v34  ;;  %v25381_v55 = vpack.c.bf16 %v14321_v45, %v14318_v33  ;;  %v25384_v10 = vsub.f32 %v14286_v62, %v14318_v33  ;;  %v14434_v33 = vand.u32 4294901760, %v25386_v61 }
0x11c3   :  { %v14427_v37 = vand.u32 4294901760, %v25384_v10 }
0x11c4   :  { %21728 = vmatpush3.bf16.msra.mxu0 %v25375_v8 }
0x11c5   :  { %21729 = vmatprep.subr.bf16.mxu0 %v22103_v34 }
0x11c8   :  { %21731 = vmatpush3.bf16.msra.mxu0 %v25381_v55 }
0x11c9   :  { %21732 = vmatprep.subr.bf16.mxu0 %v22103_v34 }
0x11cc   :  { %21734 = vmatpush3.bf16.msra.mxu0 %v25389_v43 }
0x11cd   :  { %21735 = vmatprep.subr.bf16.mxu0 %v22103_v34 }
0x11d0   :  { %21737 = vmatpush3.bf16.msra.mxu0 %v25393_v21 }
0x11d1   :  { %21738 = vmatprep.subr.bf16.mxu0 %v22103_v34 }
0x11d4   :  { %21740 = vmatpush3.bf16.msra.mxu0 %v25405_v3 }
0x11d5   :  { %21741 = vmatprep.subr.bf16.mxu0 %v22103_v34 }
0x124a   :  { %v18196_v54 = vpop.f32.mrb[96].mxu1 }
0x124b   :  { %v18197_v39 = vpop.f32.mrb[97].mxu1 }
0x124c   :  { %v18198_v51 = vadd.f32 %v18197_v39, %v18196_v54  ;;  %v25411_v54 = vpack.c.bf16 %v14345_v16, %v14342_v20  ;;  %v14296_v39 = vld [vmem:[#allocation8 + $0x70] sm:$0xff] }
0x124e   :  { %21743 = vmatpush3.bf16.msra.mxu0 %v25411_v54 }
0x124f   :  { %21744 = vmatprep.subr.bf16.mxu0 %v22103_v34 }
0x1252   :  { %v18161_v6 = vpop.f32.mrb[84].mxu0 }
0x1253   :  { %v18162_v58 = vpop.f32.mrb[85].mxu0 }
0x1254   :  { %v18163_v17 = vadd.f32 %v18162_v58, %v18161_v6  ;;  %v14348_v6 = vand.u32 4294901760, %v14296_v39 }
0x1256   :  { %v13503_v11 = vadd.f32 %v25274_v47, %v18163_v17  ;;  %v14399_v17 = vand.u32 4294901760, %v25366_v4 }
0x1258   :  { %v13735_v29 = vadd.f32 %v18198_v51, %v13503_v11  ;;  %v14297_v51 = vld [vmem:[#allocation8 + $0x78] sm:$0xff]  ;;  %v14406_v11 = vand.u32 4294901760, %v25368_v14 }
0x1259   :  { %v14351_v58 = vand.u32 4294901760, %v14297_v51 }
0x126a   :  { %v18266_v38 = vpop.f32.mrb[98].mxu1 }
0x126b   :  { %v18267_v63 = vpop.f32.mrb[99].mxu1 }
0x126c   :  { %v18268_v46 = vadd.f32 %v18267_v63, %v18266_v38  ;;  %v14400_v38 = vsub.f32 %v25366_v4, %v14399_v17  ;;  %v14407_v63 = vsub.f32 %v25368_v14, %v14406_v11 }
0x1272   :  { %v18231_v32 = vpop.f32.mrb[86].mxu0 }
0x1273   :  { %v18232_v35 = vpop.f32.mrb[87].mxu0 }
0x1274   :  { %v18233_v25 = vadd.f32 %v18232_v35, %v18231_v32  ;;  %v25427_v32 = vsub.f32 %v14289_v44, %v14327_v60  ;;  %v25429_v35 = vsub.f32 %v14290_v13, %v14330_v40  ;;  %v14428_v44 = vsub.f32 %v25384_v10, %v14427_v37 }
0x1276   :  { %v13873_v7 = vadd.f32 %v18233_v25, %v13735_v29  ;;  %v25417_v29 = vpack.c.bf16 %v14351_v58, %v14348_v6  ;;  %v25431_v25 = vsub.f32 %v14291_v15, %v14333_v41  ;;  %v14429_v13 = vand.u32 4294901760, %v14428_v44 }
0x1277   :  { %v26023_v40 = vand.u32 4294901760, %v25427_v32 }
0x1278   :  { %v13981_v31 = vadd.f32 %v18268_v46, %v13873_v7  ;;  %v25425_v46 = vsub.f32 %v14288_v23, %v14324_v52  ;;  %v25433_v7 = vsub.f32 %v14292_v0, %v14336_v42  ;;  %21746 = vmatpush3.bf16.msra.mxu0 %v25417_v29  ;;  %v14435_v52 = vsub.f32 %v25386_v61, %v14434_v33 }
0x1279   :  { %21747 = vmatprep.subr.bf16.mxu0 %v22103_v34 }
0x127a   :  { %v14441_v15 = vand.u32 4294901760, %v25425_v46  ;;  %v14436_v41 = vand.u32 4294901760, %v14435_v52 }
0x127c   :  { %v21754_v0 = vpack.c.bf16 %v14436_v41, %v14429_v13 }
0x128b   :  { %v18336_v19 = vpop.f32.mrb[100].mxu1 }
0x128c   :  { %v18337_v28 = vpop.f32.mrb[101].mxu1 }
0x128d   :  { %v18338_v1 = vadd.f32 %v18337_v28, %v18336_v19  ;;  %v25437_v19 = vsub.f32 %v14294_v26, %v14342_v20  ;;  %v25439_v28 = vsub.f32 %v14295_v18, %v14345_v16  ;;  %v26021_v26 = vand.u32 4294901760, %v25431_v25 }
0x128f   :  { %v14463_v16 = vsub.f32 %v25431_v25, %v26021_v26 }
0x1292   :  { %v18301_v56 = vpop.f32.mrb[88].mxu0 }
0x1293   :  { %v18302_v48 = vpop.f32.mrb[89].mxu0 }
0x1294   :  { %v18303_v49 = vadd.f32 %v18302_v48, %v18301_v56  ;;  %v25444_v56 = vsub.f32 %v14297_v51, %v14351_v58  ;;  %v14401_v48 = vand.u32 4294901760, %v14400_v38  ;;  %v14464_v51 = vand.u32 4294901760, %v14463_v16 }
0x1296   :  { %v14149_v57 = vadd.f32 %v18303_v49, %v13981_v31  ;;  %v25435_v31 = vsub.f32 %v14293_v36, %v14339_v53  ;;  %v26947_v49 = vmov 0.0   ;;  %v26022_v53 = vand.u32 4294901760, %v25429_v35 }
0x1297   :  { %18473 = vmatprep.mubr.msk.f32.mxu0 %vm22104_vm3, %v26947_v49 }
0x1298   :  { %v14253_v50 = vadd.f32 %v18338_v1, %v14149_v57  ;;  %v25442_v1 = vsub.f32 %v14296_v39, %v14348_v6  ;;  %v14408_v57 = vand.u32 4294901760, %v14407_v63  ;;  %v14456_v20 = vsub.f32 %v25429_v35, %v26022_v53 }
0x1299   :  { %v26020_v6 = vand.u32 4294901760, %v25433_v7  ;;  %v26019_v58 = vand.u32 4294901760, %v25435_v31 }
0x129a   :  { %v14977_v27 = vmul.f32 -1.442695, %v14253_v50  ;;  %v14457_v39 = vand.u32 4294901760, %v14456_v20 }
0x129b   :  { %v14470_v63 = vsub.f32 %v25433_v7, %v26020_v6 }
0x129c   :  { %22009 = vpow2.f32 %v14977_v27  ;;  %v14420_v27 = vand.u32 4294901760, %v25372_v59  ;;  %v21760_v38 = vpack.c.bf16 %v14464_v51, %v14457_v39 }
0x129d   :  { %22011 = vtanh.f32 %v14253_v50  ;;  %v14413_v50 = vand.u32 4294901760, %v25370_v2 }
0x129e   :  { %v14421_v62 = vsub.f32 %v25372_v59, %v14420_v27 }
0x12a0   :  { %v14422_v23 = vand.u32 4294901760, %v14421_v62  ;;  %v26018_v62 = vand.u32 4294901760, %v25437_v19 }
0x12a2   :  { %v14484_v44 = vsub.f32 %v25437_v19, %v26018_v62 }
0x12a4   :  { %v14485_v13 = vand.u32 4294901760, %v14484_v44  ;;  %v21784_v44 = vpack.c.bf16 %v25431_v25, %v25429_v35 }
0x12a6   :  { %v22010_v47 = vpop.eup %22009 }
0x12a7   :  { %v14260_v9 = vadd.f32 1.0, %v22010_v47  ;;  %v22012_v12 = vpop.eup %22011  ;;  %v25451_v47 = vpack.c.bf16 %v14408_v57, %v14401_v48  ;;  %v14477_v48 = vsub.f32 %v25435_v31, %v26019_v58  ;;  %v14471_v57 = vand.u32 4294901760, %v14470_v63 }
0x12a8   :  { %v21772_v63 = vpack.c.bf16 %v25368_v14, %v25366_v4  ;;  %v21826_v4 = vpack.c.bf16 %v14434_v33, %v14427_v37  ;;  %v26948_v14 = vand.u32 4294901760, %v25427_v32 }
0x12a9   :  { %22013 = vrcp.f32 %v14260_v9  ;;  %v14414_v9 = vsub.f32 %v25370_v2, %v14413_v50 }
0x12ab   :  { %v14415_v45 = vand.u32 4294901760, %v14414_v9  ;;  %v14478_v9 = vand.u32 4294901760, %v14477_v48  ;;  %v21775_v48 = vpack.c.bf16 %v25372_v59, %v25370_v2  ;;  %v21829_v2 = vpack.c.bf16 %v26948_v14, %v14441_v15 }
0x12ac   :  { %v26949_v59 = vand.u32 4294901760, %v25429_v35  ;;  %v26955_v35 = vand.u32 4294901760, %v25442_v1 }
0x12ad   :  { %v25467_v60 = vpack.c.bf16 %v14422_v23, %v14415_v45  ;;  %v26017_v45 = vand.u32 4294901760, %v25439_v28  ;;  %v21763_v23 = vpack.c.bf16 %v14478_v9, %v14471_v57  ;;  %v21778_v57 = vpack.c.bf16 %v25386_v61, %v25384_v10 }
0x12ae   :  { %v21781_v9 = vpack.c.bf16 %v25427_v32, %v25425_v46  ;;  %v26951_v10 = vand.u32 4294901760, %v25433_v7  ;;  %v26952_v61 = vand.u32 4294901760, %v25435_v31 }
0x12af   :  { %v14491_v52 = vsub.f32 %v25439_v28, %v26017_v45 }
0x12b1   :  { %v14492_v41 = vand.u32 4294901760, %v14491_v52  ;;  %v21787_v52 = vpack.c.bf16 %v25435_v31, %v25433_v7 }
0x12b3   :  { %v22014_v5 = vpop.eup %22013 }
0x12b4   :  { %v25397_v24 = vsel %vm23244_vm2, %v22012_v12, %v22014_v5  ;;  %v14442_v12 = vsub.f32 %v25425_v46, %v14441_v15  ;;  %v14449_v5 = vsub.f32 %v25427_v32, %v26023_v40  ;;  %v26953_v46 = vand.u32 4294901760, %v25437_v19 }
0x12b5   :  { %14266 = vrot.lane.b32.xlu0 %v25397_v24, %s22102_s19  ;;  %14264 = vrot.lane.b32.xlu1 %v25397_v24, %s22101_s18  ;;  %v26954_v32 = vand.u32 4294901760, %v25439_v28 }
0x12b6   :  { %v14443_v36 = vand.u32 4294901760, %v14442_v12  ;;  %v14450_v42 = vand.u32 4294901760, %v14449_v5  ;;  %v26016_v12 = vand.u32 4294901760, %v25442_v1  ;;  %v26015_v5 = vand.u32 4294901760, %v25444_v56 }
0x12b8   :  { %v21757_v18 = vpack.c.bf16 %v14450_v42, %v14443_v36  ;;  %v21766_v36 = vpack.c.bf16 %v14492_v41, %v14485_v13  ;;  %v14498_v42 = vsub.f32 %v25442_v1, %v26016_v12  ;;  %v14505_v20 = vsub.f32 %v25444_v56, %v26015_v5 }
0x12b9   :  { %14268 = vrot.lane.b32.xlu1 %v25397_v24, %s22100_s17  ;;  %v21790_v13 = vpack.c.bf16 %v25439_v28, %v25437_v19  ;;  %v21793_v41 = vpack.c.bf16 %v25444_v56, %v25442_v1 }
0x12ba   :  { %v14499_v16 = vand.u32 4294901760, %v14498_v42  ;;  %v14506_v39 = vand.u32 4294901760, %v14505_v20 }
0x12bc   :  { %v21769_v51 = vpack.c.bf16 %v14506_v39, %v14499_v16 }
0x1327   :  { %v14267_v42 = vpop.permute.xlu0 %14266  ;;  %v14265_v20 = vpop.permute.xlu1 %14264 }
0x1328   :  { %v14271_v16 = vmul.f32 %v14267_v42, %v25397_v24  ;;  %v14270_v39 = vmul.f32 %v14265_v20, %v25291_v30  ;;  %v21820_v30 = vpack.c.bf16 %v14406_v11, %v14399_v17  ;;  %v21823_v24 = vpack.c.bf16 %v14420_v27, %v14413_v50 }
0x1329   :  { %v26950_v17 = vand.u32 4294901760, %v25431_v25  ;;  %v21835_v50 = vpack.c.bf16 %v26952_v61, %v26951_v10  ;;  %v21838_v27 = vpack.c.bf16 %v26954_v32, %v26953_v46  ;;  %v26956_v25 = vand.u32 4294901760, %v25444_v56 }
0x132a   :  { %v14272_v5 = vadd.f32 %v14271_v16, %v14270_v39 }
0x132b   :  { %v14269_v45 = vpop.permute.xlu1 %14268  ;;  %v21832_v11 = vpack.c.bf16 %v26950_v17, %v26949_v59 }
0x132c   :  { %22015 = vtanh.f32 %v14272_v5 }
0x1336   :  { %v22016_v12 = vpop.eup %22015 }
0x1337   :  { %v14274_v62 = vmul.f32 %v22016_v12, %v14269_v45 }
0x1339   :  { %v25527_v58 = vand.u32 4294901760, %v14274_v62 }
0x133b   :  { %v14387_v6 = vsub.f32 %v14274_v62, %v25527_v58 }
0x133d   :  { %v14388_v26 = vand.u32 4294901760, %v14387_v6 }
0x133f   :  { %v14389_v53 = vsub.f32 %v14387_v6, %v14388_v26 }
0x1341   :  { %v14390_v40 = vand.u32 4294901760, %v14389_v53 }
0x1343   :  { %18474 = vmatmul.mubr.f32.vlgmr.msra.gmra.mrb[90].mxu0 %v14390_v40 }
0x1344   :  { %21749 = vmatpush3.bf16.msra.mxu0 %v25451_v47  ;;  %18508 = vmatprep.mubr.msk.f32.mxu0 %vm22104_vm3, %v26947_v49  ;;  %v21841_v47 = vpack.c.bf16 %v26956_v25, %v26955_v35 }
0x1345   :  { %21750 = vmatprep.subr.bf16.mxu0 %v22103_v34 }
0x1348   :  { %21752 = vmatpush3.bf16.msra.mxu0 %v25467_v60 }
0x1349   :  { %21753 = vmatprep.subr.bf16.mxu0 %v22103_v34 }
0x134c   :  { %21755 = vmatpush3.bf16.msra.mxu0 %v21754_v0 }
0x134d   :  { %21756 = vmatprep.subr.bf16.mxu0 %v22103_v34 }
0x1350   :  { %21758 = vmatpush3.bf16.msra.mxu0 %v21757_v18 }
0x1351   :  { %21759 = vmatprep.subr.bf16.mxu0 %v22103_v34 }
0x1354   :  { %21761 = vmatpush3.bf16.msra.mxu0 %v21760_v38 }
0x1355   :  { %21762 = vmatprep.subr.bf16.mxu0 %v22103_v34 }
0x1358   :  { %21764 = vmatpush3.bf16.msra.mxu0 %v21763_v23 }
0x1359   :  { %21765 = vmatprep.subr.bf16.mxu0 %v22103_v34 }
0x135c   :  { %21767 = vmatpush3.bf16.msra.mxu0 %v21766_v36 }
0x135d   :  { %21768 = vmatprep.subr.bf16.mxu0 %v22103_v34 }
0x1360   :  { %21770 = vmatpush3.bf16.msra.mxu0 %v21769_v51 }
0x1361   :  { %21771 = vmatprep.subr.bf16.mxu0 %v22103_v34 }
0x1363   :  { %18509 = vmatmul.mubr.f32.vlgmr.msra.gmra.mrb[90].mxu0 %v25527_v58 }
0x1364   :  { %21773 = vmatpush3.bf16.msra.mxu0 %v21772_v63  ;;  %18543 = vmatprep.mubr.msk.f32.mxu0 %vm22104_vm3, %v26947_v49 }
0x1365   :  { %21774 = vmatprep.subr.bf16.mxu0 %v22103_v34 }
0x1368   :  { %21776 = vmatpush3.bf16.msra.mxu0 %v21775_v48 }
0x1369   :  { %21777 = vmatprep.subr.bf16.mxu0 %v22103_v34 }
0x136c   :  { %21779 = vmatpush3.bf16.msra.mxu0 %v21778_v57 }
0x136d   :  { %21780 = vmatprep.subr.bf16.mxu0 %v22103_v34 }
0x1370   :  { %21782 = vmatpush3.bf16.msra.mxu0 %v21781_v9 }
0x1371   :  { %21783 = vmatprep.subr.bf16.mxu0 %v22103_v34 }
0x1374   :  { %21785 = vmatpush3.bf16.msra.mxu0 %v21784_v44 }
0x1375   :  { %21786 = vmatprep.subr.bf16.mxu0 %v22103_v34 }
0x1378   :  { %21788 = vmatpush3.bf16.msra.mxu0 %v21787_v52 }
0x1379   :  { %21789 = vmatprep.subr.bf16.mxu0 %v22103_v34 }
0x137c   :  { %21791 = vmatpush3.bf16.msra.mxu0 %v21790_v13 }
0x137d   :  { %21792 = vmatprep.subr.bf16.mxu0 %v22103_v34 }
0x1380   :  { %21794 = vmatpush3.bf16.msra.mxu0 %v21793_v41 }
0x1381   :  { %21795 = vmatprep.subr.bf16.mxu0 %v22103_v34 }
0x1383   :  { %18544 = vmatmul.mubr.f32.vlgmr.msra.gmra.mrb[90].mxu0 %v14387_v6 }
0x1384   :  { %21797 = vmatpush3.bf16.msra.mxu0 %v25364_v22  ;;  %18578 = vmatprep.mubr.msk.f32.mxu0 %vm22104_vm3, %v26947_v49 }
0x1385   :  { %21798 = vmatprep.subr.bf16.mxu0 %v22103_v34 }
0x1388   :  { %21800 = vmatpush3.bf16.msra.mxu0 %v25375_v8 }
0x1389   :  { %21801 = vmatprep.subr.bf16.mxu0 %v22103_v34 }
0x138c   :  { %21803 = vmatpush3.bf16.msra.mxu0 %v25381_v55 }
0x138d   :  { %21804 = vmatprep.subr.bf16.mxu0 %v22103_v34 }
0x1390   :  { %21806 = vmatpush3.bf16.msra.mxu0 %v25389_v43 }
0x1391   :  { %21807 = vmatprep.subr.bf16.mxu0 %v22103_v34 }
0x1394   :  { %21809 = vmatpush3.bf16.msra.mxu0 %v25393_v21 }
0x1395   :  { %21810 = vmatprep.subr.bf16.mxu0 %v22103_v34 }
0x1398   :  { %21812 = vmatpush3.bf16.msra.mxu0 %v25405_v3 }
0x1399   :  { %21813 = vmatprep.subr.bf16.mxu0 %v22103_v34 }
0x139c   :  { %21815 = vmatpush3.bf16.msra.mxu0 %v25411_v54 }
0x139d   :  { %21816 = vmatprep.subr.bf16.mxu0 %v22103_v34 }
0x13a0   :  { %21818 = vmatpush3.bf16.msra.mxu0 %v25417_v29 }
0x13a1   :  { %21819 = vmatprep.subr.bf16.mxu0 %v22103_v34 }
0x13a3   :  { %18579 = vmatmul.mubr.f32.vlgmr.msra.gmra.mrb[90].mxu0 %v14388_v26 }
0x13a4   :  { %21821 = vmatpush3.bf16.msra.mxu0 %v21820_v30  ;;  %18613 = vmatprep.mubr.msk.f32.mxu0 %vm22104_vm3, %v26947_v49 }
0x13a5   :  { %21822 = vmatprep.subr.bf16.mxu0 %v22103_v34 }
0x13a8   :  { %21824 = vmatpush3.bf16.msra.mxu0 %v21823_v24 }
0x13a9   :  { %21825 = vmatprep.subr.bf16.mxu0 %v22103_v34 }
0x13ac   :  { %21827 = vmatpush3.bf16.msra.mxu0 %v21826_v4 }
0x13ad   :  { %21828 = vmatprep.subr.bf16.mxu0 %v22103_v34 }
0x13b0   :  { %21830 = vmatpush3.bf16.msra.mxu0 %v21829_v2 }
0x13b1   :  { %21831 = vmatprep.subr.bf16.mxu0 %v22103_v34 }
0x13b4   :  { %21833 = vmatpush3.bf16.msra.mxu0 %v21832_v11 }
0x13b5   :  { %21834 = vmatprep.subr.bf16.mxu0 %v22103_v34 }
0x13b8   :  { %21836 = vmatpush3.bf16.msra.mxu0 %v21835_v50 }
0x13b9   :  { %21837 = vmatprep.subr.bf16.mxu0 %v22103_v34 }
0x13bc   :  { %21839 = vmatpush3.bf16.msra.mxu0 %v21838_v27 }
0x13bd   :  { %21840 = vmatprep.subr.bf16.mxu0 %v22103_v34 }
0x13c0   :  { %21842 = vmatpush3.bf16.msra.mxu0 %v21841_v47 }
0x13c1   :  { %21843 = vmatprep.subr.bf16.mxu0 %v22103_v34 }
0x13c3   :  { %18614 = vmatmul.mubr.f32.vlgmr.msra.gmra.mrb[90].mxu0 %v25527_v58 }
0x13c4   :  { %21845 = vmatpush3.bf16.msra.mxu0 %v25364_v22  ;;  %18648 = vmatprep.mubr.msk.f32.mxu0 %vm22104_vm3, %v26947_v49  ;;  %v14978_v22 = vld [vmem:[%s25644_s6] ss:$0 sm:$0xff] }
0x13c5   :  { %21846 = vmatprep.subr.bf16.mxu0 %v22103_v34 }
0x13c8   :  { %21848 = vmatpush3.bf16.msra.mxu0 %v25375_v8 }
0x13c9   :  { %21849 = vmatprep.subr.bf16.mxu0 %v22103_v34 }
0x13cc   :  { %21851 = vmatpush3.bf16.msra.mxu0 %v25381_v55 }
0x13cd   :  { %21852 = vmatprep.subr.bf16.mxu0 %v22103_v34 }
0x13d0   :  { %21854 = vmatpush3.bf16.msra.mxu0 %v25389_v43 }
0x13d1   :  { %21855 = vmatprep.subr.bf16.mxu0 %v22103_v34 }
0x13d4   :  { %21857 = vmatpush3.bf16.msra.mxu0 %v25393_v21 }
0x13d5   :  { %21858 = vmatprep.subr.bf16.mxu0 %v22103_v34 }
0x13d8   :  { %21860 = vmatpush3.bf16.msra.mxu0 %v25405_v3 }
0x13d9   :  { %21861 = vmatprep.subr.bf16.mxu0 %v22103_v34 }
0x13dc   :  { %21863 = vmatpush3.bf16.msra.mxu0 %v25411_v54 }
0x13dd   :  { %21864 = vmatprep.subr.bf16.mxu0 %v22103_v34 }
0x13e0   :  { %21866 = vmatpush3.bf16.msra.mxu0 %v25417_v29 }
0x13e3   :  { %18649 = vmatmul.mubr.f32.vlgmr.msra.gmra.mrb[90].mxu0 %v25527_v58 }
0x14b6   :  { %v14942_v8 = vpop.f32.mrb[90].mxu0 }
0x14b7   :  { %v21867_v55 = vadd.f32 %v14978_v22, %v14942_v8  ;;  %v18650_v43 = vpop.f32.mrb[91].mxu0 }
0x14b9   :  { %14946 = vst [vmem:[%s25645_s7] sm:$0xff] %v21867_v55 }
0x14ba   :  { %14951 = vsyncpa [#allocation5], 1 }
0x14bb   :  { %14952 = vsyncpa [#allocation7], 1 }

</bundles_post_ra>
